<compile_context>
chip_gen: v6e
topology: v6e:2x2x1
jax: 0.10.0
libtpu: 0.0.40
codegen_flags: <defaults>
</compile_context>

<pallas_src>
import functools
import math

import jax
import jax.numpy as jnp
from jax.experimental import pallas as pl
from jax.experimental.pallas import tpu as pltpu


# ----------------------------- config / helpers -----------------------------

_VMEM = pl.BlockSpec(memory_space=pltpu.MemorySpace.VMEM)
_VMEM_LIMIT = 48 * 1024 * 1024   # > default scoped limits, < v7x 64 MiB physical
_LN_EPS = 1e-12                  # BERT LayerNorm epsilon
_ROW_TILE = 512                  # v6e-tuned row tile for the gridded linears


def _mosaic_params(dimension_semantics):
    return pltpu.CompilerParams(dimension_semantics=dimension_semantics,
                                vmem_limit_bytes=_VMEM_LIMIT)


def _recip(x):
    # approx reciprocal runs on the EUP slot (frees VALU in the softmax epilogue).
    return pl.reciprocal(x, approx=True)


def _tile(n, target):
    """Largest multiple-of-8 tile <= target dividing n (whole n if n <= target)."""
    if n <= target:
        return n
    for t in range(target, 0, -8):
        if n % t == 0:
            return t
    # TODO(synk): large n not divisible by 8 falls back to a single whole block.
    return n


def _probe_copy_kernel(x_ref, o_ref):
    o_ref[...] = x_ref[...]


def _probe_single_buffer():
    """Check (once, at import, outside any trace) that Buffered(1) lowers & runs."""
    if not hasattr(pl, "Buffered"):
        return False
    try:
        spec = pl.BlockSpec((8, 128), lambda i: (0, 0), pipeline_mode=pl.Buffered(1))
        out = pl.pallas_call(
            _probe_copy_kernel,
            out_shape=jax.ShapeDtypeStruct((8, 128), jnp.float32),
            grid=(1,),
            in_specs=[spec],
            out_specs=pl.BlockSpec((8, 128), lambda i: (0, 0)),
        )(jnp.zeros((8, 128), jnp.float32))
        jax.block_until_ready(out)
        return True
    except Exception:
        return False


_SINGLE_BUFFER_OK = _probe_single_buffer()


def _const_spec(shape):
    """Constant-index block (weights/bias/LN params); single-buffered if supported."""
    index_map = lambda *_: (0,) * len(shape)
    if _SINGLE_BUFFER_OK:
        return pl.BlockSpec(shape, index_map, pipeline_mode=pl.Buffered(1))
    return pl.BlockSpec(shape, index_map)


# ----------------------------- Pallas kernels -----------------------------

def _layernorm_kernel(x_ref, g_ref, b_ref, o_ref):
    x = x_ref[...].astype(jnp.float32)
    mu = jnp.mean(x, axis=-1, keepdims=True)
    var = jnp.mean((x - mu) ** 2, axis=-1, keepdims=True)
    y = (x - mu) * jax.lax.rsqrt(var + _LN_EPS)
    o_ref[...] = (y * g_ref[...] + b_ref[...]).astype(o_ref.dtype)


def _qkv_proj_kernel(x_ref, w_ref, b_ref, q_ref, k_ref, v_ref):
    # One fused [TM,H]@[H,3H] matmul; q/k/v written directly in [B*S, H] layout
    # (no XLA head-split transpose downstream).
    y = jnp.dot(x_ref[...], w_ref[...], preferred_element_type=jnp.float32)
    y = y + b_ref[...]
    h = q_ref.shape[-1]
    q_ref[...] = y[:, :h].astype(q_ref.dtype)
    k_ref[...] = y[:, h:2 * h].astype(k_ref.dtype)
    v_ref[...] = y[:, 2 * h:].astype(v_ref.dtype)


def _mha_kernel(q_ref, k_ref, v_ref, bias_ref, o_ref, m_sc, l_sc, acc_sc,
                *, n_heads, d_head):
    # Flash-style attention, all heads per grid step (lane-dense [TQ,H] output),
    # online softmax over the kv grid axis, f32 scratch statistics/accumulators.
    ki = pl.program_id(2)

    @pl.when(ki == 0)
    def _():
        m_sc[...] = jnp.full(m_sc.shape, -1e30, jnp.float32)
        l_sc[...] = jnp.zeros_like(l_sc)
        acc_sc[...] = jnp.zeros_like(acc_sc)

    q = q_ref[0]            # (TQ, H) bf16 — softmax scale folded into Wq/bq
    k = k_ref[0]            # (TK, H) bf16
    v = v_ref[0]            # (TK, H) bf16
    bias = bias_ref[0]      # (1, TK) f32 additive key mask, broadcast over q rows

    for h in range(n_heads):
        sl = slice(h * d_head, (h + 1) * d_head)
        s = jax.lax.dot_general(q[:, sl], k[:, sl], (((1,), (1,)), ((), ())),
                                preferred_element_type=jnp.float32)
        s = s + bias
        m_prev = m_sc[h]
        m_new = jnp.maximum(m_prev, jnp.max(s, axis=-1, keepdims=True))
        alpha = jnp.exp(m_prev - m_new)
        p = jnp.exp(s - m_new)
        l_sc[h] = alpha * l_sc[h] + jnp.sum(p, axis=-1, keepdims=True)
        acc_sc[h] = alpha * acc_sc[h] + jnp.dot(
            p.astype(v.dtype), v[:, sl], preferred_element_type=jnp.float32)
        m_sc[h] = m_new

    @pl.when(ki == pl.num_programs(2) - 1)
    def _():
        parts = [acc_sc[h] * _recip(l_sc[h]) for h in range(n_heads)]
        o_ref[0, :, :] = jnp.concatenate(parts, axis=-1).astype(o_ref.dtype)


def _proj_residual_ln_kernel(x_ref, w_ref, b_ref, r_ref, g_ref, beta_ref, o_ref):
    # Fused: LayerNorm((x @ w + b) + residual); stats in f32.
    y = jnp.dot(x_ref[...], w_ref[...], preferred_element_type=jnp.float32)
    y = y + b_ref[...] + r_ref[...].astype(jnp.float32)
    mu = jnp.mean(y, axis=-1, keepdims=True)
    var = jnp.mean((y - mu) ** 2, axis=-1, keepdims=True)
    y = (y - mu) * jax.lax.rsqrt(var + _LN_EPS)
    o_ref[...] = (y * g_ref[...] + beta_ref[...]).astype(o_ref.dtype)


def _ffn_residual_ln_kernel(x_ref, w1_ref, b1_ref, w2_ref, b2_ref,
                            g_ref, beta_ref, o_ref, acc_ref):
    # Fused FFN: per F-tile GELU(x@w1_f + b1_f) @ w2_f accumulated in f32;
    # residual (= x) + LayerNorm applied at the last F step. The [M, F]
    # intermediate never leaves VMEM.
    fi = pl.program_id(1)

    @pl.when(fi == 0)
    def _():
        acc_ref[...] = jnp.zeros_like(acc_ref)

    h = jnp.dot(x_ref[...], w1_ref[...], preferred_element_type=jnp.float32)
    # TODO(synk): HF BERT uses exact erf-GELU; tanh approximation used here.
    h = jax.nn.gelu(h + b1_ref[...], approximate=True)
    acc_ref[...] += jnp.dot(h.astype(x_ref.dtype), w2_ref[...],
                            preferred_element_type=jnp.float32)

    @pl.when(fi == pl.num_programs(1) - 1)
    def _():
        y = acc_ref[...] + b2_ref[...] + x_ref[...].astype(jnp.float32)
        mu = jnp.mean(y, axis=-1, keepdims=True)
        var = jnp.mean((y - mu) ** 2, axis=-1, keepdims=True)
        y = (y - mu) * jax.lax.rsqrt(var + _LN_EPS)
        o_ref[...] = (y * g_ref[...] + beta_ref[...]).astype(o_ref.dtype)


def _mean_pool_kernel(x_ref, o_ref, *, inv_s):
    # Gridded mean over the sequence axis (matches torch.mean(dim=1), unmasked).
    @pl.when(pl.program_id(0) == 0)
    def _():
        o_ref[...] = jnp.zeros_like(o_ref)
    o_ref[...] += jnp.sum(x_ref[...].astype(jnp.float32), axis=1) * inv_s


def _cls_ce_kernel(p_ref, w_ref, b_ref, y_ref, logits_ref, loss_ref):
    # Tiny classifier + cross-entropy (mean over batch).
    z = jnp.dot(p_ref[...], w_ref[...].astype(jnp.float32),
                preferred_element_type=jnp.float32) + b_ref[...]
    logits_ref[...] = z
    m = jnp.max(z, axis=-1, keepdims=True)
    lse = jnp.log(jnp.sum(jnp.exp(z - m), axis=-1, keepdims=True)) + m
    nll = lse - jnp.sum(y_ref[...] * z, axis=-1, keepdims=True)
    loss_ref[...] = jnp.mean(nll, axis=0, keepdims=True)


# ----------------------------- thin wrappers -----------------------------

def layernorm(x, gamma, beta, out_dtype=None):
    M, H = x.shape
    TM = _tile(M, _ROW_TILE)
    return pl.pallas_call(
        _layernorm_kernel,
        out_shape=jax.ShapeDtypeStruct((M, H), out_dtype or x.dtype),
        grid=(M // TM,),
        in_specs=[pl.BlockSpec((TM, H), lambda i: (i, 0)),
                  _const_spec((1, H)), _const_spec((1, H))],
        out_specs=pl.BlockSpec((TM, H), lambda i: (i, 0)),
        compiler_params=_mosaic_params(("parallel",)),
    )(x, gamma.reshape(1, H).astype(jnp.float32),
      beta.reshape(1, H).astype(jnp.float32))


def qkv_projection(x, w_qkv, b_qkv):
    M, H = x.shape
    TM = _tile(M, _ROW_TILE)
    out_spec = pl.BlockSpec((TM, H), lambda i: (i, 0))
    return pl.pallas_call(
        _qkv_proj_kernel,
        out_shape=tuple(jax.ShapeDtypeStruct((M, H), x.dtype) for _ in range(3)),
        grid=(M // TM,),
        in_specs=[pl.BlockSpec((TM, H), lambda i: (i, 0)),
                  _const_spec((H, 3 * H)), _const_spec((1, 3 * H))],
        out_specs=(out_spec, out_spec, out_spec),
        compiler_params=_mosaic_params(("parallel",)),
    )(x, w_qkv, b_qkv.reshape(1, 3 * H).astype(jnp.float32))


def attention(q, k, v, key_bias, n_heads, *, block_q=256, block_k=128):
    """q,k,v: [B,S,H] bf16 (scale pre-folded into Wq); key_bias: [B,1,S] f32."""
    B, S, H = q.shape
    d_head = H // n_heads
    TQ = _tile(S, block_q)
    TK = _tile(S, block_k)
    grid = (B, S // TQ, S // TK)
    return pl.pallas_call(
        functools.partial(_mha_kernel, n_heads=n_heads, d_head=d_head),
        out_shape=jax.ShapeDtypeStruct((B, S, H), q.dtype),
        grid=grid,
        in_specs=[pl.BlockSpec((1, TQ, H), lambda b, qi, ki: (b, qi, 0)),
                  pl.BlockSpec((1, TK, H), lambda b, qi, ki: (b, ki, 0)),
                  pl.BlockSpec((1, TK, H), lambda b, qi, ki: (b, ki, 0)),
                  pl.BlockSpec((1, 1, TK), lambda b, qi, ki: (b, 0, ki))],
        out_specs=pl.BlockSpec((1, TQ, H), lambda b, qi, ki: (b, qi, 0)),
        scratch_shapes=[pltpu.VMEM((n_heads, TQ, 1), jnp.float32),
                        pltpu.VMEM((n_heads, TQ, 1), jnp.float32),
                        pltpu.VMEM((n_heads, TQ, d_head), jnp.float32)],
        compiler_params=_mosaic_params(("parallel", "parallel", "arbitrary")),
    )(q, k, v, key_bias)


def proj_residual_ln(x, w, b, residual, gamma, beta, out_dtype=None):
    M, K = x.shape
    N = w.shape[1]
    TM = _tile(M, _ROW_TILE)
    return pl.pallas_call(
        _proj_residual_ln_kernel,
        out_shape=jax.ShapeDtypeStruct((M, N), out_dtype or x.dtype),
        grid=(M // TM,),
        in_specs=[pl.BlockSpec((TM, K), lambda i: (i, 0)),
                  _const_spec((K, N)),
                  _const_spec((1, N)),
                  pl.BlockSpec((TM, N), lambda i: (i, 0)),
                  _const_spec((1, N)),
                  _const_spec((1, N))],
        out_specs=pl.BlockSpec((TM, N), lambda i: (i, 0)),
        compiler_params=_mosaic_params(("parallel",)),
    )(x, w, b.reshape(1, N).astype(jnp.float32), residual,
      gamma.reshape(1, N).astype(jnp.float32),
      beta.reshape(1, N).astype(jnp.float32))


def ffn_residual_ln(x, w1, b1, w2, b2, gamma, beta, out_dtype=None):
    M, H = x.shape
    F = w1.shape[1]
    TM = _tile(M, _ROW_TILE)
    TF = _tile(F, 512)
    return pl.pallas_call(
        _ffn_residual_ln_kernel,
        out_shape=jax.ShapeDtypeStruct((M, H), out_dtype or x.dtype),
        grid=(M // TM, F // TF),
        in_specs=[pl.BlockSpec((TM, H), lambda i, f: (i, 0)),
                  pl.BlockSpec((H, TF), lambda i, f: (0, f)),
                  pl.BlockSpec((1, TF), lambda i, f: (0, f)),
                  pl.BlockSpec((TF, H), lambda i, f: (f, 0)),
                  _const_spec((1, H)),
                  _const_spec((1, H)),
                  _const_spec((1, H))],
        out_specs=pl.BlockSpec((TM, H), lambda i, f: (i, 0)),
        scratch_shapes=[pltpu.VMEM((TM, H), jnp.float32)],
        compiler_params=_mosaic_params(("parallel", "arbitrary")),
    )(x, w1, b1.reshape(1, F).astype(jnp.float32), w2,
      b2.reshape(1, H).astype(jnp.float32),
      gamma.reshape(1, H).astype(jnp.float32),
      beta.reshape(1, H).astype(jnp.float32))


def mean_pool(hidden):
    B, S, H = hidden.shape
    TS = _tile(S, 512)
    return pl.pallas_call(
        functools.partial(_mean_pool_kernel, inv_s=1.0 / S),
        out_shape=jax.ShapeDtypeStruct((B, H), jnp.float32),
        grid=(S // TS,),
        in_specs=[pl.BlockSpec((B, TS, H), lambda s: (0, s, 0))],
        out_specs=pl.BlockSpec((B, H), lambda s: (0, 0)),
        compiler_params=_mosaic_params(("arbitrary",)),
    )(hidden)


def classifier_ce(pooled, w, b, onehot):
    B = pooled.shape[0]
    L = w.shape[1]
    return pl.pallas_call(
        _cls_ce_kernel,
        out_shape=(jax.ShapeDtypeStruct((B, L), jnp.float32),
                   jax.ShapeDtypeStruct((1, 1), jnp.float32)),
        in_specs=[_VMEM] * 4,
        out_specs=(_VMEM, _VMEM),
    )(pooled, w, b.reshape(1, L).astype(jnp.float32), onehot)


# ----------------------------- model (glue) -----------------------------

def init_params(key, cfg):
    H, F, L = cfg["hidden"], cfg["ffn"], cfg["num_labels"]
    scale = 1.0 / math.sqrt(H // cfg["heads"])
    keys = iter(jax.random.split(key, 4 + 6 * cfg["layers"]))

    def dense(i, o, s=1.0):
        return (jax.random.normal(next(keys), (i, o), jnp.float32) * 0.02 * s
                ).astype(jnp.bfloat16)

    p = {
        "word_emb": jax.random.normal(next(keys), (cfg["vocab"], H), jnp.float32) * 0.02,
        "pos_emb": jax.random.normal(next(keys), (cfg["max_pos"], H), jnp.float32) * 0.02,
        "type_emb": jax.random.normal(next(keys), (cfg["type_vocab"], H), jnp.float32) * 0.02,
        "emb_ln_g": jnp.ones((H,), jnp.float32),
        "emb_ln_b": jnp.zeros((H,), jnp.float32),
        "cls_w": dense(H, L),
        "cls_b": jnp.zeros((L,), jnp.float32),
        "layers": [],
    }
    for _ in range(cfg["layers"]):
        # Softmax scale 1/sqrt(Dh) folded into the Q columns of the fused QKV
        # weight (and, for nonzero biases, into b_q) at parameter setup time.
        wq, wk, wv = dense(H, H, scale), dense(H, H), dense(H, H)
        p["layers"].append({
            "w_qkv": jnp.concatenate([wq, wk, wv], axis=1),
            "b_qkv": jnp.zeros((3 * H,), jnp.float32),
            "wo": dense(H, H), "bo": jnp.zeros((H,), jnp.float32),
            "ln1_g": jnp.ones((H,), jnp.float32), "ln1_b": jnp.zeros((H,), jnp.float32),
            "w1": dense(H, F), "b1": jnp.zeros((F,), jnp.float32),
            "w2": dense(F, H), "b2": jnp.zeros((H,), jnp.float32),
            "ln2_g": jnp.ones((H,), jnp.float32), "ln2_b": jnp.zeros((H,), jnp.float32),
        })
    return p


def encoder_for_classification(params, cfg, input_ids, attention_mask,
                               token_type_ids, label):
    B, S = input_ids.shape
    H, nH = cfg["hidden"], cfg["heads"]

    if token_type_ids is None:
        token_type_ids = jnp.zeros_like(input_ids)

    # TODO(synk): embedding gather kept in plain JAX; no clean Pallas gather here.
    emb = (params["word_emb"][input_ids]
           + params["pos_emb"][jnp.arange(S)][None, :, :]
           + params["type_emb"][token_type_ids])                     # f32 [B,S,H]
    x = layernorm(emb.reshape(B * S, H), params["emb_ln_g"], params["emb_ln_b"],
                  out_dtype=jnp.bfloat16)                            # bf16 [B*S,H]

    # Tiny additive key mask [B,1,S], broadcast over queries inside the kernel.
    key_bias = ((1.0 - attention_mask.astype(jnp.float32)) * -1e9).reshape(B, 1, S)

    for lyr in params["layers"]:
        # --- self-attention block (no head-split/merge relayouts in HBM) ---
        q, k, v = qkv_projection(x, lyr["w_qkv"], lyr["b_qkv"])      # 3x [B*S,H]
        ctx = attention(q.reshape(B, S, H), k.reshape(B, S, H),
                        v.reshape(B, S, H), key_bias, nH)            # [B,S,H]
        x = proj_residual_ln(ctx.reshape(B * S, H), lyr["wo"], lyr["bo"],
                             residual=x, gamma=lyr["ln1_g"], beta=lyr["ln1_b"])
        # --- feed-forward block (fused, no [M,F] HBM intermediate) ---
        x = ffn_residual_ln(x, lyr["w1"], lyr["b1"], lyr["w2"], lyr["b2"],
                            lyr["ln2_g"], lyr["ln2_b"])

    pooled = mean_pool(x.reshape(B, S, H))                           # f32 [B,H]
    onehot = jax.nn.one_hot(label, cfg["num_labels"], dtype=jnp.float32)
    logits, loss = classifier_ce(pooled, params["cls_w"], params["cls_b"], onehot)
    return {"logits": logits, "loss": loss[0, 0]}


# ----------------------------- main -----------------------------

if __name__ == "__main__":
    cfg = dict(vocab=100, max_pos=128, type_vocab=2, hidden=128, heads=2,
               ffn=256, layers=2, num_labels=3)
    B, S = 2, 128

    root = jax.random.PRNGKey(0)
    k_params, k_ids, k_lab = jax.random.split(root, 3)

    params = init_params(k_params, cfg)
    input_ids = jax.random.randint(k_ids, (B, S), 0, cfg["vocab"], dtype=jnp.int32)
    attention_mask = jnp.ones((B, S), dtype=jnp.int32)
    token_type_ids = jnp.zeros((B, S), dtype=jnp.int32)
    label = jax.random.randint(k_lab, (B,), 0, cfg["num_labels"], dtype=jnp.int32)

    @jax.jit
    def fwd(p, ids, mask, ttids, lab):
        return encoder_for_classification(p, cfg, ids, mask, ttids, lab)

    out = fwd(params, input_ids, attention_mask, token_type_ids, label)
    jax.block_until_ready(out)
    assert out["logits"].shape == (B, cfg["num_labels"])
    assert out["loss"].shape == ()
    assert bool(jnp.isfinite(out["loss"]))
    print("KERNEL_OK")
</pallas_src>

<mosaic_0001>
module attributes {stable_mosaic.version = 11 : i64} {
  func.func @_probe_copy_kernel(%arg0: i32, %arg1: memref<8x128xf32, #tpu.memory_space<vmem>>, %arg2: memref<8x128xf32, #tpu.memory_space<vmem>>) attributes {dimension_semantics = [#tpu.dimension_semantics<arbitrary>], iteration_bounds = array<i64: 1>, scalar_prefetch = 0 : i64, scratch_operands = 0 : i64, tpu.core_type = #tpu.core_type<tc>, window_params = [{pipeline_mode = #tpu.pipeline_mode<synchronous>, transform_indices = @transform_0, window_bounds = array<i64: 8, 128>}, {pipeline_mode = #tpu.pipeline_mode<synchronous>, transform_indices = @transform_1, window_bounds = array<i64: 8, 128>}]} {
    %c0 = arith.constant 0 : index
    %c0_0 = arith.constant 0 : index
    %0 = vector.load %arg1[%c0, %c0_0] : memref<8x128xf32, #tpu.memory_space<vmem>>, vector<8x128xf32>
    %c0_1 = arith.constant 0 : index
    %c0_2 = arith.constant 0 : index
    %1 = vector.load %arg2[%c0_1, %c0_2] : memref<8x128xf32, #tpu.memory_space<vmem>>, vector<8x128xf32>
    tpu.vector_store %arg2[%c0_1, %c0_2], %0 {strides = array<i32>} : memref<8x128xf32, #tpu.memory_space<vmem>>, vector<8x128xf32>,
    return
  }
  func.func @transform_0(%arg0: i32) -> (i32, i32) {
    %c0_i32 = arith.constant 0 : i32
    %c0_i32_0 = arith.constant 0 : i32
    %c0_i32_1 = arith.constant 0 : i32
    return %c0_i32, %c0_i32_0 : i32, i32
  }
  func.func @transform_1(%arg0: i32) -> (i32, i32) {
    %c0_i32 = arith.constant 0 : i32
    %c0_i32_0 = arith.constant 0 : i32
    %c0_i32_1 = arith.constant 0 : i32
    return %c0_i32, %c0_i32_0 : i32, i32
  }
}

module attributes {stable_mosaic.version = 11 : i64} {
  func.func @_qkv_proj_kernel(%arg0: i32, %arg1: memref<256x128xbf16, #tpu.memory_space<vmem>>, %arg2: memref<128x384xbf16, #tpu.memory_space<vmem>>, %arg3: memref<1x384xf32, #tpu.memory_space<vmem>>, %arg4: memref<256x128xbf16, #tpu.memory_space<vmem>>, %arg5: memref<256x128xbf16, #tpu.memory_space<vmem>>, %arg6: memref<256x128xbf16, #tpu.memory_space<vmem>>) attributes {dimension_semantics = [#tpu.dimension_semantics<parallel>], iteration_bounds = array<i64: 1>, scalar_prefetch = 0 : i64, scratch_operands = 0 : i64, tpu.core_type = #tpu.core_type<tc>, window_params = [{transform_indices = @transform_0, window_bounds = array<i64: 256, 128>}, {pipeline_mode = #tpu.pipeline_mode<synchronous>, transform_indices = @transform_1, window_bounds = array<i64: 128, 384>}, {pipeline_mode = #tpu.pipeline_mode<synchronous>, transform_indices = @transform_2, window_bounds = array<i64: 1, 384>}, {transform_indices = @transform_3, window_bounds = array<i64: 256, 128>}, {transform_indices = @transform_4, window_bounds = array<i64: 256, 128>}, {transform_indices = @transform_5, window_bounds = array<i64: 256, 128>}]} {
    %c0 = arith.constant 0 : index
    %c0_0 = arith.constant 0 : index
    %0 = vector.load %arg1[%c0, %c0_0] : memref<256x128xbf16, #tpu.memory_space<vmem>>, vector<256x128xbf16>
    %c0_1 = arith.constant 0 : index
    %c0_2 = arith.constant 0 : index
    %1 = vector.load %arg2[%c0_1, %c0_2] : memref<128x384xbf16, #tpu.memory_space<vmem>>, vector<128x384xbf16>
    %cst = arith.constant dense<0.000000e+00> : vector<256x384xf32>
    %2 = tpu.matmul %0, %1, %cst {dimension_numbers = #tpu.dot_dimension_numbers<[1], [0], [0], [1], [0, 0, 1, 1], [], []>} : vector<256x128xbf16>, vector<128x384xbf16>, vector<256x384xf32> -> vector<256x384xf32>
    %c0_3 = arith.constant 0 : index
    %c0_4 = arith.constant 0 : index
    %3 = vector.load %arg3[%c0_3, %c0_4] : memref<1x384xf32, #tpu.memory_space<vmem>>, vector<1x384xf32>
    %4 = vector.broadcast %3 : vector<1x384xf32> to vector<256x384xf32>
    %5 = arith.addf %2, %4 : vector<256x384xf32>
    %6 = vector.extract_strided_slice %5 {offsets = [0, 0], sizes = [256, 128], strides = [1, 1]} : vector<256x384xf32> to vector<256x128xf32>
    %7 = arith.truncf %6 : vector<256x128xf32> to vector<256x128xbf16>
    %c0_5 = arith.constant 0 : index
    %c0_6 = arith.constant 0 : index
    %8 = vector.load %arg4[%c0_5, %c0_6] : memref<256x128xbf16, #tpu.memory_space<vmem>>, vector<256x128xbf16>
    tpu.vector_store %arg4[%c0_5, %c0_6], %7 {strides = array<i32>} : memref<256x128xbf16, #tpu.memory_space<vmem>>, vector<256x128xbf16>,
    %9 = vector.extract_strided_slice %5 {offsets = [0, 128], sizes = [256, 128], strides = [1, 1]} : vector<256x384xf32> to vector<256x128xf32>
    %10 = arith.truncf %9 : vector<256x128xf32> to vector<256x128xbf16>
    %c0_7 = arith.constant 0 : index
    %c0_8 = arith.constant 0 : index
    %11 = vector.load %arg5[%c0_7, %c0_8] : memref<256x128xbf16, #tpu.memory_space<vmem>>, vector<256x128xbf16>
    tpu.vector_store %arg5[%c0_7, %c0_8], %10 {strides = array<i32>} : memref<256x128xbf16, #tpu.memory_space<vmem>>, vector<256x128xbf16>,
    %12 = vector.extract_strided_slice %5 {offsets = [0, 256], sizes = [256, 128], strides = [1, 1]} : vector<256x384xf32> to vector<256x128xf32>
    %13 = arith.truncf %12 : vector<256x128xf32> to vector<256x128xbf16>
    %c0_9 = arith.constant 0 : index
    %c0_10 = arith.constant 0 : index
    %14 = vector.load %arg6[%c0_9, %c0_10] : memref<256x128xbf16, #tpu.memory_space<vmem>>, vector<256x128xbf16>
    tpu.vector_store %arg6[%c0_9, %c0_10], %13 {strides = array<i32>} : memref<256x128xbf16, #tpu.memory_space<vmem>>, vector<256x128xbf16>,
    return
  }
  func.func @transform_0(%arg0: i32) -> (i32, i32) {
    %c0_i32 = arith.constant 0 : i32
    %c0_i32_0 = arith.constant 0 : i32
    return %arg0, %c0_i32 : i32, i32
  }
  func.func @transform_1(%arg0: i32) -> (i32, i32) {
    %c0_i32 = arith.constant 0 : i32
    %c0_i32_0 = arith.constant 0 : i32
    %c0_i32_1 = arith.constant 0 : i32
    return %c0_i32, %c0_i32_0 : i32, i32
  }
  func.func @transform_2(%arg0: i32) -> (i32, i32) {
    %c0_i32 = arith.constant 0 : i32
    %c0_i32_0 = arith.constant 0 : i32
    %c0_i32_1 = arith.constant 0 : i32
    return %c0_i32, %c0_i32_0 : i32, i32
  }
  func.func @transform_3(%arg0: i32) -> (i32, i32) {
    %c0_i32 = arith.constant 0 : i32
    %c0_i32_0 = arith.constant 0 : i32
    return %arg0, %c0_i32 : i32, i32
  }
  func.func @transform_4(%arg0: i32) -> (i32, i32) {
    %c0_i32 = arith.constant 0 : i32
    %c0_i32_0 = arith.constant 0 : i32
    return %arg0, %c0_i32 : i32, i32
  }
  func.func @transform_5(%arg0: i32) -> (i32, i32) {
    %c0_i32 = arith.constant 0 : i32
    %c0_i32_0 = arith.constant 0 : i32
    return %arg0, %c0_i32 : i32, i32
  }
}

module attributes {stable_mosaic.version = 11 : i64} {
  func.func @_layernorm_kernel(%arg0: i32, %arg1: memref<256x128xf32, #tpu.memory_space<vmem>>, %arg2: memref<1x128xf32, #tpu.memory_space<vmem>>, %arg3: memref<1x128xf32, #tpu.memory_space<vmem>>, %arg4: memref<256x128xbf16, #tpu.memory_space<vmem>>) attributes {dimension_semantics = [#tpu.dimension_semantics<parallel>], iteration_bounds = array<i64: 1>, scalar_prefetch = 0 : i64, scratch_operands = 0 : i64, tpu.core_type = #tpu.core_type<tc>, window_params = [{transform_indices = @transform_0, window_bounds = array<i64: 256, 128>}, {pipeline_mode = #tpu.pipeline_mode<synchronous>, transform_indices = @transform_1, window_bounds = array<i64: 1, 128>}, {pipeline_mode = #tpu.pipeline_mode<synchronous>, transform_indices = @transform_2, window_bounds = array<i64: 1, 128>}, {transform_indices = @transform_3, window_bounds = array<i64: 256, 128>}]} {
    %c0 = arith.constant 0 : index
    %c0_0 = arith.constant 0 : index
    %0 = vector.load %arg1[%c0, %c0_0] : memref<256x128xf32, #tpu.memory_space<vmem>>, vector<256x128xf32>
    %cst = arith.constant dense<0.000000e+00> : vector<256xf32>
    %1 = vector.multi_reduction <add>, %0, %cst [1] : vector<256x128xf32> to vector<256xf32>
    %2 = vector.shape_cast %1 : vector<256xf32> to vector<256x1xf32>
    %cst_1 = arith.constant 1.280000e+02 : f32
    %3 = vector.broadcast %cst_1 : f32 to vector<256x1xf32>
    %4 = arith.divf %2, %3 : vector<256x1xf32>
    %5 = vector.broadcast %4 : vector<256x1xf32> to vector<256x128xf32>
    %6 = arith.subf %0, %5 : vector<256x128xf32>
    %7 = arith.mulf %6, %6 : vector<256x128xf32>
    %cst_2 = arith.constant dense<0.000000e+00> : vector<256xf32>
    %8 = vector.multi_reduction <add>, %7, %cst_2 [1] : vector<256x128xf32> to vector<256xf32>
    %9 = vector.shape_cast %8 : vector<256xf32> to vector<256x1xf32>
    %cst_3 = arith.constant 1.280000e+02 : f32
    %10 = vector.broadcast %cst_3 : f32 to vector<256x1xf32>
    %11 = arith.divf %9, %10 : vector<256x1xf32>
    %12 = vector.broadcast %4 : vector<256x1xf32> to vector<256x128xf32>
    %13 = arith.subf %0, %12 : vector<256x128xf32>
    %cst_4 = arith.constant 9.99999996E-13 : f32
    %14 = vector.broadcast %cst_4 : f32 to vector<256x1xf32>
    %15 = arith.addf %11, %14 : vector<256x1xf32>
    %16 = math.rsqrt %15 : vector<256x1xf32>
    %17 = vector.broadcast %16 : vector<256x1xf32> to vector<256x128xf32>
    %18 = arith.mulf %13, %17 : vector<256x128xf32>
    %c0_5 = arith.constant 0 : index
    %c0_6 = arith.constant 0 : index
    %19 = vector.load %arg2[%c0_5, %c0_6] : memref<1x128xf32, #tpu.memory_space<vmem>>, vector<1x128xf32>
    %20 = vector.broadcast %19 : vector<1x128xf32> to vector<256x128xf32>
    %21 = arith.mulf %18, %20 : vector<256x128xf32>
    %c0_7 = arith.constant 0 : index
    %c0_8 = arith.constant 0 : index
    %22 = vector.load %arg3[%c0_7, %c0_8] : memref<1x128xf32, #tpu.memory_space<vmem>>, vector<1x128xf32>
    %23 = vector.broadcast %22 : vector<1x128xf32> to vector<256x128xf32>
    %24 = arith.addf %21, %23 : vector<256x128xf32>
    %25 = arith.truncf %24 : vector<256x128xf32> to vector<256x128xbf16>
    %c0_9 = arith.constant 0 : index
    %c0_10 = arith.constant 0 : index
    %26 = vector.load %arg4[%c0_9, %c0_10] : memref<256x128xbf16, #tpu.memory_space<vmem>>, vector<256x128xbf16>
    tpu.vector_store %arg4[%c0_9, %c0_10], %25 {strides = array<i32>} : memref<256x128xbf16, #tpu.memory_space<vmem>>, vector<256x128xbf16>,
    return
  }
  func.func @transform_0(%arg0: i32) -> (i32, i32) {
    %c0_i32 = arith.constant 0 : i32
    %c0_i32_0 = arith.constant 0 : i32
    return %arg0, %c0_i32 : i32, i32
  }
  func.func @transform_1(%arg0: i32) -> (i32, i32) {
    %c0_i32 = arith.constant 0 : i32
    %c0_i32_0 = arith.constant 0 : i32
    %c0_i32_1 = arith.constant 0 : i32
    return %c0_i32, %c0_i32_0 : i32, i32
  }
  func.func @transform_2(%arg0: i32) -> (i32, i32) {
    %c0_i32 = arith.constant 0 : i32
    %c0_i32_0 = arith.constant 0 : i32
    %c0_i32_1 = arith.constant 0 : i32
    return %c0_i32, %c0_i32_0 : i32, i32
  }
  func.func @transform_3(%arg0: i32) -> (i32, i32) {
    %c0_i32 = arith.constant 0 : i32
    %c0_i32_0 = arith.constant 0 : i32
    return %arg0, %c0_i32 : i32, i32
  }
}

module attributes {stable_mosaic.version = 11 : i64} {
  func.func @_proj_residual_ln_kernel(%arg0: i32, %arg1: memref<256x128xbf16, #tpu.memory_space<vmem>>, %arg2: memref<128x128xbf16, #tpu.memory_space<vmem>>, %arg3: memref<1x128xf32, #tpu.memory_space<vmem>>, %arg4: memref<256x128xbf16, #tpu.memory_space<vmem>>, %arg5: memref<1x128xf32, #tpu.memory_space<vmem>>, %arg6: memref<1x128xf32, #tpu.memory_space<vmem>>, %arg7: memref<256x128xbf16, #tpu.memory_space<vmem>>) attributes {dimension_semantics = [#tpu.dimension_semantics<parallel>], iteration_bounds = array<i64: 1>, scalar_prefetch = 0 : i64, scratch_operands = 0 : i64, tpu.core_type = #tpu.core_type<tc>, window_params = [{transform_indices = @transform_0, window_bounds = array<i64: 256, 128>}, {pipeline_mode = #tpu.pipeline_mode<synchronous>, transform_indices = @transform_1, window_bounds = array<i64: 128, 128>}, {pipeline_mode = #tpu.pipeline_mode<synchronous>, transform_indices = @transform_2, window_bounds = array<i64: 1, 128>}, {transform_indices = @transform_3, window_bounds = array<i64: 256, 128>}, {pipeline_mode = #tpu.pipeline_mode<synchronous>, transform_indices = @transform_4, window_bounds = array<i64: 1, 128>}, {pipeline_mode = #tpu.pipeline_mode<synchronous>, transform_indices = @transform_5, window_bounds = array<i64: 1, 128>}, {transform_indices = @transform_6, window_bounds = array<i64: 256, 128>}]} {
    %c0 = arith.constant 0 : index
    %c0_0 = arith.constant 0 : index
    %0 = vector.load %arg1[%c0, %c0_0] : memref<256x128xbf16, #tpu.memory_space<vmem>>, vector<256x128xbf16>
    %c0_1 = arith.constant 0 : index
    %c0_2 = arith.constant 0 : index
    %1 = vector.load %arg2[%c0_1, %c0_2] : memref<128x128xbf16, #tpu.memory_space<vmem>>, vector<128x128xbf16>
    %cst = arith.constant dense<0.000000e+00> : vector<256x128xf32>
    %2 = tpu.matmul %0, %1, %cst {dimension_numbers = #tpu.dot_dimension_numbers<[1], [0], [0], [1], [0, 0, 1, 1], [], []>} : vector<256x128xbf16>, vector<128x128xbf16>, vector<256x128xf32> -> vector<256x128xf32>
    %c0_3 = arith.constant 0 : index
    %c0_4 = arith.constant 0 : index
    %3 = vector.load %arg3[%c0_3, %c0_4] : memref<1x128xf32, #tpu.memory_space<vmem>>, vector<1x128xf32>
    %4 = vector.broadcast %3 : vector<1x128xf32> to vector<256x128xf32>
    %5 = arith.addf %2, %4 : vector<256x128xf32>
    %c0_5 = arith.constant 0 : index
    %c0_6 = arith.constant 0 : index
    %6 = vector.load %arg4[%c0_5, %c0_6] : memref<256x128xbf16, #tpu.memory_space<vmem>>, vector<256x128xbf16>
    %7 = arith.extf %6 : vector<256x128xbf16> to vector<256x128xf32>
    %8 = arith.addf %5, %7 : vector<256x128xf32>
    %cst_7 = arith.constant dense<0.000000e+00> : vector<256xf32>
    %9 = vector.multi_reduction <add>, %8, %cst_7 [1] : vector<256x128xf32> to vector<256xf32>
    %10 = vector.shape_cast %9 : vector<256xf32> to vector<256x1xf32>
    %cst_8 = arith.constant 1.280000e+02 : f32
    %11 = vector.broadcast %cst_8 : f32 to vector<256x1xf32>
    %12 = arith.divf %10, %11 : vector<256x1xf32>
    %13 = vector.broadcast %12 : vector<256x1xf32> to vector<256x128xf32>
    %14 = arith.subf %8, %13 : vector<256x128xf32>
    %15 = arith.mulf %14, %14 : vector<256x128xf32>
    %cst_9 = arith.constant dense<0.000000e+00> : vector<256xf32>
    %16 = vector.multi_reduction <add>, %15, %cst_9 [1] : vector<256x128xf32> to vector<256xf32>
    %17 = vector.shape_cast %16 : vector<256xf32> to vector<256x1xf32>
    %cst_10 = arith.constant 1.280000e+02 : f32
    %18 = vector.broadcast %cst_10 : f32 to vector<256x1xf32>
    %19 = arith.divf %17, %18 : vector<256x1xf32>
    %20 = vector.broadcast %12 : vector<256x1xf32> to vector<256x128xf32>
    %21 = arith.subf %8, %20 : vector<256x128xf32>
    %cst_11 = arith.constant 9.99999996E-13 : f32
    %22 = vector.broadcast %cst_11 : f32 to vector<256x1xf32>
    %23 = arith.addf %19, %22 : vector<256x1xf32>
    %24 = math.rsqrt %23 : vector<256x1xf32>
    %25 = vector.broadcast %24 : vector<256x1xf32> to vector<256x128xf32>
    %26 = arith.mulf %21, %25 : vector<256x128xf32>
    %c0_12 = arith.constant 0 : index
    %c0_13 = arith.constant 0 : index
    %27 = vector.load %arg5[%c0_12, %c0_13] : memref<1x128xf32, #tpu.memory_space<vmem>>, vector<1x128xf32>
    %28 = vector.broadcast %27 : vector<1x128xf32> to vector<256x128xf32>
    %29 = arith.mulf %26, %28 : vector<256x128xf32>
    %c0_14 = arith.constant 0 : index
    %c0_15 = arith.constant 0 : index
    %30 = vector.load %arg6[%c0_14, %c0_15] : memref<1x128xf32, #tpu.memory_space<vmem>>, vector<1x128xf32>
    %31 = vector.broadcast %30 : vector<1x128xf32> to vector<256x128xf32>
    %32 = arith.addf %29, %31 : vector<256x128xf32>
    %33 = arith.truncf %32 : vector<256x128xf32> to vector<256x128xbf16>
    %c0_16 = arith.constant 0 : index
    %c0_17 = arith.constant 0 : index
    %34 = vector.load %arg7[%c0_16, %c0_17] : memref<256x128xbf16, #tpu.memory_space<vmem>>, vector<256x128xbf16>
    tpu.vector_store %arg7[%c0_16, %c0_17], %33 {strides = array<i32>} : memref<256x128xbf16, #tpu.memory_space<vmem>>, vector<256x128xbf16>,
    return
  }
  func.func @transform_0(%arg0: i32) -> (i32, i32) {
    %c0_i32 = arith.constant 0 : i32
    %c0_i32_0 = arith.constant 0 : i32
    return %arg0, %c0_i32 : i32, i32
  }
  func.func @transform_1(%arg0: i32) -> (i32, i32) {
    %c0_i32 = arith.constant 0 : i32
    %c0_i32_0 = arith.constant 0 : i32
    %c0_i32_1 = arith.constant 0 : i32
    return %c0_i32, %c0_i32_0 : i32, i32
  }
  func.func @transform_2(%arg0: i32) -> (i32, i32) {
    %c0_i32 = arith.constant 0 : i32
    %c0_i32_0 = arith.constant 0 : i32
    %c0_i32_1 = arith.constant 0 : i32
    return %c0_i32, %c0_i32_0 : i32, i32
  }
  func.func @transform_3(%arg0: i32) -> (i32, i32) {
    %c0_i32 = arith.constant 0 : i32
    %c0_i32_0 = arith.constant 0 : i32
    return %arg0, %c0_i32 : i32, i32
  }
  func.func @transform_4(%arg0: i32) -> (i32, i32) {
    %c0_i32 = arith.constant 0 : i32
    %c0_i32_0 = arith.constant 0 : i32
    %c0_i32_1 = arith.constant 0 : i32
    return %c0_i32, %c0_i32_0 : i32, i32
  }
  func.func @transform_5(%arg0: i32) -> (i32, i32) {
    %c0_i32 = arith.constant 0 : i32
    %c0_i32_0 = arith.constant 0 : i32
    %c0_i32_1 = arith.constant 0 : i32
    return %c0_i32, %c0_i32_0 : i32, i32
  }
  func.func @transform_6(%arg0: i32) -> (i32, i32) {
    %c0_i32 = arith.constant 0 : i32
    %c0_i32_0 = arith.constant 0 : i32
    return %arg0, %c0_i32 : i32, i32
  }
}

module attributes {stable_mosaic.version = 11 : i64} {
  func.func @_mha_kernel(%arg0: i32, %arg1: i32, %arg2: i32, %arg3: memref<1x128x128xbf16, #tpu.memory_space<vmem>>, %arg4: memref<1x128x128xbf16, #tpu.memory_space<vmem>>, %arg5: memref<1x128x128xbf16, #tpu.memory_space<vmem>>, %arg6: memref<1x1x128xf32, #tpu.memory_space<vmem>>, %arg7: memref<1x128x128xbf16, #tpu.memory_space<vmem>>, %arg8: memref<2x128x1xf32, #tpu.memory_space<vmem>>, %arg9: memref<2x128x1xf32, #tpu.memory_space<vmem>>, %arg10: memref<2x128x64xf32, #tpu.memory_space<vmem>>) attributes {dimension_semantics = [#tpu.dimension_semantics<parallel>, #tpu.dimension_semantics<parallel>, #tpu.dimension_semantics<arbitrary>], iteration_bounds = array<i64: 2, 1, 1>, scalar_prefetch = 0 : i64, scratch_operands = 3 : i64, tpu.core_type = #tpu.core_type<tc>, window_params = [{transform_indices = @transform_0, window_bounds = array<i64: 1, 128, 128>}, {transform_indices = @transform_1, window_bounds = array<i64: 1, 128, 128>}, {transform_indices = @transform_2, window_bounds = array<i64: 1, 128, 128>}, {transform_indices = @transform_3, window_bounds = array<i64: 1, 1, 128>}, {transform_indices = @transform_4, window_bounds = array<i64: 1, 128, 128>}]} {
    %c0_i32 = arith.constant 0 : i32
    %0 = arith.cmpi eq, %arg2, %c0_i32 : i32
    %1 = arith.extui %0 : i1 to i32
    %c0_i32_0 = arith.constant 0 : i32
    %2 = arith.cmpi ne, %1, %c0_i32_0 : i32
    scf.if %2 {
      %cst_56 = arith.constant -1.000000e+30 : f32
      %90 = vector.broadcast %cst_56 : f32 to vector<2x128x1xf32>
      %c0_57 = arith.constant 0 : index
      %c0_58 = arith.constant 0 : index
      %c0_59 = arith.constant 0 : index
      %91 = vector.load %arg8[%c0_57, %c0_58, %c0_59] : memref<2x128x1xf32, #tpu.memory_space<vmem>>, vector<2x128x1xf32>
      tpu.vector_store %arg8[%c0_57, %c0_58, %c0_59], %90 {strides = array<i32>} : memref<2x128x1xf32, #tpu.memory_space<vmem>>, vector<2x128x1xf32>,
      %cst_60 = arith.constant 0.000000e+00 : f32
      %92 = vector.broadcast %cst_60 : f32 to vector<2x128x1xf32>
      %c0_61 = arith.constant 0 : index
      %c0_62 = arith.constant 0 : index
      %c0_63 = arith.constant 0 : index
      %93 = vector.load %arg9[%c0_61, %c0_62, %c0_63] : memref<2x128x1xf32, #tpu.memory_space<vmem>>, vector<2x128x1xf32>
      tpu.vector_store %arg9[%c0_61, %c0_62, %c0_63], %92 {strides = array<i32>} : memref<2x128x1xf32, #tpu.memory_space<vmem>>, vector<2x128x1xf32>,
      %cst_64 = arith.constant 0.000000e+00 : f32
      %94 = vector.broadcast %cst_64 : f32 to vector<2x128x64xf32>
      %c0_65 = arith.constant 0 : index
      %c0_66 = arith.constant 0 : index
      %c0_67 = arith.constant 0 : index
      %95 = vector.load %arg10[%c0_65, %c0_66, %c0_67] : memref<2x128x64xf32, #tpu.memory_space<vmem>>, vector<2x128x64xf32>
      tpu.vector_store %arg10[%c0_65, %c0_66, %c0_67], %94 {strides = array<i32>} : memref<2x128x64xf32, #tpu.memory_space<vmem>>, vector<2x128x64xf32>,
    } else {
    }
    %c0 = arith.constant 0 : index
    %c0_1 = arith.constant 0 : index
    %c0_2 = arith.constant 0 : index
    %3 = vector.load %arg3[%c0, %c0_1, %c0_2] : memref<1x128x128xbf16, #tpu.memory_space<vmem>>, vector<1x128x128xbf16>
    %4 = vector.shape_cast %3 : vector<1x128x128xbf16> to vector<128x128xbf16>
    %c0_3 = arith.constant 0 : index
    %c0_4 = arith.constant 0 : index
    %c0_5 = arith.constant 0 : index
    %5 = vector.load %arg4[%c0_3, %c0_4, %c0_5] : memref<1x128x128xbf16, #tpu.memory_space<vmem>>, vector<1x128x128xbf16>
    %6 = vector.shape_cast %5 : vector<1x128x128xbf16> to vector<128x128xbf16>
    %c0_6 = arith.constant 0 : index
    %c0_7 = arith.constant 0 : index
    %c0_8 = arith.constant 0 : index
    %7 = vector.load %arg5[%c0_6, %c0_7, %c0_8] : memref<1x128x128xbf16, #tpu.memory_space<vmem>>, vector<1x128x128xbf16>
    %8 = vector.shape_cast %7 : vector<1x128x128xbf16> to vector<128x128xbf16>
    %c0_9 = arith.constant 0 : index
    %c0_10 = arith.constant 0 : index
    %c0_11 = arith.constant 0 : index
    %9 = vector.load %arg6[%c0_9, %c0_10, %c0_11] : memref<1x1x128xf32, #tpu.memory_space<vmem>>, vector<1x1x128xf32>
    %10 = vector.shape_cast %9 : vector<1x1x128xf32> to vector<1x128xf32>
    %11 = vector.extract_strided_slice %4 {offsets = [0, 0], sizes = [128, 64], strides = [1, 1]} : vector<128x128xbf16> to vector<128x64xbf16>
    %12 = vector.extract_strided_slice %6 {offsets = [0, 0], sizes = [128, 64], strides = [1, 1]} : vector<128x128xbf16> to vector<128x64xbf16>
    %cst = arith.constant dense<0.000000e+00> : vector<128x128xf32>
    %13 = tpu.matmul %11, %12, %cst {dimension_numbers = #tpu.dot_dimension_numbers<[1], [1], [0], [0], [0, 0, 1, 0], [], []>} : vector<128x64xbf16>, vector<128x64xbf16>, vector<128x128xf32> -> vector<128x128xf32>
    %14 = vector.broadcast %10 : vector<1x128xf32> to vector<128x128xf32>
    %15 = arith.addf %13, %14 : vector<128x128xf32>
    %c0_12 = arith.constant 0 : index
    %c0_13 = arith.constant 0 : index
    %c0_14 = arith.constant 0 : index
    %16 = vector.load %arg8[%c0_12, %c0_13, %c0_14] : memref<2x128x1xf32, #tpu.memory_space<vmem>>, vector<1x128x1xf32>
    %17 = vector.shape_cast %16 : vector<1x128x1xf32> to vector<128x1xf32>
    %cst_15 = arith.constant dense<0xFF800000> : vector<128xf32>
    %18 = vector.multi_reduction <maximumf>, %15, %cst_15 [1] : vector<128x128xf32> to vector<128xf32>
    %19 = vector.shape_cast %18 : vector<128xf32> to vector<128x1xf32>
    %20 = arith.maximumf %17, %19 : vector<128x1xf32>
    %21 = arith.subf %17, %20 : vector<128x1xf32>
    %22 = math.exp %21 : vector<128x1xf32>
    %23 = vector.broadcast %20 : vector<128x1xf32> to vector<128x128xf32>
    %24 = arith.subf %15, %23 : vector<128x128xf32>
    %25 = math.exp %24 : vector<128x128xf32>
    %c0_16 = arith.constant 0 : index
    %c0_17 = arith.constant 0 : index
    %c0_18 = arith.constant 0 : index
    %26 = vector.load %arg9[%c0_16, %c0_17, %c0_18] : memref<2x128x1xf32, #tpu.memory_space<vmem>>, vector<1x128x1xf32>
    %27 = vector.shape_cast %26 : vector<1x128x1xf32> to vector<128x1xf32>
    %28 = arith.mulf %22, %27 : vector<128x1xf32>
    %cst_19 = arith.constant dense<0.000000e+00> : vector<128xf32>
    %29 = vector.multi_reduction <add>, %25, %cst_19 [1] : vector<128x128xf32> to vector<128xf32>
    %30 = vector.shape_cast %29 : vector<128xf32> to vector<128x1xf32>
    %31 = arith.addf %28, %30 : vector<128x1xf32>
    %c0_20 = arith.constant 0 : index
    %c0_21 = arith.constant 0 : index
    %c0_22 = arith.constant 0 : index
    %32 = vector.load %arg9[%c0_20, %c0_21, %c0_22] : memref<2x128x1xf32, #tpu.memory_space<vmem>>, vector<1x128x1xf32>
    %33 = vector.shape_cast %32 : vector<1x128x1xf32> to vector<128x1xf32>
    %34 = vector.shape_cast %31 : vector<128x1xf32> to vector<1x128x1xf32>
    tpu.vector_store %arg9[%c0_20, %c0_21, %c0_22], %34 {strides = array<i32>} : memref<2x128x1xf32, #tpu.memory_space<vmem>>, vector<1x128x1xf32>,
    %c0_23 = arith.constant 0 : index
    %c0_24 = arith.constant 0 : index
    %c0_25 = arith.constant 0 : index
    %35 = vector.load %arg10[%c0_23, %c0_24, %c0_25] : memref<2x128x64xf32, #tpu.memory_space<vmem>>, vector<1x128x64xf32>
    %36 = vector.shape_cast %35 : vector<1x128x64xf32> to vector<128x64xf32>
    %37 = vector.broadcast %22 : vector<128x1xf32> to vector<128x64xf32>
    %38 = arith.mulf %37, %36 : vector<128x64xf32>
    %39 = arith.truncf %25 : vector<128x128xf32> to vector<128x128xbf16>
    %40 = vector.extract_strided_slice %8 {offsets = [0, 0], sizes = [128, 64], strides = [1, 1]} : vector<128x128xbf16> to vector<128x64xbf16>
    %cst_26 = arith.constant dense<0.000000e+00> : vector<128x64xf32>
    %41 = tpu.matmul %39, %40, %cst_26 {dimension_numbers = #tpu.dot_dimension_numbers<[1], [0], [0], [1], [0, 0, 1, 1], [], []>} : vector<128x128xbf16>, vector<128x64xbf16>, vector<128x64xf32> -> vector<128x64xf32>
    %42 = arith.addf %38, %41 : vector<128x64xf32>
    %c0_27 = arith.constant 0 : index
    %c0_28 = arith.constant 0 : index
    %c0_29 = arith.constant 0 : index
    %43 = vector.load %arg10[%c0_27, %c0_28, %c0_29] : memref<2x128x64xf32, #tpu.memory_space<vmem>>, vector<1x128x64xf32>
    %44 = vector.shape_cast %43 : vector<1x128x64xf32> to vector<128x64xf32>
    %45 = vector.shape_cast %42 : vector<128x64xf32> to vector<1x128x64xf32>
    tpu.vector_store %arg10[%c0_27, %c0_28, %c0_29], %45 {strides = array<i32>} : memref<2x128x64xf32, #tpu.memory_space<vmem>>, vector<1x128x64xf32>,
    %c0_30 = arith.constant 0 : index
    %c0_31 = arith.constant 0 : index
    %c0_32 = arith.constant 0 : index
    %46 = vector.load %arg8[%c0_30, %c0_31, %c0_32] : memref<2x128x1xf32, #tpu.memory_space<vmem>>, vector<1x128x1xf32>
    %47 = vector.shape_cast %46 : vector<1x128x1xf32> to vector<128x1xf32>
    %48 = vector.shape_cast %20 : vector<128x1xf32> to vector<1x128x1xf32>
    tpu.vector_store %arg8[%c0_30, %c0_31, %c0_32], %48 {strides = array<i32>} : memref<2x128x1xf32, #tpu.memory_space<vmem>>, vector<1x128x1xf32>,
    %49 = vector.extract_strided_slice %4 {offsets = [0, 64], sizes = [128, 64], strides = [1, 1]} : vector<128x128xbf16> to vector<128x64xbf16>
    %50 = vector.extract_strided_slice %6 {offsets = [0, 64], sizes = [128, 64], strides = [1, 1]} : vector<128x128xbf16> to vector<128x64xbf16>
    %cst_33 = arith.constant dense<0.000000e+00> : vector<128x128xf32>
    %51 = tpu.matmul %49, %50, %cst_33 {dimension_numbers = #tpu.dot_dimension_numbers<[1], [1], [0], [0], [0, 0, 1, 0], [], []>} : vector<128x64xbf16>, vector<128x64xbf16>, vector<128x128xf32> -> vector<128x128xf32>
    %52 = vector.broadcast %10 : vector<1x128xf32> to vector<128x128xf32>
    %53 = arith.addf %51, %52 : vector<128x128xf32>
    %c1 = arith.constant 1 : index
    %c0_34 = arith.constant 0 : index
    %c0_35 = arith.constant 0 : index
    %54 = vector.load %arg8[%c1, %c0_34, %c0_35] : memref<2x128x1xf32, #tpu.memory_space<vmem>>, vector<1x128x1xf32>
    %55 = vector.shape_cast %54 : vector<1x128x1xf32> to vector<128x1xf32>
    %cst_36 = arith.constant dense<0xFF800000> : vector<128xf32>
    %56 = vector.multi_reduction <maximumf>, %53, %cst_36 [1] : vector<128x128xf32> to vector<128xf32>
    %57 = vector.shape_cast %56 : vector<128xf32> to vector<128x1xf32>
    %58 = arith.maximumf %55, %57 : vector<128x1xf32>
    %59 = arith.subf %55, %58 : vector<128x1xf32>
    %60 = math.exp %59 : vector<128x1xf32>
    %61 = vector.broadcast %58 : vector<128x1xf32> to vector<128x128xf32>
    %62 = arith.subf %53, %61 : vector<128x128xf32>
    %63 = math.exp %62 : vector<128x128xf32>
    %c1_37 = arith.constant 1 : index
    %c0_38 = arith.constant 0 : index
    %c0_39 = arith.constant 0 : index
    %64 = vector.load %arg9[%c1_37, %c0_38, %c0_39] : memref<2x128x1xf32, #tpu.memory_space<vmem>>, vector<1x128x1xf32>
    %65 = vector.shape_cast %64 : vector<1x128x1xf32> to vector<128x1xf32>
    %66 = arith.mulf %60, %65 : vector<128x1xf32>
    %cst_40 = arith.constant dense<0.000000e+00> : vector<128xf32>
    %67 = vector.multi_reduction <add>, %63, %cst_40 [1] : vector<128x128xf32> to vector<128xf32>
    %68 = vector.shape_cast %67 : vector<128xf32> to vector<128x1xf32>
    %69 = arith.addf %66, %68 : vector<128x1xf32>
    %c1_41 = arith.constant 1 : index
    %c0_42 = arith.constant 0 : index
    %c0_43 = arith.constant 0 : index
    %70 = vector.load %arg9[%c1_41, %c0_42, %c0_43] : memref<2x128x1xf32, #tpu.memory_space<vmem>>, vector<1x128x1xf32>
    %71 = vector.shape_cast %70 : vector<1x128x1xf32> to vector<128x1xf32>
    %72 = vector.shape_cast %69 : vector<128x1xf32> to vector<1x128x1xf32>
    tpu.vector_store %arg9[%c1_41, %c0_42, %c0_43], %72 {strides = array<i32>} : memref<2x128x1xf32, #tpu.memory_space<vmem>>, vector<1x128x1xf32>,
    %c1_44 = arith.constant 1 : index
    %c0_45 = arith.constant 0 : index
    %c0_46 = arith.constant 0 : index
    %73 = vector.load %arg10[%c1_44, %c0_45, %c0_46] : memref<2x128x64xf32, #tpu.memory_space<vmem>>, vector<1x128x64xf32>
    %74 = vector.shape_cast %73 : vector<1x128x64xf32> to vector<128x64xf32>
    %75 = vector.broadcast %60 : vector<128x1xf32> to vector<128x64xf32>
    %76 = arith.mulf %75, %74 : vector<128x64xf32>
    %77 = arith.truncf %63 : vector<128x128xf32> to vector<128x128xbf16>
    %78 = vector.extract_strided_slice %8 {offsets = [0, 64], sizes = [128, 64], strides = [1, 1]} : vector<128x128xbf16> to vector<128x64xbf16>
    %cst_47 = arith.constant dense<0.000000e+00> : vector<128x64xf32>
    %79 = tpu.matmul %77, %78, %cst_47 {dimension_numbers = #tpu.dot_dimension_numbers<[1], [0], [0], [1], [0, 0, 1, 1], [], []>} : vector<128x128xbf16>, vector<128x64xbf16>, vector<128x64xf32> -> vector<128x64xf32>
    %80 = arith.addf %76, %79 : vector<128x64xf32>
    %c1_48 = arith.constant 1 : index
    %c0_49 = arith.constant 0 : index
    %c0_50 = arith.constant 0 : index
    %81 = vector.load %arg10[%c1_48, %c0_49, %c0_50] : memref<2x128x64xf32, #tpu.memory_space<vmem>>, vector<1x128x64xf32>
    %82 = vector.shape_cast %81 : vector<1x128x64xf32> to vector<128x64xf32>
    %83 = vector.shape_cast %80 : vector<128x64xf32> to vector<1x128x64xf32>
    tpu.vector_store %arg10[%c1_48, %c0_49, %c0_50], %83 {strides = array<i32>} : memref<2x128x64xf32, #tpu.memory_space<vmem>>, vector<1x128x64xf32>,
    %c1_51 = arith.constant 1 : index
    %c0_52 = arith.constant 0 : index
    %c0_53 = arith.constant 0 : index
    %84 = vector.load %arg8[%c1_51, %c0_52, %c0_53] : memref<2x128x1xf32, #tpu.memory_space<vmem>>, vector<1x128x1xf32>
    %85 = vector.shape_cast %84 : vector<1x128x1xf32> to vector<128x1xf32>
    %86 = vector.shape_cast %58 : vector<128x1xf32> to vector<1x128x1xf32>
    tpu.vector_store %arg8[%c1_51, %c0_52, %c0_53], %86 {strides = array<i32>} : memref<2x128x1xf32, #tpu.memory_space<vmem>>, vector<1x128x1xf32>,
    %c0_i32_54 = arith.constant 0 : i32
    %87 = arith.cmpi eq, %arg2, %c0_i32_54 : i32
    %88 = arith.extui %87 : i1 to i32
    %c0_i32_55 = arith.constant 0 : i32
    %89 = arith.cmpi ne, %88, %c0_i32_55 : i32
    scf.if %89 {
      %c0_56 = arith.constant 0 : index
      %c0_57 = arith.constant 0 : index
      %c0_58 = arith.constant 0 : index
      %90 = vector.load %arg10[%c0_56, %c0_57, %c0_58] : memref<2x128x64xf32, #tpu.memory_space<vmem>>, vector<1x128x64xf32>
      %91 = vector.shape_cast %90 : vector<1x128x64xf32> to vector<128x64xf32>
      %c0_59 = arith.constant 0 : index
      %c0_60 = arith.constant 0 : index
      %c0_61 = arith.constant 0 : index
      %92 = vector.load %arg9[%c0_59, %c0_60, %c0_61] : memref<2x128x1xf32, #tpu.memory_space<vmem>>, vector<1x128x1xf32>
      %93 = vector.shape_cast %92 : vector<1x128x1xf32> to vector<128x1xf32>
      %94 = tpu.reciprocal %93 {approx = true} : vector<128x1xf32> -> vector<128x1xf32>
      %95 = vector.broadcast %94 : vector<128x1xf32> to vector<128x64xf32>
      %96 = arith.mulf %91, %95 : vector<128x64xf32>
      %c1_62 = arith.constant 1 : index
      %c0_63 = arith.constant 0 : index
      %c0_64 = arith.constant 0 : index
      %97 = vector.load %arg10[%c1_62, %c0_63, %c0_64] : memref<2x128x64xf32, #tpu.memory_space<vmem>>, vector<1x128x64xf32>
      %98 = vector.shape_cast %97 : vector<1x128x64xf32> to vector<128x64xf32>
      %c1_65 = arith.constant 1 : index
      %c0_66 = arith.constant 0 : index
      %c0_67 = arith.constant 0 : index
      %99 = vector.load %arg9[%c1_65, %c0_66, %c0_67] : memref<2x128x1xf32, #tpu.memory_space<vmem>>, vector<1x128x1xf32>
      %100 = vector.shape_cast %99 : vector<1x128x1xf32> to vector<128x1xf32>
      %101 = tpu.reciprocal %100 {approx = true} : vector<128x1xf32> -> vector<128x1xf32>
      %102 = vector.broadcast %101 : vector<128x1xf32> to vector<128x64xf32>
      %103 = arith.mulf %98, %102 : vector<128x64xf32>
      %104 = tpu.concatenate %96, %103 in 1 : vector<128x64xf32>, vector<128x64xf32> -> vector<128x128xf32>
      %105 = arith.truncf %104 : vector<128x128xf32> to vector<128x128xbf16>
      %c0_68 = arith.constant 0 : index
      %c0_69 = arith.constant 0 : index
      %c0_70 = arith.constant 0 : index
      %106 = vector.load %arg7[%c0_68, %c0_69, %c0_70] : memref<1x128x128xbf16, #tpu.memory_space<vmem>>, vector<1x128x128xbf16>
      %107 = vector.shape_cast %106 : vector<1x128x128xbf16> to vector<128x128xbf16>
      %108 = vector.shape_cast %105 : vector<128x128xbf16> to vector<1x128x128xbf16>
      tpu.vector_store %arg7[%c0_68, %c0_69, %c0_70], %108 {strides = array<i32>} : memref<1x128x128xbf16, #tpu.memory_space<vmem>>, vector<1x128x128xbf16>,
    } else {
    }
    return
  }
  func.func @transform_0(%arg0: i32, %arg1: i32, %arg2: i32) -> (i32, i32, i32) {
    %c0_i32 = arith.constant 0 : i32
    %c0_i32_0 = arith.constant 0 : i32
    return %arg0, %arg1, %c0_i32 : i32, i32, i32
  }
  func.func @transform_1(%arg0: i32, %arg1: i32, %arg2: i32) -> (i32, i32, i32) {
    %c0_i32 = arith.constant 0 : i32
    %c0_i32_0 = arith.constant 0 : i32
    return %arg0, %arg2, %c0_i32 : i32, i32, i32
  }
  func.func @transform_2(%arg0: i32, %arg1: i32, %arg2: i32) -> (i32, i32, i32) {
    %c0_i32 = arith.constant 0 : i32
    %c0_i32_0 = arith.constant 0 : i32
    return %arg0, %arg2, %c0_i32 : i32, i32, i32
  }
  func.func @transform_3(%arg0: i32, %arg1: i32, %arg2: i32) -> (i32, i32, i32) {
    %c0_i32 = arith.constant 0 : i32
    %c0_i32_0 = arith.constant 0 : i32
    return %arg0, %c0_i32, %arg2 : i32, i32, i32
  }
  func.func @transform_4(%arg0: i32, %arg1: i32, %arg2: i32) -> (i32, i32, i32) {
    %c0_i32 = arith.constant 0 : i32
    %c0_i32_0 = arith.constant 0 : i32
    return %arg0, %arg1, %c0_i32 : i32, i32, i32
  }
}

module attributes {stable_mosaic.version = 11 : i64} {
  func.func @_ffn_residual_ln_kernel(%arg0: i32, %arg1: i32, %arg2: memref<256x128xbf16, #tpu.memory_space<vmem>>, %arg3: memref<128x256xbf16, #tpu.memory_space<vmem>>, %arg4: memref<1x256xf32, #tpu.memory_space<vmem>>, %arg5: memref<256x128xbf16, #tpu.memory_space<vmem>>, %arg6: memref<1x128xf32, #tpu.memory_space<vmem>>, %arg7: memref<1x128xf32, #tpu.memory_space<vmem>>, %arg8: memref<1x128xf32, #tpu.memory_space<vmem>>, %arg9: memref<256x128xbf16, #tpu.memory_space<vmem>>, %arg10: memref<256x128xf32, #tpu.memory_space<vmem>>) attributes {dimension_semantics = [#tpu.dimension_semantics<parallel>, #tpu.dimension_semantics<arbitrary>], iteration_bounds = array<i64: 1, 1>, scalar_prefetch = 0 : i64, scratch_operands = 1 : i64, tpu.core_type = #tpu.core_type<tc>, window_params = [{transform_indices = @transform_0, window_bounds = array<i64: 256, 128>}, {transform_indices = @transform_1, window_bounds = array<i64: 128, 256>}, {transform_indices = @transform_2, window_bounds = array<i64: 1, 256>}, {transform_indices = @transform_3, window_bounds = array<i64: 256, 128>}, {pipeline_mode = #tpu.pipeline_mode<synchronous>, transform_indices = @transform_4, window_bounds = array<i64: 1, 128>}, {pipeline_mode = #tpu.pipeline_mode<synchronous>, transform_indices = @transform_5, window_bounds = array<i64: 1, 128>}, {pipeline_mode = #tpu.pipeline_mode<synchronous>, transform_indices = @transform_6, window_bounds = array<i64: 1, 128>}, {transform_indices = @transform_7, window_bounds = array<i64: 256, 128>}]} {
    %c0_i32 = arith.constant 0 : i32
    %0 = arith.cmpi eq, %arg1, %c0_i32 : i32
    %1 = arith.extui %0 : i1 to i32
    %c0_i32_0 = arith.constant 0 : i32
    %2 = arith.cmpi ne, %1, %c0_i32_0 : i32
    scf.if %2 {
      %cst_19 = arith.constant 0.000000e+00 : f32
      %31 = vector.broadcast %cst_19 : f32 to vector<256x128xf32>
      %c0_20 = arith.constant 0 : index
      %c0_21 = arith.constant 0 : index
      %32 = vector.load %arg10[%c0_20, %c0_21] : memref<256x128xf32, #tpu.memory_space<vmem>>, vector<256x128xf32>
      tpu.vector_store %arg10[%c0_20, %c0_21], %31 {strides = array<i32>} : memref<256x128xf32, #tpu.memory_space<vmem>>, vector<256x128xf32>,
    } else {
    }
    %c0 = arith.constant 0 : index
    %c0_1 = arith.constant 0 : index
    %3 = vector.load %arg2[%c0, %c0_1] : memref<256x128xbf16, #tpu.memory_space<vmem>>, vector<256x128xbf16>
    %c0_2 = arith.constant 0 : index
    %c0_3 = arith.constant 0 : index
    %4 = vector.load %arg3[%c0_2, %c0_3] : memref<128x256xbf16, #tpu.memory_space<vmem>>, vector<128x256xbf16>
    %cst = arith.constant dense<0.000000e+00> : vector<256x256xf32>
    %5 = tpu.matmul %3, %4, %cst {dimension_numbers = #tpu.dot_dimension_numbers<[1], [0], [0], [1], [0, 0, 1, 1], [], []>} : vector<256x128xbf16>, vector<128x256xbf16>, vector<256x256xf32> -> vector<256x256xf32>
    %c0_4 = arith.constant 0 : index
    %c0_5 = arith.constant 0 : index
    %6 = vector.load %arg4[%c0_4, %c0_5] : memref<1x256xf32, #tpu.memory_space<vmem>>, vector<1x256xf32>
    %7 = vector.broadcast %6 : vector<1x256xf32> to vector<256x256xf32>
    %8 = arith.addf %5, %7 : vector<256x256xf32>
    %9 = arith.mulf %8, %8 : vector<256x256xf32>
    %10 = arith.mulf %8, %9 : vector<256x256xf32>
    %cst_6 = arith.constant 4.471500e-02 : f32
    %11 = vector.broadcast %cst_6 : f32 to vector<256x256xf32>
    %12 = arith.mulf %11, %10 : vector<256x256xf32>
    %13 = arith.addf %8, %12 : vector<256x256xf32>
    %cst_7 = arith.constant 0.797884583 : f32
    %14 = vector.broadcast %cst_7 : f32 to vector<256x256xf32>
    %15 = arith.mulf %14, %13 : vector<256x256xf32>
    %16 = math.tanh %15 : vector<256x256xf32>
    %cst_8 = arith.constant 1.000000e+00 : f32
    %17 = vector.broadcast %cst_8 : f32 to vector<256x256xf32>
    %18 = arith.addf %17, %16 : vector<256x256xf32>
    %cst_9 = arith.constant 5.000000e-01 : f32
    %19 = vector.broadcast %cst_9 : f32 to vector<256x256xf32>
    %20 = arith.mulf %19, %18 : vector<256x256xf32>
    %21 = arith.mulf %8, %20 : vector<256x256xf32>
    %c0_10 = arith.constant 0 : index
    %c0_11 = arith.constant 0 : index
    %22 = vector.load %arg10[%c0_10, %c0_11] : memref<256x128xf32, #tpu.memory_space<vmem>>, vector<256x128xf32>
    %23 = arith.truncf %21 : vector<256x256xf32> to vector<256x256xbf16>
    %c0_12 = arith.constant 0 : index
    %c0_13 = arith.constant 0 : index
    %24 = vector.load %arg5[%c0_12, %c0_13] : memref<256x128xbf16, #tpu.memory_space<vmem>>, vector<256x128xbf16>
    %cst_14 = arith.constant dense<0.000000e+00> : vector<256x128xf32>
    %25 = tpu.matmul %23, %24, %cst_14 {dimension_numbers = #tpu.dot_dimension_numbers<[1], [0], [0], [1], [0, 0, 1, 1], [], []>} : vector<256x256xbf16>, vector<256x128xbf16>, vector<256x128xf32> -> vector<256x128xf32>
    %26 = arith.addf %22, %25 : vector<256x128xf32>
    %c0_15 = arith.constant 0 : index
    %c0_16 = arith.constant 0 : index
    %27 = vector.load %arg10[%c0_15, %c0_16] : memref<256x128xf32, #tpu.memory_space<vmem>>, vector<256x128xf32>
    tpu.vector_store %arg10[%c0_15, %c0_16], %26 {strides = array<i32>} : memref<256x128xf32, #tpu.memory_space<vmem>>, vector<256x128xf32>,
    %c0_i32_17 = arith.constant 0 : i32
    %28 = arith.cmpi eq, %arg1, %c0_i32_17 : i32
    %29 = arith.extui %28 : i1 to i32
    %c0_i32_18 = arith.constant 0 : i32
    %30 = arith.cmpi ne, %29, %c0_i32_18 : i32
    scf.if %30 {
      %c0_19 = arith.constant 0 : index
      %c0_20 = arith.constant 0 : index
      %31 = vector.load %arg10[%c0_19, %c0_20] : memref<256x128xf32, #tpu.memory_space<vmem>>, vector<256x128xf32>
      %c0_21 = arith.constant 0 : index
      %c0_22 = arith.constant 0 : index
      %32 = vector.load %arg6[%c0_21, %c0_22] : memref<1x128xf32, #tpu.memory_space<vmem>>, vector<1x128xf32>
      %33 = vector.broadcast %32 : vector<1x128xf32> to vector<256x128xf32>
      %34 = arith.addf %31, %33 : vector<256x128xf32>
      %c0_23 = arith.constant 0 : index
      %c0_24 = arith.constant 0 : index
      %35 = vector.load %arg2[%c0_23, %c0_24] : memref<256x128xbf16, #tpu.memory_space<vmem>>, vector<256x128xbf16>
      %36 = arith.extf %35 : vector<256x128xbf16> to vector<256x128xf32>
      %37 = arith.addf %34, %36 : vector<256x128xf32>
      %cst_25 = arith.constant dense<0.000000e+00> : vector<256xf32>
      %38 = vector.multi_reduction <add>, %37, %cst_25 [1] : vector<256x128xf32> to vector<256xf32>
      %39 = vector.shape_cast %38 : vector<256xf32> to vector<256x1xf32>
      %cst_26 = arith.constant 1.280000e+02 : f32
      %40 = vector.broadcast %cst_26 : f32 to vector<256x1xf32>
      %41 = arith.divf %39, %40 : vector<256x1xf32>
      %42 = vector.broadcast %41 : vector<256x1xf32> to vector<256x128xf32>
      %43 = arith.subf %37, %42 : vector<256x128xf32>
      %44 = arith.mulf %43, %43 : vector<256x128xf32>
      %cst_27 = arith.constant dense<0.000000e+00> : vector<256xf32>
      %45 = vector.multi_reduction <add>, %44, %cst_27 [1] : vector<256x128xf32> to vector<256xf32>
      %46 = vector.shape_cast %45 : vector<256xf32> to vector<256x1xf32>
      %cst_28 = arith.constant 1.280000e+02 : f32
      %47 = vector.broadcast %cst_28 : f32 to vector<256x1xf32>
      %48 = arith.divf %46, %47 : vector<256x1xf32>
      %49 = vector.broadcast %41 : vector<256x1xf32> to vector<256x128xf32>
      %50 = arith.subf %37, %49 : vector<256x128xf32>
      %cst_29 = arith.constant 9.99999996E-13 : f32
      %51 = vector.broadcast %cst_29 : f32 to vector<256x1xf32>
      %52 = arith.addf %48, %51 : vector<256x1xf32>
      %53 = math.rsqrt %52 : vector<256x1xf32>
      %54 = vector.broadcast %53 : vector<256x1xf32> to vector<256x128xf32>
      %55 = arith.mulf %50, %54 : vector<256x128xf32>
      %c0_30 = arith.constant 0 : index
      %c0_31 = arith.constant 0 : index
      %56 = vector.load %arg7[%c0_30, %c0_31] : memref<1x128xf32, #tpu.memory_space<vmem>>, vector<1x128xf32>
      %57 = vector.broadcast %56 : vector<1x128xf32> to vector<256x128xf32>
      %58 = arith.mulf %55, %57 : vector<256x128xf32>
      %c0_32 = arith.constant 0 : index
      %c0_33 = arith.constant 0 : index
      %59 = vector.load %arg8[%c0_32, %c0_33] : memref<1x128xf32, #tpu.memory_space<vmem>>, vector<1x128xf32>
      %60 = vector.broadcast %59 : vector<1x128xf32> to vector<256x128xf32>
      %61 = arith.addf %58, %60 : vector<256x128xf32>
      %62 = arith.truncf %61 : vector<256x128xf32> to vector<256x128xbf16>
      %c0_34 = arith.constant 0 : index
      %c0_35 = arith.constant 0 : index
      %63 = vector.load %arg9[%c0_34, %c0_35] : memref<256x128xbf16, #tpu.memory_space<vmem>>, vector<256x128xbf16>
      tpu.vector_store %arg9[%c0_34, %c0_35], %62 {strides = array<i32>} : memref<256x128xbf16, #tpu.memory_space<vmem>>, vector<256x128xbf16>,
    } else {
    }
    return
  }
  func.func @transform_0(%arg0: i32, %arg1: i32) -> (i32, i32) {
    %c0_i32 = arith.constant 0 : i32
    %c0_i32_0 = arith.constant 0 : i32
    return %arg0, %c0_i32 : i32, i32
  }
  func.func @transform_1(%arg0: i32, %arg1: i32) -> (i32, i32) {
    %c0_i32 = arith.constant 0 : i32
    %c0_i32_0 = arith.constant 0 : i32
    return %c0_i32, %arg1 : i32, i32
  }
  func.func @transform_2(%arg0: i32, %arg1: i32) -> (i32, i32) {
    %c0_i32 = arith.constant 0 : i32
    %c0_i32_0 = arith.constant 0 : i32
    return %c0_i32, %arg1 : i32, i32
  }
  func.func @transform_3(%arg0: i32, %arg1: i32) -> (i32, i32) {
    %c0_i32 = arith.constant 0 : i32
    %c0_i32_0 = arith.constant 0 : i32
    return %arg1, %c0_i32 : i32, i32
  }
  func.func @transform_4(%arg0: i32, %arg1: i32) -> (i32, i32) {
    %c0_i32 = arith.constant 0 : i32
    %c0_i32_0 = arith.constant 0 : i32
    %c0_i32_1 = arith.constant 0 : i32
    return %c0_i32, %c0_i32_0 : i32, i32
  }
  func.func @transform_5(%arg0: i32, %arg1: i32) -> (i32, i32) {
    %c0_i32 = arith.constant 0 : i32
    %c0_i32_0 = arith.constant 0 : i32
    %c0_i32_1 = arith.constant 0 : i32
    return %c0_i32, %c0_i32_0 : i32, i32
  }
  func.func @transform_6(%arg0: i32, %arg1: i32) -> (i32, i32) {
    %c0_i32 = arith.constant 0 : i32
    %c0_i32_0 = arith.constant 0 : i32
    %c0_i32_1 = arith.constant 0 : i32
    return %c0_i32, %c0_i32_0 : i32, i32
  }
  func.func @transform_7(%arg0: i32, %arg1: i32) -> (i32, i32) {
    %c0_i32 = arith.constant 0 : i32
    %c0_i32_0 = arith.constant 0 : i32
    return %arg0, %c0_i32 : i32, i32
  }
}

module attributes {stable_mosaic.version = 11 : i64} {
  func.func @_mean_pool_kernel(%arg0: i32, %arg1: memref<2x128x128xbf16, #tpu.memory_space<vmem>>, %arg2: memref<2x128xf32, #tpu.memory_space<vmem>>) attributes {dimension_semantics = [#tpu.dimension_semantics<arbitrary>], iteration_bounds = array<i64: 1>, scalar_prefetch = 0 : i64, scratch_operands = 0 : i64, tpu.core_type = #tpu.core_type<tc>, window_params = [{transform_indices = @transform_0, window_bounds = array<i64: 2, 128, 128>}, {pipeline_mode = #tpu.pipeline_mode<synchronous>, transform_indices = @transform_1, window_bounds = array<i64: 2, 128>}]} {
    %c0_i32 = arith.constant 0 : i32
    %0 = arith.cmpi eq, %arg0, %c0_i32 : i32
    %1 = arith.extui %0 : i1 to i32
    %c0_i32_0 = arith.constant 0 : i32
    %2 = arith.cmpi ne, %1, %c0_i32_0 : i32
    scf.if %2 {
      %cst_8 = arith.constant 0.000000e+00 : f32
      %11 = vector.broadcast %cst_8 : f32 to vector<2x128xf32>
      %c0_9 = arith.constant 0 : index
      %c0_10 = arith.constant 0 : index
      %12 = vector.load %arg2[%c0_9, %c0_10] : memref<2x128xf32, #tpu.memory_space<vmem>>, vector<2x128xf32>
      tpu.vector_store %arg2[%c0_9, %c0_10], %11 {strides = array<i32>} : memref<2x128xf32, #tpu.memory_space<vmem>>, vector<2x128xf32>,
    } else {
    }
    %c0 = arith.constant 0 : index
    %c0_1 = arith.constant 0 : index
    %3 = vector.load %arg2[%c0, %c0_1] : memref<2x128xf32, #tpu.memory_space<vmem>>, vector<2x128xf32>
    %c0_2 = arith.constant 0 : index
    %c0_3 = arith.constant 0 : index
    %c0_4 = arith.constant 0 : index
    %4 = vector.load %arg1[%c0_2, %c0_3, %c0_4] : memref<2x128x128xbf16, #tpu.memory_space<vmem>>, vector<2x128x128xbf16>
    %5 = arith.extf %4 : vector<2x128x128xbf16> to vector<2x128x128xf32>
    %cst = arith.constant dense<0.000000e+00> : vector<2x128xf32>
    %6 = vector.multi_reduction <add>, %5, %cst [1] : vector<2x128x128xf32> to vector<2x128xf32>
    %cst_5 = arith.constant 7.812500e-03 : f32
    %7 = vector.broadcast %cst_5 : f32 to vector<2x128xf32>
    %8 = arith.mulf %6, %7 : vector<2x128xf32>
    %9 = arith.addf %3, %8 : vector<2x128xf32>
    %c0_6 = arith.constant 0 : index
    %c0_7 = arith.constant 0 : index
    %10 = vector.load %arg2[%c0_6, %c0_7] : memref<2x128xf32, #tpu.memory_space<vmem>>, vector<2x128xf32>
    tpu.vector_store %arg2[%c0_6, %c0_7], %9 {strides = array<i32>} : memref<2x128xf32, #tpu.memory_space<vmem>>, vector<2x128xf32>,
    return
  }
  func.func @transform_0(%arg0: i32) -> (i32, i32, i32) {
    %c0_i32 = arith.constant 0 : i32
    %c0_i32_0 = arith.constant 0 : i32
    %c0_i32_1 = arith.constant 0 : i32
    return %c0_i32, %arg0, %c0_i32_0 : i32, i32, i32
  }
  func.func @transform_1(%arg0: i32) -> (i32, i32) {
    %c0_i32 = arith.constant 0 : i32
    %c0_i32_0 = arith.constant 0 : i32
    %c0_i32_1 = arith.constant 0 : i32
    return %c0_i32, %c0_i32_0 : i32, i32
  }
}

module attributes {stable_mosaic.version = 11 : i64} {
  func.func @_cls_ce_kernel(%arg0: memref<2x128xf32, #tpu.memory_space<vmem>>, %arg1: memref<128x3xbf16, #tpu.memory_space<vmem>>, %arg2: memref<1x3xf32, #tpu.memory_space<vmem>>, %arg3: memref<2x3xf32, #tpu.memory_space<vmem>>, %arg4: memref<2x3xf32, #tpu.memory_space<vmem>>, %arg5: memref<1x1xf32, #tpu.memory_space<vmem>>) attributes {dimension_semantics = [], scalar_prefetch = 0 : i64, scratch_operands = 0 : i64, tpu.core_type = #tpu.core_type<tc>} {
    %c0 = arith.constant 0 : index
    %c0_0 = arith.constant 0 : index
    %0 = vector.load %arg0[%c0, %c0_0] : memref<2x128xf32, #tpu.memory_space<vmem>>, vector<2x128xf32>
    %c0_1 = arith.constant 0 : index
    %c0_2 = arith.constant 0 : index
    %1 = vector.load %arg1[%c0_1, %c0_2] : memref<128x3xbf16, #tpu.memory_space<vmem>>, vector<128x3xbf16>
    %2 = arith.extf %1 : vector<128x3xbf16> to vector<128x3xf32>
    %cst = arith.constant dense<0.000000e+00> : vector<2x3xf32>
    %3 = tpu.matmul %0, %2, %cst {dimension_numbers = #tpu.dot_dimension_numbers<[1], [0], [0], [1], [0, 0, 1, 1], [], []>} : vector<2x128xf32>, vector<128x3xf32>, vector<2x3xf32> -> vector<2x3xf32>
    %c0_3 = arith.constant 0 : index
    %c0_4 = arith.constant 0 : index
    %4 = vector.load %arg2[%c0_3, %c0_4] : memref<1x3xf32, #tpu.memory_space<vmem>>, vector<1x3xf32>
    %5 = vector.broadcast %4 : vector<1x3xf32> to vector<2x3xf32>
    %6 = arith.addf %3, %5 : vector<2x3xf32>
    %c0_5 = arith.constant 0 : index
    %c0_6 = arith.constant 0 : index
    %7 = vector.load %arg4[%c0_5, %c0_6] : memref<2x3xf32, #tpu.memory_space<vmem>>, vector<2x3xf32>
    tpu.vector_store %arg4[%c0_5, %c0_6], %6 {strides = array<i32>} : memref<2x3xf32, #tpu.memory_space<vmem>>, vector<2x3xf32>,
    %cst_7 = arith.constant dense<0xFF800000> : vector<2xf32>
    %8 = vector.multi_reduction <maximumf>, %6, %cst_7 [1] : vector<2x3xf32> to vector<2xf32>
    %9 = vector.shape_cast %8 : vector<2xf32> to vector<2x1xf32>
    %10 = vector.broadcast %9 : vector<2x1xf32> to vector<2x3xf32>
    %11 = arith.subf %6, %10 : vector<2x3xf32>
    %12 = math.exp %11 : vector<2x3xf32>
    %cst_8 = arith.constant dense<0.000000e+00> : vector<2xf32>
    %13 = vector.multi_reduction <add>, %12, %cst_8 [1] : vector<2x3xf32> to vector<2xf32>
    %14 = vector.shape_cast %13 : vector<2xf32> to vector<2x1xf32>
    %15 = math.log %14 : vector<2x1xf32>
    %16 = arith.addf %15, %9 : vector<2x1xf32>
    %c0_9 = arith.constant 0 : index
    %c0_10 = arith.constant 0 : index
    %17 = vector.load %arg3[%c0_9, %c0_10] : memref<2x3xf32, #tpu.memory_space<vmem>>, vector<2x3xf32>
    %18 = arith.mulf %17, %6 : vector<2x3xf32>
    %cst_11 = arith.constant dense<0.000000e+00> : vector<2xf32>
    %19 = vector.multi_reduction <add>, %18, %cst_11 [1] : vector<2x3xf32> to vector<2xf32>
    %20 = vector.shape_cast %19 : vector<2xf32> to vector<2x1xf32>
    %21 = arith.subf %16, %20 : vector<2x1xf32>
    %cst_12 = arith.constant dense<0.000000e+00> : vector<1xf32>
    %22 = vector.multi_reduction <add>, %21, %cst_12 [0] : vector<2x1xf32> to vector<1xf32>
    %23 = vector.shape_cast %22 : vector<1xf32> to vector<1x1xf32>
    %cst_13 = arith.constant 2.000000e+00 : f32
    %24 = vector.broadcast %cst_13 : f32 to vector<1x1xf32>
    %25 = arith.divf %23, %24 : vector<1x1xf32>
    %c0_14 = arith.constant 0 : index
    %c0_15 = arith.constant 0 : index
    %26 = vector.load %arg5[%c0_14, %c0_15] : memref<1x1xf32, #tpu.memory_space<vmem>>, vector<1x1xf32>
    tpu.vector_store %arg5[%c0_14, %c0_15], %25 {strides = array<i32>} : memref<1x1xf32, #tpu.memory_space<vmem>>, vector<1x1xf32>,
    return
  }
}

</mosaic_0001>

<bundles_post_ra>
// kernel: tpu_custom_call.1
= control target key start
LH: loop header
LB: loop body
LE: loop exit
PB: predicated region body
PF: predicated region fallthrough
CT: control target
= control target key end

     0   :  { %6 = vsyncpa [#allocation3], 0  ;;  %s102_s0 = inlined_call_operand.hbm [shape: f32[8,128], index: 0, kind: input, shape index: {}]   ;;  %s103_s1 = inlined_call_operand.hbm [shape: f32[8,128], index: 1, kind: output, shape index: {}]  }
   0x1   :  { %7 = vsyncpa [#allocation4], 0  ;;  %s84_s6 = smov [#allocation2]  }
   0x2   :  { %s14_s7 = sshll.u32 %s84_s6, 4  ;;  %s15_s7 = int_to_ptr.vmem [resolvable:$true] %s14_s7 }
   0x3   :  { %s48_s8 = scalar_lea.vmem %s15_s7, 128  ;;  %p53_p1 = scmp.lt.s32.totalorder %s15_s7, %s15_s7 }
   0x4   :  { %p49_p0 = scmp.ne.s32.totalorder %s15_s7, %s48_s8  ;;  %p54_p2 = scmp.lt.s32.totalorder %s48_s8, %s48_s8 }
   0x6   :  { %p55_p3 = por %p54_p2, %p53_p1 }
   0x8   :  { %p56_p4 = pnand %p55_p3, %p49_p0 }
   0xa   :  { %59 = shalt.err (!%p56_p4)
}
   0xb   :  { %17 = dma.hbm_to_vmem [thread:$0]  %s102_s0, 128, %s15_s7, [#allocation3]  }
   0xc   :  { %80 = dma.done.wait [#allocation3], 128  }
   0xd   :  { %81 = vsyncadd [#allocation3], 4294967168  ;;  %s85_s11 = smov [#allocation5]   ;;  %v21_v0 = vld [vmem:[#allocation2] sm:$0xff] }
   0xe   :  { %s29_s12 = sshll.u32 %s85_s11, 4  ;;  %22 = vst [vmem:[#allocation5] sm:$0xff] %v21_v0  ;;  %s30_s12 = int_to_ptr.vmem [resolvable:$true] %s29_s12 }
   0xf   :  { %s60_s13 = scalar_lea.vmem %s30_s12, 128  ;;  %p65_p6 = scmp.lt.s32.totalorder %s30_s12, %s30_s12 }
  0x10   :  { %p61_p5 = scmp.ne.s32.totalorder %s30_s12, %s60_s13  ;;  %p66_p7 = scmp.lt.s32.totalorder %s60_s13, %s60_s13 }
  0x12   :  { %p67_p8 = por %p66_p7, %p65_p6 }
  0x14   :  { %p68_p9 = pnand %p67_p8, %p61_p5 }
  0x16   :  { %71 = shalt.err (!%p68_p9)
}
  0x17   :  { %32 = dma.vmem_to_hbm [thread:$0]  %s30_s12, 128, %s103_s1, [#allocation4]  }
  0x18   :  { %82 = dma.done.wait [#allocation4], 128  }
  0x19   :  { %83 = vsyncadd [#allocation4], 4294967168 }
  0x1a   :  { %36 = vsyncpa [#allocation3], 1 }
  0x1b   :  { %37 = vsyncpa [#allocation4], 1 }

// kernel: fwd.11
= control target key start
LH: loop header
LB: loop body
LE: loop exit
PB: predicated region body
PF: predicated region fallthrough
CT: control target
= control target key end

     0   :  { %s1392_s0 = inlined_call_operand.vmem [shape: f32[256,128], index: 0, kind: input, shape index: {}]   ;;  %s1393_s1 = inlined_call_operand.vmem [shape: f32[1,128], index: 1, kind: input, shape index: {}]   ;;  %s1394_s2 = inlined_call_operand.vmem [shape: f32[1,128], index: 2, kind: input, shape index: {}]   ;;  %s1395_s3 = inlined_call_operand.vmem [shape: bf16[256,128], index: 3, kind: output, shape index: {}]  }
   0x1   :  { %v889_v0 = vld [vmem:[%s1392_s0] sm:$0xff]  ;;  %v894_v1 = vld [vmem:[%s1392_s0 + $0x10] sm:$0xff]  ;;  %v901_v2 = vld [vmem:[%s1392_s0 + $0x8] sm:$0xff] }
   0x2   :  { %46 = vadd.xlane.f32.xlu0 %v889_v0  ;;  %50 = vadd.xlane.f32.xlu1 %v894_v1  ;;  %v906_v3 = vld [vmem:[%s1392_s0 + $0x18] sm:$0xff]  ;;  %v913_v4 = vld [vmem:[%s1392_s0 + $0x20] sm:$0xff]  ;;  %v918_v5 = vld [vmem:[%s1392_s0 + $0x28] sm:$0xff] }
   0x3   :  { %v925_v6 = vld [vmem:[%s1392_s0 + $0x30] sm:$0xff]  ;;  %v930_v7 = vld [vmem:[%s1392_s0 + $0x38] sm:$0xff]  ;;  %v937_v8 = vld [vmem:[%s1392_s0 + $0x40] sm:$0xff] }
   0x4   :  { %v942_v9 = vld [vmem:[%s1392_s0 + $0x48] sm:$0xff]  ;;  %v949_v10 = vld [vmem:[%s1392_s0 + $0x50] sm:$0xff]  ;;  %v954_v11 = vld [vmem:[%s1392_s0 + $0x58] sm:$0xff] }
   0x5   :  { %v961_v12 = vld [vmem:[%s1392_s0 + $0x60] sm:$0xff]  ;;  %v966_v13 = vld [vmem:[%s1392_s0 + $0x68] sm:$0xff]  ;;  %v973_v14 = vld [vmem:[%s1392_s0 + $0x70] sm:$0xff] }
   0x6   :  { %48 = vadd.xlane.f32.xlu0 %v901_v2  ;;  %52 = vadd.xlane.f32.xlu1 %v906_v3  ;;  %v978_v15 = vld [vmem:[%s1392_s0 + $0x78] sm:$0xff]  ;;  %v985_v16 = vld [vmem:[%s1392_s0 + $0x80] sm:$0xff]  ;;  %v990_v17 = vld [vmem:[%s1392_s0 + $0x88] sm:$0xff] }
   0x7   :  { %v997_v18 = vld [vmem:[%s1392_s0 + $0x90] sm:$0xff]  ;;  %v1002_v19 = vld [vmem:[%s1392_s0 + $0x98] sm:$0xff]  ;;  %v1009_v20 = vld [vmem:[%s1392_s0 + $0xa0] sm:$0xff] }
   0x8   :  { %v1014_v21 = vld [vmem:[%s1392_s0 + $0xa8] sm:$0xff]  ;;  %v1021_v22 = vld [vmem:[%s1392_s0 + $0xb0] sm:$0xff]  ;;  %v1026_v23 = vld [vmem:[%s1392_s0 + $0xb8] sm:$0xff] }
   0x9   :  { %v1033_v24 = vld [vmem:[%s1392_s0 + $0xc0] sm:$0xff]  ;;  %v1038_v25 = vld [vmem:[%s1392_s0 + $0xc8] sm:$0xff]  ;;  %v1045_v26 = vld [vmem:[%s1392_s0 + $0xd0] sm:$0xff] }
   0xa   :  { %54 = vadd.xlane.f32.xlu0 %v913_v4  ;;  %56 = vadd.xlane.f32.xlu1 %v918_v5  ;;  %v1050_v27 = vld [vmem:[%s1392_s0 + $0xd8] sm:$0xff]  ;;  %v1057_v28 = vld [vmem:[%s1392_s0 + $0xe0] sm:$0xff]  ;;  %v1062_v29 = vld [vmem:[%s1392_s0 + $0xe8] sm:$0xff] }
   0xb   :  { %v1069_v30 = vld [vmem:[%s1392_s0 + $0xf0] sm:$0xff]  ;;  %v1074_v31 = vld [vmem:[%s1392_s0 + $0xf8] sm:$0xff] }
   0xe   :  { %58 = vadd.xlane.f32.xlu0 %v925_v6  ;;  %60 = vadd.xlane.f32.xlu1 %v930_v7 }
  0x12   :  { %62 = vadd.xlane.f32.xlu0 %v937_v8  ;;  %64 = vadd.xlane.f32.xlu1 %v942_v9 }
  0x16   :  { %66 = vadd.xlane.f32.xlu0 %v949_v10  ;;  %68 = vadd.xlane.f32.xlu1 %v954_v11 }
  0x1a   :  { %70 = vadd.xlane.f32.xlu0 %v961_v12  ;;  %72 = vadd.xlane.f32.xlu1 %v966_v13 }
  0x1e   :  { %74 = vadd.xlane.f32.xlu0 %v973_v14  ;;  %76 = vadd.xlane.f32.xlu1 %v978_v15 }
  0x22   :  { %78 = vadd.xlane.f32.xlu0 %v985_v16  ;;  %80 = vadd.xlane.f32.xlu1 %v990_v17 }
  0x26   :  { %82 = vadd.xlane.f32.xlu0 %v997_v18  ;;  %84 = vadd.xlane.f32.xlu1 %v1002_v19 }
  0x2a   :  { %86 = vadd.xlane.f32.xlu0 %v1009_v20  ;;  %88 = vadd.xlane.f32.xlu1 %v1014_v21 }
  0x2e   :  { %90 = vadd.xlane.f32.xlu0 %v1021_v22  ;;  %92 = vadd.xlane.f32.xlu1 %v1026_v23 }
  0x32   :  { %94 = vadd.xlane.f32.xlu0 %v1033_v24  ;;  %96 = vadd.xlane.f32.xlu1 %v1038_v25 }
  0x36   :  { %98 = vadd.xlane.f32.xlu0 %v1045_v26  ;;  %100 = vadd.xlane.f32.xlu1 %v1050_v27 }
  0x3a   :  { %102 = vadd.xlane.f32.xlu0 %v1057_v28  ;;  %104 = vadd.xlane.f32.xlu1 %v1062_v29 }
  0x3e   :  { %106 = vadd.xlane.f32.xlu0 %v1069_v30  ;;  %108 = vadd.xlane.f32.xlu1 %v1074_v31 }
  0x8b   :  { %v47_v32 = vpop.xlane.xlu0 %46  ;;  %v51_v33 = vpop.xlane.xlu1 %50 }
  0x8c   :  { %v111_v34 = vmul.f32 0.0078125, %v47_v32  ;;  %v113_v35 = vmul.f32 0.0078125, %v51_v33 }
  0x8e   :  { %v1079_v36 = vsub.f32 %v889_v0, %v111_v34  ;;  %v1082_v37 = vsub.f32 %v894_v1, %v113_v35 }
  0x8f   :  { %v49_v38 = vpop.xlane.xlu0 %48  ;;  %v53_v39 = vpop.xlane.xlu1 %52 }
  0x90   :  { %v112_v40 = vmul.f32 0.0078125, %v49_v38  ;;  %v175_v41 = vmul.f32 %v1079_v36, %v1079_v36  ;;  %v114_v42 = vmul.f32 0.0078125, %v53_v39  ;;  %v177_v45 = vmul.f32 %v1082_v37, %v1082_v37 }
  0x92   :  { %v1087_v43 = vsub.f32 %v901_v2, %v112_v40  ;;  %207 = vadd.xlane.f32.xlu0 %v175_v41  ;;  %v1090_v44 = vsub.f32 %v906_v3, %v114_v42 }
  0x93   :  { %v55_v46 = vpop.xlane.xlu0 %54  ;;  %v57_v47 = vpop.xlane.xlu1 %56 }
  0x94   :  { %v115_v48 = vmul.f32 0.0078125, %v55_v46  ;;  %v176_v49 = vmul.f32 %v1087_v43, %v1087_v43  ;;  %v116_v50 = vmul.f32 0.0078125, %v57_v47  ;;  %v178_v53 = vmul.f32 %v1090_v44, %v1090_v44 }
  0x96   :  { %v1097_v51 = vsub.f32 %v913_v4, %v115_v48  ;;  %211 = vadd.xlane.f32.xlu0 %v177_v45  ;;  %209 = vadd.xlane.f32.xlu1 %v176_v49  ;;  %v1100_v52 = vsub.f32 %v918_v5, %v116_v50 }
  0x97   :  { %v59_v54 = vpop.xlane.xlu0 %58  ;;  %v61_v55 = vpop.xlane.xlu1 %60 }
  0x98   :  { %v117_v56 = vmul.f32 0.0078125, %v59_v54  ;;  %v179_v57 = vmul.f32 %v1097_v51, %v1097_v51  ;;  %v118_v58 = vmul.f32 0.0078125, %v61_v55  ;;  %v180_v61 = vmul.f32 %v1100_v52, %v1100_v52 }
  0x9a   :  { %v1107_v59 = vsub.f32 %v925_v6, %v117_v56  ;;  %213 = vadd.xlane.f32.xlu1 %v178_v53  ;;  %215 = vadd.xlane.f32.xlu0 %v179_v57  ;;  %v1110_v60 = vsub.f32 %v930_v7, %v118_v58 }
  0x9b   :  { %v63_v62 = vpop.xlane.xlu0 %62  ;;  %v65_v63 = vpop.xlane.xlu1 %64 }
  0x9c   :  { %v119_v0 = vmul.f32 0.0078125, %v63_v62  ;;  %v181_v1 = vmul.f32 %v1107_v59, %v1107_v59  ;;  %v120_v2 = vmul.f32 0.0078125, %v65_v63  ;;  %v182_v5 = vmul.f32 %v1110_v60, %v1110_v60 }
  0x9e   :  { %v1117_v3 = vsub.f32 %v937_v8, %v119_v0  ;;  %217 = vadd.xlane.f32.xlu1 %v180_v61  ;;  %219 = vadd.xlane.f32.xlu0 %v181_v1  ;;  %v1120_v4 = vsub.f32 %v942_v9, %v120_v2 }
  0x9f   :  { %v67_v6 = vpop.xlane.xlu0 %66  ;;  %v69_v7 = vpop.xlane.xlu1 %68 }
  0xa0   :  { %v121_v32 = vmul.f32 0.0078125, %v67_v6  ;;  %v183_v33 = vmul.f32 %v1117_v3, %v1117_v3  ;;  %v122_v34 = vmul.f32 0.0078125, %v69_v7  ;;  %v184_v9 = vmul.f32 %v1120_v4, %v1120_v4 }
  0xa2   :  { %v1127_v35 = vsub.f32 %v949_v10, %v121_v32  ;;  %221 = vadd.xlane.f32.xlu1 %v182_v5  ;;  %223 = vadd.xlane.f32.xlu0 %v183_v33  ;;  %v1130_v8 = vsub.f32 %v954_v11, %v122_v34 }
  0xa3   :  { %v71_v38 = vpop.xlane.xlu0 %70  ;;  %v73_v39 = vpop.xlane.xlu1 %72 }
  0xa4   :  { %v123_v40 = vmul.f32 0.0078125, %v71_v38  ;;  %v185_v41 = vmul.f32 %v1127_v35, %v1127_v35  ;;  %v124_v42 = vmul.f32 0.0078125, %v73_v39  ;;  %v186_v11 = vmul.f32 %v1130_v8, %v1130_v8 }
  0xa6   :  { %v1137_v45 = vsub.f32 %v961_v12, %v123_v40  ;;  %225 = vadd.xlane.f32.xlu1 %v184_v9  ;;  %227 = vadd.xlane.f32.xlu0 %v185_v41  ;;  %v1140_v10 = vsub.f32 %v966_v13, %v124_v42 }
  0xa7   :  { %v75_v46 = vpop.xlane.xlu0 %74  ;;  %v77_v47 = vpop.xlane.xlu1 %76 }
  0xa8   :  { %v125_v48 = vmul.f32 0.0078125, %v75_v46  ;;  %v187_v49 = vmul.f32 %v1137_v45, %v1137_v45  ;;  %v126_v50 = vmul.f32 0.0078125, %v77_v47  ;;  %v188_v13 = vmul.f32 %v1140_v10, %v1140_v10 }
  0xaa   :  { %v1147_v53 = vsub.f32 %v973_v14, %v125_v48  ;;  %229 = vadd.xlane.f32.xlu1 %v186_v11  ;;  %231 = vadd.xlane.f32.xlu0 %v187_v49  ;;  %v1150_v12 = vsub.f32 %v978_v15, %v126_v50 }
  0xab   :  { %v79_v54 = vpop.xlane.xlu0 %78  ;;  %v81_v55 = vpop.xlane.xlu1 %80 }
  0xac   :  { %v127_v56 = vmul.f32 0.0078125, %v79_v54  ;;  %v189_v57 = vmul.f32 %v1147_v53, %v1147_v53  ;;  %v128_v58 = vmul.f32 0.0078125, %v81_v55  ;;  %v190_v15 = vmul.f32 %v1150_v12, %v1150_v12 }
  0xae   :  { %v1157_v61 = vsub.f32 %v985_v16, %v127_v56  ;;  %233 = vadd.xlane.f32.xlu1 %v188_v13  ;;  %235 = vadd.xlane.f32.xlu0 %v189_v57  ;;  %v1160_v14 = vsub.f32 %v990_v17, %v128_v58 }
  0xaf   :  { %v83_v62 = vpop.xlane.xlu0 %82  ;;  %v85_v63 = vpop.xlane.xlu1 %84 }
  0xb0   :  { %v129_v0 = vmul.f32 0.0078125, %v83_v62  ;;  %v191_v1 = vmul.f32 %v1157_v61, %v1157_v61  ;;  %v130_v2 = vmul.f32 0.0078125, %v85_v63  ;;  %v192_v17 = vmul.f32 %v1160_v14, %v1160_v14 }
  0xb2   :  { %v1167_v5 = vsub.f32 %v997_v18, %v129_v0  ;;  %237 = vadd.xlane.f32.xlu1 %v190_v15  ;;  %239 = vadd.xlane.f32.xlu0 %v191_v1  ;;  %v1170_v16 = vsub.f32 %v1002_v19, %v130_v2 }
  0xb3   :  { %v87_v6 = vpop.xlane.xlu0 %86  ;;  %v89_v7 = vpop.xlane.xlu1 %88 }
  0xb4   :  { %v131_v32 = vmul.f32 0.0078125, %v87_v6  ;;  %v193_v33 = vmul.f32 %v1167_v5, %v1167_v5  ;;  %v132_v34 = vmul.f32 0.0078125, %v89_v7  ;;  %v194_v19 = vmul.f32 %v1170_v16, %v1170_v16 }
  0xb6   :  { %v1177_v9 = vsub.f32 %v1009_v20, %v131_v32  ;;  %241 = vadd.xlane.f32.xlu1 %v192_v17  ;;  %243 = vadd.xlane.f32.xlu0 %v193_v33  ;;  %v1180_v18 = vsub.f32 %v1014_v21, %v132_v34 }
  0xb7   :  { %v91_v38 = vpop.xlane.xlu0 %90  ;;  %v93_v39 = vpop.xlane.xlu1 %92 }
  0xb8   :  { %v133_v40 = vmul.f32 0.0078125, %v91_v38  ;;  %v195_v41 = vmul.f32 %v1177_v9, %v1177_v9  ;;  %v134_v42 = vmul.f32 0.0078125, %v93_v39  ;;  %v196_v21 = vmul.f32 %v1180_v18, %v1180_v18 }
  0xba   :  { %v1187_v11 = vsub.f32 %v1021_v22, %v133_v40  ;;  %245 = vadd.xlane.f32.xlu1 %v194_v19  ;;  %247 = vadd.xlane.f32.xlu0 %v195_v41  ;;  %v1190_v20 = vsub.f32 %v1026_v23, %v134_v42 }
  0xbb   :  { %v95_v46 = vpop.xlane.xlu0 %94  ;;  %v97_v47 = vpop.xlane.xlu1 %96 }
  0xbc   :  { %v135_v48 = vmul.f32 0.0078125, %v95_v46  ;;  %v197_v49 = vmul.f32 %v1187_v11, %v1187_v11  ;;  %v136_v50 = vmul.f32 0.0078125, %v97_v47  ;;  %v198_v23 = vmul.f32 %v1190_v20, %v1190_v20 }
  0xbe   :  { %v1197_v13 = vsub.f32 %v1033_v24, %v135_v48  ;;  %249 = vadd.xlane.f32.xlu1 %v196_v21  ;;  %251 = vadd.xlane.f32.xlu0 %v197_v49  ;;  %v1200_v22 = vsub.f32 %v1038_v25, %v136_v50 }
  0xbf   :  { %v99_v54 = vpop.xlane.xlu0 %98  ;;  %v101_v55 = vpop.xlane.xlu1 %100 }
  0xc0   :  { %v137_v56 = vmul.f32 0.0078125, %v99_v54  ;;  %v199_v57 = vmul.f32 %v1197_v13, %v1197_v13  ;;  %v138_v58 = vmul.f32 0.0078125, %v101_v55  ;;  %v200_v25 = vmul.f32 %v1200_v22, %v1200_v22 }
  0xc2   :  { %v1207_v15 = vsub.f32 %v1045_v26, %v137_v56  ;;  %253 = vadd.xlane.f32.xlu1 %v198_v23  ;;  %255 = vadd.xlane.f32.xlu0 %v199_v57  ;;  %v1210_v24 = vsub.f32 %v1050_v27, %v138_v58 }
  0xc3   :  { %v103_v62 = vpop.xlane.xlu0 %102  ;;  %v105_v63 = vpop.xlane.xlu1 %104 }
  0xc4   :  { %v139_v0 = vmul.f32 0.0078125, %v103_v62  ;;  %v201_v1 = vmul.f32 %v1207_v15, %v1207_v15  ;;  %v140_v2 = vmul.f32 0.0078125, %v105_v63  ;;  %v202_v27 = vmul.f32 %v1210_v24, %v1210_v24 }
  0xc6   :  { %v1217_v17 = vsub.f32 %v1057_v28, %v139_v0  ;;  %257 = vadd.xlane.f32.xlu1 %v200_v25  ;;  %259 = vadd.xlane.f32.xlu0 %v201_v1  ;;  %v1220_v26 = vsub.f32 %v1062_v29, %v140_v2 }
  0xc7   :  { %v107_v6 = vpop.xlane.xlu0 %106  ;;  %v109_v7 = vpop.xlane.xlu1 %108 }
  0xc8   :  { %v141_v32 = vmul.f32 0.0078125, %v107_v6  ;;  %v203_v33 = vmul.f32 %v1217_v17, %v1217_v17  ;;  %v142_v34 = vmul.f32 0.0078125, %v109_v7  ;;  %v204_v29 = vmul.f32 %v1220_v26, %v1220_v26 }
  0xca   :  { %v1227_v19 = vsub.f32 %v1069_v30, %v141_v32  ;;  %261 = vadd.xlane.f32.xlu1 %v202_v27  ;;  %263 = vadd.xlane.f32.xlu0 %v203_v33  ;;  %v1230_v28 = vsub.f32 %v1074_v31, %v142_v34  ;;  %v1241_v32 = vld [vmem:[%s1393_s1] ss:$0 sm:$0xff] }
  0xcc   :  { %v205_v38 = vmul.f32 %v1227_v19, %v1227_v19  ;;  %v206_v39 = vmul.f32 %v1230_v28, %v1230_v28 }
  0xce   :  { %265 = vadd.xlane.f32.xlu1 %v204_v29  ;;  %267 = vadd.xlane.f32.xlu0 %v205_v38 }
  0xd2   :  { %269 = vadd.xlane.f32.xlu1 %v206_v39 }
 0x11b   :  { %v208_v40 = vpop.xlane.xlu0 %207 }
 0x11c   :  { %v271_v30 = vmul.f32 0.0078125, %v208_v40 }
 0x11e   :  { %v303_v41 = vadd.f32 1e-12, %v271_v30 }
 0x11f   :  { %v210_v42 = vpop.xlane.xlu1 %209  ;;  %v212_v21 = vpop.xlane.xlu0 %211 }
 0x120   :  { %802 = vrsqrt.f32 %v303_v41  ;;  %v272_v31 = vmul.f32 0.0078125, %v210_v42  ;;  %v273_v46 = vmul.f32 0.0078125, %v212_v21 }
 0x122   :  { %v304_v47 = vadd.f32 1e-12, %v272_v31  ;;  %v305_v48 = vadd.f32 1e-12, %v273_v46  ;;  %v1248_v31 = vld [vmem:[%s1394_s2] ss:$0 sm:$0xff] }
 0x123   :  { %v214_v49 = vpop.xlane.xlu1 %213  ;;  %v216_v50 = vpop.xlane.xlu0 %215 }
 0x124   :  { %804 = vrsqrt.f32 %v304_v47  ;;  %v274_v23 = vmul.f32 0.0078125, %v214_v49  ;;  %v275_v54 = vmul.f32 0.0078125, %v216_v50 }
 0x125   :  { %806 = vrsqrt.f32 %v305_v48 }
 0x126   :  { %v306_v55 = vadd.f32 1e-12, %v274_v23  ;;  %v307_v56 = vadd.f32 1e-12, %v275_v54 }
 0x127   :  { %v218_v57 = vpop.xlane.xlu1 %217  ;;  %v220_v58 = vpop.xlane.xlu0 %219 }
 0x128   :  { %808 = vrsqrt.f32 %v306_v55  ;;  %v276_v25 = vmul.f32 0.0078125, %v218_v57  ;;  %v277_v62 = vmul.f32 0.0078125, %v220_v58 }
 0x129   :  { %810 = vrsqrt.f32 %v307_v56 }
 0x12a   :  { %v308_v63 = vadd.f32 1e-12, %v276_v25  ;;  %v309_v0 = vadd.f32 1e-12, %v277_v62 }
 0x12b   :  { %v222_v1 = vpop.xlane.xlu1 %221  ;;  %v224_v2 = vpop.xlane.xlu0 %223 }
 0x12c   :  { %812 = vrsqrt.f32 %v308_v63  ;;  %v278_v27 = vmul.f32 0.0078125, %v222_v1  ;;  %v279_v6 = vmul.f32 0.0078125, %v224_v2 }
 0x12d   :  { %v803_v7 = vpop.eup %802  ;;  %814 = vrsqrt.f32 %v309_v0 }
 0x12e   :  { %v367_v33 = vmul.f32 %v803_v7, %v1079_v36  ;;  %v310_v34 = vadd.f32 1e-12, %v278_v27  ;;  %v311_v29 = vadd.f32 1e-12, %v279_v6 }
 0x12f   :  { %v226_v38 = vpop.xlane.xlu1 %225  ;;  %v228_v39 = vpop.xlane.xlu0 %227 }
 0x130   :  { %816 = vrsqrt.f32 %v310_v34  ;;  %v280_v40 = vmul.f32 0.0078125, %v226_v38  ;;  %v281_v30 = vmul.f32 0.0078125, %v228_v39  ;;  %v406_v42 = vmul.f32 %v1241_v32, %v367_v33 }
 0x131   :  { %v805_v41 = vpop.eup %804  ;;  %818 = vrsqrt.f32 %v311_v29 }
 0x132   :  { %v807_v21 = vpop.eup %806  ;;  %v368_v46 = vmul.f32 %v805_v41, %v1087_v43  ;;  %v312_v36 = vadd.f32 1e-12, %v280_v40  ;;  %v313_v47 = vadd.f32 1e-12, %v281_v30  ;;  %v445_v57 = vadd.f32 %v1248_v31, %v406_v42 }
 0x133   :  { %v369_v48 = vmul.f32 %v807_v21, %v1082_v37  ;;  %v230_v49 = vpop.xlane.xlu1 %229  ;;  %v232_v50 = vpop.xlane.xlu0 %231 }
 0x134   :  { %v407_v23 = vmul.f32 %v1241_v32, %v368_v46  ;;  %820 = vrsqrt.f32 %v312_v36  ;;  %v282_v54 = vmul.f32 0.0078125, %v230_v49  ;;  %v283_v55 = vmul.f32 0.0078125, %v232_v50 }
 0x135   :  { %v809_v56 = vpop.eup %808  ;;  %v408_v58 = vmul.f32 %v1241_v32, %v369_v48  ;;  %822 = vrsqrt.f32 %v313_v47 }
 0x136   :  { %v811_v25 = vpop.eup %810  ;;  %v446_v43 = vadd.f32 %v1248_v31, %v407_v23  ;;  %v370_v62 = vmul.f32 %v809_v56, %v1090_v44  ;;  %v314_v63 = vadd.f32 1e-12, %v282_v54  ;;  %v315_v37 = vadd.f32 1e-12, %v283_v55 }
 0x137   :  { %v371_v0 = vmul.f32 %v811_v25, %v1097_v51  ;;  %v234_v1 = vpop.xlane.xlu1 %233  ;;  %v236_v2 = vpop.xlane.xlu0 %235  ;;  %v447_v44 = vadd.f32 %v1248_v31, %v408_v58 }
 0x138   :  { %v710_v27 = vpack.c.bf16 %v446_v43, %v445_v57  ;;  %v409_v6 = vmul.f32 %v1241_v32, %v370_v62  ;;  %824 = vrsqrt.f32 %v314_v63  ;;  %v284_v7 = vmul.f32 0.0078125, %v234_v1 }
 0x139   :  { %v813_v33 = vpop.eup %812  ;;  %v410_v34 = vmul.f32 %v1241_v32, %v371_v0  ;;  %826 = vrsqrt.f32 %v315_v37  ;;  %v285_v29 = vmul.f32 0.0078125, %v236_v2 }
 0x13a   :  { %v815_v38 = vpop.eup %814  ;;  %711 = vst [vmem:[%s1395_s3] sm:$0xff] %v710_v27   ;;  %v448_v51 = vadd.f32 %v1248_v31, %v409_v6  ;;  %v372_v39 = vmul.f32 %v813_v33, %v1100_v52  ;;  %v316_v40 = vadd.f32 1e-12, %v284_v7 }
 0x13b   :  { %v373_v30 = vmul.f32 %v815_v38, %v1107_v59  ;;  %v317_v41 = vadd.f32 1e-12, %v285_v29  ;;  %v238_v42 = vpop.xlane.xlu1 %237  ;;  %v240_v21 = vpop.xlane.xlu0 %239  ;;  %v449_v49 = vadd.f32 %v1248_v31, %v410_v34 }
 0x13c   :  { %v715_v46 = vpack.c.bf16 %v448_v51, %v447_v44  ;;  %v411_v36 = vmul.f32 %v1241_v32, %v372_v39  ;;  %828 = vrsqrt.f32 %v316_v40  ;;  %v286_v47 = vmul.f32 0.0078125, %v238_v42 }
 0x13d   :  { %v817_v48 = vpop.eup %816  ;;  %830 = vrsqrt.f32 %v317_v41  ;;  %v287_v50 = vmul.f32 0.0078125, %v240_v21  ;;  %v412_v59 = vmul.f32 %v1241_v32, %v373_v30 }
 0x13e   :  { %v819_v23 = vpop.eup %818  ;;  %787 = vst [vmem:[%s1395_s3 + $0x8] sm:$0xff] %v715_v46   ;;  %v450_v52 = vadd.f32 %v1248_v31, %v411_v36  ;;  %v374_v54 = vmul.f32 %v817_v48, %v1110_v60  ;;  %v318_v55 = vadd.f32 1e-12, %v286_v47 }
 0x13f   :  { %v375_v56 = vmul.f32 %v819_v23, %v1117_v3  ;;  %v319_v57 = vadd.f32 1e-12, %v287_v50  ;;  %v242_v58 = vpop.xlane.xlu1 %241  ;;  %v244_v25 = vpop.xlane.xlu0 %243  ;;  %v451_v60 = vadd.f32 %v1248_v31, %v412_v59 }
 0x140   :  { %v720_v43 = vpack.c.bf16 %v450_v52, %v449_v49  ;;  %v413_v62 = vmul.f32 %v1241_v32, %v374_v54  ;;  %832 = vrsqrt.f32 %v318_v55  ;;  %v288_v63 = vmul.f32 0.0078125, %v242_v58 }
 0x141   :  { %v821_v37 = vpop.eup %820  ;;  %v414_v0 = vmul.f32 %v1241_v32, %v375_v56  ;;  %834 = vrsqrt.f32 %v319_v57  ;;  %v289_v1 = vmul.f32 0.0078125, %v244_v25 }
 0x142   :  { %v823_v2 = vpop.eup %822  ;;  %788 = vst [vmem:[%s1395_s3 + $0x10] sm:$0xff] %v720_v43   ;;  %v452_v3 = vadd.f32 %v1248_v31, %v413_v62  ;;  %v376_v27 = vmul.f32 %v821_v37, %v1120_v4  ;;  %v320_v6 = vadd.f32 1e-12, %v288_v63 }
 0x143   :  { %v377_v7 = vmul.f32 %v823_v2, %v1127_v35  ;;  %v321_v33 = vadd.f32 1e-12, %v289_v1  ;;  %v246_v34 = vpop.xlane.xlu1 %245  ;;  %v248_v29 = vpop.xlane.xlu0 %247  ;;  %v453_v40 = vadd.f32 %v1248_v31, %v414_v0 }
 0x144   :  { %v725_v38 = vpack.c.bf16 %v452_v3, %v451_v60  ;;  %v415_v44 = vmul.f32 %v1241_v32, %v376_v27  ;;  %836 = vrsqrt.f32 %v320_v6  ;;  %v290_v51 = vmul.f32 0.0078125, %v246_v34 }
 0x145   :  { %v825_v39 = vpop.eup %824  ;;  %838 = vrsqrt.f32 %v321_v33  ;;  %v291_v30 = vmul.f32 0.0078125, %v248_v29  ;;  %v416_v35 = vmul.f32 %v1241_v32, %v377_v7 }
 0x146   :  { %v827_v41 = vpop.eup %826  ;;  %789 = vst [vmem:[%s1395_s3 + $0x18] sm:$0xff] %v725_v38   ;;  %v454_v4 = vadd.f32 %v1248_v31, %v415_v44  ;;  %v378_v42 = vmul.f32 %v825_v39, %v1130_v8  ;;  %v322_v21 = vadd.f32 1e-12, %v290_v51 }
 0x147   :  { %v379_v46 = vmul.f32 %v827_v41, %v1137_v45  ;;  %v323_v36 = vadd.f32 1e-12, %v291_v30  ;;  %v250_v47 = vpop.xlane.xlu1 %249  ;;  %v252_v48 = vpop.xlane.xlu0 %251  ;;  %v455_v8 = vadd.f32 %v1248_v31, %v416_v35 }
 0x148   :  { %v730_v49 = vpack.c.bf16 %v454_v4, %v453_v40  ;;  %v417_v50 = vmul.f32 %v1241_v32, %v378_v42  ;;  %840 = vrsqrt.f32 %v322_v21  ;;  %v292_v23 = vmul.f32 0.0078125, %v250_v47 }
 0x149   :  { %v829_v52 = vpop.eup %828  ;;  %v418_v59 = vmul.f32 %v1241_v32, %v379_v46  ;;  %842 = vrsqrt.f32 %v323_v36  ;;  %v293_v54 = vmul.f32 0.0078125, %v252_v48 }
 0x14a   :  { %v831_v55 = vpop.eup %830  ;;  %790 = vst [vmem:[%s1395_s3 + $0x20] sm:$0xff] %v730_v49   ;;  %v456_v45 = vadd.f32 %v1248_v31, %v417_v50  ;;  %v380_v56 = vmul.f32 %v829_v52, %v1140_v10  ;;  %v324_v57 = vadd.f32 1e-12, %v292_v23 }
 0x14b   :  { %v381_v58 = vmul.f32 %v831_v55, %v1147_v53  ;;  %v325_v25 = vadd.f32 1e-12, %v293_v54  ;;  %v254_v43 = vpop.xlane.xlu1 %253  ;;  %v256_v62 = vpop.xlane.xlu0 %255  ;;  %v457_v2 = vadd.f32 %v1248_v31, %v418_v59 }
 0x14c   :  { %v735_v63 = vpack.c.bf16 %v456_v45, %v455_v8  ;;  %v419_v37 = vmul.f32 %v1241_v32, %v380_v56  ;;  %844 = vrsqrt.f32 %v324_v57  ;;  %v294_v0 = vmul.f32 0.0078125, %v254_v43 }
 0x14d   :  { %v833_v1 = vpop.eup %832  ;;  %846 = vrsqrt.f32 %v325_v25  ;;  %v295_v60 = vmul.f32 0.0078125, %v256_v62  ;;  %v420_v53 = vmul.f32 %v1241_v32, %v381_v58 }
 0x14e   :  { %v835_v3 = vpop.eup %834  ;;  %791 = vst [vmem:[%s1395_s3 + $0x28] sm:$0xff] %v735_v63   ;;  %v458_v10 = vadd.f32 %v1248_v31, %v419_v37  ;;  %v382_v27 = vmul.f32 %v833_v1, %v1150_v12  ;;  %v326_v6 = vadd.f32 1e-12, %v294_v0 }
 0x14f   :  { %v383_v7 = vmul.f32 %v835_v3, %v1157_v61  ;;  %v327_v33 = vadd.f32 1e-12, %v295_v60  ;;  %v258_v34 = vpop.xlane.xlu1 %257  ;;  %v260_v29 = vpop.xlane.xlu0 %259  ;;  %v459_v12 = vadd.f32 %v1248_v31, %v420_v53 }
 0x150   :  { %v740_v38 = vpack.c.bf16 %v458_v10, %v457_v2  ;;  %v421_v44 = vmul.f32 %v1241_v32, %v382_v27  ;;  %848 = vrsqrt.f32 %v326_v6  ;;  %v296_v51 = vmul.f32 0.0078125, %v258_v34 }
 0x151   :  { %v837_v39 = vpop.eup %836  ;;  %v422_v40 = vmul.f32 %v1241_v32, %v383_v7  ;;  %850 = vrsqrt.f32 %v327_v33  ;;  %v297_v30 = vmul.f32 0.0078125, %v260_v29 }
 0x152   :  { %v839_v41 = vpop.eup %838  ;;  %792 = vst [vmem:[%s1395_s3 + $0x30] sm:$0xff] %v740_v38   ;;  %v460_v61 = vadd.f32 %v1248_v31, %v421_v44  ;;  %v384_v4 = vmul.f32 %v837_v39, %v1160_v14  ;;  %v328_v35 = vadd.f32 1e-12, %v296_v51 }
 0x153   :  { %v385_v42 = vmul.f32 %v839_v41, %v1167_v5  ;;  %v329_v21 = vadd.f32 1e-12, %v297_v30  ;;  %v262_v46 = vpop.xlane.xlu1 %261  ;;  %v264_v36 = vpop.xlane.xlu0 %263  ;;  %v461_v23 = vadd.f32 %v1248_v31, %v422_v40 }
 0x154   :  { %v745_v47 = vpack.c.bf16 %v460_v61, %v459_v12  ;;  %v423_v48 = vmul.f32 %v1241_v32, %v384_v4  ;;  %852 = vrsqrt.f32 %v328_v35  ;;  %v298_v49 = vmul.f32 0.0078125, %v262_v46 }
 0x155   :  { %v841_v50 = vpop.eup %840  ;;  %854 = vrsqrt.f32 %v329_v21  ;;  %v299_v52 = vmul.f32 0.0078125, %v264_v36  ;;  %v424_v5 = vmul.f32 %v1241_v32, %v385_v42 }
 0x156   :  { %v843_v59 = vpop.eup %842  ;;  %793 = vst [vmem:[%s1395_s3 + $0x38] sm:$0xff] %v745_v47   ;;  %v462_v14 = vadd.f32 %v1248_v31, %v423_v48  ;;  %v386_v54 = vmul.f32 %v841_v50, %v1170_v16  ;;  %v330_v55 = vadd.f32 1e-12, %v298_v49 }
 0x157   :  { %v387_v8 = vmul.f32 %v843_v59, %v1177_v9  ;;  %v331_v45 = vadd.f32 1e-12, %v299_v52  ;;  %v266_v56 = vpop.xlane.xlu1 %265  ;;  %v268_v57 = vpop.xlane.xlu0 %267  ;;  %v463_v16 = vadd.f32 %v1248_v31, %v424_v5 }
 0x158   :  { %v750_v58 = vpack.c.bf16 %v462_v14, %v461_v23  ;;  %v425_v25 = vmul.f32 %v1241_v32, %v386_v54  ;;  %856 = vrsqrt.f32 %v330_v55  ;;  %v300_v43 = vmul.f32 0.0078125, %v266_v56 }
 0x159   :  { %v845_v62 = vpop.eup %844  ;;  %v426_v63 = vmul.f32 %v1241_v32, %v387_v8  ;;  %858 = vrsqrt.f32 %v331_v45  ;;  %v301_v37 = vmul.f32 0.0078125, %v268_v57 }
 0x15a   :  { %v847_v0 = vpop.eup %846  ;;  %794 = vst [vmem:[%s1395_s3 + $0x40] sm:$0xff] %v750_v58   ;;  %v464_v9 = vadd.f32 %v1248_v31, %v425_v25  ;;  %v388_v1 = vmul.f32 %v845_v62, %v1180_v18  ;;  %v332_v2 = vadd.f32 1e-12, %v300_v43 }
 0x15b   :  { %v389_v60 = vmul.f32 %v847_v0, %v1187_v11  ;;  %v333_v3 = vadd.f32 1e-12, %v301_v37  ;;  %v270_v10 = vpop.xlane.xlu1 %269  ;;  %v465_v33 = vadd.f32 %v1248_v31, %v426_v63 }
 0x15c   :  { %v755_v53 = vpack.c.bf16 %v464_v9, %v463_v16  ;;  %v427_v27 = vmul.f32 %v1241_v32, %v388_v1  ;;  %860 = vrsqrt.f32 %v332_v2  ;;  %v302_v6 = vmul.f32 0.0078125, %v270_v10 }
 0x15d   :  { %v849_v7 = vpop.eup %848  ;;  %862 = vrsqrt.f32 %v333_v3  ;;  %v428_v11 = vmul.f32 %v1241_v32, %v389_v60 }
 0x15e   :  { %v851_v34 = vpop.eup %850  ;;  %795 = vst [vmem:[%s1395_s3 + $0x48] sm:$0xff] %v755_v53   ;;  %v466_v18 = vadd.f32 %v1248_v31, %v427_v27  ;;  %v390_v29 = vmul.f32 %v849_v7, %v1190_v20  ;;  %v334_v38 = vadd.f32 1e-12, %v302_v6 }
 0x15f   :  { %v391_v44 = vmul.f32 %v851_v34, %v1197_v13  ;;  %v467_v41 = vadd.f32 %v1248_v31, %v428_v11 }
 0x160   :  { %v760_v51 = vpack.c.bf16 %v466_v18, %v465_v33  ;;  %v429_v39 = vmul.f32 %v1241_v32, %v390_v29  ;;  %864 = vrsqrt.f32 %v334_v38 }
 0x161   :  { %v853_v40 = vpop.eup %852  ;;  %v430_v61 = vmul.f32 %v1241_v32, %v391_v44 }
 0x162   :  { %v855_v30 = vpop.eup %854  ;;  %796 = vst [vmem:[%s1395_s3 + $0x50] sm:$0xff] %v760_v51   ;;  %v468_v12 = vadd.f32 %v1248_v31, %v429_v39  ;;  %v392_v20 = vmul.f32 %v853_v40, %v1200_v22 }
 0x163   :  { %v393_v13 = vmul.f32 %v855_v30, %v1207_v15  ;;  %v469_v46 = vadd.f32 %v1248_v31, %v430_v61 }
 0x164   :  { %v765_v4 = vpack.c.bf16 %v468_v12, %v467_v41  ;;  %v431_v35 = vmul.f32 %v1241_v32, %v392_v20 }
 0x165   :  { %v857_v42 = vpop.eup %856  ;;  %v432_v47 = vmul.f32 %v1241_v32, %v393_v13 }
 0x166   :  { %v859_v21 = vpop.eup %858  ;;  %797 = vst [vmem:[%s1395_s3 + $0x58] sm:$0xff] %v765_v4   ;;  %v470_v36 = vadd.f32 %v1248_v31, %v431_v35  ;;  %v394_v48 = vmul.f32 %v857_v42, %v1210_v24 }
 0x167   :  { %v395_v22 = vmul.f32 %v859_v21, %v1217_v17  ;;  %v471_v52 = vadd.f32 %v1248_v31, %v432_v47 }
 0x168   :  { %v770_v15 = vpack.c.bf16 %v470_v36, %v469_v46  ;;  %v433_v49 = vmul.f32 %v1241_v32, %v394_v48 }
 0x169   :  { %v861_v50 = vpop.eup %860  ;;  %v434_v14 = vmul.f32 %v1241_v32, %v395_v22 }
 0x16a   :  { %v863_v23 = vpop.eup %862  ;;  %798 = vst [vmem:[%s1395_s3 + $0x60] sm:$0xff] %v770_v15   ;;  %v472_v59 = vadd.f32 %v1248_v31, %v433_v49  ;;  %v396_v5 = vmul.f32 %v861_v50, %v1220_v26 }
 0x16b   :  { %v397_v24 = vmul.f32 %v863_v23, %v1227_v19  ;;  %v473_v8 = vadd.f32 %v1248_v31, %v434_v14 }
 0x16c   :  { %v775_v17 = vpack.c.bf16 %v472_v59, %v471_v52  ;;  %v435_v54 = vmul.f32 %v1241_v32, %v396_v5 }
 0x16d   :  { %v865_v55 = vpop.eup %864  ;;  %v436_v56 = vmul.f32 %v1241_v32, %v397_v24 }
 0x16e   :  { %799 = vst [vmem:[%s1395_s3 + $0x68] sm:$0xff] %v775_v17   ;;  %v474_v45 = vadd.f32 %v1248_v31, %v435_v54  ;;  %v398_v57 = vmul.f32 %v865_v55, %v1230_v28 }
 0x16f   :  { %v475_v19 = vadd.f32 %v1248_v31, %v436_v56 }
 0x170   :  { %v780_v58 = vpack.c.bf16 %v474_v45, %v473_v8  ;;  %v437_v26 = vmul.f32 %v1241_v32, %v398_v57 }
 0x172   :  { %800 = vst [vmem:[%s1395_s3 + $0x70] sm:$0xff] %v780_v58   ;;  %v476_v25 = vadd.f32 %v1248_v31, %v437_v26 }
 0x174   :  { %v785_v43 = vpack.c.bf16 %v476_v25, %v475_v19 }
 0x176   :  { %801 = vst [vmem:[%s1395_s3 + $0x78] sm:$0xff] %v785_v43  }

// kernel: fwd.12
= control target key start
LH: loop header
LB: loop body
LE: loop exit
PB: predicated region body
PF: predicated region fallthrough
CT: control target
= control target key end

     0   :  { %v1823_v1 = vmov 0   ;;  %v84_v41 = vlaneseq  ;;  %s2257_s1 = inlined_call_operand.vmem [shape: bf16[128,384], index: 1, kind: input, shape index: {}]   ;;  %s2258_s0 = inlined_call_operand.vmem [shape: bf16[256,128], index: 0, kind: input, shape index: {}]   ;;  %s2259_s2 = inlined_call_operand.vmem [shape: f32[1,384], index: 2, kind: input, shape index: {}]   ;;  %s2260_s3 = inlined_call_operand.vmem [shape: bf16[256,128], index: 3, kind: output, shape index: {0}]   ;;  %s2261_s4 = inlined_call_operand.vmem [shape: bf16[256,128], index: 4, kind: output, shape index: {1}]   ;;  %s2262_s5 = inlined_call_operand.vmem [shape: bf16[256,128], index: 5, kind: output, shape index: {2}]  }
   0x1   :  { %v1775_v0 = vld [vmem:[%s2257_s1 + $0xac] ss:$12 sps:$4 sm:$0xff]   ;;  %355 = vmatprep.mubr.bf16.mxu0 %v1823_v1  ;;  %475 = vmatprep.mubr.bf16.mxu1 %v1823_v1  ;;  %v1777_v2 = vld [vmem:[%s2257_s1 + $0xa8] ss:$12 sps:$4 sm:$0xff]   ;;  %v1780_v4 = vld [vmem:[%s2257_s1 + $0x90] ss:$12 sps:$4 sm:$0xff]  }
   0x2   :  { %323 = vmatprep.subr.bf16.mxu0 %v1775_v0  ;;  %1758 = vmatprep.subr.bf16.mxu1 %v1775_v0  ;;  %v1778_v3 = vld [vmem:[%s2257_s1 + $0x94] ss:$12 sps:$4 sm:$0xff]   ;;  %v1781_v5 = vld [vmem:[%s2257_s1 + $0x7c] ss:$12 sps:$4 sm:$0xff]   ;;  %v1783_v6 = vld [vmem:[%s2257_s1 + $0x78] ss:$12 sps:$4 sm:$0xff]  }
   0x3   :  { %324 = vmatpush1.bf16.msra.mxu0 %v1777_v2  ;;  %1766 = vmatpush1.bf16.msra.mxu1 %v1777_v2  ;;  %v1784_v7 = vld [vmem:[%s2257_s1 + $0x64] ss:$12 sps:$4 sm:$0xff]   ;;  %v1786_v8 = vld [vmem:[%s2257_s1 + $0x60] ss:$12 sps:$4 sm:$0xff]   ;;  %v1789_v10 = vld [vmem:[%s2257_s1 + $0x48] ss:$12 sps:$4 sm:$0xff]  }
   0x4   :  { %325 = vmatprep.subr.bf16.mxu0 %v1778_v3  ;;  %1759 = vmatprep.subr.bf16.mxu1 %v1778_v3  ;;  %v1787_v9 = vld [vmem:[%s2257_s1 + $0x4c] ss:$12 sps:$4 sm:$0xff]   ;;  %v1790_v11 = vld [vmem:[%s2257_s1 + $0x34] ss:$12 sps:$4 sm:$0xff]   ;;  %v1792_v12 = vld [vmem:[%s2257_s1 + $0x30] ss:$12 sps:$4 sm:$0xff]  }
   0x5   :  { %v1793_v13 = vld [vmem:[%s2257_s1 + $0x1c] ss:$12 sps:$4 sm:$0xff]   ;;  %v1795_v14 = vld [vmem:[%s2257_s1 + $0x18] ss:$12 sps:$4 sm:$0xff]   ;;  %v1798_v16 = vld [vmem:[%s2257_s1] ss:$12 sps:$4 sm:$0xff]  }
   0x6   :  { %v1796_v15 = vld [vmem:[%s2257_s1 + $0x4] ss:$12 sps:$4 sm:$0xff]   ;;  %v1805_v21 = vld [vmem:[%s2257_s1 + $0x80] ss:$12 sps:$4 sm:$0xff]   ;;  %v1806_v24 = vld [vmem:[%s2257_s1 + $0x68] ss:$12 sps:$4 sm:$0xff]  }
   0x7   :  { %326 = vmatpush1.bf16.msra.mxu0 %v1780_v4  ;;  %1767 = vmatpush1.bf16.msra.mxu1 %v1780_v4  ;;  %v1801_v17 = vld [vmem:[%s2257_s1 + $0xb0] ss:$12 sps:$4 sm:$0xff]   ;;  %v1799_v18 = vld [vmem:[%s2258_s0] sm:$0xff]   ;;  %v1803_v22 = vld [vmem:[%s2258_s0 + $0x8] sm:$0xff]   ;;  %v1998_v42 = vshrl.u32 %v84_v41, 7 }
   0x8   :  { %327 = vmatprep.subr.bf16.mxu0 %v1781_v5  ;;  %1760 = vmatprep.subr.bf16.mxu1 %v1781_v5  ;;  %v1913_v19 = vld [vmem:[%s2258_s0 + $0x60] sm:$0xff]   ;;  %v1930_v23 = vld [vmem:[%s2258_s0 + $0x68] sm:$0xff]   ;;  %v1809_v25 = vld [vmem:[%s2257_s1 + $0x50] ss:$12 sps:$4 sm:$0xff]  }
   0x9   :  { %v1802_v20 = vld [vmem:[%s2257_s1 + $0x98] ss:$12 sps:$4 sm:$0xff]   ;;  %v1807_v26 = vld [vmem:[%s2258_s0 + $0x10] sm:$0xff]   ;;  %v1813_v29 = vld [vmem:[%s2257_s1 + $0x20] ss:$12 sps:$4 sm:$0xff]   ;;  %v86_v43 = vsub.s32 0, %v1998_v42 }
   0xa   :  { %v1808_v27 = vld [vmem:[%s2258_s0 + $0x70] sm:$0xff]   ;;  %v1810_v28 = vld [vmem:[%s2257_s1 + $0x38] ss:$12 sps:$4 sm:$0xff]   ;;  %v1816_v34 = vld [vmem:[%s2258_s0 + $0x28] sm:$0xff]   ;;  %v90_v45 = vsub.s32 1, %v1998_v42 }
   0xb   :  { %328 = vmatpush1.bf16.msra.mxu0 %v1783_v6  ;;  %1768 = vmatpush1.bf16.msra.mxu1 %v1783_v6  ;;  %v1811_v30 = vld [vmem:[%s2258_s0 + $0x18] sm:$0xff]   ;;  %v1814_v32 = vld [vmem:[%s2257_s1 + $0x8] ss:$12 sps:$4 sm:$0xff]   ;;  %v1815_v33 = vld [vmem:[%s2258_s0 + $0x20] sm:$0xff]  }
   0xc   :  { %329 = vmatprep.subr.bf16.mxu0 %v1784_v7  ;;  %1761 = vmatprep.subr.bf16.mxu1 %v1784_v7  ;;  %v1812_v31 = vld [vmem:[%s2258_s0 + $0x78] sm:$0xff]   ;;  %v1817_v35 = vld [vmem:[%s2258_s0 + $0x30] sm:$0xff]   ;;  %v1819_v37 = vld [vmem:[%s2258_s0 + $0x40] sm:$0xff]  }
   0xd   :  { %v1818_v36 = vld [vmem:[%s2258_s0 + $0x38] sm:$0xff]   ;;  %v1820_v38 = vld [vmem:[%s2258_s0 + $0x48] sm:$0xff]   ;;  %v1821_v39 = vld [vmem:[%s2258_s0 + $0x50] sm:$0xff]  }
   0xe   :  { %v1822_v40 = vld [vmem:[%s2258_s0 + $0x58] sm:$0xff]   ;;  %v2004_v44 = vld [vmem:[%s2259_s2] sm:$0x7] }
   0xf   :  { %330 = vmatpush1.bf16.msra.mxu0 %v1786_v8  ;;  %1769 = vmatpush1.bf16.msra.mxu1 %v1786_v8  ;;  %v2008_v48 = vrot.slane %v2004_v44, %v86_v43  ;;  %v2011_v49 = vrot.slane %v2004_v44, %v90_v45 }
  0x10   :  { %331 = vmatprep.subr.bf16.mxu0 %v1787_v9  ;;  %1762 = vmatprep.subr.bf16.mxu1 %v1787_v9 }
  0x13   :  { %332 = vmatpush1.bf16.msra.mxu0 %v1789_v10  ;;  %1770 = vmatpush1.bf16.msra.mxu1 %v1789_v10 }
  0x14   :  { %333 = vmatprep.subr.bf16.mxu0 %v1790_v11  ;;  %1763 = vmatprep.subr.bf16.mxu1 %v1790_v11 }
  0x17   :  { %334 = vmatpush1.bf16.msra.mxu0 %v1792_v12  ;;  %1771 = vmatpush1.bf16.msra.mxu1 %v1792_v12 }
  0x18   :  { %335 = vmatprep.subr.bf16.mxu0 %v1793_v13  ;;  %1764 = vmatprep.subr.bf16.mxu1 %v1793_v13 }
  0x1b   :  { %336 = vmatpush1.bf16.msra.mxu0 %v1795_v14  ;;  %1772 = vmatpush1.bf16.msra.mxu1 %v1795_v14 }
  0x1c   :  { %337 = vmatprep.subr.bf16.mxu0 %v1796_v15  ;;  %1765 = vmatprep.subr.bf16.mxu1 %v1796_v15 }
  0x1f   :  { %338 = vmatpush1.bf16.msra.mxu0 %v1798_v16  ;;  %1773 = vmatpush1.bf16.msra.mxu1 %v1798_v16 }
  0x20   :  { %1710 = vmatprep.subr.bf16.mxu1 %v1801_v17 }
  0x22   :  { %356 = vmatmul.mubr.bf16.vlgmr.msra.gmra.mxu0 %v1799_v18  ;;  %476 = vmatmul.mubr.bf16.vlgmr.msra.gmra.mxu1 %v1913_v19 }
  0x23   :  { %1711 = vmatpush3.bf16.msra.mxu1 %v1801_v17  ;;  %365 = vmatprep.mubr.bf16.mxu0 %v1823_v1 }
  0x24   :  { %1712 = vmatprep.subr.bf16.mxu1 %v1802_v20  ;;  %485 = vmatprep.mubr.bf16.mxu1 %v1823_v1 }
  0x27   :  { %1713 = vmatpush3.bf16.msra.mxu1 %v1802_v20 }
  0x28   :  { %1714 = vmatprep.subr.bf16.mxu1 %v1805_v21 }
  0x2a   :  { %366 = vmatmul.mubr.bf16.gmra.mxu0 %v1803_v22  ;;  %486 = vmatmul.mubr.bf16.gmra.mxu1 %v1930_v23 }
  0x2b   :  { %1715 = vmatpush3.bf16.msra.mxu1 %v1805_v21  ;;  %375 = vmatprep.mubr.bf16.mxu0 %v1823_v1 }
  0x2c   :  { %1716 = vmatprep.subr.bf16.mxu1 %v1806_v24  ;;  %495 = vmatprep.mubr.bf16.mxu1 %v1823_v1 }
  0x2f   :  { %1717 = vmatpush3.bf16.msra.mxu1 %v1806_v24 }
  0x30   :  { %1718 = vmatprep.subr.bf16.mxu1 %v1809_v25 }
  0x32   :  { %376 = vmatmul.mubr.bf16.gmra.mxu0 %v1807_v26  ;;  %496 = vmatmul.mubr.bf16.gmra.mxu1 %v1808_v27 }
  0x33   :  { %1719 = vmatpush3.bf16.msra.mxu1 %v1809_v25  ;;  %385 = vmatprep.mubr.bf16.mxu0 %v1823_v1 }
  0x34   :  { %1720 = vmatprep.subr.bf16.mxu1 %v1810_v28  ;;  %505 = vmatprep.mubr.bf16.mxu1 %v1823_v1 }
  0x37   :  { %1721 = vmatpush3.bf16.msra.mxu1 %v1810_v28 }
  0x38   :  { %1722 = vmatprep.subr.bf16.mxu1 %v1813_v29 }
  0x3a   :  { %386 = vmatmul.mubr.bf16.gmra.mxu0 %v1811_v30  ;;  %506 = vmatmul.mubr.bf16.gmra.mxu1 %v1812_v31 }
  0x3b   :  { %1723 = vmatpush3.bf16.msra.mxu1 %v1813_v29  ;;  %395 = vmatprep.mubr.bf16.mxu0 %v1823_v1 }
  0x3c   :  { %1724 = vmatprep.subr.bf16.mxu1 %v1814_v32  ;;  %1726 = vmatprep.mubr.bf16.mxu1 %v1799_v18 }
  0x3f   :  { %1725 = vmatpush3.bf16.msra.mxu1 %v1814_v32 }
  0x42   :  { %396 = vmatmul.mubr.bf16.gmra.mxu0 %v1815_v33  ;;  %1727 = vmatmul.mubr.bf16.vlgmr.msra.gmra.mxu1 %v1803_v22 }
  0x43   :  { %405 = vmatprep.mubr.bf16.mxu0 %v1823_v1  ;;  %1730 = vmatprep.mubr.bf16.mxu1 %v1807_v26 }
  0x4a   :  { %406 = vmatmul.mubr.bf16.gmra.mxu0 %v1816_v34  ;;  %1731 = vmatmul.mubr.bf16.gmra.mxu1 %v1811_v30 }
  0x4b   :  { %415 = vmatprep.mubr.bf16.mxu0 %v1823_v1  ;;  %1734 = vmatprep.mubr.bf16.mxu1 %v1815_v33 }
  0x52   :  { %416 = vmatmul.mubr.bf16.gmra.mxu0 %v1817_v35  ;;  %1735 = vmatmul.mubr.bf16.gmra.mxu1 %v1816_v34 }
  0x53   :  { %425 = vmatprep.mubr.bf16.mxu0 %v1823_v1  ;;  %1738 = vmatprep.mubr.bf16.mxu1 %v1817_v35 }
  0x5a   :  { %426 = vmatmul.mubr.bf16.gmra.mxu0 %v1818_v36  ;;  %1739 = vmatmul.mubr.bf16.gmra.mxu1 %v1818_v36 }
  0x5b   :  { %435 = vmatprep.mubr.bf16.mxu0 %v1823_v1  ;;  %1742 = vmatprep.mubr.bf16.mxu1 %v1819_v37 }
  0x62   :  { %436 = vmatmul.mubr.bf16.gmra.mxu0 %v1819_v37  ;;  %1743 = vmatmul.mubr.bf16.gmra.mxu1 %v1820_v38 }
  0x63   :  { %445 = vmatprep.mubr.bf16.mxu0 %v1823_v1  ;;  %1746 = vmatprep.mubr.bf16.mxu1 %v1821_v39 }
  0x6a   :  { %446 = vmatmul.mubr.bf16.gmra.mxu0 %v1820_v38  ;;  %1747 = vmatmul.mubr.bf16.gmra.mxu1 %v1822_v40 }
  0x6b   :  { %455 = vmatprep.mubr.bf16.mxu0 %v1823_v1  ;;  %1750 = vmatprep.mubr.bf16.mxu1 %v1913_v19 }
  0x72   :  { %456 = vmatmul.mubr.bf16.gmra.mxu0 %v1821_v39  ;;  %1751 = vmatmul.mubr.bf16.gmra.mxu1 %v1930_v23 }
  0x73   :  { %465 = vmatprep.mubr.bf16.mxu0 %v1823_v1  ;;  %1754 = vmatprep.mubr.bf16.mxu1 %v1808_v27 }
  0x7a   :  { %466 = vmatmul.mubr.bf16.gmra.mxu0 %v1822_v40  ;;  %1755 = vmatmul.mubr.bf16.gmra.mxu1 %v1812_v31 }
  0xe2   :  { %v357_v46 = vpop.f32.mrf.mxu0  ;;  %v477_v47 = vpop.f32.mrf.mxu1 }
  0xe3   :  { %v358_v54 = vadd.f32 %v357_v46, %v2008_v48  ;;  %v478_v55 = vadd.f32 %v477_v47, %v2008_v48 }
  0xe4   :  { %v359_v50 = vpop.f32.mrf.mxu0  ;;  %v479_v51 = vpop.f32.mrf.mxu1 }
  0xe5   :  { %v360_v58 = vadd.f32 %v359_v50, %v2011_v49  ;;  %v480_v59 = vadd.f32 %v479_v51, %v2011_v49 }
  0xe6   :  { %v361_v52 = vpop.f32.mrf.mxu0  ;;  %v481_v53 = vpop.f32.mrf.mxu1 }
  0xe7   :  { %v362_v56 = vadd.f32 %v361_v52, %v2008_v48  ;;  %v482_v57 = vadd.f32 %v481_v53, %v2008_v48 }
  0xe8   :  { %v363_v60 = vpop.f32.mrf.mxu0  ;;  %v483_v61 = vpop.f32.mrf.mxu1 }
  0xe9   :  { %v1404_v62 = vpack.c.bf16 %v362_v56, %v358_v54  ;;  %v1464_v63 = vpack.c.bf16 %v482_v57, %v478_v55  ;;  %v364_v0 = vadd.f32 %v363_v60, %v2011_v49  ;;  %v484_v1 = vadd.f32 %v483_v61, %v2011_v49 }
  0xea   :  { %v367_v2 = vpop.f32.mrf.mxu0  ;;  %v487_v3 = vpop.f32.mrf.mxu1  ;;  %v94_v54 = vsub.s32 2, %v1998_v42 }
  0xeb   :  { %1405 = vst [vmem:[%s2260_s3] sm:$0xff] %v1404_v62   ;;  %1652 = vst [vmem:[%s2260_s3 + $0x60] sm:$0xff] %v1464_v63   ;;  %v1484_v4 = vpack.c.bf16 %v364_v0, %v360_v58  ;;  %v1544_v5 = vpack.c.bf16 %v484_v1, %v480_v59  ;;  %v368_v10 = vadd.f32 %v367_v2, %v2008_v48 }
  0xec   :  { %v369_v6 = vpop.f32.mrf.mxu0  ;;  %v489_v7 = vpop.f32.mrf.mxu1  ;;  %v488_v11 = vadd.f32 %v487_v3, %v2008_v48 }
  0xed   :  { %1485 = vst [vmem:[%s2261_s4] sm:$0xff] %v1484_v4   ;;  %1667 = vst [vmem:[%s2261_s4 + $0x60] sm:$0xff] %v1544_v5   ;;  %v370_v14 = vadd.f32 %v369_v6, %v2011_v49  ;;  %v490_v15 = vadd.f32 %v489_v7, %v2011_v49  ;;  %v2089_v6 = vrot.slane %v2004_v44, %v94_v54 }
  0xee   :  { %v371_v8 = vpop.f32.mrf.mxu0  ;;  %v491_v9 = vpop.f32.mrf.mxu1 }
  0xef   :  { %v372_v12 = vadd.f32 %v371_v8, %v2008_v48  ;;  %v492_v13 = vadd.f32 %v491_v9, %v2008_v48 }
  0xf0   :  { %v373_v16 = vpop.f32.mrf.mxu0  ;;  %v493_v17 = vpop.f32.mrf.mxu1 }
  0xf1   :  { %v1409_v18 = vpack.c.bf16 %v372_v12, %v368_v10  ;;  %v1469_v19 = vpack.c.bf16 %v492_v13, %v488_v11  ;;  %v374_v20 = vadd.f32 %v373_v16, %v2011_v49  ;;  %v494_v21 = vadd.f32 %v493_v17, %v2011_v49 }
  0xf2   :  { %v377_v22 = vpop.f32.mrf.mxu0  ;;  %v497_v23 = vpop.f32.mrf.mxu1 }
  0xf3   :  { %1641 = vst [vmem:[%s2260_s3 + $0x8] sm:$0xff] %v1409_v18   ;;  %1653 = vst [vmem:[%s2260_s3 + $0x68] sm:$0xff] %v1469_v19   ;;  %v1489_v24 = vpack.c.bf16 %v374_v20, %v370_v14  ;;  %v1549_v25 = vpack.c.bf16 %v494_v21, %v490_v15  ;;  %v378_v30 = vadd.f32 %v377_v22, %v2008_v48 }
  0xf4   :  { %v379_v26 = vpop.f32.mrf.mxu0  ;;  %v499_v27 = vpop.f32.mrf.mxu1  ;;  %v498_v31 = vadd.f32 %v497_v23, %v2008_v48 }
  0xf5   :  { %1656 = vst [vmem:[%s2261_s4 + $0x8] sm:$0xff] %v1489_v24   ;;  %1668 = vst [vmem:[%s2261_s4 + $0x68] sm:$0xff] %v1549_v25   ;;  %v380_v34 = vadd.f32 %v379_v26, %v2011_v49  ;;  %v500_v35 = vadd.f32 %v499_v27, %v2011_v49 }
  0xf6   :  { %v381_v28 = vpop.f32.mrf.mxu0  ;;  %v501_v29 = vpop.f32.mrf.mxu1 }
  0xf7   :  { %v382_v32 = vadd.f32 %v381_v28, %v2008_v48  ;;  %v502_v33 = vadd.f32 %v501_v29, %v2008_v48 }
  0xf8   :  { %v383_v36 = vpop.f32.mrf.mxu0  ;;  %v503_v37 = vpop.f32.mrf.mxu1 }
  0xf9   :  { %v1414_v38 = vpack.c.bf16 %v382_v32, %v378_v30  ;;  %v1474_v39 = vpack.c.bf16 %v502_v33, %v498_v31  ;;  %v384_v40 = vadd.f32 %v383_v36, %v2011_v49  ;;  %v504_v41 = vadd.f32 %v503_v37, %v2011_v49 }
  0xfa   :  { %v387_v43 = vpop.f32.mrf.mxu0  ;;  %v507_v45 = vpop.f32.mrf.mxu1 }
  0xfb   :  { %1642 = vst [vmem:[%s2260_s3 + $0x10] sm:$0xff] %v1414_v38   ;;  %1654 = vst [vmem:[%s2260_s3 + $0x70] sm:$0xff] %v1474_v39   ;;  %v1494_v46 = vpack.c.bf16 %v384_v40, %v380_v34  ;;  %v1554_v47 = vpack.c.bf16 %v504_v41, %v500_v35  ;;  %v388_v55 = vadd.f32 %v387_v43, %v2008_v48 }
  0xfc   :  { %v389_v50 = vpop.f32.mrf.mxu0  ;;  %v509_v51 = vpop.f32.mrf.mxu1  ;;  %v508_v56 = vadd.f32 %v507_v45, %v2008_v48 }
  0xfd   :  { %1657 = vst [vmem:[%s2261_s4 + $0x10] sm:$0xff] %v1494_v46   ;;  %1669 = vst [vmem:[%s2261_s4 + $0x70] sm:$0xff] %v1554_v47   ;;  %v390_v59 = vadd.f32 %v389_v50, %v2011_v49  ;;  %v510_v60 = vadd.f32 %v509_v51, %v2011_v49 }
  0xfe   :  { %v391_v52 = vpop.f32.mrf.mxu0  ;;  %v511_v53 = vpop.f32.mrf.mxu1 }
  0xff   :  { %v392_v57 = vadd.f32 %v391_v52, %v2008_v48  ;;  %v512_v58 = vadd.f32 %v511_v53, %v2008_v48 }
 0x100   :  { %v393_v61 = vpop.f32.mrf.mxu0  ;;  %v513_v62 = vpop.f32.mrf.mxu1 }
 0x101   :  { %v1419_v63 = vpack.c.bf16 %v392_v57, %v388_v55  ;;  %v1479_v0 = vpack.c.bf16 %v512_v58, %v508_v56  ;;  %v394_v1 = vadd.f32 %v393_v61, %v2011_v49  ;;  %v514_v42 = vadd.f32 %v513_v62, %v2011_v49 }
 0x102   :  { %v397_v2 = vpop.f32.mrf.mxu0  ;;  %v1728_v3 = vpop.f32.mrf.mxu1 }
 0x103   :  { %1643 = vst [vmem:[%s2260_s3 + $0x18] sm:$0xff] %v1419_v63   ;;  %1655 = vst [vmem:[%s2260_s3 + $0x78] sm:$0xff] %v1479_v0   ;;  %v1499_v4 = vpack.c.bf16 %v394_v1, %v390_v59  ;;  %v1559_v5 = vpack.c.bf16 %v514_v42, %v510_v60  ;;  %v398_v11 = vadd.f32 %v397_v2, %v2008_v48 }
 0x104   :  { %v399_v7 = vpop.f32.mrf.mxu0  ;;  %v550_v8 = vpop.f32.mrf.mxu1  ;;  %v559_v12 = vadd.f32 %v1728_v3, %v2089_v6 }
 0x105   :  { %1658 = vst [vmem:[%s2261_s4 + $0x18] sm:$0xff] %v1499_v4   ;;  %1670 = vst [vmem:[%s2261_s4 + $0x78] sm:$0xff] %v1559_v5   ;;  %v400_v14 = vadd.f32 %v399_v7, %v2011_v49  ;;  %v551_v15 = vadd.f32 %v550_v8, %v2089_v6 }
 0x106   :  { %v401_v9 = vpop.f32.mrf.mxu0  ;;  %v1729_v10 = vpop.f32.mrf.mxu1 }
 0x107   :  { %v402_v13 = vadd.f32 %v401_v9, %v2008_v48  ;;  %v562_v44 = vadd.f32 %v1729_v10, %v2089_v6 }
 0x108   :  { %v403_v16 = vpop.f32.mrf.mxu0  ;;  %v553_v17 = vpop.f32.mrf.mxu1 }
 0x109   :  { %v1424_v18 = vpack.c.bf16 %v402_v13, %v398_v11  ;;  %v1569_v19 = vpack.c.bf16 %v562_v44, %v559_v12  ;;  %v404_v20 = vadd.f32 %v403_v16, %v2011_v49  ;;  %v554_v21 = vadd.f32 %v553_v17, %v2089_v6 }
 0x10a   :  { %v407_v22 = vpop.f32.mrf.mxu0  ;;  %v1732_v23 = vpop.f32.mrf.mxu1 }
 0x10b   :  { %1644 = vst [vmem:[%s2260_s3 + $0x20] sm:$0xff] %v1424_v18   ;;  %1671 = vst [vmem:[%s2262_s5 + $0x8] sm:$0xff] %v1569_v19   ;;  %v1504_v24 = vpack.c.bf16 %v404_v20, %v400_v14  ;;  %v1564_v25 = vpack.c.bf16 %v554_v21, %v551_v15  ;;  %v408_v30 = vadd.f32 %v407_v22, %v2008_v48 }
 0x10c   :  { %v409_v26 = vpop.f32.mrf.mxu0  ;;  %v566_v27 = vpop.f32.mrf.mxu1  ;;  %v575_v31 = vadd.f32 %v1732_v23, %v2089_v6 }
 0x10d   :  { %1659 = vst [vmem:[%s2261_s4 + $0x20] sm:$0xff] %v1504_v24   ;;  %1565 = vst [vmem:[%s2262_s5] sm:$0xff] %v1564_v25   ;;  %v410_v34 = vadd.f32 %v409_v26, %v2011_v49  ;;  %v567_v35 = vadd.f32 %v566_v27, %v2089_v6 }
 0x10e   :  { %v411_v28 = vpop.f32.mrf.mxu0  ;;  %v1733_v29 = vpop.f32.mrf.mxu1 }
 0x10f   :  { %v412_v32 = vadd.f32 %v411_v28, %v2008_v48  ;;  %v578_v33 = vadd.f32 %v1733_v29, %v2089_v6 }
 0x110   :  { %v413_v36 = vpop.f32.mrf.mxu0  ;;  %v569_v37 = vpop.f32.mrf.mxu1 }
 0x111   :  { %v1429_v38 = vpack.c.bf16 %v412_v32, %v408_v30  ;;  %v1579_v39 = vpack.c.bf16 %v578_v33, %v575_v31  ;;  %v414_v40 = vadd.f32 %v413_v36, %v2011_v49  ;;  %v570_v41 = vadd.f32 %v569_v37, %v2089_v6 }
 0x112   :  { %v417_v43 = vpop.f32.mrf.mxu0  ;;  %v1736_v45 = vpop.f32.mrf.mxu1 }
 0x113   :  { %1645 = vst [vmem:[%s2260_s3 + $0x28] sm:$0xff] %v1429_v38   ;;  %1673 = vst [vmem:[%s2262_s5 + $0x18] sm:$0xff] %v1579_v39   ;;  %v1509_v46 = vpack.c.bf16 %v414_v40, %v410_v34  ;;  %v1574_v47 = vpack.c.bf16 %v570_v41, %v567_v35  ;;  %v418_v54 = vadd.f32 %v417_v43, %v2008_v48 }
 0x114   :  { %v419_v50 = vpop.f32.mrf.mxu0  ;;  %v582_v51 = vpop.f32.mrf.mxu1  ;;  %v591_v55 = vadd.f32 %v1736_v45, %v2089_v6 }
 0x115   :  { %1660 = vst [vmem:[%s2261_s4 + $0x28] sm:$0xff] %v1509_v46   ;;  %1672 = vst [vmem:[%s2262_s5 + $0x10] sm:$0xff] %v1574_v47   ;;  %v420_v58 = vadd.f32 %v419_v50, %v2011_v49  ;;  %v583_v59 = vadd.f32 %v582_v51, %v2089_v6 }
 0x116   :  { %v421_v52 = vpop.f32.mrf.mxu0  ;;  %v1737_v53 = vpop.f32.mrf.mxu1 }
 0x117   :  { %v422_v56 = vadd.f32 %v421_v52, %v2008_v48  ;;  %v594_v57 = vadd.f32 %v1737_v53, %v2089_v6 }
 0x118   :  { %v423_v60 = vpop.f32.mrf.mxu0  ;;  %v585_v61 = vpop.f32.mrf.mxu1 }
 0x119   :  { %v1434_v62 = vpack.c.bf16 %v422_v56, %v418_v54  ;;  %v1589_v63 = vpack.c.bf16 %v594_v57, %v591_v55  ;;  %v424_v0 = vadd.f32 %v423_v60, %v2011_v49  ;;  %v586_v1 = vadd.f32 %v585_v61, %v2089_v6 }
 0x11a   :  { %v427_v42 = vpop.f32.mrf.mxu0  ;;  %v1740_v2 = vpop.f32.mrf.mxu1 }
 0x11b   :  { %1646 = vst [vmem:[%s2260_s3 + $0x30] sm:$0xff] %v1434_v62   ;;  %1675 = vst [vmem:[%s2262_s5 + $0x28] sm:$0xff] %v1589_v63   ;;  %v1514_v3 = vpack.c.bf16 %v424_v0, %v420_v58  ;;  %v1584_v4 = vpack.c.bf16 %v586_v1, %v583_v59  ;;  %v428_v10 = vadd.f32 %v427_v42, %v2008_v48 }
 0x11c   :  { %v429_v5 = vpop.f32.mrf.mxu0  ;;  %v598_v7 = vpop.f32.mrf.mxu1  ;;  %v607_v11 = vadd.f32 %v1740_v2, %v2089_v6 }
 0x11d   :  { %1661 = vst [vmem:[%s2261_s4 + $0x30] sm:$0xff] %v1514_v3   ;;  %1674 = vst [vmem:[%s2262_s5 + $0x20] sm:$0xff] %v1584_v4   ;;  %v430_v44 = vadd.f32 %v429_v5, %v2011_v49  ;;  %v599_v14 = vadd.f32 %v598_v7, %v2089_v6 }
 0x11e   :  { %v431_v8 = vpop.f32.mrf.mxu0  ;;  %v1741_v9 = vpop.f32.mrf.mxu1 }
 0x11f   :  { %v432_v12 = vadd.f32 %v431_v8, %v2008_v48  ;;  %v610_v13 = vadd.f32 %v1741_v9, %v2089_v6 }
 0x120   :  { %v433_v15 = vpop.f32.mrf.mxu0  ;;  %v601_v16 = vpop.f32.mrf.mxu1 }
 0x121   :  { %v1439_v17 = vpack.c.bf16 %v432_v12, %v428_v10  ;;  %v1599_v18 = vpack.c.bf16 %v610_v13, %v607_v11  ;;  %v434_v19 = vadd.f32 %v433_v15, %v2011_v49  ;;  %v602_v20 = vadd.f32 %v601_v16, %v2089_v6 }
 0x122   :  { %v437_v21 = vpop.f32.mrf.mxu0  ;;  %v1744_v22 = vpop.f32.mrf.mxu1 }
 0x123   :  { %1647 = vst [vmem:[%s2260_s3 + $0x38] sm:$0xff] %v1439_v17   ;;  %1677 = vst [vmem:[%s2262_s5 + $0x38] sm:$0xff] %v1599_v18   ;;  %v1519_v23 = vpack.c.bf16 %v434_v19, %v430_v44  ;;  %v1594_v24 = vpack.c.bf16 %v602_v20, %v599_v14  ;;  %v438_v29 = vadd.f32 %v437_v21, %v2008_v48 }
 0x124   :  { %v439_v25 = vpop.f32.mrf.mxu0  ;;  %v614_v26 = vpop.f32.mrf.mxu1  ;;  %v623_v30 = vadd.f32 %v1744_v22, %v2089_v6 }
 0x125   :  { %1662 = vst [vmem:[%s2261_s4 + $0x38] sm:$0xff] %v1519_v23   ;;  %1676 = vst [vmem:[%s2262_s5 + $0x30] sm:$0xff] %v1594_v24   ;;  %v440_v33 = vadd.f32 %v439_v25, %v2011_v49  ;;  %v615_v34 = vadd.f32 %v614_v26, %v2089_v6 }
 0x126   :  { %v441_v27 = vpop.f32.mrf.mxu0  ;;  %v1745_v28 = vpop.f32.mrf.mxu1 }
 0x127   :  { %v442_v31 = vadd.f32 %v441_v27, %v2008_v48  ;;  %v626_v32 = vadd.f32 %v1745_v28, %v2089_v6 }
 0x128   :  { %v443_v35 = vpop.f32.mrf.mxu0  ;;  %v617_v36 = vpop.f32.mrf.mxu1 }
 0x129   :  { %v1444_v37 = vpack.c.bf16 %v442_v31, %v438_v29  ;;  %v1609_v38 = vpack.c.bf16 %v626_v32, %v623_v30  ;;  %v444_v39 = vadd.f32 %v443_v35, %v2011_v49  ;;  %v618_v40 = vadd.f32 %v617_v36, %v2089_v6 }
 0x12a   :  { %v447_v41 = vpop.f32.mrf.mxu0  ;;  %v1748_v43 = vpop.f32.mrf.mxu1 }
 0x12b   :  { %1648 = vst [vmem:[%s2260_s3 + $0x40] sm:$0xff] %v1444_v37   ;;  %1679 = vst [vmem:[%s2262_s5 + $0x48] sm:$0xff] %v1609_v38   ;;  %v1524_v45 = vpack.c.bf16 %v444_v39, %v440_v33  ;;  %v1604_v46 = vpack.c.bf16 %v618_v40, %v615_v34  ;;  %v448_v53 = vadd.f32 %v447_v41, %v2008_v48 }
 0x12c   :  { %v449_v47 = vpop.f32.mrf.mxu0  ;;  %v630_v50 = vpop.f32.mrf.mxu1  ;;  %v639_v54 = vadd.f32 %v1748_v43, %v2089_v6 }
 0x12d   :  { %1663 = vst [vmem:[%s2261_s4 + $0x40] sm:$0xff] %v1524_v45   ;;  %1678 = vst [vmem:[%s2262_s5 + $0x40] sm:$0xff] %v1604_v46   ;;  %v450_v57 = vadd.f32 %v449_v47, %v2011_v49  ;;  %v631_v58 = vadd.f32 %v630_v50, %v2089_v6 }
 0x12e   :  { %v451_v51 = vpop.f32.mrf.mxu0  ;;  %v1749_v52 = vpop.f32.mrf.mxu1 }
 0x12f   :  { %v452_v55 = vadd.f32 %v451_v51, %v2008_v48  ;;  %v642_v56 = vadd.f32 %v1749_v52, %v2089_v6 }
 0x130   :  { %v453_v59 = vpop.f32.mrf.mxu0  ;;  %v633_v60 = vpop.f32.mrf.mxu1 }
 0x131   :  { %v1449_v61 = vpack.c.bf16 %v452_v55, %v448_v53  ;;  %v1619_v62 = vpack.c.bf16 %v642_v56, %v639_v54  ;;  %v454_v63 = vadd.f32 %v453_v59, %v2011_v49  ;;  %v634_v0 = vadd.f32 %v633_v60, %v2089_v6 }
 0x132   :  { %v457_v1 = vpop.f32.mrf.mxu0  ;;  %v1752_v42 = vpop.f32.mrf.mxu1 }
 0x133   :  { %1649 = vst [vmem:[%s2260_s3 + $0x48] sm:$0xff] %v1449_v61   ;;  %1681 = vst [vmem:[%s2262_s5 + $0x58] sm:$0xff] %v1619_v62   ;;  %v1529_v2 = vpack.c.bf16 %v454_v63, %v450_v57  ;;  %v1614_v3 = vpack.c.bf16 %v634_v0, %v631_v58  ;;  %v458_v9 = vadd.f32 %v457_v1, %v2008_v48 }
 0x134   :  { %v459_v4 = vpop.f32.mrf.mxu0  ;;  %v646_v5 = vpop.f32.mrf.mxu1  ;;  %v655_v10 = vadd.f32 %v1752_v42, %v2089_v6 }
 0x135   :  { %1664 = vst [vmem:[%s2261_s4 + $0x48] sm:$0xff] %v1529_v2   ;;  %1680 = vst [vmem:[%s2262_s5 + $0x50] sm:$0xff] %v1614_v3   ;;  %v460_v13 = vadd.f32 %v459_v4, %v2011_v49  ;;  %v647_v44 = vadd.f32 %v646_v5, %v2089_v6 }
 0x136   :  { %v461_v7 = vpop.f32.mrf.mxu0  ;;  %v1753_v8 = vpop.f32.mrf.mxu1 }
 0x137   :  { %v462_v11 = vadd.f32 %v461_v7, %v2008_v48  ;;  %v658_v12 = vadd.f32 %v1753_v8, %v2089_v6 }
 0x138   :  { %v463_v14 = vpop.f32.mrf.mxu0  ;;  %v649_v15 = vpop.f32.mrf.mxu1 }
 0x139   :  { %v1454_v16 = vpack.c.bf16 %v462_v11, %v458_v9  ;;  %v1629_v17 = vpack.c.bf16 %v658_v12, %v655_v10  ;;  %v464_v18 = vadd.f32 %v463_v14, %v2011_v49  ;;  %v650_v19 = vadd.f32 %v649_v15, %v2089_v6 }
 0x13a   :  { %v467_v20 = vpop.f32.mrf.mxu0  ;;  %v1756_v21 = vpop.f32.mrf.mxu1 }
 0x13b   :  { %1650 = vst [vmem:[%s2260_s3 + $0x50] sm:$0xff] %v1454_v16   ;;  %1683 = vst [vmem:[%s2262_s5 + $0x68] sm:$0xff] %v1629_v17   ;;  %v1534_v22 = vpack.c.bf16 %v464_v18, %v460_v13  ;;  %v1624_v23 = vpack.c.bf16 %v650_v19, %v647_v44  ;;  %v468_v28 = vadd.f32 %v467_v20, %v2008_v48 }
 0x13c   :  { %v469_v24 = vpop.f32.mrf.mxu0  ;;  %v662_v25 = vpop.f32.mrf.mxu1  ;;  %v671_v29 = vadd.f32 %v1756_v21, %v2089_v6 }
 0x13d   :  { %1665 = vst [vmem:[%s2261_s4 + $0x50] sm:$0xff] %v1534_v22   ;;  %1682 = vst [vmem:[%s2262_s5 + $0x60] sm:$0xff] %v1624_v23   ;;  %v470_v32 = vadd.f32 %v469_v24, %v2011_v49  ;;  %v663_v33 = vadd.f32 %v662_v25, %v2089_v6 }
 0x13e   :  { %v471_v26 = vpop.f32.mrf.mxu0  ;;  %v1757_v27 = vpop.f32.mrf.mxu1 }
 0x13f   :  { %v472_v30 = vadd.f32 %v471_v26, %v2008_v48  ;;  %v674_v31 = vadd.f32 %v1757_v27, %v2089_v6 }
 0x140   :  { %v473_v34 = vpop.f32.mrf.mxu0  ;;  %v665_v35 = vpop.f32.mrf.mxu1 }
 0x141   :  { %v1459_v36 = vpack.c.bf16 %v472_v30, %v468_v28  ;;  %v1639_v37 = vpack.c.bf16 %v674_v31, %v671_v29  ;;  %v474_v38 = vadd.f32 %v473_v34, %v2011_v49  ;;  %v666_v39 = vadd.f32 %v665_v35, %v2089_v6 }
 0x143   :  { %1651 = vst [vmem:[%s2260_s3 + $0x58] sm:$0xff] %v1459_v36   ;;  %1685 = vst [vmem:[%s2262_s5 + $0x78] sm:$0xff] %v1639_v37   ;;  %v1539_v48 = vpack.c.bf16 %v474_v38, %v470_v32  ;;  %v1634_v40 = vpack.c.bf16 %v666_v39, %v663_v33 }
 0x145   :  { %1666 = vst [vmem:[%s2261_s4 + $0x58] sm:$0xff] %v1539_v48   ;;  %1684 = vst [vmem:[%s2262_s5 + $0x70] sm:$0xff] %v1634_v40  }

// kernel: fwd.14
= control target key start
LH: loop header
LB: loop body
LE: loop exit
PB: predicated region body
PF: predicated region fallthrough
CT: control target
= control target key end

     0   :  { %s2118_s1 = inlined_call_operand.vmem [shape: bf16[128,128], index: 1, kind: input, shape index: {}]   ;;  %s2119_s0 = inlined_call_operand.vmem [shape: bf16[256,128], index: 0, kind: input, shape index: {}]   ;;  %s2120_s3 = inlined_call_operand.vmem [shape: bf16[256,128], index: 3, kind: input, shape index: {}]   ;;  %s2121_s2 = inlined_call_operand.vmem [shape: f32[1,128], index: 2, kind: input, shape index: {}]   ;;  %s2122_s4 = inlined_call_operand.vmem [shape: f32[1,128], index: 4, kind: input, shape index: {}]   ;;  %s2123_s5 = inlined_call_operand.vmem [shape: f32[1,128], index: 5, kind: input, shape index: {}]   ;;  %s2124_s6 = inlined_call_operand.vmem [shape: bf16[256,128], index: 6, kind: output, shape index: {}]  }
   0x1   :  { %v1428_v0 = vld [vmem:[%s2118_s1 + $0x38] sm:$0xff]   ;;  %v1429_v1 = vld [vmem:[%s2118_s1 + $0x30] sm:$0xff]   ;;  %v1430_v2 = vld [vmem:[%s2118_s1 + $0x28] sm:$0xff]  }
   0x2   :  { %1364 = vmatprep.subr.bf16.mxu0 %v1428_v0  ;;  %1412 = vmatprep.subr.bf16.mxu1 %v1428_v0  ;;  %v1431_v3 = vld [vmem:[%s2118_s1 + $0x20] sm:$0xff]   ;;  %v1432_v6 = vld [vmem:[%s2118_s1 + $0x18] sm:$0xff]   ;;  %v1433_v7 = vld [vmem:[%s2118_s1 + $0x10] sm:$0xff]  }
   0x3   :  { %1365 = vmatpush3.bf16.msra.mxu0 %v1428_v0  ;;  %1420 = vmatpush3.bf16.msra.mxu1 %v1428_v0  ;;  %v1436_v4 = vld [vmem:[%s2119_s0] sm:$0xff]   ;;  %v1434_v8 = vld [vmem:[%s2118_s1 + $0x8] sm:$0xff]   ;;  %v1440_v12 = vld [vmem:[%s2119_s0 + $0x10] sm:$0xff]  }
   0x4   :  { %1366 = vmatprep.subr.bf16.mxu0 %v1429_v1  ;;  %1413 = vmatprep.subr.bf16.mxu1 %v1429_v1  ;;  %v1437_v5 = vld [vmem:[%s2119_s0 + $0x40] sm:$0xff]   ;;  %v1438_v10 = vld [vmem:[%s2119_s0 + $0x8] sm:$0xff]   ;;  %v1442_v13 = vld [vmem:[%s2119_s0 + $0x50] sm:$0xff]  }
   0x5   :  { %1380 = vmatprep.mubr.bf16.mxu0 %v1436_v4  ;;  %1396 = vmatprep.mubr.bf16.mxu1 %v1437_v5  ;;  %v1435_v9 = vld [vmem:[%s2118_s1] sm:$0xff]   ;;  %v1439_v11 = vld [vmem:[%s2119_s0 + $0x48] sm:$0xff]   ;;  %v1441_v14 = vld [vmem:[%s2119_s0 + $0x18] sm:$0xff]  }
   0x6   :  { %v1443_v15 = vld [vmem:[%s2119_s0 + $0x58] sm:$0xff]   ;;  %v1444_v16 = vld [vmem:[%s2119_s0 + $0x20] sm:$0xff]   ;;  %v1445_v18 = vld [vmem:[%s2119_s0 + $0x28] sm:$0xff]  }
   0x7   :  { %1367 = vmatpush3.bf16.msra.mxu0 %v1429_v1  ;;  %1421 = vmatpush3.bf16.msra.mxu1 %v1429_v1  ;;  %v1446_v17 = vld [vmem:[%s2119_s0 + $0x60] sm:$0xff]   ;;  %v1447_v19 = vld [vmem:[%s2119_s0 + $0x68] sm:$0xff]   ;;  %v1448_v20 = vld [vmem:[%s2119_s0 + $0x30] sm:$0xff]  }
   0x8   :  { %1368 = vmatprep.subr.bf16.mxu0 %v1430_v2  ;;  %1414 = vmatprep.subr.bf16.mxu1 %v1430_v2  ;;  %v1450_v21 = vld [vmem:[%s2119_s0 + $0x70] sm:$0xff]   ;;  %v1449_v22 = vld [vmem:[%s2119_s0 + $0x38] sm:$0xff]   ;;  %v1318_v24 = vld [vmem:[%s2120_s3 + $0x48] sm:$0xff]  }
   0x9   :  { %v1451_v23 = vld [vmem:[%s2119_s0 + $0x78] sm:$0xff]   ;;  %v1310_v25 = vld [vmem:[%s2120_s3 + $0x8] sm:$0xff]   ;;  %v1632_v26 = vld [vmem:[%s2121_s2] ss:$0 sm:$0xff]  ;;  %v1204_v27 = vunpack.c.l.bf16 %v1318_v24  ;;  %v1205_v47 = vunpack.c.h.bf16 %v1318_v24 }
   0xa   :  { %v1172_v28 = vunpack.c.l.bf16 %v1310_v25  ;;  %v1167_v29 = vld [vmem:[%s2120_s3] sm:$0xff]   ;;  %v1173_v40 = vunpack.c.h.bf16 %v1310_v25  ;;  %v1312_v58 = vld [vmem:[%s2120_s3 + $0x18] sm:$0xff]   ;;  %v1319_v25 = vld [vmem:[%s2120_s3 + $0x50] sm:$0xff]  }
   0xb   :  { %1369 = vmatpush3.bf16.msra.mxu0 %v1430_v2  ;;  %1422 = vmatpush3.bf16.msra.mxu1 %v1430_v2  ;;  %v1168_v36 = vunpack.c.l.bf16 %v1167_v29  ;;  %v1317_v41 = vld [vmem:[%s2120_s3 + $0x40] sm:$0xff]   ;;  %v1169_v57 = vunpack.c.h.bf16 %v1167_v29  ;;  %v1180_v4 = vunpack.c.l.bf16 %v1312_v58  ;;  %v1320_v5 = vld [vmem:[%s2120_s3 + $0x58] sm:$0xff]   ;;  %v1209_v29 = vunpack.c.h.bf16 %v1319_v25 }
   0xc   :  { %1370 = vmatprep.subr.bf16.mxu0 %v1431_v3  ;;  %1415 = vmatprep.subr.bf16.mxu1 %v1431_v3  ;;  %v1200_v48 = vunpack.c.l.bf16 %v1317_v41  ;;  %v1201_v56 = vunpack.c.h.bf16 %v1317_v41 }
   0xf   :  { %1371 = vmatpush3.bf16.msra.mxu0 %v1431_v3  ;;  %1423 = vmatpush3.bf16.msra.mxu1 %v1431_v3  ;;  %v1181_v3 = vunpack.c.h.bf16 %v1312_v58  ;;  %v1313_v58 = vld [vmem:[%s2120_s3 + $0x20] sm:$0xff]  }
  0x10   :  { %1372 = vmatprep.subr.bf16.mxu0 %v1432_v6  ;;  %1416 = vmatprep.subr.bf16.mxu1 %v1432_v6 }
  0x13   :  { %1373 = vmatpush3.bf16.msra.mxu0 %v1432_v6  ;;  %1424 = vmatpush3.bf16.msra.mxu1 %v1432_v6 }
  0x14   :  { %1374 = vmatprep.subr.bf16.mxu0 %v1433_v7  ;;  %1417 = vmatprep.subr.bf16.mxu1 %v1433_v7 }
  0x17   :  { %1375 = vmatpush3.bf16.msra.mxu0 %v1433_v7  ;;  %1425 = vmatpush3.bf16.msra.mxu1 %v1433_v7 }
  0x18   :  { %1376 = vmatprep.subr.bf16.mxu0 %v1434_v8  ;;  %1418 = vmatprep.subr.bf16.mxu1 %v1434_v8 }
  0x1b   :  { %1377 = vmatpush3.bf16.msra.mxu0 %v1434_v8  ;;  %1426 = vmatpush3.bf16.msra.mxu1 %v1434_v8 }
  0x1c   :  { %1378 = vmatprep.subr.bf16.mxu0 %v1435_v9  ;;  %1419 = vmatprep.subr.bf16.mxu1 %v1435_v9 }
  0x1f   :  { %1379 = vmatpush3.bf16.msra.mxu0 %v1435_v9  ;;  %1427 = vmatpush3.bf16.msra.mxu1 %v1435_v9 }
  0x22   :  { %1381 = vmatmul.mubr.bf16.vlgmr.msra.gmra.mxu0 %v1438_v10  ;;  %1397 = vmatmul.mubr.bf16.vlgmr.msra.gmra.mxu1 %v1439_v11  ;;  %v1213_v10 = vunpack.c.h.bf16 %v1320_v5 }
  0x23   :  { %1384 = vmatprep.mubr.bf16.mxu0 %v1440_v12  ;;  %1400 = vmatprep.mubr.bf16.mxu1 %v1442_v13 }
  0x2a   :  { %1385 = vmatmul.mubr.bf16.gmra.mxu0 %v1441_v14  ;;  %1401 = vmatmul.mubr.bf16.gmra.mxu1 %v1443_v15  ;;  %v1212_v14 = vunpack.c.l.bf16 %v1320_v5 }
  0x2b   :  { %1388 = vmatprep.mubr.bf16.mxu0 %v1444_v16  ;;  %1404 = vmatprep.mubr.bf16.mxu1 %v1446_v17  ;;  %v1311_v17 = vld [vmem:[%s2120_s3 + $0x10] sm:$0xff]  }
  0x2c   :  { %v1176_v24 = vunpack.c.l.bf16 %v1311_v17 }
  0x32   :  { %1389 = vmatmul.mubr.bf16.gmra.mxu0 %v1445_v18  ;;  %1405 = vmatmul.mubr.bf16.gmra.mxu1 %v1447_v19 }
  0x33   :  { %1392 = vmatprep.mubr.bf16.mxu0 %v1448_v20  ;;  %1408 = vmatprep.mubr.bf16.mxu1 %v1450_v21 }
  0x3a   :  { %1393 = vmatmul.mubr.bf16.gmra.mxu0 %v1449_v22  ;;  %1409 = vmatmul.mubr.bf16.gmra.mxu1 %v1451_v23  ;;  %v1177_v23 = vunpack.c.h.bf16 %v1311_v17 }
  0xe2   :  { %v1382_v30 = vpop.f32.mrf.mxu0  ;;  %v1398_v31 = vpop.f32.mrf.mxu1 }
  0xe3   :  { %v266_v32 = vadd.f32 %v1382_v30, %v1632_v26  ;;  %v330_v33 = vadd.f32 %v1398_v31, %v1632_v26  ;;  %v1208_v30 = vunpack.c.l.bf16 %v1319_v25  ;;  %v1314_v31 = vld [vmem:[%s2120_s3 + $0x28] sm:$0xff]  }
  0xe4   :  { %v257_v34 = vpop.f32.mrf.mxu0  ;;  %v321_v35 = vpop.f32.mrf.mxu1 }
  0xe5   :  { %v258_v37 = vadd.f32 %v1632_v26, %v257_v34  ;;  %v1640_v38 = vadd.f32 %v1204_v27, %v330_v33  ;;  %v1642_v39 = vadd.f32 %v1172_v28, %v266_v32  ;;  %v322_v49 = vadd.f32 %v1632_v26, %v321_v35 }
  0xe6   :  { %v1383_v42 = vpop.f32.mrf.mxu0  ;;  %v1399_v43 = vpop.f32.mrf.mxu1 }
  0xe7   :  { %v269_v44 = vadd.f32 %v1383_v42, %v1632_v26  ;;  %516 = vadd.xlane.f32.xlu0 %v1640_v38  ;;  %484 = vadd.xlane.f32.xlu1 %v1642_v39  ;;  %v333_v50 = vadd.f32 %v1399_v43, %v1632_v26  ;;  %v1654_v52 = vadd.f32 %v1168_v36, %v258_v37  ;;  %v1189_v42 = vunpack.c.h.bf16 %v1314_v31 }
  0xe8   :  { %v260_v45 = vpop.f32.mrf.mxu0  ;;  %v324_v46 = vpop.f32.mrf.mxu1  ;;  %v1665_v62 = vadd.f32 %v1200_v48, %v322_v49  ;;  %v1188_v43 = vunpack.c.l.bf16 %v1314_v31  ;;  %v1315_v31 = vld [vmem:[%s2120_s3 + $0x30] sm:$0xff]  }
  0xe9   :  { %v1652_v51 = vadd.f32 %v1173_v40, %v269_v44  ;;  %v261_v59 = vadd.f32 %v1632_v26, %v260_v45  ;;  %v325_v60 = vadd.f32 %v1632_v26, %v324_v46  ;;  %v1663_v61 = vadd.f32 %v1205_v47, %v333_v50  ;;  %v1322_v44 = vld [vmem:[%s2120_s3 + $0x68] sm:$0xff]  }
  0xea   :  { %v1386_v53 = vpop.f32.mrf.mxu0  ;;  %v1402_v54 = vpop.f32.mrf.mxu1  ;;  %v1221_v49 = vunpack.c.h.bf16 %v1322_v44 }
  0xeb   :  { %486 = vadd.xlane.f32.xlu1 %v1652_v51  ;;  %480 = vadd.xlane.f32.xlu0 %v1654_v52  ;;  %v282_v1 = vadd.f32 %v1386_v53, %v1632_v26  ;;  %v1674_v6 = vadd.f32 %v1201_v56, %v325_v60  ;;  %v1676_v7 = vadd.f32 %v1169_v57, %v261_v59 }
  0xec   :  { %v273_v55 = vpop.f32.mrf.mxu0  ;;  %v337_v0 = vpop.f32.mrf.mxu1  ;;  %v346_v8 = vadd.f32 %v1402_v54, %v1632_v26 }
  0xed   :  { %v1684_v13 = vadd.f32 %v1180_v4, %v282_v1  ;;  %v274_v21 = vadd.f32 %v1632_v26, %v273_v55  ;;  %v338_v32 = vadd.f32 %v1632_v26, %v337_v0  ;;  %v1220_v55 = vunpack.c.l.bf16 %v1322_v44  ;;  %v1321_v4 = vld [vmem:[%s2120_s3 + $0x60] sm:$0xff]  }
  0xee   :  { %v1387_v63 = vpop.f32.mrf.mxu0  ;;  %v1403_v9 = vpop.f32.mrf.mxu1  ;;  %v1693_v19 = vadd.f32 %v1212_v14, %v346_v8 }
  0xef   :  { %518 = vadd.xlane.f32.xlu1 %v1663_v61  ;;  %512 = vadd.xlane.f32.xlu0 %v1665_v62  ;;  %v285_v2 = vadd.f32 %v1387_v63, %v1632_v26  ;;  %v349_v11 = vadd.f32 %v1403_v9, %v1632_v26  ;;  %v1709_v35 = vadd.f32 %v1176_v24, %v274_v21  ;;  %v1217_v9 = vunpack.c.h.bf16 %v1321_v4 }
  0xf0   :  { %v276_v15 = vpop.f32.mrf.mxu0  ;;  %v340_v20 = vpop.f32.mrf.mxu1  ;;  %v1720_v46 = vadd.f32 %v1208_v30, %v338_v32 }
  0xf1   :  { %v1682_v12 = vadd.f32 %v1181_v3, %v285_v2  ;;  %v1691_v18 = vadd.f32 %v1213_v10, %v349_v11  ;;  %v277_v22 = vadd.f32 %v1632_v26, %v276_v15  ;;  %v341_v33 = vadd.f32 %v1632_v26, %v340_v20  ;;  %v1316_v11 = vld [vmem:[%s2120_s3 + $0x38] sm:$0xff]  }
  0xf2   :  { %v1390_v16 = vpop.f32.mrf.mxu0  ;;  %v1406_v28 = vpop.f32.mrf.mxu1  ;;  %v1185_v2 = vunpack.c.h.bf16 %v1313_v58  ;;  %v1184_v3 = vunpack.c.l.bf16 %v1313_v58  ;;  %v1216_v10 = vunpack.c.l.bf16 %v1321_v4  ;;  %v1197_v24 = vunpack.c.h.bf16 %v1316_v11 }
  0xf3   :  { %514 = vadd.xlane.f32.xlu1 %v1674_v6  ;;  %482 = vadd.xlane.f32.xlu0 %v1676_v7  ;;  %v1707_v34 = vadd.f32 %v1177_v23, %v277_v22  ;;  %v298_v40 = vadd.f32 %v1390_v16, %v1632_v26  ;;  %v1718_v45 = vadd.f32 %v1209_v29, %v341_v33  ;;  %v1196_v25 = vunpack.c.l.bf16 %v1316_v11 }
  0xf4   :  { %v289_v27 = vpop.f32.mrf.mxu0  ;;  %v353_v37 = vpop.f32.mrf.mxu1  ;;  %v362_v47 = vadd.f32 %v1406_v28, %v1632_v26 }
  0xf5   :  { %v1728_v54 = vadd.f32 %v1188_v43, %v298_v40  ;;  %v290_v0 = vadd.f32 %v1632_v26, %v289_v27  ;;  %v354_v14 = vadd.f32 %v1632_v26, %v353_v37  ;;  %v1193_v40 = vunpack.c.h.bf16 %v1315_v31 }
  0xf6   :  { %v1391_v36 = vpop.f32.mrf.mxu0  ;;  %v1407_v48 = vpop.f32.mrf.mxu1  ;;  %v1737_v60 = vadd.f32 %v1220_v55, %v362_v47 }
  0xf7   :  { %494 = vadd.xlane.f32.xlu1 %v1682_v12  ;;  %492 = vadd.xlane.f32.xlu0 %v1684_v13  ;;  %v301_v41 = vadd.f32 %v1391_v36, %v1632_v26  ;;  %v365_v50 = vadd.f32 %v1407_v48, %v1632_v26  ;;  %v1753_v17 = vadd.f32 %v1184_v3, %v290_v0 }
  0xf8   :  { %v292_v56 = vpop.f32.mrf.mxu0  ;;  %v356_v63 = vpop.f32.mrf.mxu1  ;;  %v1761_v28 = vadd.f32 %v1216_v10, %v354_v14 }
  0xf9   :  { %v1726_v53 = vadd.f32 %v1189_v42, %v301_v41  ;;  %v1735_v59 = vadd.f32 %v1221_v49, %v365_v50  ;;  %v293_v1 = vadd.f32 %v1632_v26, %v292_v56  ;;  %v357_v15 = vadd.f32 %v1632_v26, %v356_v63  ;;  %v1323_v42 = vld [vmem:[%s2120_s3 + $0x70] sm:$0xff]   ;;  %v1324_v56 = vld [vmem:[%s2120_s3 + $0x78] sm:$0xff]  }
  0xfa   :  { %v1394_v57 = vpop.f32.mrf.mxu0  ;;  %v1410_v8 = vpop.f32.mrf.mxu1  ;;  %v1192_v41 = vunpack.c.l.bf16 %v1315_v31  ;;  %v1225_v44 = vunpack.c.h.bf16 %v1323_v42  ;;  %v1224_v47 = vunpack.c.l.bf16 %v1323_v42  ;;  %v1228_v58 = vunpack.c.l.bf16 %v1324_v56 }
  0xfb   :  { %526 = vadd.xlane.f32.xlu1 %v1691_v18  ;;  %524 = vadd.xlane.f32.xlu0 %v1693_v19  ;;  %v1751_v16 = vadd.f32 %v1185_v2, %v293_v1  ;;  %v314_v22 = vadd.f32 %v1394_v57, %v1632_v26  ;;  %v1759_v27 = vadd.f32 %v1217_v9, %v357_v15  ;;  %v1229_v57 = vunpack.c.h.bf16 %v1324_v56 }
  0xfc   :  { %v305_v5 = vpop.f32.mrf.mxu0  ;;  %v369_v21 = vpop.f32.mrf.mxu1  ;;  %v378_v63 = vadd.f32 %v1410_v8, %v1632_v26 }
  0xfd   :  { %v1770_v33 = vadd.f32 %v1196_v25, %v314_v22  ;;  %v306_v36 = vadd.f32 %v1632_v26, %v305_v5  ;;  %v370_v48 = vadd.f32 %v1632_v26, %v369_v21 }
  0xfe   :  { %v1395_v20 = vpop.f32.mrf.mxu0  ;;  %v1411_v30 = vpop.f32.mrf.mxu1  ;;  %v1800_v4 = vadd.f32 %v1228_v58, %v378_v63 }
  0xff   :  { %490 = vadd.xlane.f32.xlu1 %v1707_v34  ;;  %488 = vadd.xlane.f32.xlu0 %v1709_v35  ;;  %v317_v23 = vadd.f32 %v1395_v20, %v1632_v26  ;;  %v1783_v55 = vadd.f32 %v1192_v41, %v306_v36  ;;  %v381_v0 = vadd.f32 %v1411_v30, %v1632_v26 }
 0x100   :  { %v308_v29 = vpop.f32.mrf.mxu0  ;;  %v372_v43 = vpop.f32.mrf.mxu1  ;;  %v1794_v2 = vadd.f32 %v1224_v47, %v370_v48 }
 0x101   :  { %v1768_v32 = vadd.f32 %v1197_v24, %v317_v23  ;;  %v309_v37 = vadd.f32 %v1632_v26, %v308_v29  ;;  %v373_v49 = vadd.f32 %v1632_v26, %v372_v43  ;;  %v1798_v3 = vadd.f32 %v1229_v57, %v381_v0 }
 0x103   :  { %522 = vadd.xlane.f32.xlu1 %v1718_v45  ;;  %520 = vadd.xlane.f32.xlu0 %v1720_v46  ;;  %v1781_v50 = vadd.f32 %v1193_v40, %v309_v37  ;;  %v1792_v1 = vadd.f32 %v1225_v44, %v373_v49 }
 0x107   :  { %502 = vadd.xlane.f32.xlu1 %v1726_v53  ;;  %500 = vadd.xlane.f32.xlu0 %v1728_v54 }
 0x10b   :  { %534 = vadd.xlane.f32.xlu1 %v1735_v59  ;;  %532 = vadd.xlane.f32.xlu0 %v1737_v60 }
 0x10f   :  { %498 = vadd.xlane.f32.xlu1 %v1751_v16  ;;  %496 = vadd.xlane.f32.xlu0 %v1753_v17 }
 0x113   :  { %530 = vadd.xlane.f32.xlu1 %v1759_v27  ;;  %528 = vadd.xlane.f32.xlu0 %v1761_v28 }
 0x117   :  { %510 = vadd.xlane.f32.xlu1 %v1768_v32  ;;  %508 = vadd.xlane.f32.xlu0 %v1770_v33 }
 0x11b   :  { %506 = vadd.xlane.f32.xlu1 %v1781_v50  ;;  %504 = vadd.xlane.f32.xlu0 %v1783_v55 }
 0x11f   :  { %538 = vadd.xlane.f32.xlu1 %v1792_v1  ;;  %536 = vadd.xlane.f32.xlu0 %v1794_v2 }
 0x123   :  { %542 = vadd.xlane.f32.xlu1 %v1798_v3  ;;  %540 = vadd.xlane.f32.xlu0 %v1800_v4 }
 0x170   :  { %v517_v5 = vpop.xlane.xlu0 %516  ;;  %v485_v8 = vpop.xlane.xlu1 %484 }
 0x171   :  { %v563_v9 = vmul.f32 0.0078125, %v517_v5  ;;  %v547_v26 = vmul.f32 0.0078125, %v485_v8 }
 0x173   :  { %v1805_v10 = vsub.f32 %v1642_v39, %v547_v26  ;;  %v1808_v15 = vsub.f32 %v1640_v38, %v563_v9 }
 0x174   :  { %v487_v11 = vpop.xlane.xlu1 %486  ;;  %v481_v14 = vpop.xlane.xlu0 %480 }
 0x175   :  { %v548_v20 = vmul.f32 0.0078125, %v487_v11  ;;  %v545_v21 = vmul.f32 0.0078125, %v481_v14  ;;  %v611_v22 = vmul.f32 %v1805_v10, %v1805_v10  ;;  %v627_v31 = vmul.f32 %v1808_v15, %v1808_v15 }
 0x177   :  { %v1813_v23 = vsub.f32 %v1652_v51, %v548_v20  ;;  %645 = vadd.xlane.f32.xlu0 %v611_v22  ;;  %v1816_v24 = vsub.f32 %v1654_v52, %v545_v21 }
 0x178   :  { %v519_v25 = vpop.xlane.xlu1 %518  ;;  %v513_v39 = vpop.xlane.xlu0 %512 }
 0x179   :  { %v564_v29 = vmul.f32 0.0078125, %v519_v25  ;;  %v561_v30 = vmul.f32 0.0078125, %v513_v39  ;;  %v612_v38 = vmul.f32 %v1813_v23, %v1813_v23  ;;  %v609_v52 = vmul.f32 %v1816_v24, %v1816_v24 }
 0x17b   :  { %v1823_v36 = vsub.f32 %v1663_v61, %v564_v29  ;;  %647 = vadd.xlane.f32.xlu1 %v612_v38  ;;  %677 = vadd.xlane.f32.xlu0 %v627_v31  ;;  %v1828_v40 = vsub.f32 %v1665_v62, %v561_v30 }
 0x17c   :  { %v515_v51 = vpop.xlane.xlu1 %514  ;;  %v483_v37 = vpop.xlane.xlu0 %482 }
 0x17d   :  { %v562_v41 = vmul.f32 0.0078125, %v515_v51  ;;  %v546_v42 = vmul.f32 0.0078125, %v483_v37  ;;  %v628_v43 = vmul.f32 %v1823_v36, %v1823_v36  ;;  %v625_v62 = vmul.f32 %v1828_v40, %v1828_v40 }
 0x17f   :  { %v1833_v44 = vsub.f32 %v1676_v7, %v546_v42  ;;  %679 = vadd.xlane.f32.xlu1 %v628_v43  ;;  %641 = vadd.xlane.f32.xlu0 %v609_v52  ;;  %v1836_v61 = vsub.f32 %v1674_v6, %v562_v41 }
 0x180   :  { %v495_v47 = vpop.xlane.xlu1 %494  ;;  %v493_v48 = vpop.xlane.xlu0 %492 }
 0x181   :  { %v552_v49 = vmul.f32 0.0078125, %v495_v47  ;;  %v551_v56 = vmul.f32 0.0078125, %v493_v48  ;;  %v610_v57 = vmul.f32 %v1833_v44, %v1833_v44  ;;  %v626_v6 = vmul.f32 %v1836_v61, %v1836_v61 }
 0x183   :  { %v1843_v58 = vsub.f32 %v1684_v13, %v551_v56  ;;  %673 = vadd.xlane.f32.xlu0 %v625_v62  ;;  %643 = vadd.xlane.f32.xlu1 %v610_v57  ;;  %v1848_v0 = vsub.f32 %v1682_v12, %v552_v49 }
 0x184   :  { %v527_v7 = vpop.xlane.xlu1 %526  ;;  %v525_v63 = vpop.xlane.xlu0 %524 }
 0x185   :  { %v568_v5 = vmul.f32 0.0078125, %v527_v7  ;;  %v567_v8 = vmul.f32 0.0078125, %v525_v63  ;;  %v615_v9 = vmul.f32 %v1843_v58, %v1843_v58  ;;  %v616_v12 = vmul.f32 %v1848_v0, %v1848_v0 }
 0x187   :  { %v1853_v26 = vsub.f32 %v1693_v19, %v567_v8  ;;  %675 = vadd.xlane.f32.xlu1 %v626_v6  ;;  %653 = vadd.xlane.f32.xlu0 %v615_v9  ;;  %v1856_v13 = vsub.f32 %v1691_v18, %v568_v5 }
 0x188   :  { %v491_v11 = vpop.xlane.xlu1 %490  ;;  %v489_v14 = vpop.xlane.xlu0 %488 }
 0x189   :  { %v550_v20 = vmul.f32 0.0078125, %v491_v11  ;;  %v549_v21 = vmul.f32 0.0078125, %v489_v14  ;;  %v631_v22 = vmul.f32 %v1853_v26, %v1853_v26  ;;  %v632_v18 = vmul.f32 %v1856_v13, %v1856_v13 }
 0x18b   :  { %v1863_v25 = vsub.f32 %v1709_v35, %v549_v21  ;;  %655 = vadd.xlane.f32.xlu1 %v616_v12  ;;  %685 = vadd.xlane.f32.xlu0 %v631_v22  ;;  %v1868_v29 = vsub.f32 %v1707_v34, %v550_v20 }
 0x18c   :  { %v523_v19 = vpop.xlane.xlu1 %522  ;;  %v521_v39 = vpop.xlane.xlu0 %520 }
 0x18d   :  { %v566_v30 = vmul.f32 0.0078125, %v523_v19  ;;  %v565_v38 = vmul.f32 0.0078125, %v521_v39  ;;  %v613_v31 = vmul.f32 %v1863_v25, %v1863_v25  ;;  %v614_v34 = vmul.f32 %v1868_v29, %v1868_v29 }
 0x18f   :  { %v1873_v51 = vsub.f32 %v1720_v46, %v565_v38  ;;  %687 = vadd.xlane.f32.xlu1 %v632_v18  ;;  %649 = vadd.xlane.f32.xlu0 %v613_v31  ;;  %v1876_v35 = vsub.f32 %v1718_v45, %v566_v30 }
 0x190   :  { %v503_v37 = vpop.xlane.xlu1 %502  ;;  %v501_v52 = vpop.xlane.xlu0 %500 }
 0x191   :  { %v556_v41 = vmul.f32 0.0078125, %v503_v37  ;;  %v555_v42 = vmul.f32 0.0078125, %v501_v52  ;;  %v629_v43 = vmul.f32 %v1873_v51, %v1873_v51  ;;  %v630_v45 = vmul.f32 %v1876_v35, %v1876_v35 }
 0x193   :  { %v1883_v47 = vsub.f32 %v1728_v54, %v555_v42  ;;  %651 = vadd.xlane.f32.xlu1 %v614_v34  ;;  %681 = vadd.xlane.f32.xlu0 %v629_v43  ;;  %v1888_v49 = vsub.f32 %v1726_v53, %v556_v41 }
 0x194   :  { %v535_v46 = vpop.xlane.xlu1 %534  ;;  %v533_v48 = vpop.xlane.xlu0 %532 }
 0x195   :  { %v572_v56 = vmul.f32 0.0078125, %v535_v46  ;;  %v571_v62 = vmul.f32 0.0078125, %v533_v48  ;;  %v619_v57 = vmul.f32 %v1883_v47, %v1883_v47  ;;  %v620_v53 = vmul.f32 %v1888_v49, %v1888_v49 }
 0x197   :  { %v1893_v7 = vsub.f32 %v1737_v60, %v571_v62  ;;  %683 = vadd.xlane.f32.xlu1 %v630_v45  ;;  %661 = vadd.xlane.f32.xlu0 %v619_v57  ;;  %v1896_v54 = vsub.f32 %v1735_v59, %v572_v56 }
 0x198   :  { %v499_v63 = vpop.xlane.xlu1 %498  ;;  %v497_v6 = vpop.xlane.xlu0 %496 }
 0x199   :  { %v554_v5 = vmul.f32 0.0078125, %v499_v63  ;;  %v553_v8 = vmul.f32 0.0078125, %v497_v6  ;;  %v635_v9 = vmul.f32 %v1893_v7, %v1893_v7  ;;  %v636_v59 = vmul.f32 %v1896_v54, %v1896_v54 }
 0x19b   :  { %v1903_v11 = vsub.f32 %v1753_v17, %v553_v8  ;;  %663 = vadd.xlane.f32.xlu1 %v620_v53  ;;  %693 = vadd.xlane.f32.xlu0 %v635_v9  ;;  %v1908_v20 = vsub.f32 %v1751_v16, %v554_v5 }
 0x19c   :  { %v531_v60 = vpop.xlane.xlu1 %530  ;;  %v529_v14 = vpop.xlane.xlu0 %528 }
 0x19d   :  { %v570_v21 = vmul.f32 0.0078125, %v531_v60  ;;  %v569_v12 = vmul.f32 0.0078125, %v529_v14  ;;  %v617_v22 = vmul.f32 %v1903_v11, %v1903_v11  ;;  %v618_v16 = vmul.f32 %v1908_v20, %v1908_v20 }
 0x19f   :  { %v1913_v19 = vsub.f32 %v1761_v28, %v569_v12  ;;  %695 = vadd.xlane.f32.xlu1 %v636_v59  ;;  %657 = vadd.xlane.f32.xlu0 %v617_v22  ;;  %v1916_v17 = vsub.f32 %v1759_v27, %v570_v21 }
 0x1a0   :  { %v511_v39 = vpop.xlane.xlu1 %510  ;;  %v509_v18 = vpop.xlane.xlu0 %508 }
 0x1a1   :  { %v560_v30 = vmul.f32 0.0078125, %v511_v39  ;;  %v559_v38 = vmul.f32 0.0078125, %v509_v18  ;;  %v633_v31 = vmul.f32 %v1913_v19, %v1913_v19  ;;  %v634_v27 = vmul.f32 %v1916_v17, %v1916_v17 }
 0x1a3   :  { %v1923_v37 = vsub.f32 %v1770_v33, %v559_v38  ;;  %659 = vadd.xlane.f32.xlu1 %v618_v16  ;;  %689 = vadd.xlane.f32.xlu0 %v633_v31  ;;  %v1928_v41 = vsub.f32 %v1768_v32, %v560_v30 }
 0x1a4   :  { %v507_v28 = vpop.xlane.xlu1 %506  ;;  %v505_v52 = vpop.xlane.xlu0 %504 }
 0x1a5   :  { %v558_v42 = vmul.f32 0.0078125, %v507_v28  ;;  %v557_v34 = vmul.f32 0.0078125, %v505_v52  ;;  %v623_v43 = vmul.f32 %v1923_v37, %v1923_v37  ;;  %v624_v32 = vmul.f32 %v1928_v41, %v1928_v41 }
 0x1a7   :  { %v1933_v46 = vsub.f32 %v1783_v55, %v557_v34  ;;  %691 = vadd.xlane.f32.xlu1 %v634_v27  ;;  %669 = vadd.xlane.f32.xlu0 %v623_v43  ;;  %v1936_v33 = vsub.f32 %v1781_v50, %v558_v42 }
 0x1a8   :  { %v539_v48 = vpop.xlane.xlu1 %538  ;;  %v537_v45 = vpop.xlane.xlu0 %536 }
 0x1a9   :  { %v574_v56 = vmul.f32 0.0078125, %v539_v48  ;;  %v573_v62 = vmul.f32 0.0078125, %v537_v45  ;;  %v621_v57 = vmul.f32 %v1933_v46, %v1933_v46  ;;  %v622_v50 = vmul.f32 %v1936_v33, %v1936_v33 }
 0x1ab   :  { %v1943_v63 = vsub.f32 %v1794_v2, %v573_v62  ;;  %671 = vadd.xlane.f32.xlu1 %v624_v32  ;;  %665 = vadd.xlane.f32.xlu0 %v621_v57  ;;  %v1948_v5 = vsub.f32 %v1792_v1, %v574_v56 }
 0x1ac   :  { %v543_v55 = vpop.xlane.xlu1 %542  ;;  %v541_v6 = vpop.xlane.xlu0 %540 }
 0x1ad   :  { %v576_v8 = vmul.f32 0.0078125, %v543_v55  ;;  %v575_v53 = vmul.f32 0.0078125, %v541_v6  ;;  %v637_v9 = vmul.f32 %v1943_v63, %v1943_v63  ;;  %v638_v14 = vmul.f32 %v1948_v5, %v1948_v5 }
 0x1af   :  { %v1953_v60 = vsub.f32 %v1800_v4, %v575_v53  ;;  %667 = vadd.xlane.f32.xlu1 %v622_v50  ;;  %697 = vadd.xlane.f32.xlu0 %v637_v9  ;;  %v1956_v2 = vsub.f32 %v1798_v3, %v576_v8  ;;  %v1967_v8 = vld [vmem:[%s2122_s4] ss:$0 sm:$0xff] }
 0x1b1   :  { %v639_v1 = vmul.f32 %v1953_v60, %v1953_v60  ;;  %v640_v59 = vmul.f32 %v1956_v2, %v1956_v2 }
 0x1b3   :  { %699 = vadd.xlane.f32.xlu1 %v638_v14  ;;  %701 = vadd.xlane.f32.xlu0 %v639_v1 }
 0x1b7   :  { %703 = vadd.xlane.f32.xlu1 %v640_v59 }
 0x200   :  { %v646_v21 = vpop.xlane.xlu0 %645 }
 0x201   :  { %v707_v4 = vmul.f32 0.0078125, %v646_v21 }
 0x203   :  { %v739_v12 = vadd.f32 1e-12, %v707_v4 }
 0x204   :  { %v648_v22 = vpop.xlane.xlu1 %647  ;;  %v678_v39 = vpop.xlane.xlu0 %677 }
 0x205   :  { %1452 = vrsqrt.f32 %v739_v12  ;;  %v708_v3 = vmul.f32 0.0078125, %v648_v22  ;;  %v723_v18 = vmul.f32 0.0078125, %v678_v39 }
 0x207   :  { %v740_v30 = vadd.f32 1e-12, %v708_v3  ;;  %v755_v38 = vadd.f32 1e-12, %v723_v18  ;;  %v1974_v3 = vld [vmem:[%s2123_s5] ss:$0 sm:$0xff] }
 0x208   :  { %v680_v16 = vpop.xlane.xlu1 %679  ;;  %v642_v31 = vpop.xlane.xlu0 %641 }
 0x209   :  { %1454 = vrsqrt.f32 %v740_v30  ;;  %v724_v28 = vmul.f32 0.0078125, %v680_v16  ;;  %v705_v52 = vmul.f32 0.0078125, %v642_v31 }
 0x20a   :  { %1456 = vrsqrt.f32 %v755_v38 }
 0x20b   :  { %v756_v27 = vadd.f32 1e-12, %v724_v28  ;;  %v737_v42 = vadd.f32 1e-12, %v705_v52 }
 0x20c   :  { %v644_v34 = vpop.xlane.xlu1 %643  ;;  %v674_v43 = vpop.xlane.xlu0 %673 }
 0x20d   :  { %1458 = vrsqrt.f32 %v756_v27  ;;  %v706_v48 = vmul.f32 0.0078125, %v644_v34  ;;  %v721_v45 = vmul.f32 0.0078125, %v674_v43 }
 0x20e   :  { %1460 = vrsqrt.f32 %v737_v42 }
 0x20f   :  { %v738_v56 = vadd.f32 1e-12, %v706_v48  ;;  %v753_v62 = vadd.f32 1e-12, %v721_v45 }
 0x210   :  { %v676_v32 = vpop.xlane.xlu1 %675  ;;  %v654_v57 = vpop.xlane.xlu0 %653 }
 0x211   :  { %1462 = vrsqrt.f32 %v738_v56  ;;  %v722_v55 = vmul.f32 0.0078125, %v676_v32  ;;  %v711_v6 = vmul.f32 0.0078125, %v654_v57 }
 0x212   :  { %v1453_v50 = vpop.eup %1452  ;;  %1464 = vrsqrt.f32 %v753_v62 }
 0x213   :  { %v803_v53 = vmul.f32 %v1453_v50, %v1805_v10  ;;  %v754_v9 = vadd.f32 1e-12, %v722_v55  ;;  %v743_v14 = vadd.f32 1e-12, %v711_v6 }
 0x214   :  { %v656_v1 = vpop.xlane.xlu1 %655  ;;  %v686_v59 = vpop.xlane.xlu0 %685 }
 0x215   :  { %1466 = vrsqrt.f32 %v754_v9  ;;  %v712_v21 = vmul.f32 0.0078125, %v656_v1  ;;  %v727_v4 = vmul.f32 0.0078125, %v686_v59  ;;  %v842_v22 = vmul.f32 %v1967_v8, %v803_v53 }
 0x216   :  { %v1455_v12 = vpop.eup %1454  ;;  %1468 = vrsqrt.f32 %v743_v14 }
 0x217   :  { %v1457_v39 = vpop.eup %1456  ;;  %v804_v18 = vmul.f32 %v1455_v12, %v1813_v23  ;;  %v744_v10 = vadd.f32 1e-12, %v712_v21  ;;  %v759_v30 = vadd.f32 1e-12, %v727_v4  ;;  %v881_v34 = vadd.f32 %v1974_v3, %v842_v22 }
 0x218   :  { %v819_v38 = vmul.f32 %v1457_v39, %v1808_v15  ;;  %v688_v16 = vpop.xlane.xlu1 %687  ;;  %v650_v31 = vpop.xlane.xlu0 %649 }
 0x219   :  { %v843_v28 = vmul.f32 %v1967_v8, %v804_v18  ;;  %1470 = vrsqrt.f32 %v744_v10  ;;  %v728_v52 = vmul.f32 0.0078125, %v688_v16  ;;  %v709_v27 = vmul.f32 0.0078125, %v650_v31 }
 0x21a   :  { %v1459_v42 = vpop.eup %1458  ;;  %v858_v43 = vmul.f32 %v1967_v8, %v819_v38  ;;  %1472 = vrsqrt.f32 %v759_v30 }
 0x21b   :  { %v1461_v48 = vpop.eup %1460  ;;  %v882_v23 = vadd.f32 %v1974_v3, %v843_v28  ;;  %v820_v45 = vmul.f32 %v1459_v42, %v1823_v36  ;;  %v760_v56 = vadd.f32 1e-12, %v728_v52  ;;  %v741_v15 = vadd.f32 1e-12, %v709_v27 }
 0x21c   :  { %v801_v62 = vmul.f32 %v1461_v48, %v1816_v24  ;;  %v652_v32 = vpop.xlane.xlu1 %651  ;;  %v682_v57 = vpop.xlane.xlu0 %681  ;;  %v897_v36 = vadd.f32 %v1974_v3, %v858_v43 }
 0x21d   :  { %v1238_v55 = vpack.c.bf16 %v882_v23, %v881_v34  ;;  %v859_v6 = vmul.f32 %v1967_v8, %v820_v45  ;;  %1474 = vrsqrt.f32 %v760_v56  ;;  %v710_v50 = vmul.f32 0.0078125, %v652_v32 }
 0x21e   :  { %v1463_v53 = vpop.eup %1462  ;;  %v840_v9 = vmul.f32 %v1967_v8, %v801_v62  ;;  %1476 = vrsqrt.f32 %v741_v15  ;;  %v725_v14 = vmul.f32 0.0078125, %v682_v57 }
 0x21f   :  { %v1465_v1 = vpop.eup %1464  ;;  %1325 = vst [vmem:[%s2124_s6 + $0x8] sm:$0xff] %v1238_v55   ;;  %v898_v24 = vadd.f32 %v1974_v3, %v859_v6  ;;  %v802_v59 = vmul.f32 %v1463_v53, %v1833_v44  ;;  %v742_v21 = vadd.f32 1e-12, %v710_v50 }
 0x220   :  { %v817_v4 = vmul.f32 %v1465_v1, %v1828_v40  ;;  %v757_v12 = vadd.f32 1e-12, %v725_v14  ;;  %v684_v22 = vpop.xlane.xlu1 %683  ;;  %v662_v39 = vpop.xlane.xlu0 %661  ;;  %v879_v16 = vadd.f32 %v1974_v3, %v840_v9 }
 0x221   :  { %v1278_v18 = vpack.c.bf16 %v898_v24, %v897_v36  ;;  %v841_v10 = vmul.f32 %v1967_v8, %v802_v59  ;;  %1478 = vrsqrt.f32 %v742_v21  ;;  %v726_v30 = vmul.f32 0.0078125, %v684_v22 }
 0x222   :  { %v1467_v38 = vpop.eup %1466  ;;  %1480 = vrsqrt.f32 %v757_v12  ;;  %v715_v31 = vmul.f32 0.0078125, %v662_v39  ;;  %v856_v44 = vmul.f32 %v1967_v8, %v817_v4 }
 0x223   :  { %v1469_v28 = vpop.eup %1468  ;;  %1333 = vst [vmem:[%s2124_s6 + $0x48] sm:$0xff] %v1278_v18   ;;  %v880_v40 = vadd.f32 %v1974_v3, %v841_v10  ;;  %v818_v52 = vmul.f32 %v1467_v38, %v1836_v61  ;;  %v758_v27 = vadd.f32 1e-12, %v726_v30 }
 0x224   :  { %v807_v42 = vmul.f32 %v1469_v28, %v1843_v58  ;;  %v747_v34 = vadd.f32 1e-12, %v715_v31  ;;  %v664_v43 = vpop.xlane.xlu1 %663  ;;  %v694_v48 = vpop.xlane.xlu0 %693  ;;  %v895_v61 = vadd.f32 %v1974_v3, %v856_v44 }
 0x225   :  { %v1233_v23 = vpack.c.bf16 %v880_v40, %v879_v16  ;;  %v857_v45 = vmul.f32 %v1967_v8, %v818_v52  ;;  %1482 = vrsqrt.f32 %v758_v27  ;;  %v716_v56 = vmul.f32 0.0078125, %v664_v43 }
 0x226   :  { %v1471_v15 = vpop.eup %1470  ;;  %v846_v62 = vmul.f32 %v1967_v8, %v807_v42  ;;  %1484 = vrsqrt.f32 %v747_v34  ;;  %v731_v32 = vmul.f32 0.0078125, %v694_v48 }
 0x227   :  { %v1473_v57 = vpop.eup %1472  ;;  %1234 = vst [vmem:[%s2124_s6] sm:$0xff] %v1233_v23   ;;  %v896_v58 = vadd.f32 %v1974_v3, %v857_v45  ;;  %v808_v55 = vmul.f32 %v1471_v15, %v1848_v0  ;;  %v748_v6 = vadd.f32 1e-12, %v716_v56 }
 0x228   :  { %v823_v50 = vmul.f32 %v1473_v57, %v1853_v26  ;;  %v763_v53 = vadd.f32 1e-12, %v731_v32  ;;  %v696_v9 = vpop.xlane.xlu1 %695  ;;  %v658_v14 = vpop.xlane.xlu0 %657  ;;  %v885_v21 = vadd.f32 %v1974_v3, %v846_v62 }
 0x229   :  { %v1273_v1 = vpack.c.bf16 %v896_v58, %v895_v61  ;;  %v847_v36 = vmul.f32 %v1967_v8, %v808_v55  ;;  %1486 = vrsqrt.f32 %v748_v6  ;;  %v732_v24 = vmul.f32 0.0078125, %v696_v9 }
 0x22a   :  { %v1475_v59 = vpop.eup %1474  ;;  %1488 = vrsqrt.f32 %v763_v53  ;;  %v713_v4 = vmul.f32 0.0078125, %v658_v14  ;;  %v862_v26 = vmul.f32 %v1967_v8, %v823_v50 }
 0x22b   :  { %v1477_v12 = vpop.eup %1476  ;;  %1332 = vst [vmem:[%s2124_s6 + $0x40] sm:$0xff] %v1273_v1   ;;  %v886_v0 = vadd.f32 %v1974_v3, %v847_v36  ;;  %v824_v22 = vmul.f32 %v1475_v59, %v1856_v13  ;;  %v764_v39 = vadd.f32 1e-12, %v732_v24 }
 0x22c   :  { %v805_v18 = vmul.f32 %v1477_v12, %v1863_v25  ;;  %v745_v10 = vadd.f32 1e-12, %v713_v4  ;;  %v660_v30 = vpop.xlane.xlu1 %659  ;;  %v690_v38 = vpop.xlane.xlu0 %689  ;;  %v901_v13 = vadd.f32 %v1974_v3, %v862_v26 }
 0x22d   :  { %v1248_v16 = vpack.c.bf16 %v886_v0, %v885_v21  ;;  %v863_v31 = vmul.f32 %v1967_v8, %v824_v22  ;;  %1490 = vrsqrt.f32 %v764_v39  ;;  %v714_v28 = vmul.f32 0.0078125, %v660_v30 }
 0x22e   :  { %v1479_v40 = vpop.eup %1478  ;;  %v844_v44 = vmul.f32 %v1967_v8, %v805_v18  ;;  %1492 = vrsqrt.f32 %v745_v10  ;;  %v729_v52 = vmul.f32 0.0078125, %v690_v38 }
 0x22f   :  { %v1481_v27 = vpop.eup %1480  ;;  %1327 = vst [vmem:[%s2124_s6 + $0x18] sm:$0xff] %v1248_v16   ;;  %v902_v25 = vadd.f32 %v1974_v3, %v863_v31  ;;  %v806_v42 = vmul.f32 %v1479_v40, %v1868_v29  ;;  %v746_v34 = vadd.f32 1e-12, %v714_v28 }
 0x230   :  { %v821_v43 = vmul.f32 %v1481_v27, %v1873_v51  ;;  %v761_v48 = vadd.f32 1e-12, %v729_v52  ;;  %v692_v23 = vpop.xlane.xlu1 %691  ;;  %v670_v45 = vpop.xlane.xlu0 %669  ;;  %v883_v57 = vadd.f32 %v1974_v3, %v844_v44 }
 0x231   :  { %v1288_v56 = vpack.c.bf16 %v902_v25, %v901_v13  ;;  %v845_v15 = vmul.f32 %v1967_v8, %v806_v42  ;;  %1494 = vrsqrt.f32 %v746_v34  ;;  %v730_v62 = vmul.f32 0.0078125, %v692_v23 }
 0x232   :  { %v1483_v32 = vpop.eup %1482  ;;  %1496 = vrsqrt.f32 %v761_v48  ;;  %v719_v61 = vmul.f32 0.0078125, %v670_v45  ;;  %v860_v51 = vmul.f32 %v1967_v8, %v821_v43 }
 0x233   :  { %v1485_v58 = vpop.eup %1484  ;;  %1335 = vst [vmem:[%s2124_s6 + $0x58] sm:$0xff] %v1288_v56   ;;  %v884_v29 = vadd.f32 %v1974_v3, %v845_v15  ;;  %v822_v55 = vmul.f32 %v1483_v32, %v1876_v35  ;;  %v762_v6 = vadd.f32 1e-12, %v730_v62 }
 0x234   :  { %v811_v50 = vmul.f32 %v1485_v58, %v1883_v47  ;;  %v751_v53 = vadd.f32 1e-12, %v719_v61  ;;  %v672_v9 = vpop.xlane.xlu1 %671  ;;  %v666_v14 = vpop.xlane.xlu0 %665  ;;  %v899_v35 = vadd.f32 %v1974_v3, %v860_v51 }
 0x235   :  { %v1243_v1 = vpack.c.bf16 %v884_v29, %v883_v57  ;;  %v861_v36 = vmul.f32 %v1967_v8, %v822_v55  ;;  %1498 = vrsqrt.f32 %v762_v6  ;;  %v720_v24 = vmul.f32 0.0078125, %v672_v9 }
 0x236   :  { %v1487_v59 = vpop.eup %1486  ;;  %v850_v21 = vmul.f32 %v1967_v8, %v811_v50  ;;  %1500 = vrsqrt.f32 %v751_v53  ;;  %v717_v4 = vmul.f32 0.0078125, %v666_v14 }
 0x237   :  { %v1489_v12 = vpop.eup %1488  ;;  %1326 = vst [vmem:[%s2124_s6 + $0x10] sm:$0xff] %v1243_v1   ;;  %v900_v47 = vadd.f32 %v1974_v3, %v861_v36  ;;  %v812_v0 = vmul.f32 %v1487_v59, %v1888_v49  ;;  %v752_v26 = vadd.f32 1e-12, %v720_v24 }
 0x238   :  { %v827_v22 = vmul.f32 %v1489_v12, %v1893_v7  ;;  %v749_v39 = vadd.f32 1e-12, %v717_v4  ;;  %v668_v18 = vpop.xlane.xlu1 %667  ;;  %v698_v10 = vpop.xlane.xlu0 %697  ;;  %v889_v28 = vadd.f32 %v1974_v3, %v850_v21 }
 0x239   :  { %v1283_v30 = vpack.c.bf16 %v900_v47, %v899_v35  ;;  %v851_v38 = vmul.f32 %v1967_v8, %v812_v0  ;;  %1502 = vrsqrt.f32 %v752_v26  ;;  %v718_v16 = vmul.f32 0.0078125, %v668_v18 }
 0x23a   :  { %v1491_v31 = vpop.eup %1490  ;;  %1504 = vrsqrt.f32 %v749_v39  ;;  %v733_v40 = vmul.f32 0.0078125, %v698_v10  ;;  %v866_v7 = vmul.f32 %v1967_v8, %v827_v22 }
 0x23b   :  { %v1493_v44 = vpop.eup %1492  ;;  %1334 = vst [vmem:[%s2124_s6 + $0x50] sm:$0xff] %v1283_v30   ;;  %v890_v49 = vadd.f32 %v1974_v3, %v851_v38  ;;  %v828_v52 = vmul.f32 %v1491_v31, %v1896_v54  ;;  %v750_v27 = vadd.f32 1e-12, %v718_v16 }
 0x23c   :  { %v809_v13 = vmul.f32 %v1493_v44, %v1903_v11  ;;  %v765_v25 = vadd.f32 1e-12, %v733_v40  ;;  %v700_v42 = vpop.xlane.xlu1 %699  ;;  %v702_v34 = vpop.xlane.xlu0 %701  ;;  %v905_v54 = vadd.f32 %v1974_v3, %v866_v7 }
 0x23d   :  { %v1258_v43 = vpack.c.bf16 %v890_v49, %v889_v28  ;;  %v867_v48 = vmul.f32 %v1967_v8, %v828_v52  ;;  %1506 = vrsqrt.f32 %v750_v27  ;;  %v734_v23 = vmul.f32 0.0078125, %v700_v42 }
 0x23e   :  { %v1495_v45 = vpop.eup %1494  ;;  %v848_v56 = vmul.f32 %v1967_v8, %v809_v13  ;;  %1508 = vrsqrt.f32 %v765_v25  ;;  %v735_v15 = vmul.f32 0.0078125, %v702_v34 }
 0x23f   :  { %v1497_v62 = vpop.eup %1496  ;;  %1329 = vst [vmem:[%s2124_s6 + $0x28] sm:$0xff] %v1258_v43   ;;  %v906_v11 = vadd.f32 %v1974_v3, %v867_v48  ;;  %v810_v32 = vmul.f32 %v1495_v45, %v1908_v20  ;;  %v766_v57 = vadd.f32 1e-12, %v734_v23 }
 0x240   :  { %v825_v61 = vmul.f32 %v1497_v62, %v1913_v19  ;;  %v767_v58 = vadd.f32 1e-12, %v735_v15  ;;  %v704_v29 = vpop.xlane.xlu1 %703  ;;  %v887_v53 = vadd.f32 %v1974_v3, %v848_v56 }
 0x241   :  { %v1298_v51 = vpack.c.bf16 %v906_v11, %v905_v54  ;;  %v849_v55 = vmul.f32 %v1967_v8, %v810_v32  ;;  %1510 = vrsqrt.f32 %v766_v57  ;;  %v736_v6 = vmul.f32 0.0078125, %v704_v29 }
 0x242   :  { %v1499_v50 = vpop.eup %1498  ;;  %1512 = vrsqrt.f32 %v767_v58  ;;  %v864_v19 = vmul.f32 %v1967_v8, %v825_v61 }
 0x243   :  { %v1501_v9 = vpop.eup %1500  ;;  %1337 = vst [vmem:[%s2124_s6 + $0x68] sm:$0xff] %v1298_v51   ;;  %v888_v20 = vadd.f32 %v1974_v3, %v849_v55  ;;  %v826_v14 = vmul.f32 %v1499_v50, %v1916_v17  ;;  %v768_v1 = vadd.f32 1e-12, %v736_v6 }
 0x244   :  { %v815_v36 = vmul.f32 %v1501_v9, %v1923_v37  ;;  %v903_v12 = vadd.f32 %v1974_v3, %v864_v19 }
 0x245   :  { %v1253_v24 = vpack.c.bf16 %v888_v20, %v887_v53  ;;  %v865_v59 = vmul.f32 %v1967_v8, %v826_v14  ;;  %1514 = vrsqrt.f32 %v768_v1 }
 0x246   :  { %v1503_v21 = vpop.eup %1502  ;;  %v854_v47 = vmul.f32 %v1967_v8, %v815_v36 }
 0x247   :  { %v1505_v4 = vpop.eup %1504  ;;  %1328 = vst [vmem:[%s2124_s6 + $0x20] sm:$0xff] %v1253_v24   ;;  %v904_v35 = vadd.f32 %v1974_v3, %v865_v59  ;;  %v816_v17 = vmul.f32 %v1503_v21, %v1928_v41 }
 0x248   :  { %v813_v37 = vmul.f32 %v1505_v4, %v1933_v46  ;;  %v893_v18 = vadd.f32 %v1974_v3, %v854_v47 }
 0x249   :  { %v1293_v0 = vpack.c.bf16 %v904_v35, %v903_v12  ;;  %v855_v26 = vmul.f32 %v1967_v8, %v816_v17 }
 0x24a   :  { %v1507_v22 = vpop.eup %1506  ;;  %v852_v30 = vmul.f32 %v1967_v8, %v813_v37 }
 0x24b   :  { %v1509_v39 = vpop.eup %1508  ;;  %1336 = vst [vmem:[%s2124_s6 + $0x60] sm:$0xff] %v1293_v0   ;;  %v894_v10 = vadd.f32 %v1974_v3, %v855_v26  ;;  %v814_v38 = vmul.f32 %v1507_v22, %v1936_v33 }
 0x24c   :  { %v829_v41 = vmul.f32 %v1509_v39, %v1943_v63  ;;  %v891_v40 = vadd.f32 %v1974_v3, %v852_v30 }
 0x24d   :  { %v1268_v46 = vpack.c.bf16 %v894_v10, %v893_v18  ;;  %v853_v16 = vmul.f32 %v1967_v8, %v814_v38 }
 0x24e   :  { %v1511_v31 = vpop.eup %1510  ;;  %v868_v49 = vmul.f32 %v1967_v8, %v829_v41 }
 0x24f   :  { %v1513_v28 = vpop.eup %1512  ;;  %1331 = vst [vmem:[%s2124_s6 + $0x38] sm:$0xff] %v1268_v46   ;;  %v892_v44 = vadd.f32 %v1974_v3, %v853_v16  ;;  %v830_v7 = vmul.f32 %v1511_v31, %v1948_v5 }
 0x250   :  { %v831_v33 = vmul.f32 %v1513_v28, %v1953_v60  ;;  %v907_v13 = vadd.f32 %v1974_v3, %v868_v49 }
 0x251   :  { %v1263_v63 = vpack.c.bf16 %v892_v44, %v891_v40  ;;  %v869_v52 = vmul.f32 %v1967_v8, %v830_v7 }
 0x252   :  { %v1515_v27 = vpop.eup %1514  ;;  %v870_v42 = vmul.f32 %v1967_v8, %v831_v33 }
 0x253   :  { %1330 = vst [vmem:[%s2124_s6 + $0x30] sm:$0xff] %v1263_v63   ;;  %v908_v25 = vadd.f32 %v1974_v3, %v869_v52  ;;  %v832_v34 = vmul.f32 %v1515_v27, %v1956_v2 }
 0x254   :  { %v909_v60 = vadd.f32 %v1974_v3, %v870_v42 }
 0x255   :  { %v1303_v43 = vpack.c.bf16 %v908_v25, %v907_v13  ;;  %v871_v5 = vmul.f32 %v1967_v8, %v832_v34 }
 0x257   :  { %1338 = vst [vmem:[%s2124_s6 + $0x70] sm:$0xff] %v1303_v43   ;;  %v910_v48 = vadd.f32 %v1974_v3, %v871_v5 }
 0x259   :  { %v1308_v23 = vpack.c.bf16 %v910_v48, %v909_v60 }
 0x25b   :  { %1339 = vst [vmem:[%s2124_s6 + $0x78] sm:$0xff] %v1308_v23  }

// kernel: fwd.20
= control target key start
LH: loop header
LB: loop body
LE: loop exit
PB: predicated region body
PF: predicated region fallthrough
CT: control target
= control target key end

     0   :  { %v213_v0 = vmov 0.0   ;;  %vm124_vm0 = vcmask 1041409   ;;  %s281_s1 = inlined_call_operand.vmem [shape: f32[2,128], index: 1, kind: output, shape index: {}]   ;;  %s282_s0 = inlined_call_operand.vmem [shape: bf16[2,128,128], index: 0, kind: input, shape index: {}]  }
   0x1   :  { %12 = vst [vmem:[%s281_s1] sm:$0x3] %v213_v0  ;;  %v134_v1 = vld [vmem:[%s282_s0] sm:$0xff]   ;;  %v197_v3 = vld [vmem:[%s282_s0 + $0x8] sm:$0xff]   ;;  %v198_v11 = vld [vmem:[%s282_s0 + $0x10] sm:$0xff]  }
   0x2   :  { %v204_v2 = vld [vmem:[%s282_s0 + $0x40] sm:$0xff]   ;;  %v205_v4 = vld [vmem:[%s282_s0 + $0x48] sm:$0xff]   ;;  %v135_v5 = vunpack.c.l.bf16 %v134_v1  ;;  %v136_v6 = vunpack.c.h.bf16 %v134_v1  ;;  %v139_v9 = vunpack.c.l.bf16 %v197_v3  ;;  %v206_v12 = vld [vmem:[%s282_s0 + $0x50] sm:$0xff]   ;;  %v140_v13 = vunpack.c.h.bf16 %v197_v3 }
   0x3   :  { %v167_v7 = vunpack.c.l.bf16 %v204_v2  ;;  %v168_v8 = vunpack.c.h.bf16 %v204_v2  ;;  %v171_v10 = vunpack.c.l.bf16 %v205_v4  ;;  %v172_v14 = vunpack.c.h.bf16 %v205_v4  ;;  %v199_v21 = vld [vmem:[%s282_s0 + $0x18] sm:$0xff]   ;;  %v200_v31 = vld [vmem:[%s282_s0 + $0x20] sm:$0xff]   ;;  %v201_v41 = vld [vmem:[%s282_s0 + $0x28] sm:$0xff]  }
   0x4   :  { %v78_v15 = vadd.f32 %v136_v6, %v135_v5  ;;  %v143_v17 = vunpack.c.l.bf16 %v198_v11  ;;  %v175_v18 = vunpack.c.l.bf16 %v206_v12  ;;  %v207_v22 = vld [vmem:[%s282_s0 + $0x58] sm:$0xff]   ;;  %v144_v23 = vunpack.c.h.bf16 %v198_v11  ;;  %v208_v32 = vld [vmem:[%s282_s0 + $0x60] sm:$0xff]   ;;  %v209_v42 = vld [vmem:[%s282_s0 + $0x68] sm:$0xff]  }
   0x5   :  { %v99_v16 = vadd.f32 %v168_v8, %v167_v7  ;;  %v176_v24 = vunpack.c.h.bf16 %v206_v12  ;;  %v147_v27 = vunpack.c.l.bf16 %v199_v21  ;;  %v179_v28 = vunpack.c.l.bf16 %v207_v22  ;;  %v202_v51 = vld [vmem:[%s282_s0 + $0x30] sm:$0xff]   ;;  %v203_v61 = vld [vmem:[%s282_s0 + $0x38] sm:$0xff]  }
   0x6   :  { %v79_v19 = vadd.f32 %v139_v9, %v78_v15  ;;  %v148_v33 = vunpack.c.h.bf16 %v199_v21  ;;  %v180_v34 = vunpack.c.h.bf16 %v207_v22  ;;  %v151_v37 = vunpack.c.l.bf16 %v200_v31  ;;  %v210_v52 = vld [vmem:[%s282_s0 + $0x70] sm:$0xff]   ;;  %v211_v62 = vld [vmem:[%s282_s0 + $0x78] sm:$0xff]  }
   0x7   :  { %v100_v20 = vadd.f32 %v171_v10, %v99_v16  ;;  %v183_v38 = vunpack.c.l.bf16 %v208_v32  ;;  %v152_v43 = vunpack.c.h.bf16 %v200_v31  ;;  %v184_v44 = vunpack.c.h.bf16 %v208_v32 }
   0x8   :  { %v80_v25 = vadd.f32 %v140_v13, %v79_v19  ;;  %v155_v47 = vunpack.c.l.bf16 %v201_v41  ;;  %v187_v48 = vunpack.c.l.bf16 %v209_v42  ;;  %v156_v53 = vunpack.c.h.bf16 %v201_v41 }
   0x9   :  { %v101_v26 = vadd.f32 %v172_v14, %v100_v20  ;;  %v188_v54 = vunpack.c.h.bf16 %v209_v42  ;;  %v159_v57 = vunpack.c.l.bf16 %v202_v51  ;;  %v191_v58 = vunpack.c.l.bf16 %v210_v52 }
   0xa   :  { %v81_v29 = vadd.f32 %v143_v17, %v80_v25  ;;  %v160_v63 = vunpack.c.h.bf16 %v202_v51  ;;  %v192_v0 = vunpack.c.h.bf16 %v210_v52  ;;  %v163_v3 = vunpack.c.l.bf16 %v203_v61 }
   0xb   :  { %v102_v30 = vadd.f32 %v175_v18, %v101_v26  ;;  %v195_v4 = vunpack.c.l.bf16 %v211_v62  ;;  %v164_v7 = vunpack.c.h.bf16 %v203_v61  ;;  %v196_v8 = vunpack.c.h.bf16 %v211_v62 }
   0xc   :  { %v82_v35 = vadd.f32 %v144_v23, %v81_v29 }
   0xd   :  { %v103_v36 = vadd.f32 %v176_v24, %v102_v30 }
   0xe   :  { %v83_v39 = vadd.f32 %v147_v27, %v82_v35  ;;  %v13_v27 = vld [vmem:[%s281_s1] sm:$0x3] }
   0xf   :  { %v104_v40 = vadd.f32 %v179_v28, %v103_v36 }
  0x10   :  { %v84_v45 = vadd.f32 %v148_v33, %v83_v39 }
  0x11   :  { %v105_v46 = vadd.f32 %v180_v34, %v104_v40 }
  0x12   :  { %v85_v49 = vadd.f32 %v151_v37, %v84_v45 }
  0x13   :  { %v106_v50 = vadd.f32 %v183_v38, %v105_v46 }
  0x14   :  { %v86_v55 = vadd.f32 %v152_v43, %v85_v49 }
  0x15   :  { %v107_v56 = vadd.f32 %v184_v44, %v106_v50 }
  0x16   :  { %v87_v59 = vadd.f32 %v155_v47, %v86_v55 }
  0x17   :  { %v108_v60 = vadd.f32 %v187_v48, %v107_v56 }
  0x18   :  { %v88_v1 = vadd.f32 %v156_v53, %v87_v59 }
  0x19   :  { %v109_v2 = vadd.f32 %v188_v54, %v108_v60 }
  0x1a   :  { %v89_v5 = vadd.f32 %v159_v57, %v88_v1 }
  0x1b   :  { %v110_v6 = vadd.f32 %v191_v58, %v109_v2 }
  0x1c   :  { %v90_v9 = vadd.f32 %v160_v63, %v89_v5 }
  0x1d   :  { %v111_v10 = vadd.f32 %v192_v0, %v110_v6 }
  0x1e   :  { %v91_v11 = vadd.f32 %v163_v3, %v90_v9 }
  0x1f   :  { %v112_v12 = vadd.f32 %v195_v4, %v111_v10 }
  0x20   :  { %v92_v13 = vadd.f32 %v164_v7, %v91_v11 }
  0x21   :  { %v113_v14 = vadd.f32 %v196_v8, %v112_v12 }
  0x22   :  { %v93_v15 = vrot.slane %v92_v13, 4 }
  0x23   :  { %v114_v16 = vrot.slane %v113_v14, 4 }
  0x24   :  { %v94_v17 = vadd.f32 %v93_v15, %v92_v13 }
  0x25   :  { %v115_v18 = vadd.f32 %v114_v16, %v113_v14 }
  0x26   :  { %v95_v19 = vrot.slane %v94_v17, 2 }
  0x27   :  { %v116_v20 = vrot.slane %v115_v18, 2 }
  0x28   :  { %v96_v21 = vadd.f32 %v95_v19, %v94_v17 }
  0x29   :  { %v117_v22 = vadd.f32 %v116_v20, %v115_v18 }
  0x2a   :  { %v97_v23 = vrot.slane %v96_v21, 1 }
  0x2b   :  { %v118_v24 = vrot.slane %v117_v22, 1 }
  0x2c   :  { %v98_v25 = vadd.f32 %v97_v23, %v96_v21 }
  0x2d   :  { %v119_v26 = vadd.f32 %v118_v24, %v117_v22 }
  0x2e   :  { %v120_v28 = vmul.f32 0.0078125, %v98_v25 }
  0x2f   :  { %v121_v29 = vmul.f32 0.0078125, %v119_v26 }
  0x31   :  { %v125_v30 = vsel %vm124_vm0, %v121_v29, %v120_v28 }
  0x32   :  { %v127_v31 = vadd.f32 %v125_v30, %v13_v27 }
  0x34   :  { %128 = vst [vmem:[%s281_s1] sm:$0x3] %v127_v31 }

// kernel: fwd.21
= control target key start
LH: loop header
LB: loop body
LE: loop exit
PB: predicated region body
PF: predicated region fallthrough
CT: control target
= control target key end

     0   :  { %11 = vsyncpa [#allocation3], 0  ;;  %v335_v2 = vmov 0.0   ;;  %vm336_vm0 = vmmov 0   ;;  %s408_s0 = inlined_call_operand.vmem [shape: f32[2,128], index: 0, kind: input, shape index: {}]   ;;  %s409_s1 = inlined_call_operand.vmem [shape: bf16[128,3], index: 1, kind: input, shape index: {}]   ;;  %s410_s2 = inlined_call_operand.vmem [shape: f32[1,3], index: 2, kind: input, shape index: {}]   ;;  %s411_s3 = inlined_call_operand.vmem [shape: f32[2,3], index: 3, kind: input, shape index: {}]   ;;  %s412_s4 = inlined_call_operand.hbm [shape: f32[2,3], index: 4, kind: output, shape index: {0}]   ;;  %s413_s5 = inlined_call_operand.hbm [shape: f32[1,1], index: 5, kind: output, shape index: {1}]  }
   0x1   :  { %v230_v0 = vld [vmem:[%s409_s1 + $0x38] sm:$0xff]   ;;  %v229_v1 = vld [vmem:[%s409_s1 + $0x30] sm:$0xff]   ;;  %248 = vmatprep.subr.mxu0 %v335_v2  ;;  %280 = vmatprep.mubr.msk.f32.mxu0 %vm336_vm0, %v335_v2 }
   0x2   :  { %v222_v3 = vunpack.c.l.bf16 %v230_v0  ;;  %v223_v4 = vunpack.c.h.bf16 %v230_v0  ;;  %v219_v5 = vunpack.c.h.bf16 %v229_v1 }
   0x4   :  { %249 = vmatpush3.msra.mxu0 %v223_v4 }
   0x5   :  { %12 = vsyncpa [#allocation5], 0  ;;  %250 = vmatprep.subr.mxu0 %v335_v2  ;;  %v228_v6 = vld [vmem:[%s409_s1 + $0x28] sm:$0xff]   ;;  %v218_v7 = vunpack.c.l.bf16 %v229_v1  ;;  %v227_v9 = vld [vmem:[%s409_s1 + $0x20] sm:$0xff]   ;;  %vm131_vm1 = vcmask 17408  }
   0x6   :  { %251 = vmatpush3.msra.mxu0 %v222_v3  ;;  %v215_v8 = vunpack.c.h.bf16 %v228_v6  ;;  %v214_v10 = vunpack.c.l.bf16 %v228_v6  ;;  %v211_v11 = vunpack.c.h.bf16 %v227_v9  ;;  %v226_v12 = vld [vmem:[%s409_s1 + $0x18] sm:$0xff]   ;;  %v210_v13 = vunpack.c.l.bf16 %v227_v9  ;;  %v225_v15 = vld [vmem:[%s409_s1 + $0x10] sm:$0xff]   ;;  %v224_v18 = vld [vmem:[%s409_s1 + $0x8] sm:$0xff]  }
   0x7   :  { %252 = vmatprep.subr.mxu0 %v335_v2  ;;  %v207_v14 = vunpack.c.h.bf16 %v226_v12  ;;  %v206_v16 = vunpack.c.l.bf16 %v226_v12  ;;  %v203_v17 = vunpack.c.h.bf16 %v225_v15  ;;  %v202_v19 = vunpack.c.l.bf16 %v225_v15  ;;  %v193_v21 = vld [vmem:[%s409_s1] sm:$0xff]  }
   0x8   :  { %253 = vmatpush3.msra.mxu0 %v219_v5  ;;  %v199_v20 = vunpack.c.h.bf16 %v224_v18  ;;  %v198_v22 = vunpack.c.l.bf16 %v224_v18  ;;  %v195_v23 = vunpack.c.h.bf16 %v193_v21  ;;  %v194_v24 = vunpack.c.l.bf16 %v193_v21  ;;  %v21_v25 = vld [vmem:[%s408_s0] sm:$0x3]  ;;  %s337_s0 = smov [#allocation2]  }
   0x9   :  { %254 = vmatprep.subr.mxu0 %v335_v2  ;;  %v191_v26 = vld [vmem:[%s410_s2] ss:$0 sm:$0xff]  ;;  %s169_s2 = sshll.u32 %s337_s0, 4  ;;  %s170_s2 = int_to_ptr.vmem [resolvable:$true] %s169_s2 }
   0xa   :  { %255 = vmatpush3.msra.mxu0 %v218_v7  ;;  %v145_v28 = vld [vmem:[%s411_s3] sm:$0x3]  ;;  %s291_s14 = scalar_lea.vmem %s170_s2, 32  ;;  %p296_p1 = scmp.lt.s32.totalorder %s170_s2, %s170_s2 }
   0xb   :  { %256 = vmatprep.subr.mxu0 %v335_v2  ;;  %p292_p0 = scmp.ne.s32.totalorder %s170_s2, %s291_s14  ;;  %p297_p2 = scmp.lt.s32.totalorder %s291_s14, %s291_s14 }
   0xc   :  { %257 = vmatpush3.msra.mxu0 %v215_v8 }
   0xd   :  { %258 = vmatprep.subr.mxu0 %v335_v2  ;;  %p298_p3 = por %p297_p2, %p296_p1 }
   0xe   :  { %259 = vmatpush3.msra.mxu0 %v214_v10 }
   0xf   :  { %260 = vmatprep.subr.mxu0 %v335_v2  ;;  %p299_p4 = pnand %p298_p3, %p292_p0 }
  0x10   :  { %261 = vmatpush3.msra.mxu0 %v211_v11 }
  0x11   :  { %262 = vmatprep.subr.mxu0 %v335_v2 }
  0x12   :  { %263 = vmatpush3.msra.mxu0 %v210_v13 }
  0x13   :  { %264 = vmatprep.subr.mxu0 %v335_v2 }
  0x14   :  { %265 = vmatpush3.msra.mxu0 %v207_v14 }
  0x15   :  { %266 = vmatprep.subr.mxu0 %v335_v2 }
  0x16   :  { %267 = vmatpush3.msra.mxu0 %v206_v16 }
  0x17   :  { %268 = vmatprep.subr.mxu0 %v335_v2 }
  0x18   :  { %269 = vmatpush3.msra.mxu0 %v203_v17 }
  0x19   :  { %270 = vmatprep.subr.mxu0 %v335_v2 }
  0x1a   :  { %271 = vmatpush3.msra.mxu0 %v202_v19 }
  0x1b   :  { %272 = vmatprep.subr.mxu0 %v335_v2 }
  0x1c   :  { %273 = vmatpush3.msra.mxu0 %v199_v20 }
  0x1d   :  { %274 = vmatprep.subr.mxu0 %v335_v2 }
  0x1e   :  { %275 = vmatpush3.msra.mxu0 %v198_v22 }
  0x1f   :  { %276 = vmatprep.subr.mxu0 %v335_v2 }
  0x20   :  { %277 = vmatpush3.msra.mxu0 %v195_v23 }
  0x21   :  { %278 = vmatprep.subr.mxu0 %v335_v2 }
  0x22   :  { %279 = vmatpush3.msra.mxu0 %v194_v24 }
  0x23   :  { %281 = vmatmul.mubr.f32.vlgmr.msra.gmra.mxu0 %v21_v25 }
  0xe3   :  { %v127_v27 = vpop.f32.mrf.mxu0 }
  0xe4   :  { %v128_v29 = vadd.f32 %v191_v26, %v127_v27 }
  0xe5   :  { %v282_v30 = vpop.f32.mrf.mxu0 }
  0xe6   :  { %v133_v31 = vsel %vm131_vm1, %v128_v29, -inf  ;;  %132 = vst.msk [vmem:[#allocation2] sm:$0x3] %vm131_vm1, %v128_v29  ;;  %v146_v32 = vmul.f32 %v145_v28, %v128_v29 }
  0xe7   :  { %134 = vmax.xlane.f32.xlu0 %v133_v31 }
  0xe8   :  { %v147_v33 = vsel %vm131_vm1, %v146_v32, 0.0 }
  0xe9   :  { %148 = vadd.xlane.f32.xlu1 %v147_v33 }
 0x170   :  { %v135_v34 = vpop.xlane.xlu0 %134 }
 0x171   :  { %v136_v35 = vsub.f32 %v128_v29, %v135_v34 }
 0x173   :  { %v137_v36 = vmul.f32 1.442695, %v136_v35 }
 0x175   :  { %287 = vpow2.f32 %v137_v36 }
 0x182   :  { %v288_v37 = vpop.eup %287 }
 0x183   :  { %v139_v38 = vsel %vm131_vm1, %v288_v37, 0.0 }
 0x184   :  { %140 = vadd.xlane.f32.xlu0 %v139_v38 }
 0x185   :  { %302 = shalt.err (!%p299_p4)
}
 0x186   :  { %172 = dma.vmem_to_hbm [thread:$0]  %s170_s2, 32, %s412_s4, [#allocation3]   ;;  %v149_v43 = vpop.xlane.xlu1 %148  ;;  %vm151_vm2 = vcmask 1041408   ;;  %vm161_vm3 = vcmask 0  }
 0x187   :  { %s338_s16 = smov [#allocation4]  }
 0x188   :  { %s179_s17 = sshll.u32 %s338_s16, 4  ;;  %s180_s17 = int_to_ptr.vmem [resolvable:$true] %s179_s17 }
 0x189   :  { %s311_s4 = scalar_lea.vmem %s180_s17, 16  ;;  %s315_s18 = scalar_lea.vmem %s180_s17, 32 }
 0x18a   :  { %p312_p5 = scmp.ne.s32.totalorder %s180_s17, %s311_s4  ;;  %p316_p6 = scmp.lt.s32.totalorder %s180_s17, %s180_s17 }
 0x18b   :  { %p317_p7 = scmp.lt.s32.totalorder %s315_s18, %s311_s4 }
 0x18d   :  { %p318_p8 = por %p317_p7, %p316_p6 }
 0x18f   :  { %p319_p9 = pnand %p318_p8, %p312_p5 }
 0x20d   :  { %v141_v39 = vpop.xlane.xlu0 %140 }
 0x20e   :  { %289 = vlog2.f32 %v141_v39 }
 0x21b   :  { %v290_v40 = vpop.eup %289 }
 0x21c   :  { %v143_v41 = vmul.f32 0.6931472, %v290_v40 }
 0x21e   :  { %v144_v42 = vadd.f32 %v143_v41, %v135_v34 }
 0x220   :  { %v150_v44 = vsub.f32 %v144_v42, %v149_v43 }
 0x222   :  { %v152_v45 = vsel %vm151_vm2, %v150_v44, 0.0 }
 0x223   :  { %v153_v46 = vrot.slane %v152_v45, 4 }
 0x225   :  { %v154_v47 = vadd.f32 %v153_v46, %v152_v45 }
 0x227   :  { %v155_v48 = vrot.slane %v154_v47, 2 }
 0x229   :  { %v156_v49 = vadd.f32 %v155_v48, %v154_v47 }
 0x22b   :  { %v157_v50 = vrot.slane %v156_v49, 1 }
 0x22d   :  { %v158_v51 = vadd.f32 %v157_v50, %v156_v49 }
 0x22f   :  { %v160_v52 = vmul.f32 0.5, %v158_v51 }
 0x231   :  { %162 = vst.msk [vmem:[#allocation4] sm:$0x1] %vm161_vm3, %v160_v52 }
 0x232   :  { %322 = shalt.err (!%p319_p9)
}
 0x233   :  { %182 = dma.vmem_to_hbm [thread:$0]  %s180_s17, 16, %s413_s5, [#allocation5]  }
 0x234   :  { %331 = dma.done.wait [#allocation3], 32  }
 0x235   :  { %332 = vsyncadd [#allocation3], 4294967264 }
 0x236   :  { %333 = dma.done.wait [#allocation5], 16  }
 0x237   :  { %334 = vsyncadd [#allocation5], 4294967280 }
 0x238   :  { %189 = vsyncpa [#allocation3], 1 }
 0x239   :  { %190 = vsyncpa [#allocation5], 1 }

// kernel: fwd.13
= control target key start
LH: loop header
LB: loop body
LE: loop exit
PB: predicated region body
PF: predicated region fallthrough
CT: control target
= control target key end

     0   :  { %s3464_s15 = smov 0   ;;  %s3466_s16 = smov 0   ;;  %s4712_s0 = inlined_call_operand.vmem [shape: bf16[2,128,128], index: 0, kind: input, shape index: {}]   ;;  %s4713_s1 = inlined_call_operand.vmem [shape: bf16[2,128,128], index: 1, kind: input, shape index: {}]   ;;  %s4714_s2 = inlined_call_operand.vmem [shape: bf16[2,128,128], index: 2, kind: input, shape index: {}]   ;;  %s4715_s3 = inlined_call_operand.vmem [shape: f32[2,1,128], index: 3, kind: input, shape index: {}]   ;;  %s4716_s4 = inlined_call_operand.vmem [shape: bf16[2,128,128], index: 4, kind: output, shape index: {}]  }
   0x1   :  { %s3468_s17 = smov 0  }
   0x2 LB: > { %s33_s18 = sadd.s32 1, %s3429_s16  ;;  %p2773_p0 = scmp.ge.s32.totalorder %s3433_s17, 1  ;;  %s3433_s17 = sphi %s3468_s17, %s14_s17   ;;  %s3429_s16 = sphi %s3466_s16, %s4729_s16   ;;  %s3425_s15 = sphi %s3464_s15, %s4728_s15  }
   0x3   : > { %p35_p1 = scmp.ge.s32.totalorder %s33_s18, 2  ;;  %p237_p2 = scmp.lt.s32.totalorder %s3433_s17, 3 }
   0x5   : > { %s4731_s18 = smov (%p35_p1, %s33_s18), 0  ;;  %p238_p3 = pnand %p2773_p0, %p237_p2 }
   0x6   : > { %p296_p4 = scmp.lt.s32.totalorder (!%p238_p3), %s3425_s15, 1  ;;  %s3438_s6 = smov (!%p238_p3), 64  }
   0x7   : > { %241 = sbr.rel (%p238_p3) target bundleno = 1611 (0x64b), region = 36 }
   0xc   : > { %s4733_s15 = smov (!%p296_p4, %s3425_s15), 1  ;;  %vm411_vm0 = vcmask 523264   ;;  %vm346_vm1 = vcmask 7168   ;;  %v3435_v24 = vmov -1e+30   ;;  %v3436_v41 = vmov 0  }
   0xd   : > { %s3485_s19 = sshll.u32 %s4733_s15, 6  ;;  %349 = vst.msk [vmem:[#allocation2 + $0x10] sm:$0xff] %vm346_vm1, %v3435_v24  ;;  %347 = vst.msk [vmem:[#allocation2] sm:$0xff] %vm346_vm1, %v3435_v24  ;;  %s3631_s28 = scalar_lea.vmem %s4715_s3, %s4733_s15  ;;  %3145 = vset.pattern.permute.xlu1 %v3436_v41  ;;  %3144 = vset.pattern.permute.xlu0 %v3436_v41  ;;  %v3437_v54 = vmov 0.0  }
   0xe   : > { %s3491_s22 = scalar_lea.vmem %s4713_s1, %s3485_s19  ;;  %s3509_s25 = scalar_lea.vmem %s4712_s0, %s3485_s19  ;;  %348 = vst.msk [vmem:[#allocation2 + $0x8] sm:$0xff] %vm346_vm1, %v3435_v24  ;;  %350 = vst.msk [vmem:[#allocation2 + $0x18] sm:$0xff] %vm346_vm1, %v3435_v24  ;;  %v3634_v25 = vld [vmem:[%s3631_s28] ss:$0 sm:$0xff] }
   0xf   : > { %v3494_v0 = vld [vmem:[%s3491_s22 + $0x38] sm:$0xff]   ;;  %v3497_v1 = vld [vmem:[%s3491_s22 + $0x30] sm:$0xff]   ;;  %v3512_v3 = vld [vmem:[%s3491_s22 + $0x28] sm:$0xff]   ;;  %351 = vst.msk [vmem:[#allocation2 + $0x20] sm:$0xff] %vm346_vm1, %v3435_v24  ;;  %s3835_s5 = scalar_lea.vmem %s4714_s2, %s3485_s19  ;;  %s4665_s9 = scalar_lea.vmem %s4716_s4, %s3485_s19 }
  0x10   : > { %3100 = vmatprep.subr.msk.bf16.mxu0 %vm411_vm0, %v3494_v0  ;;  %v626_v2 = vsel %vm411_vm0, %v3494_v0, 0  ;;  %v623_v4 = vsel %vm411_vm0, %v3497_v1, 0  ;;  %v3517_v5 = vld [vmem:[%s3509_s25] sm:$0xff]   ;;  %v620_v6 = vsel %vm411_vm0, %v3512_v3, 0  ;;  %v3533_v9 = vld [vmem:[%s3491_s22 + $0x18] sm:$0xff]   ;;  %v3540_v11 = vld [vmem:[%s3491_s22 + $0x10] sm:$0xff]  }
  0x11   : > { %2973 = vmatpush3.bf16.xpose.msra.mxu0 %v626_v2  ;;  %2988 = vmatprep.mubr.msk.bf16.mxu0 %vm411_vm0, %v3517_v5  ;;  %v3526_v7 = vld [vmem:[%s3491_s22 + $0x20] sm:$0xff]   ;;  %v614_v10 = vsel %vm411_vm0, %v3533_v9, 0  ;;  %v611_v12 = vsel %vm411_vm0, %v3540_v11, 0  ;;  %v3547_v13 = vld [vmem:[%s3491_s22 + $0x8] sm:$0xff]   ;;  %v3564_v18 = vld [vmem:[%s3509_s25 + $0x10] sm:$0xff]   ;;  %352 = vst.msk [vmem:[#allocation2 + $0x28] sm:$0xff] %vm346_vm1, %v3435_v24 }
  0x12   : > { %3101 = vmatprep.subr.msk.bf16.mxu0 %vm411_vm0, %v3497_v1  ;;  %v617_v8 = vsel %vm411_vm0, %v3526_v7, 0  ;;  %v608_v14 = vsel %vm411_vm0, %v3547_v13, 0  ;;  %v3554_v15 = vld [vmem:[%s3491_s22] sm:$0xff]   ;;  %v3561_v17 = vld [vmem:[%s3509_s25 + $0x8] sm:$0xff]   ;;  %v3571_v19 = vld [vmem:[%s3509_s25 + $0x18] sm:$0xff]   ;;  %353 = vst.msk [vmem:[#allocation2 + $0x30] sm:$0xff] %vm346_vm1, %v3435_v24 }
  0x13   : > { %v605_v16 = vsel %vm411_vm0, %v3554_v15, 0  ;;  %v3574_v20 = vld [vmem:[%s3509_s25 + $0x20] sm:$0xff]   ;;  %v3581_v21 = vld [vmem:[%s3509_s25 + $0x28] sm:$0xff]   ;;  %v3584_v22 = vld [vmem:[%s3509_s25 + $0x30] sm:$0xff]   ;;  %354 = vst.msk [vmem:[#allocation2 + $0x38] sm:$0xff] %vm346_vm1, %v3435_v24 }
  0x14   : > { %v3591_v23 = vld [vmem:[%s3509_s25 + $0x38] sm:$0xff]   ;;  %355 = vst.msk [vmem:[#allocation2 + $0x40] sm:$0xff] %vm346_vm1, %v3435_v24  ;;  %356 = vst.msk [vmem:[#allocation2 + $0x48] sm:$0xff] %vm346_vm1, %v3435_v24  ;;  %v3203_v61 = vld [vmem:[%s3835_s5 + $0x30] sm:$0xff]  }
  0x15   : > { %357 = vst.msk [vmem:[#allocation2 + $0x50] sm:$0xff] %vm346_vm1, %v3435_v24  ;;  %358 = vst.msk [vmem:[#allocation2 + $0x58] sm:$0xff] %vm346_vm1, %v3435_v24  ;;  %v3202_v60 = vld [vmem:[%s3835_s5 + $0x38] sm:$0xff]   ;;  %v3204_v62 = vld [vmem:[%s3835_s5 + $0x28] sm:$0xff]  }
  0x16   : > { %359 = vst.msk [vmem:[#allocation2 + $0x60] sm:$0xff] %vm346_vm1, %v3435_v24  ;;  %360 = vst.msk [vmem:[#allocation2 + $0x68] sm:$0xff] %vm346_vm1, %v3435_v24  ;;  %3004 = vmatprep.subr.bf16.mxu1 %v3202_v60  ;;  %v3205_v63 = vld [vmem:[%s3835_s5 + $0x20] sm:$0xff]   ;;  %v3206_v2 = vld [vmem:[%s3835_s5 + $0x18] sm:$0xff]  }
  0x17   : > { %361 = vst.msk [vmem:[#allocation2 + $0x70] sm:$0xff] %vm346_vm1, %v3435_v24  ;;  %362 = vst.msk [vmem:[#allocation2 + $0x78] sm:$0xff] %vm346_vm1, %v3435_v24  ;;  %3005 = vmatpush3.bf16.msra.mxu1 %v3202_v60 }
  0x18   : > { %363 = vst.msk [vmem:[#allocation2 + $0x80] sm:$0xff] %vm346_vm1, %v3435_v24  ;;  %364 = vst.msk [vmem:[#allocation2 + $0x88] sm:$0xff] %vm346_vm1, %v3435_v24  ;;  %3006 = vmatprep.subr.bf16.mxu1 %v3203_v61 }
  0x19   : > { %2975 = vmatpush3.bf16.xpose.msra.mxu0 %v623_v4  ;;  %365 = vst.msk [vmem:[#allocation2 + $0x90] sm:$0xff] %vm346_vm1, %v3435_v24  ;;  %366 = vst.msk [vmem:[#allocation2 + $0x98] sm:$0xff] %vm346_vm1, %v3435_v24  ;;  %v3842_v4 = vld [vmem:[#allocation2 + $0x10] sm:$0xff] }
  0x1a   : > { %3102 = vmatprep.subr.msk.bf16.mxu0 %vm411_vm0, %v3512_v3  ;;  %367 = vst.msk [vmem:[#allocation2 + $0xa0] sm:$0xff] %vm346_vm1, %v3435_v24  ;;  %368 = vst.msk [vmem:[#allocation2 + $0xa8] sm:$0xff] %vm346_vm1, %v3435_v24 }
  0x1b   : > { %369 = vst.msk [vmem:[#allocation2 + $0xb0] sm:$0xff] %vm346_vm1, %v3435_v24  ;;  %370 = vst.msk [vmem:[#allocation2 + $0xb8] sm:$0xff] %vm346_vm1, %v3435_v24  ;;  %3007 = vmatpush3.bf16.msra.mxu1 %v3203_v61 }
  0x1c   : > { %371 = vst.msk [vmem:[#allocation2 + $0xc0] sm:$0xff] %vm346_vm1, %v3435_v24  ;;  %372 = vst.msk [vmem:[#allocation2 + $0xc8] sm:$0xff] %vm346_vm1, %v3435_v24  ;;  %3008 = vmatprep.subr.bf16.mxu1 %v3204_v62  ;;  %v3901_v60 = vld [vmem:[#allocation2 + $0x50] sm:$0xff] }
  0x1d   : > { %373 = vst.msk [vmem:[#allocation2 + $0xd0] sm:$0xff] %vm346_vm1, %v3435_v24  ;;  %374 = vst.msk [vmem:[#allocation2 + $0xd8] sm:$0xff] %vm346_vm1, %v3435_v24 }
  0x1e   : > { %375 = vst.msk [vmem:[#allocation2 + $0xe0] sm:$0xff] %vm346_vm1, %v3435_v24  ;;  %376 = vst.msk [vmem:[#allocation2 + $0xe8] sm:$0xff] %vm346_vm1, %v3435_v24 }
  0x1f   : > { %377 = vst.msk [vmem:[#allocation2 + $0xf0] sm:$0xff] %vm346_vm1, %v3435_v24  ;;  %378 = vst.msk [vmem:[#allocation2 + $0xf8] sm:$0xff] %vm346_vm1, %v3435_v24  ;;  %3009 = vmatpush3.bf16.msra.mxu1 %v3204_v62 }
  0x20   : > { %412 = vst.msk [vmem:[#allocation4] sm:$0xff] %vm411_vm0, %v3437_v54  ;;  %413 = vst.msk [vmem:[#allocation4 + $0x8] sm:$0xff] %vm411_vm0, %v3437_v54  ;;  %3010 = vmatprep.subr.bf16.mxu1 %v3205_v63 }
  0x21   : > { %2977 = vmatpush3.bf16.xpose.msra.mxu0 %v620_v6  ;;  %379 = vst.msk [vmem:[#allocation3] sm:$0xff] %vm346_vm1, %v3437_v54  ;;  %380 = vst.msk [vmem:[#allocation3 + $0x8] sm:$0xff] %vm346_vm1, %v3437_v54 }
  0x22   : > { %3103 = vmatprep.subr.msk.bf16.mxu0 %vm411_vm0, %v3526_v7  ;;  %381 = vst.msk [vmem:[#allocation3 + $0x10] sm:$0xff] %vm346_vm1, %v3437_v54  ;;  %382 = vst.msk [vmem:[#allocation3 + $0x18] sm:$0xff] %vm346_vm1, %v3437_v54 }
  0x23   : > { %383 = vst.msk [vmem:[#allocation3 + $0x20] sm:$0xff] %vm346_vm1, %v3437_v54  ;;  %384 = vst.msk [vmem:[#allocation3 + $0x28] sm:$0xff] %vm346_vm1, %v3437_v54  ;;  %3011 = vmatpush3.bf16.msra.mxu1 %v3205_v63  ;;  %v3910_v63 = vld [vmem:[#allocation2 + $0x58] sm:$0xff] }
  0x24   : > { %385 = vst.msk [vmem:[#allocation3 + $0x30] sm:$0xff] %vm346_vm1, %v3437_v54  ;;  %386 = vst.msk [vmem:[#allocation3 + $0x38] sm:$0xff] %vm346_vm1, %v3437_v54  ;;  %3012 = vmatprep.subr.bf16.mxu1 %v3206_v2 }
  0x25   : > { %387 = vst.msk [vmem:[#allocation3 + $0x40] sm:$0xff] %vm346_vm1, %v3437_v54  ;;  %388 = vst.msk [vmem:[#allocation3 + $0x48] sm:$0xff] %vm346_vm1, %v3437_v54 }
  0x26   : > { %389 = vst.msk [vmem:[#allocation3 + $0x50] sm:$0xff] %vm346_vm1, %v3437_v54  ;;  %390 = vst.msk [vmem:[#allocation3 + $0x58] sm:$0xff] %vm346_vm1, %v3437_v54 }
  0x27   : > { %391 = vst.msk [vmem:[#allocation3 + $0x60] sm:$0xff] %vm346_vm1, %v3437_v54  ;;  %392 = vst.msk [vmem:[#allocation3 + $0x68] sm:$0xff] %vm346_vm1, %v3437_v54  ;;  %3013 = vmatpush3.bf16.msra.mxu1 %v3206_v2 }
  0x28   : > { %393 = vst.msk [vmem:[#allocation3 + $0x70] sm:$0xff] %vm346_vm1, %v3437_v54  ;;  %394 = vst.msk [vmem:[#allocation3 + $0x78] sm:$0xff] %vm346_vm1, %v3437_v54 }
  0x29   : > { %2979 = vmatpush3.bf16.xpose.msra.mxu0 %v617_v8  ;;  %395 = vst.msk [vmem:[#allocation3 + $0x80] sm:$0xff] %vm346_vm1, %v3437_v54  ;;  %396 = vst.msk [vmem:[#allocation3 + $0x88] sm:$0xff] %vm346_vm1, %v3437_v54  ;;  %v3844_v8 = vld [vmem:[#allocation2] sm:$0xff] }
  0x2a   : > { %3104 = vmatprep.subr.msk.bf16.mxu0 %vm411_vm0, %v3533_v9  ;;  %397 = vst.msk [vmem:[#allocation3 + $0x90] sm:$0xff] %vm346_vm1, %v3437_v54  ;;  %398 = vst.msk [vmem:[#allocation3 + $0x98] sm:$0xff] %vm346_vm1, %v3437_v54 }
  0x2b   : > { %399 = vst.msk [vmem:[#allocation3 + $0xa0] sm:$0xff] %vm346_vm1, %v3437_v54  ;;  %400 = vst.msk [vmem:[#allocation3 + $0xa8] sm:$0xff] %vm346_vm1, %v3437_v54 }
  0x2c   : > { %401 = vst.msk [vmem:[#allocation3 + $0xb0] sm:$0xff] %vm346_vm1, %v3437_v54  ;;  %402 = vst.msk [vmem:[#allocation3 + $0xb8] sm:$0xff] %vm346_vm1, %v3437_v54 }
  0x2d   : > { %403 = vst.msk [vmem:[#allocation3 + $0xc0] sm:$0xff] %vm346_vm1, %v3437_v54  ;;  %404 = vst.msk [vmem:[#allocation3 + $0xc8] sm:$0xff] %vm346_vm1, %v3437_v54 }
  0x2e   : > { %405 = vst.msk [vmem:[#allocation3 + $0xd0] sm:$0xff] %vm346_vm1, %v3437_v54  ;;  %406 = vst.msk [vmem:[#allocation3 + $0xd8] sm:$0xff] %vm346_vm1, %v3437_v54 }
  0x2f   : > { %407 = vst.msk [vmem:[#allocation3 + $0xe0] sm:$0xff] %vm346_vm1, %v3437_v54  ;;  %408 = vst.msk [vmem:[#allocation3 + $0xe8] sm:$0xff] %vm346_vm1, %v3437_v54 }
  0x30   : > { %409 = vst.msk [vmem:[#allocation3 + $0xf0] sm:$0xff] %vm346_vm1, %v3437_v54  ;;  %410 = vst.msk [vmem:[#allocation3 + $0xf8] sm:$0xff] %vm346_vm1, %v3437_v54 }
  0x31   : > { %2981 = vmatpush3.bf16.xpose.msra.mxu0 %v614_v10  ;;  %414 = vst.msk [vmem:[#allocation4 + $0x10] sm:$0xff] %vm411_vm0, %v3437_v54  ;;  %415 = vst.msk [vmem:[#allocation4 + $0x18] sm:$0xff] %vm411_vm0, %v3437_v54 }
  0x32   : > { %3105 = vmatprep.subr.msk.bf16.mxu0 %vm411_vm0, %v3540_v11  ;;  %416 = vst.msk [vmem:[#allocation4 + $0x20] sm:$0xff] %vm411_vm0, %v3437_v54  ;;  %417 = vst.msk [vmem:[#allocation4 + $0x28] sm:$0xff] %vm411_vm0, %v3437_v54 }
  0x33   : > { %418 = vst.msk [vmem:[#allocation4 + $0x30] sm:$0xff] %vm411_vm0, %v3437_v54  ;;  %419 = vst.msk [vmem:[#allocation4 + $0x38] sm:$0xff] %vm411_vm0, %v3437_v54 }
  0x34   : > { %420 = vst.msk [vmem:[#allocation4 + $0x40] sm:$0xff] %vm411_vm0, %v3437_v54  ;;  %421 = vst.msk [vmem:[#allocation4 + $0x48] sm:$0xff] %vm411_vm0, %v3437_v54 }
  0x35   : > { %422 = vst.msk [vmem:[#allocation4 + $0x50] sm:$0xff] %vm411_vm0, %v3437_v54  ;;  %423 = vst.msk [vmem:[#allocation4 + $0x58] sm:$0xff] %vm411_vm0, %v3437_v54 }
  0x36   : > { %424 = vst.msk [vmem:[#allocation4 + $0x60] sm:$0xff] %vm411_vm0, %v3437_v54  ;;  %425 = vst.msk [vmem:[#allocation4 + $0x68] sm:$0xff] %vm411_vm0, %v3437_v54 }
  0x37   : > { %426 = vst.msk [vmem:[#allocation4 + $0x70] sm:$0xff] %vm411_vm0, %v3437_v54  ;;  %427 = vst.msk [vmem:[#allocation4 + $0x78] sm:$0xff] %vm411_vm0, %v3437_v54 }
  0x38   : > { %428 = vst.msk [vmem:[#allocation4 + $0x80] sm:$0xff] %vm411_vm0, %v3437_v54  ;;  %429 = vst.msk [vmem:[#allocation4 + $0x88] sm:$0xff] %vm411_vm0, %v3437_v54 }
  0x39   : > { %2983 = vmatpush3.bf16.xpose.msra.mxu0 %v611_v12  ;;  %430 = vst.msk [vmem:[#allocation4 + $0x90] sm:$0xff] %vm411_vm0, %v3437_v54  ;;  %431 = vst.msk [vmem:[#allocation4 + $0x98] sm:$0xff] %vm411_vm0, %v3437_v54  ;;  %v3207_v12 = vld [vmem:[%s3835_s5 + $0x10] sm:$0xff]  }
  0x3a   : > { %3106 = vmatprep.subr.msk.bf16.mxu0 %vm411_vm0, %v3547_v13  ;;  %432 = vst.msk [vmem:[#allocation4 + $0xa0] sm:$0xff] %vm411_vm0, %v3437_v54  ;;  %433 = vst.msk [vmem:[#allocation4 + $0xa8] sm:$0xff] %vm411_vm0, %v3437_v54  ;;  %3014 = vmatprep.subr.bf16.mxu1 %v3207_v12 }
  0x3b   : > { %434 = vst.msk [vmem:[#allocation4 + $0xb0] sm:$0xff] %vm411_vm0, %v3437_v54  ;;  %435 = vst.msk [vmem:[#allocation4 + $0xb8] sm:$0xff] %vm411_vm0, %v3437_v54  ;;  %3015 = vmatpush3.bf16.msra.mxu1 %v3207_v12  ;;  %v3917_v12 = vld [vmem:[#allocation2 + $0x40] sm:$0xff] }
  0x3c   : > { %436 = vst.msk [vmem:[#allocation4 + $0xc0] sm:$0xff] %vm411_vm0, %v3437_v54  ;;  %437 = vst.msk [vmem:[#allocation4 + $0xc8] sm:$0xff] %vm411_vm0, %v3437_v54 }
  0x3d   : > { %438 = vst.msk [vmem:[#allocation4 + $0xd0] sm:$0xff] %vm411_vm0, %v3437_v54  ;;  %439 = vst.msk [vmem:[#allocation4 + $0xd8] sm:$0xff] %vm411_vm0, %v3437_v54 }
  0x3e   : > { %440 = vst.msk [vmem:[#allocation4 + $0xe0] sm:$0xff] %vm411_vm0, %v3437_v54  ;;  %441 = vst.msk [vmem:[#allocation4 + $0xe8] sm:$0xff] %vm411_vm0, %v3437_v54 }
  0x3f   : > { %442 = vst.msk [vmem:[#allocation4 + $0xf0] sm:$0xff] %vm411_vm0, %v3437_v54  ;;  %443 = vst.msk [vmem:[#allocation4 + $0xf8] sm:$0xff] %vm411_vm0, %v3437_v54  ;;  %v3893_v54 = vld [vmem:[#allocation2 + $0x28] sm:$0xff] }
  0x41   : > { %2985 = vmatpush3.bf16.xpose.msra.mxu0 %v608_v14 }
  0x42   : > { %3107 = vmatprep.subr.msk.bf16.mxu0 %vm411_vm0, %v3554_v15 }
  0x49   : > { %2987 = vmatpush3.bf16.xpose.msra.mxu0 %v605_v16  ;;  %v3850_v16 = vld [vmem:[#allocation2 + $0x18] sm:$0xff] }
  0x50   : > { %2989 = vmatmul.mubr.msk.bf16.vlgmr.msra.gmra.mxu0 %vm411_vm0, %v3561_v17 }
  0x51   : > { %2992 = vmatprep.mubr.msk.bf16.mxu0 %vm411_vm0, %v3564_v18 }
  0x58   : > { %2993 = vmatmul.mubr.msk.bf16.gmra.mxu0 %vm411_vm0, %v3571_v19 }
  0x59   : > { %2996 = vmatprep.mubr.msk.bf16.mxu0 %vm411_vm0, %v3574_v20 }
  0x60   : > { %2997 = vmatmul.mubr.msk.bf16.gmra.mxu0 %vm411_vm0, %v3581_v21 }
  0x61   : > { %3000 = vmatprep.mubr.msk.bf16.mxu0 %vm411_vm0, %v3584_v22 }
  0x68   : > { %3001 = vmatmul.mubr.msk.bf16.gmra.mxu0 %vm411_vm0, %v3591_v23 }
 0x110   : > { %v2990_v26 = vpop.f32.mrf.mxu0 }
 0x111   : > { %v3637_v27 = vadd.f32 %v2990_v26, %v3634_v25 }
 0x112   : > { %v662_v28 = vpop.f32.mrf.mxu0 }
 0x113   : > { %v3640_v29 = vadd.f32 %v3634_v25, %v662_v28  ;;  %745 = vmax.xlane.f32.xlu1 %v3637_v27  ;;  %v3860_v28 = vld [vmem:[#allocation2 + $0x8] sm:$0xff] }
 0x114   : > { %v2991_v30 = vpop.f32.mrf.mxu0 }
 0x115   : > { %v3644_v31 = vadd.f32 %v2991_v30, %v3634_v25  ;;  %741 = vmax.xlane.f32.xlu0 %v3640_v29 }
 0x116   : > { %v665_v32 = vpop.f32.mrf.mxu0 }
 0x117   : > { %v3648_v33 = vadd.f32 %v3634_v25, %v665_v32  ;;  %747 = vmax.xlane.f32.xlu1 %v3644_v31  ;;  %v3208_v32 = vld [vmem:[%s3835_s5 + $0x8] sm:$0xff]  }
 0x118   : > { %v2994_v34 = vpop.f32.mrf.mxu0  ;;  %3016 = vmatprep.subr.bf16.mxu1 %v3208_v32 }
 0x119   : > { %v3652_v35 = vadd.f32 %v2994_v34, %v3634_v25  ;;  %743 = vmax.xlane.f32.xlu0 %v3648_v33  ;;  %3017 = vmatpush3.bf16.msra.mxu1 %v3208_v32 }
 0x11a   : > { %v678_v36 = vpop.f32.mrf.mxu0 }
 0x11b   : > { %v3656_v38 = vadd.f32 %v3634_v25, %v678_v36 }
 0x11c   : > { %v2995_v37 = vpop.f32.mrf.mxu0 }
 0x11d   : > { %v3659_v39 = vadd.f32 %v2995_v37, %v3634_v25  ;;  %753 = vmax.xlane.f32.xlu0 %v3652_v35  ;;  %v3874_v37 = vld [vmem:[#allocation2 + $0x30] sm:$0xff] }
 0x11e   : > { %v681_v40 = vpop.f32.mrf.mxu0 }
 0x11f   : > { %v3663_v42 = vadd.f32 %v3634_v25, %v681_v40  ;;  %755 = vmax.xlane.f32.xlu1 %v3659_v39  ;;  %v3209_v40 = vld [vmem:[%s3835_s5] sm:$0xff]  }
 0x120   : > { %v2998_v43 = vpop.f32.mrf.mxu0  ;;  %3018 = vmatprep.subr.bf16.mxu1 %v3209_v40 }
 0x121   : > { %v3667_v44 = vadd.f32 %v2998_v43, %v3634_v25  ;;  %749 = vmax.xlane.f32.xlu0 %v3656_v38  ;;  %v3880_v43 = vld [vmem:[#allocation2 + $0x38] sm:$0xff]  ;;  %3019 = vmatpush3.bf16.msra.mxu1 %v3209_v40 }
 0x122   : > { %v694_v45 = vpop.f32.mrf.mxu0 }
 0x123   : > { %751 = vmax.xlane.f32.xlu1 %v3663_v42  ;;  %v3672_v47 = vadd.f32 %v3634_v25, %v694_v45 }
 0x124   : > { %v2999_v46 = vpop.f32.mrf.mxu0 }
 0x125   : > { %v3675_v48 = vadd.f32 %v2999_v46, %v3634_v25  ;;  %761 = vmax.xlane.f32.xlu0 %v3667_v44 }
 0x126   : > { %v697_v49 = vpop.f32.mrf.mxu0 }
 0x127   : > { %v3679_v50 = vadd.f32 %v3634_v25, %v697_v49  ;;  %763 = vmax.xlane.f32.xlu1 %v3675_v48  ;;  %v3885_v49 = vld [vmem:[#allocation2 + $0x20] sm:$0xff] }
 0x128   : > { %v3002_v51 = vpop.f32.mrf.mxu0 }
 0x129   : > { %v3683_v52 = vadd.f32 %v3002_v51, %v3634_v25  ;;  %757 = vmax.xlane.f32.xlu0 %v3672_v47 }
 0x12a   : > { %v3686_v53 = vpop.f32.mrf.mxu0 }
 0x12b   : > { %759 = vmax.xlane.f32.xlu1 %v3679_v50  ;;  %v3819_v56 = vadd.f32 %v3634_v25, %v3686_v53 }
 0x12c   : > { %v3003_v55 = vpop.f32.mrf.mxu0 }
 0x12d   : > { %v3822_v57 = vadd.f32 %v3003_v55, %v3634_v25  ;;  %769 = vmax.xlane.f32.xlu0 %v3683_v52 }
 0x12e   : > { %v713_v58 = vpop.f32.mrf.mxu0 }
 0x12f   : > { %771 = vmax.xlane.f32.xlu1 %v3822_v57  ;;  %v3827_v59 = vadd.f32 %v3634_v25, %v713_v58 }
 0x131   : > { %765 = vmax.xlane.f32.xlu0 %v3819_v56 }
 0x133   : > { %767 = vmax.xlane.f32.xlu1 %v3827_v59 }
 0x19c   : > { %v746_v6 = vpop.xlane.xlu1 %745 }
 0x19d   : > { %v3847_v10 = vmax.f32 %v3842_v4, %v746_v6 }
 0x19e   : > { %v742_v14 = vpop.xlane.xlu0 %741 }
 0x19f   : > { %1361 = vst.msk [vmem:[#allocation2 + $0x10] sm:$0xff] %vm346_vm1, %v3847_v10  ;;  %v3857_v25 = vmax.f32 %v3844_v8, %v742_v14  ;;  %849 = vperm.xlu1 %3145, %v3847_v10  }
 0x1a0   : > { %v748_v26 = vpop.xlane.xlu1 %747 }
 0x1a1   : > { %1359 = vst.msk [vmem:[#allocation2] sm:$0xff] %vm346_vm1, %v3857_v25  ;;  %v3865_v30 = vmax.f32 %v3850_v16, %v748_v26  ;;  %839 = vperm.xlu0 %3144, %v3857_v25   ;;  %v3927_v26 = vld [vmem:[#allocation2 + $0x48] sm:$0xff] }
 0x1a2   : > { %v744_v34 = vpop.xlane.xlu0 %743 }
 0x1a3   : > { %1362 = vst.msk [vmem:[#allocation2 + $0x18] sm:$0xff] %vm346_vm1, %v3865_v30  ;;  %v3872_v36 = vmax.f32 %v3860_v28, %v744_v34  ;;  %v792_v32 = vsub.f32 %v3850_v16, %v3865_v30 }
 0x1a5   : > { %1360 = vst.msk [vmem:[#allocation2 + $0x8] sm:$0xff] %vm346_vm1, %v3872_v36  ;;  %844 = vperm.xlu1 %3145, %v3872_v36  }
 0x1a6   : > { %v754_v41 = vpop.xlane.xlu0 %753 }
 0x1a7   : > { %v3883_v45 = vmax.f32 %v3874_v37, %v754_v41  ;;  %v3936_v41 = vld [vmem:[#allocation2 + $0x70] sm:$0xff] }
 0x1a8   : > { %v756_v46 = vpop.xlane.xlu1 %755 }
 0x1a9   : > { %1365 = vst.msk [vmem:[#allocation2 + $0x30] sm:$0xff] %vm346_vm1, %v3883_v45  ;;  %v3890_v51 = vmax.f32 %v3880_v43, %v756_v46  ;;  %854 = vperm.xlu1 %3145, %v3865_v30   ;;  %v3944_v46 = vld [vmem:[#allocation2 + $0x78] sm:$0xff] }
 0x1aa   : > { %v750_v53 = vpop.xlane.xlu0 %749 }
 0x1ab   : > { %1366 = vst.msk [vmem:[#allocation2 + $0x38] sm:$0xff] %vm346_vm1, %v3890_v51  ;;  %v3898_v55 = vmax.f32 %v3885_v49, %v750_v53  ;;  %874 = vperm.xlu0 %3144, %v3890_v51  }
 0x1ac   : > { %v752_v58 = vpop.xlane.xlu1 %751 }
 0x1ad   : > { %1363 = vst.msk [vmem:[#allocation2 + $0x20] sm:$0xff] %vm346_vm1, %v3898_v55  ;;  %v3906_v61 = vmax.f32 %v3893_v54, %v752_v58  ;;  %1405 = vrot.lane.b32.xlu1 %v3494_v0, %s3438_s6 }
 0x1ae   : > { %v762_v62 = vpop.xlane.xlu0 %761 }
 0x1af   : > { %1364 = vst.msk [vmem:[#allocation2 + $0x28] sm:$0xff] %vm346_vm1, %v3906_v61  ;;  %v3915_v2 = vmax.f32 %v3901_v60, %v762_v62 }
 0x1b0   : > { %v764_v6 = vpop.xlane.xlu1 %763 }
 0x1b1   : > { %1369 = vst.msk [vmem:[#allocation2 + $0x50] sm:$0xff] %vm346_vm1, %v3915_v2  ;;  %v3922_v14 = vmax.f32 %v3910_v63, %v764_v6  ;;  %1403 = vrot.lane.b32.xlu1 %v3497_v1, %s3438_s6  ;;  %889 = vperm.xlu0 %3144, %v3915_v2   ;;  %v3950_v6 = vld [vmem:[#allocation2 + $0x60] sm:$0xff] }
 0x1b2   : > { %v758_v0 = vpop.xlane.xlu0 %757 }
 0x1b3   : > { %1370 = vst.msk [vmem:[#allocation2 + $0x58] sm:$0xff] %vm346_vm1, %v3922_v14  ;;  %v3934_v34 = vmax.f32 %v3917_v12, %v758_v0 }
 0x1b4   : > { %v760_v40 = vpop.xlane.xlu1 %759 }
 0x1b5   : > { %1367 = vst.msk [vmem:[#allocation2 + $0x40] sm:$0xff] %vm346_vm1, %v3934_v34  ;;  %v782_v1 = vmax.f32 %v3927_v26, %v760_v40  ;;  %1401 = vrot.lane.b32.xlu1 %v3512_v3, %s3438_s6  ;;  %879 = vperm.xlu0 %3144, %v3934_v34   ;;  %v3962_v40 = vld [vmem:[#allocation2 + $0x68] sm:$0xff]  ;;  %v811_v3 = vmul.f32 1.442695, %v792_v32 }
 0x1b6   : > { %v770_v53 = vpop.xlane.xlu0 %769 }
 0x1b7   : > { %1368 = vst.msk [vmem:[#allocation2 + $0x48] sm:$0xff] %vm346_vm1, %v782_v1  ;;  %v3948_v58 = vmax.f32 %v3936_v41, %v770_v53 }
 0x1b8   : > { %v772_v62 = vpop.xlane.xlu1 %771 }
 0x1b9   : > { %v3953_v0 = vmax.f32 %v3944_v46, %v772_v62  ;;  %869 = vperm.xlu1 %3145, %v3883_v45   ;;  %1399 = vrot.lane.b32.xlu0 %v3526_v7, %s3438_s6  ;;  %1373 = vst.msk [vmem:[#allocation2 + $0x70] sm:$0xff] %vm346_vm1, %v3948_v58 }
 0x1ba   : > { %v766_v53 = vpop.xlane.xlu0 %765 }
 0x1bb   : > { %1374 = vst.msk [vmem:[#allocation2 + $0x78] sm:$0xff] %vm346_vm1, %v3953_v0  ;;  %v3969_v62 = vmax.f32 %v3950_v6, %v766_v53 }
 0x1bc   : > { %v768_v24 = vpop.xlane.xlu1 %767 }
 0x1bd   : > { %v3972_v7 = vmax.f32 %v3962_v40, %v768_v24  ;;  %859 = vperm.xlu1 %3145, %v3898_v55   ;;  %1371 = vst.msk [vmem:[#allocation2 + $0x60] sm:$0xff] %vm346_vm1, %v3969_v62  ;;  %v789_v24 = vsub.f32 %v3844_v8, %v3857_v25  ;;  %v794_v8 = vsub.f32 %v3893_v54, %v3906_v61 }
 0x1be   : > { %v798_v25 = vsub.f32 %v3927_v26, %v782_v1  ;;  %v4718_v54 = vsub.f32 %v3910_v63, %v3922_v14 }
 0x1bf   : > { %1372 = vst.msk [vmem:[#allocation2 + $0x68] sm:$0xff] %vm346_vm1, %v3972_v7  ;;  %904 = vperm.xlu0 %3144, %v3972_v7   ;;  %v805_v53 = vmul.f32 1.442695, %v789_v24  ;;  %v815_v16 = vmul.f32 1.442695, %v794_v8 }
 0x1c0   : > { %v823_v30 = vmul.f32 1.442695, %v798_v25 }
 0x1c1   : > { %864 = vperm.xlu1 %3145, %v3906_v61   ;;  %3210 = vpow2.f32 %v805_v53 }
 0x1c2   : > { %3212 = vpow2.f32 %v811_v3 }
 0x1c3   : > { %914 = vperm.xlu0 %3144, %v3953_v0  }
 0x1c5   : > { %894 = vperm.xlu1 %3145, %v3922_v14  }
 0x1c7   : > { %1395 = vrot.lane.b32.xlu0 %v3540_v11, %s3438_s6  ;;  %v796_v11 = vsub.f32 %v3880_v43, %v3890_v51  ;;  %v799_v43 = vsub.f32 %v3901_v60, %v3915_v2 }
 0x1c9   : > { %884 = vperm.xlu1 %3145, %v782_v1  }
 0x1cb   : > { %1391 = vrot.lane.b32.xlu0 %v3554_v15, %s3438_s6  ;;  %v819_v15 = vmul.f32 1.442695, %v796_v11 }
 0x1cd   : > { %909 = vperm.xlu1 %3145, %v3948_v58   ;;  %3214 = vpow2.f32 %v819_v15 }
 0x1ce   : > { %3216 = vpow2.f32 %v815_v16 }
 0x1cf   : > { %1377 = vrot.lane.b32.xlu0 %v3561_v17, %s3438_s6  ;;  %v790_v17 = vsub.f32 %v3860_v28, %v3872_v36  ;;  %v793_v36 = vsub.f32 %v3885_v49, %v3898_v55  ;;  %v827_v55 = vmul.f32 1.442695, %v4718_v54 }
 0x1d1   : > { %899 = vperm.xlu1 %3145, %v3969_v62  }
 0x1d3   : > { %1381 = vrot.lane.b32.xlu0 %v3571_v19, %s3438_s6  ;;  %v807_v19 = vmul.f32 1.442695, %v790_v17 }
 0x1d5   : > { %1397 = vrot.lane.b32.xlu1 %v3533_v9, %s3438_s6  ;;  %v4018_v9 = vpop.eup %3210  ;;  %3218 = vpow2.f32 %v807_v19 }
 0x1d6   : > { %3220 = vpow2.f32 %v823_v30 }
 0x1d7   : > { %1385 = vrot.lane.b32.xlu0 %v3581_v21, %s3438_s6  ;;  %v4717_v21 = vsub.f32 %v3842_v4, %v3847_v10 }
 0x1d9   : > { %1393 = vrot.lane.b32.xlu1 %v3547_v13, %s3438_s6  ;;  %v809_v28 = vmul.f32 1.442695, %v4717_v21  ;;  %v4028_v13 = vpop.eup %3212 }
 0x1da   : > { %v4035_v4 = vpop.eup %3214 }
 0x1db   : > { %1389 = vrot.lane.b32.xlu0 %v3591_v23, %s3438_s6  ;;  %3222 = vpow2.f32 %v809_v28  ;;  %v813_v23 = vmul.f32 1.442695, %v793_v36 }
 0x1dd   : > { %1375 = vrot.lane.b32.xlu1 %v3517_v5, %s3438_s6  ;;  %v795_v5 = vsub.f32 %v3874_v37, %v3883_v45  ;;  %3224 = vpow2.f32 %v813_v23  ;;  %v825_v37 = vmul.f32 1.442695, %v799_v43  ;;  %v797_v45 = vsub.f32 %v3917_v12, %v3934_v34 }
 0x1df   : > { %1080 = vperm.xlu0 %3144, %v4018_v9   ;;  %v817_v10 = vmul.f32 1.442695, %v795_v5  ;;  %v821_v51 = vmul.f32 1.442695, %v797_v45 }
 0x1e1   : > { %1379 = vrot.lane.b32.xlu1 %v3564_v18, %s3438_s6  ;;  %v4042_v18 = vpop.eup %3216  ;;  %3226 = vpow2.f32 %v817_v10 }
 0x1e2   : > { %3228 = vpow2.f32 %v825_v37 }
 0x1e3   : > { %1095 = vperm.xlu0 %3144, %v4028_v13   ;;  %3230 = vpow2.f32 %v821_v51 }
 0x1e4   : > { %3232 = vpow2.f32 %v827_v55 }
 0x1e5   : > { %1383 = vrot.lane.b32.xlu1 %v3574_v20, %s3438_s6  ;;  %v4047_v20 = vpop.eup %3218 }
 0x1e6   : > { %v4050_v49 = vpop.eup %3220 }
 0x1e7   : > { %1115 = vperm.xlu0 %3144, %v4035_v4  }
 0x1e9   : > { %1387 = vrot.lane.b32.xlu1 %v3584_v22, %s3438_s6  ;;  %v4053_v22 = vpop.eup %3222 }
 0x1ea   : > { %v4059_v60 = vpop.eup %3224 }
 0x1eb   : > { %1105 = vperm.xlu0 %3144, %v4042_v18  }
 0x1ed   : > { %1085 = vperm.xlu1 %3145, %v4047_v20  }
 0x1ee   : > { %v4062_v61 = vpop.eup %3226 }
 0x1ef   : > { %1125 = vperm.xlu0 %3144, %v4050_v49   ;;  %v4065_v2 = vpop.eup %3228 }
 0x1f0   : > { %v4068_v12 = vpop.eup %3230 }
 0x1f1   : > { %1090 = vperm.xlu1 %3145, %v4053_v22   ;;  %v4071_v63 = vpop.eup %3232 }
 0x1f5   : > { %1100 = vperm.xlu1 %3145, %v4059_v60  }
 0x1f9   : > { %1110 = vperm.xlu1 %3145, %v4062_v61  }
 0x1fd   : > { %1130 = vperm.xlu1 %3145, %v4065_v2  }
 0x201   : > { %1120 = vperm.xlu1 %3145, %v4068_v12  }
 0x205   : > { %1135 = vperm.xlu1 %3145, %v4071_v63  }
 0x21a   : > { %v850_v14 = vpop.permute.xlu1 %849 }
 0x21b   : > { %v919_v26 = vsub.f32 %v3637_v27, %v850_v14 }
 0x21c   : > { %v840_v32 = vpop.permute.xlu0 %839 }
 0x21d   : > { %v937_v34 = vmul.f32 1.442695, %v919_v26  ;;  %v917_v1 = vsub.f32 %v3640_v29, %v840_v32 }
 0x21f   : > { %3234 = vpow2.f32 %v937_v34  ;;  %v933_v3 = vmul.f32 1.442695, %v917_v1 }
 0x220   : > { %v845_v24 = vpop.permute.xlu1 %844 }
 0x221   : > { %3236 = vpow2.f32 %v933_v3  ;;  %v918_v53 = vsub.f32 %v3648_v33, %v845_v24 }
 0x223   : > { %v935_v11 = vmul.f32 1.442695, %v918_v53 }
 0x224   : > { %v855_v15 = vpop.permute.xlu1 %854 }
 0x225   : > { %3238 = vpow2.f32 %v935_v11  ;;  %v920_v8 = vsub.f32 %v3644_v31, %v855_v15 }
 0x226   : > { %v875_v17 = vpop.permute.xlu0 %874 }
 0x227   : > { %v939_v16 = vmul.f32 1.442695, %v920_v8  ;;  %v924_v25 = vsub.f32 %v3659_v39, %v875_v17 }
 0x228   : > { %v1406_v27 = vpop.permute.xlu1 %1405 }
 0x229   : > { %3240 = vpow2.f32 %v939_v16  ;;  %v947_v19 = vmul.f32 1.442695, %v924_v25  ;;  %3108 = vmatprep.subr.msk.bf16.mxu1 %vm411_vm0, %v1406_v27  ;;  %v1453_v14 = vsel %vm411_vm0, %v1406_v27, 0 }
 0x22b   : > { %3242 = vpow2.f32 %v947_v19 }
 0x22c   : > { %v3235_v29 = vpop.eup %3234  ;;  %v1404_v30 = vpop.permute.xlu1 %1403 }
 0x22d   : > { %v890_v21 = vpop.permute.xlu0 %889  ;;  %1001 = vadd.xlane.f32.xlu0 %v3235_v29  ;;  %v1450_v11 = vsel %vm411_vm0, %v1404_v30, 0 }
 0x22e   : > { %v3237_v33 = vpop.eup %3236  ;;  %v927_v51 = vsub.f32 %v3667_v44, %v890_v21 }
 0x22f   : > { %997 = vadd.xlane.f32.xlu1 %v3237_v33 }
 0x230   : > { %v1402_v28 = vpop.permute.xlu1 %1401 }
 0x231   : > { %v880_v5 = vpop.permute.xlu0 %879 }
 0x232   : > { %v3239_v36 = vpop.eup %3238  ;;  %v925_v44 = vsub.f32 %v3672_v47, %v880_v5 }
 0x233   : > { %999 = vadd.xlane.f32.xlu0 %v3239_v36  ;;  %v1174_v31 = vpack.c.bf16 %v3239_v36, %v3237_v33 }
 0x234   : > { %v870_v23 = vpop.permute.xlu1 %869  ;;  %v949_v15 = vmul.f32 1.442695, %v925_v44 }
 0x235   : > { %v923_v39 = vsub.f32 %v3652_v35, %v870_v23  ;;  %3020 = vmatprep.mubr.bf16.mxu1 %v1174_v31  ;;  %v4081_v37 = vpop.permute.xlu0 %1399  ;;  %v953_v35 = vmul.f32 1.442695, %v927_v51 }
 0x236   : > { %v3241_v10 = vpop.eup %3240 }
 0x237   : > { %v945_v43 = vmul.f32 1.442695, %v923_v39  ;;  %1003 = vadd.xlane.f32.xlu1 %v3241_v10  ;;  %v1175_v45 = vpack.c.bf16 %v3241_v10, %v3235_v29 }
 0x238   : > { %v860_v54 = vpop.permute.xlu1 %859  ;;  %v3243_v26 = vpop.eup %3242 }
 0x239   : > { %3244 = vpow2.f32 %v945_v43  ;;  %v921_v55 = vsub.f32 %v3656_v38, %v860_v54  ;;  %3021 = vmatmul.mubr.bf16.vlgmr.msra.gmra.mxu1 %v1175_v45 }
 0x23a   : > { %3037 = vmatpush3.bf16.xpose.msra.mxu1 %v1453_v14  ;;  %v905_v1 = vpop.permute.xlu0 %904 }
 0x23b   : > { %v941_v32 = vmul.f32 1.442695, %v921_v55  ;;  %3109 = vmatprep.subr.msk.bf16.mxu1 %vm411_vm0, %v1404_v30  ;;  %1011 = vadd.xlane.f32.xlu1 %v3243_v26  ;;  %v1447_v30 = vsel %vm411_vm0, %v1402_v28, 0 }
 0x23c   : > { %v865_v34 = vpop.permute.xlu1 %864 }
 0x23d   : > { %3246 = vpow2.f32 %v941_v32  ;;  %v922_v3 = vsub.f32 %v3663_v42, %v865_v34 }
 0x23e   : > { %3248 = vpow2.f32 %v953_v35  ;;  %v915_v8 = vpop.permute.xlu0 %914 }
 0x23f   : > { %v943_v24 = vmul.f32 1.442695, %v922_v3  ;;  %v932_v47 = vsub.f32 %v3822_v57, %v915_v8 }
 0x240   : > { %v895_v38 = vpop.permute.xlu1 %894 }
 0x241   : > { %3250 = vpow2.f32 %v943_v24  ;;  %v928_v53 = vsub.f32 %v3675_v48, %v895_v38  ;;  %v930_v48 = vsub.f32 %v3827_v59, %v905_v1  ;;  %v963_v33 = vmul.f32 1.442695, %v932_v47 }
 0x242   : > { %3039 = vmatpush3.bf16.xpose.msra.mxu1 %v1450_v11 }
 0x243   : > { %v955_v17 = vmul.f32 1.442695, %v928_v53  ;;  %3110 = vmatprep.subr.msk.bf16.mxu1 %vm411_vm0, %v1402_v28  ;;  %v1444_v28 = vsel %vm411_vm0, %v4081_v37, 0 }
 0x244   : > { %v885_v16 = vpop.permute.xlu1 %884 }
 0x245   : > { %3252 = vpow2.f32 %v955_v17  ;;  %v926_v42 = vsub.f32 %v3679_v50, %v885_v16  ;;  %v959_v50 = vmul.f32 1.442695, %v930_v48 }
 0x246   : > { %v3245_v25 = vpop.eup %3244  ;;  %3254 = vpow2.f32 %v949_v15 }
 0x247   : > { %v951_v27 = vmul.f32 1.442695, %v926_v42  ;;  %1009 = vadd.xlane.f32.xlu0 %v3245_v25  ;;  %v1177_v39 = vpack.c.bf16 %v3243_v26, %v3245_v25  ;;  %v1396_v26 = vpop.permute.xlu0 %1395 }
 0x248   : > { %v910_v19 = vpop.permute.xlu1 %909  ;;  %v1438_v3 = vsel %vm411_vm0, %v1396_v26, 0 }
 0x249   : > { %3256 = vpow2.f32 %v951_v27  ;;  %v931_v29 = vsub.f32 %v3683_v52, %v910_v19 }
 0x24a   : > { %v3247_v21 = vpop.eup %3246  ;;  %3041 = vmatpush3.bf16.xpose.msra.mxu1 %v1447_v30 }
 0x24b   : > { %v961_v36 = vmul.f32 1.442695, %v931_v29  ;;  %1005 = vadd.xlane.f32.xlu0 %v3247_v21  ;;  %3111 = vmatprep.subr.msk.bf16.mxu1 %vm411_vm0, %v4081_v37  ;;  %v3249_v5 = vpop.eup %3248  ;;  %v1392_v53 = vpop.permute.xlu0 %1391 }
 0x24c   : > { %v900_v57 = vpop.permute.xlu1 %899  ;;  %v1432_v11 = vsel %vm411_vm0, %v1392_v53, 0 }
 0x24d   : > { %3258 = vpow2.f32 %v961_v36  ;;  %v929_v59 = vsub.f32 %v3819_v56, %v900_v57 }
 0x24e   : > { %v3251_v31 = vpop.eup %3250  ;;  %3260 = vpow2.f32 %v963_v33 }
 0x24f   : > { %v957_v23 = vmul.f32 1.442695, %v929_v59  ;;  %1007 = vadd.xlane.f32.xlu1 %v3251_v31  ;;  %1017 = vadd.xlane.f32.xlu0 %v3249_v5  ;;  %v1176_v52 = vpack.c.bf16 %v3251_v31, %v3247_v21  ;;  %3262 = vpow2.f32 %v959_v50  ;;  %v1378_v15 = vpop.permute.xlu0 %1377  ;;  %v967_v59 = vld [vmem:[#allocation3 + $0x10] sm:$0xff] }
 0x250   : > { %v1398_v45 = vpop.permute.xlu1 %1397 }
 0x251   : > { %3264 = vpow2.f32 %v957_v23  ;;  %3024 = vmatprep.mubr.bf16.mxu1 %v1176_v52  ;;  %v1441_v54 = vsel %vm411_vm0, %v1398_v45, 0  ;;  %v965_v23 = vld [vmem:[#allocation3] sm:$0xff]  ;;  %v983_v52 = vmul.f32 %v4053_v22, %v967_v59 }
 0x252   : > { %v3253_v10 = vpop.eup %3252  ;;  %3043 = vmatpush3.bf16.xpose.msra.mxu1 %v1444_v28  ;;  %v973_v59 = vld [vmem:[#allocation3 + $0x40] sm:$0xff] }
 0x253   : > { %v3255_v43 = vpop.eup %3254  ;;  %3025 = vmatmul.mubr.bf16.gmra.mxu1 %v1177_v39  ;;  %1019 = vadd.xlane.f32.xlu1 %v3253_v10  ;;  %v1179_v55 = vpack.c.bf16 %v3253_v10, %v3249_v5  ;;  %v1382_v17 = vpop.permute.xlu0 %1381  ;;  %v981_v10 = vmul.f32 %v4018_v9, %v965_v23  ;;  %v989_v23 = vmul.f32 %v4068_v12, %v973_v59 }
 0x254   : > { %1013 = vadd.xlane.f32.xlu0 %v3255_v43  ;;  %3112 = vmatprep.subr.msk.bf16.mxu1 %vm411_vm0, %v1398_v45  ;;  %v1394_v35 = vpop.permute.xlu1 %1393  ;;  %v966_v45 = vld [vmem:[#allocation3 + $0x8] sm:$0xff] }
 0x255   : > { %v1435_v38 = vsel %vm411_vm0, %v1394_v35, 0 }
 0x256   : > { %v3257_v56 = vpop.eup %3256 }
 0x257   : > { %1015 = vadd.xlane.f32.xlu1 %v3257_v56  ;;  %v1178_v51 = vpack.c.bf16 %v3257_v56, %v3255_v43  ;;  %v1386_v42 = vpop.permute.xlu0 %1385 }
 0x258   : > { %v1376_v24 = vpop.permute.xlu1 %1375 }
 0x259   : > { %3028 = vmatprep.mubr.bf16.mxu1 %v1178_v51  ;;  %v982_v51 = vmul.f32 %v4047_v20, %v966_v45  ;;  %v4719_v20 = vsub.f32 %v3936_v41, %v3948_v58  ;;  %v4722_v41 = vsub.f32 %v3962_v40, %v3972_v7  ;;  %v979_v45 = vld [vmem:[#allocation3 + $0x70] sm:$0xff] }
 0x25a   : > { %v3259_v14 = vpop.eup %3258  ;;  %3045 = vmatpush3.bf16.xpose.msra.mxu1 %v1441_v54 }
 0x25b   : > { %v3261_v37 = vpop.eup %3260  ;;  %3029 = vmatmul.mubr.bf16.gmra.mxu1 %v1179_v55  ;;  %1025 = vadd.xlane.f32.xlu0 %v3259_v14  ;;  %v1390_v47 = vpop.permute.xlu0 %1389  ;;  %v968_v55 = vld [vmem:[#allocation3 + $0x18] sm:$0xff]  ;;  %v831_v58 = vmul.f32 1.442695, %v4722_v41 }
 0x25c   : > { %1027 = vadd.xlane.f32.xlu1 %v3261_v37  ;;  %3113 = vmatprep.subr.msk.bf16.mxu1 %vm411_vm0, %v1396_v26  ;;  %v3263_v32 = vpop.eup %3262  ;;  %v1181_v44 = vpack.c.bf16 %v3261_v37, %v3259_v14  ;;  %v1380_v8 = vpop.permute.xlu1 %1379  ;;  %v984_v22 = vmul.f32 %v4028_v13, %v968_v55  ;;  %v972_v26 = vld [vmem:[#allocation3 + $0x38] sm:$0xff]  ;;  %v4720_v13 = vsub.f32 %v3944_v46, %v3953_v0  ;;  %v970_v46 = vld [vmem:[#allocation3 + $0x28] sm:$0xff]  ;;  %v975_v0 = vld [vmem:[#allocation3 + $0x50] sm:$0xff] }
 0x25d   : > { %v988_v9 = vmul.f32 %v4035_v4, %v972_v26  ;;  %v4721_v4 = vsub.f32 %v3950_v6, %v3969_v62  ;;  %v991_v6 = vmul.f32 %v4065_v2, %v975_v0 }
 0x25e   : > { %v3265_v34 = vpop.eup %3264 }
 0x25f   : > { %1021 = vadd.xlane.f32.xlu0 %v3265_v34  ;;  %v1180_v1 = vpack.c.bf16 %v3263_v32, %v3265_v34  ;;  %v4122_v19 = vpop.permute.xlu0 %1080 }
 0x260   : > { %1023 = vadd.xlane.f32.xlu1 %v3263_v32  ;;  %v1384_v16 = vpop.permute.xlu1 %1383 }
 0x261   : > { %3032 = vmatprep.mubr.bf16.mxu1 %v1180_v1  ;;  %v971_v1 = vld [vmem:[#allocation3 + $0x30] sm:$0xff] }
 0x262   : > { %3047 = vmatpush3.bf16.xpose.msra.mxu1 %v1438_v3  ;;  %v833_v3 = vmul.f32 1.442695, %v4719_v20 }
 0x263   : > { %3033 = vmatmul.mubr.bf16.gmra.mxu1 %v1181_v44  ;;  %3114 = vmatprep.subr.msk.bf16.mxu1 %vm411_vm0, %v1394_v35  ;;  %v4126_v30 = vpop.permute.xlu0 %1095  ;;  %v987_v44 = vmul.f32 %v4062_v61, %v971_v1 }
 0x264   : > { %3052 = vmatprep.mubr.msk.bf16.mxu1 %vm411_vm0, %v1376_v24  ;;  %v1388_v25 = vpop.permute.xlu1 %1387  ;;  %v835_v24 = vmul.f32 1.442695, %v4720_v13  ;;  %3266 = vpow2.f32 %v833_v3  ;;  %v1064_v13 = vld [vmem:[#allocation4 + $0x10] sm:$0xff] }
 0x266   : > { %3268 = vpow2.f32 %v835_v24  ;;  %v1062_v24 = vld [vmem:[#allocation4] sm:$0xff] }
 0x267   : > { %v4130_v33 = vpop.permute.xlu0 %1115 }
 0x268   : > { %v4117_v27 = vpop.permute.xlu1 %1085 }
 0x26a   : > { %3049 = vmatpush3.bf16.xpose.msra.mxu1 %v1435_v38 }
 0x26b   : > { %3115 = vmatprep.subr.msk.bf16.mxu1 %vm411_vm0, %v1392_v53  ;;  %v4134_v50 = vpop.permute.xlu0 %1105  ;;  %v969_v53 = vld [vmem:[#allocation3 + $0x20] sm:$0xff] }
 0x26c   : > { %v4120_v48 = vpop.permute.xlu1 %1090 }
 0x26f   : > { %v4138_v5 = vpop.permute.xlu0 %1125 }
 0x270   : > { %v4124_v29 = vpop.permute.xlu1 %1100 }
 0x272   : > { %3051 = vmatpush3.bf16.xpose.msra.mxu1 %v1432_v11 }
 0x274   : > { %v4128_v21 = vpop.permute.xlu1 %1110 }
 0x278   : > { %v4132_v36 = vpop.permute.xlu1 %1130 }
 0x279   : > { %3053 = vmatmul.mubr.msk.bf16.vlgmr.msra.gmra.mxu1 %vm411_vm0, %v1378_v15  ;;  %v829_v15 = vmul.f32 1.442695, %v4721_v4  ;;  %v1158_v4 = vmul.f32 %v4122_v19, %v1062_v24  ;;  %v1068_v19 = vld [vmem:[#allocation4 + $0x30] sm:$0xff] }
 0x27a   : > { %3056 = vmatprep.mubr.msk.bf16.mxu1 %vm411_vm0, %v1380_v8  ;;  %v985_v8 = vmul.f32 %v4059_v60, %v969_v53  ;;  %v976_v60 = vld [vmem:[#allocation3 + $0x58] sm:$0xff] }
 0x27b   : > { %3270 = vpow2.f32 %v829_v15  ;;  %v992_v40 = vmul.f32 %v4071_v63, %v976_v60  ;;  %v1065_v53 = vld [vmem:[#allocation4 + $0x18] sm:$0xff] }
 0x27c   : > { %v4136_v57 = vpop.permute.xlu1 %1120  ;;  %3272 = vpow2.f32 %v831_v58  ;;  %v1161_v58 = vmul.f32 %v4126_v30, %v1065_v53  ;;  %v1069_v30 = vld [vmem:[#allocation4 + $0x38] sm:$0xff] }
 0x27d   : > { %v1165_v59 = vmul.f32 %v4130_v33, %v1069_v30 }
 0x280   : > { %v4140_v31 = vpop.permute.xlu1 %1135 }
 0x281   : > { %3057 = vmatmul.mubr.msk.bf16.gmra.mxu1 %vm411_vm0, %v1382_v17 }
 0x282   : > { %3060 = vmatprep.mubr.msk.bf16.mxu1 %vm411_vm0, %v1384_v16  ;;  %v986_v16 = vmul.f32 %v4042_v18, %v970_v46 }
 0x289   : > { %3061 = vmatmul.mubr.msk.bf16.gmra.mxu1 %vm411_vm0, %v1386_v42 }
 0x28a   : > { %3064 = vmatprep.mubr.msk.bf16.mxu1 %vm411_vm0, %v1388_v25 }
 0x291   : > { %3065 = vmatmul.mubr.msk.bf16.gmra.mxu1 %vm411_vm0, %v1390_v47 }
 0x2b6   : > { %v1002_v28 = vpop.xlane.xlu0 %1001 }
 0x2b7   : > { %v1031_v39 = vadd.f32 %v1002_v28, %v983_v52  ;;  %v974_v52 = vld [vmem:[#allocation3 + $0x48] sm:$0xff] }
 0x2b8   : > { %v998_v43 = vpop.xlane.xlu1 %997 }
 0x2b9   : > { %1048 = vst.msk [vmem:[#allocation3 + $0x10] sm:$0xff] %vm346_vm1, %v1031_v39  ;;  %v1029_v56 = vadd.f32 %v998_v43, %v981_v10  ;;  %v990_v39 = vmul.f32 %v4050_v49, %v974_v52  ;;  %v4176_v10 = vpop.eup %3266  ;;  %v977_v49 = vld [vmem:[#allocation3 + $0x60] sm:$0xff] }
 0x2ba   : > { %v995_v12 = vmul.f32 %v4176_v10, %v979_v45 }
 0x2bb   : > { %1046 = vst.msk [vmem:[#allocation3] sm:$0xff] %vm346_vm1, %v1029_v56  ;;  %v4179_v56 = vpop.eup %3268 }
 0x2bc   : > { %v1000_v54 = vpop.xlane.xlu0 %999 }
 0x2bd   : > { %v1030_v14 = vadd.f32 %v1000_v54, %v982_v51  ;;  %v980_v51 = vld [vmem:[#allocation3 + $0x78] sm:$0xff]  ;;  %v4183_v54 = vpop.eup %3270 }
 0x2be   : > { %v996_v55 = vmul.f32 %v4179_v56, %v980_v51 }
 0x2bf   : > { %1047 = vst.msk [vmem:[#allocation3 + $0x8] sm:$0xff] %vm346_vm1, %v1030_v14 }
 0x2c0   : > { %v1004_v37 = vpop.xlane.xlu1 %1003 }
 0x2c1   : > { %v1032_v32 = vadd.f32 %v1004_v37, %v984_v22  ;;  %v4186_v22 = vpop.eup %3272 }
 0x2c3   : > { %1049 = vst.msk [vmem:[#allocation3 + $0x18] sm:$0xff] %vm346_vm1, %v1032_v32  ;;  %v978_v32 = vld [vmem:[#allocation3 + $0x68] sm:$0xff] }
 0x2c4   : > { %v1012_v35 = vpop.xlane.xlu1 %1011 }
 0x2c5   : > { %v1036_v34 = vadd.f32 %v1012_v35, %v988_v9  ;;  %v993_v35 = vmul.f32 %v4183_v54, %v977_v49 }
 0x2c7   : > { %1053 = vst.msk [vmem:[#allocation3 + $0x38] sm:$0xff] %vm346_vm1, %v1036_v34  ;;  %v994_v34 = vmul.f32 %v4186_v22, %v978_v32 }
 0x2d0   : > { %v1010_v38 = vpop.xlane.xlu0 %1009 }
 0x2d1   : > { %v1035_v11 = vadd.f32 %v1010_v38, %v987_v44  ;;  %v1160_v38 = vmul.f32 %v4120_v48, %v1064_v13 }
 0x2d3   : > { %1052 = vst.msk [vmem:[#allocation3 + $0x30] sm:$0xff] %vm346_vm1, %v1035_v11 }
 0x2d4   : > { %v1006_v61 = vpop.xlane.xlu0 %1005 }
 0x2d5   : > { %v1033_v17 = vadd.f32 %v1006_v61, %v985_v8  ;;  %v1063_v8 = vld [vmem:[#allocation4 + $0x8] sm:$0xff] }
 0x2d6   : > { %v1159_v0 = vmul.f32 %v4117_v27, %v1063_v8 }
 0x2d7   : > { %1050 = vst.msk [vmem:[#allocation3 + $0x20] sm:$0xff] %vm346_vm1, %v1033_v17 }
 0x2d8   : > { %v1008_v62 = vpop.xlane.xlu1 %1007  ;;  %v1018_v42 = vpop.xlane.xlu0 %1017 }
 0x2d9   : > { %v1034_v25 = vadd.f32 %v1008_v62, %v986_v16  ;;  %v1039_v47 = vadd.f32 %v1018_v42, %v991_v6  ;;  %v1066_v6 = vld [vmem:[#allocation4 + $0x20] sm:$0xff]  ;;  %v1164_v62 = vmul.f32 %v4128_v21, %v1068_v19 }
 0x2da   : > { %v1162_v60 = vmul.f32 %v4124_v29, %v1066_v6  ;;  %v1070_v21 = vld [vmem:[#allocation4 + $0x40] sm:$0xff] }
 0x2db   : > { %1051 = vst.msk [vmem:[#allocation3 + $0x28] sm:$0xff] %vm346_vm1, %v1034_v25  ;;  %1056 = vst.msk [vmem:[#allocation3 + $0x50] sm:$0xff] %vm346_vm1, %v1039_v47  ;;  %v1067_v47 = vld [vmem:[#allocation4 + $0x28] sm:$0xff]  ;;  %v1166_v33 = vmul.f32 %v4136_v57, %v1070_v21  ;;  %v4287_v21 = vld [vmem:[#allocation2 + $0x90] sm:$0xff] }
 0x2dc   : > { %v1020_v7 = vpop.xlane.xlu1 %1019  ;;  %v1163_v52 = vmul.f32 %v4134_v50, %v1067_v47 }
 0x2dd   : > { %v1040_v18 = vadd.f32 %v1020_v7, %v992_v40  ;;  %v1014_v28 = vpop.xlane.xlu0 %1013  ;;  %v1072_v7 = vld [vmem:[#allocation4 + $0x50] sm:$0xff] }
 0x2de   : > { %v1037_v2 = vadd.f32 %v1014_v28, %v989_v23 }
 0x2df   : > { %1057 = vst.msk [vmem:[#allocation3 + $0x58] sm:$0xff] %vm346_vm1, %v1040_v18 }
 0x2e0   : > { %1054 = vst.msk [vmem:[#allocation3 + $0x40] sm:$0xff] %vm346_vm1, %v1037_v2  ;;  %v1016_v43 = vpop.xlane.xlu1 %1015  ;;  %v1168_v2 = vmul.f32 %v4132_v36, %v1072_v7  ;;  %v3405_v7 = vld [vmem:[%s3835_s5 + $0x38] sm:$0xff]  }
 0x2e1   : > { %v1038_v63 = vadd.f32 %v1016_v43, %v990_v39  ;;  %v1073_v39 = vld [vmem:[#allocation4 + $0x58] sm:$0xff] }
 0x2e2   : > { %v1169_v50 = vmul.f32 %v4140_v31, %v1073_v39 }
 0x2e3   : > { %1055 = vst.msk [vmem:[#allocation3 + $0x48] sm:$0xff] %vm346_vm1, %v1038_v63  ;;  %v1071_v63 = vld [vmem:[#allocation4 + $0x48] sm:$0xff] }
 0x2e4   : > { %v1026_v14 = vpop.xlane.xlu0 %1025  ;;  %v1167_v36 = vmul.f32 %v4138_v5, %v1071_v63  ;;  %v4302_v63 = vld [vmem:[#allocation2 + $0x98] sm:$0xff] }
 0x2e5   : > { %v1028_v37 = vpop.xlane.xlu1 %1027  ;;  %v1043_v26 = vadd.f32 %v1026_v14, %v995_v12 }
 0x2e6   : > { %v1044_v9 = vadd.f32 %v1028_v37, %v996_v55 }
 0x2e7   : > { %1060 = vst.msk [vmem:[#allocation3 + $0x70] sm:$0xff] %vm346_vm1, %v1043_v26 }
 0x2e8   : > { %1061 = vst.msk [vmem:[#allocation3 + $0x78] sm:$0xff] %vm346_vm1, %v1044_v9  ;;  %v1022_v1 = vpop.xlane.xlu0 %1021 }
 0x2e9   : > { %v1024_v20 = vpop.xlane.xlu1 %1023  ;;  %v1041_v3 = vadd.f32 %v1022_v1, %v993_v35  ;;  %v3402_v35 = vld [vmem:[%s3631_s28] ss:$0 sm:$0xff] }
 0x2ea   : > { %v1042_v44 = vadd.f32 %v1024_v20, %v994_v34 }
 0x2eb   : > { %1058 = vst.msk [vmem:[#allocation3 + $0x60] sm:$0xff] %vm346_vm1, %v1041_v3 }
 0x2ec   : > { %1059 = vst.msk [vmem:[#allocation3 + $0x68] sm:$0xff] %vm346_vm1, %v1042_v44 }
 0x2f9   : > { %v3022_v11 = vpop.f32.mrf.mxu1 }
 0x2fa   : > { %v1329_v15 = vadd.f32 %v3022_v11, %v1160_v38 }
 0x2fb   : > { %v1264_v41 = vpop.f32.mrf.mxu1 }
 0x2fc   : > { %1345 = vst.msk [vmem:[#allocation4 + $0x10] sm:$0xff] %vm411_vm0, %v1329_v15  ;;  %v1327_v61 = vadd.f32 %v1264_v41, %v1158_v4 }
 0x2fd   : > { %v3023_v46 = vpop.f32.mrf.mxu1 }
 0x2fe   : > { %1343 = vst.msk [vmem:[#allocation4] sm:$0xff] %vm411_vm0, %v1327_v61  ;;  %v1330_v17 = vadd.f32 %v3023_v46, %v1161_v58 }
 0x2ff   : > { %v1267_v16 = vpop.f32.mrf.mxu1 }
 0x300   : > { %1346 = vst.msk [vmem:[#allocation4 + $0x18] sm:$0xff] %vm411_vm0, %v1330_v17  ;;  %v1328_v48 = vadd.f32 %v1267_v16, %v1159_v0 }
 0x302   : > { %1344 = vst.msk [vmem:[#allocation4 + $0x8] sm:$0xff] %vm411_vm0, %v1328_v48 }
 0x313   : > { %v3026_v42 = vpop.f32.mrf.mxu1 }
 0x314   : > { %v1333_v25 = vadd.f32 %v3026_v42, %v1164_v62 }
 0x315   : > { %v1280_v27 = vpop.f32.mrf.mxu1 }
 0x316   : > { %1349 = vst.msk [vmem:[#allocation4 + $0x30] sm:$0xff] %vm411_vm0, %v1333_v25  ;;  %v1331_v40 = vadd.f32 %v1280_v27, %v1162_v60 }
 0x317   : > { %v3027_v23 = vpop.f32.mrf.mxu1 }
 0x318   : > { %1347 = vst.msk [vmem:[#allocation4 + $0x20] sm:$0xff] %vm411_vm0, %v1331_v40  ;;  %v1334_v18 = vadd.f32 %v3027_v23, %v1165_v59  ;;  %v3403_v59 = vld [vmem:[%s3835_s5 + $0x30] sm:$0xff]   ;;  %v3404_v40 = vld [vmem:[%s3835_s5 + $0x28] sm:$0xff]   ;;  %v3406_v23 = vld [vmem:[%s3835_s5 + $0x18] sm:$0xff]  }
 0x319   : > { %v1283_v28 = vpop.f32.mrf.mxu1 }
 0x31a   : > { %1350 = vst.msk [vmem:[#allocation4 + $0x38] sm:$0xff] %vm411_vm0, %v1334_v18  ;;  %v1332_v29 = vadd.f32 %v1283_v28, %v1163_v52  ;;  %v3407_v52 = vld [vmem:[%s3835_s5 + $0x20] sm:$0xff]   ;;  %v3408_v18 = vld [vmem:[%s3835_s5 + $0x10] sm:$0xff]  }
 0x31b   : > { %v3030_v43 = vpop.f32.mrf.mxu1 }
 0x31c   : > { %1348 = vst.msk [vmem:[#allocation4 + $0x28] sm:$0xff] %vm411_vm0, %v1332_v29  ;;  %v1337_v45 = vadd.f32 %v3030_v43, %v1168_v2  ;;  %v4292_v29 = vld [vmem:[#allocation2 + $0x80] sm:$0xff]  ;;  %v4297_v43 = vld [vmem:[#allocation2 + $0x88] sm:$0xff] }
 0x31d   : > { %v1296_v51 = vpop.f32.mrf.mxu1 }
 0x31e   : > { %1353 = vst.msk [vmem:[#allocation4 + $0x50] sm:$0xff] %vm411_vm0, %v1337_v45  ;;  %v1335_v12 = vadd.f32 %v1296_v51, %v1166_v33 }
 0x31f   : > { %v3031_v55 = vpop.f32.mrf.mxu1 }
 0x320   : > { %1351 = vst.msk [vmem:[#allocation4 + $0x40] sm:$0xff] %vm411_vm0, %v1335_v12  ;;  %v1338_v14 = vadd.f32 %v3031_v55, %v1169_v50  ;;  %v4310_v12 = vld [vmem:[#allocation2 + $0xb0] sm:$0xff] }
 0x321   : > { %v1299_v49 = vpop.f32.mrf.mxu1 }
 0x322   : > { %1354 = vst.msk [vmem:[#allocation4 + $0x58] sm:$0xff] %vm411_vm0, %v1338_v14  ;;  %v1336_v57 = vadd.f32 %v1299_v49, %v1167_v36  ;;  %v4317_v14 = vld [vmem:[#allocation2 + $0xb8] sm:$0xff] }
 0x323   : > { %v4218_v37 = vpop.f32.mrf.mxu1 }
 0x324   : > { %1352 = vst.msk [vmem:[#allocation4 + $0x48] sm:$0xff] %vm411_vm0, %v1336_v57 }
 0x325   : > { %v4220_v26 = vpop.f32.mrf.mxu1 }
 0x327   : > { %v4222_v31 = vpop.f32.mrf.mxu1 }
 0x329   : > { %v4224_v32 = vpop.f32.mrf.mxu1 }
 0x339   : > { %v3054_v9 = vpop.f32.mrf.mxu1 }
 0x33a   : > { %v4227_v5 = vadd.f32 %v3402_v35, %v3054_v9  ;;  %v4325_v9 = vld [vmem:[#allocation2 + $0xa0] sm:$0xff] }
 0x33b   : > { %v1489_v34 = vpop.f32.mrf.mxu1 }
 0x33c   : > { %1573 = vmax.xlane.f32.xlu0 %v4227_v5  ;;  %v4230_v20 = vadd.f32 %v3402_v35, %v1489_v34 }
 0x33d   : > { %v3055_v1 = vpop.f32.mrf.mxu1 }
 0x33e   : > { %v4235_v24 = vadd.f32 %v3402_v35, %v3055_v1  ;;  %v4333_v1 = vld [vmem:[#allocation2 + $0xa8] sm:$0xff] }
 0x33f   : > { %v1492_v3 = vpop.f32.mrf.mxu1 }
 0x340   : > { %v4232_v44 = vadd.f32 %v3402_v35, %v1492_v3  ;;  %1569 = vmax.xlane.f32.xlu0 %v4230_v20 }
 0x341   : > { %v3058_v13 = vpop.f32.mrf.mxu1 }
 0x342   : > { %v4237_v38 = vadd.f32 %v3402_v35, %v3058_v13  ;;  %1571 = vmax.xlane.f32.xlu1 %v4232_v44 }
 0x343   : > { %v1505_v53 = vpop.f32.mrf.mxu1 }
 0x344   : > { %1575 = vmax.xlane.f32.xlu0 %v4235_v24  ;;  %v4244_v8 = vadd.f32 %v3402_v35, %v1505_v53 }
 0x345   : > { %v3059_v11 = vpop.f32.mrf.mxu1 }
 0x346   : > { %v4241_v4 = vadd.f32 %v3402_v35, %v3059_v11  ;;  %1581 = vmax.xlane.f32.xlu1 %v4237_v38  ;;  %v4343_v11 = vld [vmem:[#allocation2 + $0xd0] sm:$0xff] }
 0x347   : > { %v1508_v15 = vpop.f32.mrf.mxu1 }
 0x348   : > { %1583 = vmax.xlane.f32.xlu0 %v4241_v4  ;;  %v4247_v58 = vadd.f32 %v3402_v35, %v1508_v15 }
 0x349   : > { %v3062_v41 = vpop.f32.mrf.mxu1 }
 0x34a   : > { %v4249_v61 = vadd.f32 %v3402_v35, %v3062_v41  ;;  %1577 = vmax.xlane.f32.xlu1 %v4244_v8 }
 0x34b   : > { %v1521_v46 = vpop.f32.mrf.mxu1 }
 0x34c   : > { %1579 = vmax.xlane.f32.xlu0 %v4247_v58  ;;  %v4256_v48 = vadd.f32 %v3402_v35, %v1521_v46  ;;  %v4351_v46 = vld [vmem:[#allocation2 + $0xd8] sm:$0xff] }
 0x34d   : > { %v3063_v0 = vpop.f32.mrf.mxu1 }
 0x34e   : > { %v4253_v17 = vadd.f32 %v3402_v35, %v3063_v0  ;;  %1589 = vmax.xlane.f32.xlu1 %v4249_v61 }
 0x34f   : > { %v1524_v16 = vpop.f32.mrf.mxu1 }
 0x350   : > { %1591 = vmax.xlane.f32.xlu0 %v4253_v17  ;;  %v4259_v6 = vadd.f32 %v3402_v35, %v1524_v16 }
 0x351   : > { %v3066_v19 = vpop.f32.mrf.mxu1 }
 0x352   : > { %1585 = vmax.xlane.f32.xlu1 %v4256_v48  ;;  %v4262_v62 = vadd.f32 %v3402_v35, %v3066_v19  ;;  %v4359_v19 = vld [vmem:[#allocation2 + $0xc0] sm:$0xff] }
 0x353   : > { %v1537_v30 = vpop.f32.mrf.mxu1 }
 0x354   : > { %1587 = vmax.xlane.f32.xlu0 %v4259_v6  ;;  %v4266_v60 = vadd.f32 %v3402_v35, %v1537_v30 }
 0x355   : > { %v3067_v42 = vpop.f32.mrf.mxu1 }
 0x356   : > { %1597 = vmax.xlane.f32.xlu1 %v4262_v62  ;;  %v4268_v25 = vadd.f32 %v3402_v35, %v3067_v42 }
 0x357   : > { %v1540_v47 = vpop.f32.mrf.mxu1 }
 0x358   : > { %1599 = vmax.xlane.f32.xlu0 %v4268_v25  ;;  %v4271_v27 = vadd.f32 %v3402_v35, %v1540_v47 }
 0x35a   : > { %1593 = vmax.xlane.f32.xlu1 %v4266_v60 }
 0x35c   : > { %1595 = vmax.xlane.f32.xlu0 %v4271_v27 }
 0x36b   : > { %2023 = vrot.lane.b32.xlu1 %v3403_v59, %s3438_s6  ;;  %v4369_v59 = vld [vmem:[#allocation2 + $0xc8] sm:$0xff] }
 0x36f   : > { %2021 = vrot.lane.b32.xlu1 %v3404_v40, %s3438_s6  ;;  %v3410_v40 = vld [vmem:[%s3835_s5] sm:$0xff]  }
 0x372   : > { %2025 = vrot.lane.b32.xlu0 %v3405_v7, %s3438_s6 }
 0x373   : > { %2017 = vrot.lane.b32.xlu1 %v3406_v23, %s3438_s6 }
 0x376   : > { %2019 = vrot.lane.b32.xlu0 %v3407_v52, %s3438_s6  ;;  %v4379_v52 = vld [vmem:[#allocation2 + $0xf0] sm:$0xff] }
 0x37a   : > { %2015 = vrot.lane.b32.xlu0 %v3408_v18, %s3438_s6 }
 0x3c5   : > { %v1574_v28 = vpop.xlane.xlu0 %1573 }
 0x3c6   : > { %v4290_v2 = vmax.f32 %v4287_v21, %v1574_v28 }
 0x3c8   : > { %2166 = vst.msk [vmem:[#allocation2 + $0x90] sm:$0xff] %vm346_vm1, %v4290_v2  ;;  %1677 = vperm.xlu1 %3145, %v4290_v2  }
 0x3c9   : > { %v1570_v39 = vpop.xlane.xlu0 %1569 }
 0x3ca   : > { %v4300_v33 = vmax.f32 %v4292_v29, %v1570_v39 }
 0x3cb   : > { %v1572_v45 = vpop.xlane.xlu1 %1571 }
 0x3cc   : > { %2164 = vst.msk [vmem:[#allocation2 + $0x80] sm:$0xff] %vm346_vm1, %v4300_v33  ;;  %v4307_v51 = vmax.f32 %v4297_v43, %v1572_v45  ;;  %1667 = vperm.xlu1 %3145, %v4300_v33   ;;  %v4389_v45 = vld [vmem:[#allocation2 + $0xf8] sm:$0xff] }
 0x3cd   : > { %v1576_v50 = vpop.xlane.xlu0 %1575 }
 0x3ce   : > { %2165 = vst.msk [vmem:[#allocation2 + $0x88] sm:$0xff] %vm346_vm1, %v4307_v51  ;;  %v4315_v55 = vmax.f32 %v4302_v63, %v1576_v50  ;;  %v1618_v50 = vsub.f32 %v4297_v43, %v4307_v51  ;;  %v3409_v43 = vld [vmem:[%s3835_s5 + $0x8] sm:$0xff]  }
 0x3cf   : > { %v1582_v36 = vpop.xlane.xlu1 %1581 }
 0x3d0   : > { %2167 = vst.msk [vmem:[#allocation2 + $0x98] sm:$0xff] %vm346_vm1, %v4315_v55  ;;  %v4322_v49 = vmax.f32 %v4310_v12, %v1582_v36  ;;  %1682 = vperm.xlu0 %3144, %v4315_v55  }
 0x3d1   : > { %v1584_v57 = vpop.xlane.xlu0 %1583 }
 0x3d2   : > { %2170 = vst.msk [vmem:[#allocation2 + $0xb0] sm:$0xff] %vm346_vm1, %v4322_v49  ;;  %v4330_v35 = vmax.f32 %v4317_v14, %v1584_v57  ;;  %1697 = vperm.xlu1 %3145, %v4322_v49  }
 0x3d3   : > { %v1578_v34 = vpop.xlane.xlu1 %1577 }
 0x3d4   : > { %v1624_v3 = vsub.f32 %v4317_v14, %v4330_v35  ;;  %2171 = vst.msk [vmem:[#allocation2 + $0xb8] sm:$0xff] %vm346_vm1, %v4330_v35  ;;  %v4340_v13 = vmax.f32 %v4325_v9, %v1578_v34  ;;  %1672 = vperm.xlu0 %3144, %v4307_v51   ;;  %v4401_v34 = vld [vmem:[#allocation2 + $0xe0] sm:$0xff] }
 0x3d5   : > { %v1580_v53 = vpop.xlane.xlu0 %1579 }
 0x3d6   : > { %2168 = vst.msk [vmem:[#allocation2 + $0xa0] sm:$0xff] %vm346_vm1, %v4340_v13  ;;  %v4348_v15 = vmax.f32 %v4333_v1, %v1580_v53  ;;  %1687 = vperm.xlu1 %3145, %v4340_v13  }
 0x3d7   : > { %v1590_v41 = vpop.xlane.xlu1 %1589 }
 0x3d8   : > { %2169 = vst.msk [vmem:[#allocation2 + $0xa8] sm:$0xff] %vm346_vm1, %v4348_v15  ;;  %v4356_v0 = vmax.f32 %v4343_v11, %v1590_v41  ;;  %1702 = vperm.xlu0 %3144, %v4330_v35   ;;  %v1621_v41 = vsub.f32 %v4325_v9, %v4340_v13  ;;  %v1623_v9 = vsub.f32 %v4310_v12, %v4322_v49 }
 0x3d9   : > { %v1592_v16 = vpop.xlane.xlu0 %1591 }
 0x3da   : > { %2174 = vst.msk [vmem:[#allocation2 + $0xd0] sm:$0xff] %vm346_vm1, %v4356_v0  ;;  %v4366_v42 = vmax.f32 %v4351_v46, %v1592_v16  ;;  %1717 = vperm.xlu1 %3145, %v4356_v0   ;;  %v1641_v13 = vmul.f32 1.442695, %v1621_v41 }
 0x3db   : > { %v1586_v47 = vpop.xlane.xlu1 %1585 }
 0x3dc   : > { %2175 = vst.msk [vmem:[#allocation2 + $0xd8] sm:$0xff] %vm346_vm1, %v4366_v42  ;;  %v4376_v7 = vmax.f32 %v4359_v19, %v1586_v47  ;;  %1692 = vperm.xlu0 %3144, %v4348_v15   ;;  %v4412_v47 = vld [vmem:[#allocation2 + $0xe8] sm:$0xff] }
 0x3dd   : > { %v1588_v23 = vpop.xlane.xlu0 %1587 }
 0x3de   : > { %v1625_v18 = vsub.f32 %v4359_v19, %v4376_v7  ;;  %2172 = vst.msk [vmem:[#allocation2 + $0xc0] sm:$0xff] %vm346_vm1, %v4376_v7  ;;  %v4386_v28 = vmax.f32 %v4369_v59, %v1588_v23  ;;  %1707 = vperm.xlu1 %3145, %v4376_v7   ;;  %v1619_v23 = vsub.f32 %v4287_v21, %v4290_v2 }
 0x3df   : > { %v1598_v39 = vpop.xlane.xlu1 %1597 }
 0x3e0   : > { %v1626_v36 = vsub.f32 %v4369_v59, %v4386_v28  ;;  %2173 = vst.msk [vmem:[#allocation2 + $0xc8] sm:$0xff] %vm346_vm1, %v4386_v28  ;;  %v4398_v57 = vmax.f32 %v4379_v52, %v1598_v39  ;;  %1722 = vperm.xlu0 %3144, %v4366_v42   ;;  %v1635_v39 = vmul.f32 1.442695, %v1618_v50 }
 0x3e1   : > { %v1600_v53 = vpop.xlane.xlu0 %1599 }
 0x3e2   : > { %2178 = vst.msk [vmem:[#allocation2 + $0xf0] sm:$0xff] %vm346_vm1, %v4398_v57  ;;  %2013 = vrot.lane.b32.xlu1 %v3409_v43, %s3438_s6  ;;  %v4410_v51 = vmax.f32 %v4389_v45, %v1600_v53  ;;  %v1617_v43 = vsub.f32 %v4292_v29, %v4300_v33  ;;  %3274 = vpow2.f32 %v1635_v39  ;;  %v1622_v39 = vsub.f32 %v4333_v1, %v4348_v15 }
 0x3e3   : > { %v1594_v16 = vpop.xlane.xlu1 %1593 }
 0x3e4   : > { %v4417_v30 = vmax.f32 %v4401_v34, %v1594_v16  ;;  %1712 = vperm.xlu0 %3144, %v4386_v28   ;;  %2179 = vst.msk [vmem:[#allocation2 + $0xf8] sm:$0xff] %vm346_vm1, %v4410_v51  ;;  %v1637_v16 = vmul.f32 1.442695, %v1619_v23  ;;  %v1633_v21 = vmul.f32 1.442695, %v1617_v43  ;;  %v4724_v35 = vsub.f32 %v4389_v45, %v4410_v51  ;;  %v2202_v28 = vld [vmem:[#allocation3 + $0x18] sm:$0xff] }
 0x3e5   : > { %v1596_v53 = vpop.xlane.xlu0 %1595  ;;  %v1643_v12 = vmul.f32 1.442695, %v1622_v39 }
 0x3e6   : > { %2176 = vst.msk [vmem:[#allocation2 + $0xe0] sm:$0xff] %vm346_vm1, %v4417_v30  ;;  %1727 = vperm.xlu1 %3145, %v4417_v30   ;;  %v4432_v2 = vmax.f32 %v4412_v47, %v1596_v53  ;;  %v1620_v53 = vsub.f32 %v4302_v63, %v4315_v55  ;;  %3276 = vpow2.f32 %v1637_v16  ;;  %v1645_v63 = vmul.f32 1.442695, %v1623_v9 }
 0x3e7   : > { %v2024_v50 = vpop.permute.xlu1 %2023  ;;  %3278 = vpow2.f32 %v1633_v21 }
 0x3e8   : > { %2011 = vrot.lane.b32.xlu0 %v3410_v40, %s3438_s6  ;;  %v1630_v29 = vsub.f32 %v4412_v47, %v4432_v2  ;;  %2177 = vst.msk [vmem:[#allocation2 + $0xe8] sm:$0xff] %vm346_vm1, %v4432_v2  ;;  %v1639_v23 = vmul.f32 1.442695, %v1620_v53  ;;  %3280 = vpow2.f32 %v1641_v13  ;;  %v2206_v47 = vld [vmem:[#allocation3 + $0x38] sm:$0xff] }
 0x3e9   : > { %v2026_v33 = vpop.permute.xlu0 %2025 }
 0x3ea   : > { %1737 = vperm.xlu1 %3145, %v4398_v57   ;;  %3068 = vmatprep.subr.bf16.mxu0 %v2026_v33  ;;  %3282 = vpow2.f32 %v1639_v23  ;;  %v1659_v14 = vmul.f32 1.442695, %v1630_v29 }
 0x3eb   : > { %3069 = vmatpush3.bf16.msra.mxu0 %v2026_v33  ;;  %v2022_v40 = vpop.permute.xlu1 %2021  ;;  %3284 = vpow2.f32 %v1645_v63 }
 0x3ec   : > { %1732 = vperm.xlu0 %3144, %v4432_v2   ;;  %3070 = vmatprep.subr.bf16.mxu0 %v2024_v50  ;;  %3286 = vpow2.f32 %v1643_v12 }
 0x3ed   : > { %v2020_v55 = vpop.permute.xlu0 %2019 }
 0x3ee   : > { %1140 = vperm.xlu1 %3145, %v4183_v54  }
 0x3ef   : > { %3071 = vmatpush3.bf16.msra.mxu0 %v2024_v50  ;;  %v4454_v49 = vpop.eup %3274  ;;  %v2018_v1 = vpop.permute.xlu1 %2017 }
 0x3f0   : > { %1742 = vperm.xlu0 %3144, %v4410_v51   ;;  %3072 = vmatprep.subr.bf16.mxu0 %v2022_v40 }
 0x3f1   : > { %v2016_v15 = vpop.permute.xlu0 %2015 }
 0x3f2   : > { %1150 = vperm.xlu1 %3145, %v4176_v10  }
 0x3f3   : > { %3073 = vmatpush3.bf16.msra.mxu0 %v2022_v40  ;;  %v4458_v54 = vpop.eup %3276 }
 0x3f4   : > { %1145 = vperm.xlu0 %3144, %v4186_v22   ;;  %3074 = vmatprep.subr.bf16.mxu0 %v2020_v55  ;;  %v4461_v10 = vpop.eup %3278 }
 0x3f5   : > { %v4464_v22 = vpop.eup %3280 }
 0x3f6   : > { %1914 = vperm.xlu1 %3145, %v4454_v49  }
 0x3f7   : > { %3075 = vmatpush3.bf16.msra.mxu0 %v2020_v55  ;;  %v4467_v41 = vpop.eup %3282 }
 0x3f8   : > { %1155 = vperm.xlu0 %3144, %v4179_v56   ;;  %3076 = vmatprep.subr.bf16.mxu0 %v2018_v1  ;;  %v4470_v56 = vpop.eup %3284 }
 0x3f9   : > { %v4473_v43 = vpop.eup %3286 }
 0x3fa   : > { %1919 = vperm.xlu1 %3145, %v4458_v54  }
 0x3fb   : > { %3077 = vmatpush3.bf16.msra.mxu0 %v2018_v1 }
 0x3fc   : > { %1909 = vperm.xlu0 %3144, %v4461_v10   ;;  %3078 = vmatprep.subr.bf16.mxu0 %v2016_v15 }
 0x3fe   : > { %1929 = vperm.xlu1 %3145, %v4464_v22  }
 0x3ff   : > { %3079 = vmatpush3.bf16.msra.mxu0 %v2016_v15 }
 0x400   : > { %1924 = vperm.xlu0 %3144, %v4467_v41  }
 0x402   : > { %1939 = vperm.xlu1 %3145, %v4470_v56  }
 0x404   : > { %1934 = vperm.xlu0 %3144, %v4473_v43  }
 0x443   : > { %v1678_v21 = vpop.permute.xlu1 %1677 }
 0x444   : > { %v1747_v50 = vsub.f32 %v4227_v5, %v1678_v21 }
 0x446   : > { %v1765_v16 = vmul.f32 1.442695, %v1747_v50 }
 0x447   : > { %v1668_v33 = vpop.permute.xlu1 %1667 }
 0x448   : > { %3288 = vpow2.f32 %v1765_v16  ;;  %v1745_v53 = vsub.f32 %v4230_v20, %v1668_v33 }
 0x44a   : > { %v1761_v9 = vmul.f32 1.442695, %v1745_v53 }
 0x44b   : > { %v1683_v13 = vpop.permute.xlu0 %1682 }
 0x44c   : > { %3290 = vpow2.f32 %v1761_v9  ;;  %v1748_v40 = vsub.f32 %v4235_v24, %v1683_v13 }
 0x44d   : > { %v1698_v23 = vpop.permute.xlu1 %1697 }
 0x44e   : > { %v1767_v39 = vmul.f32 1.442695, %v1748_v40  ;;  %v1751_v63 = vsub.f32 %v4237_v38, %v1698_v23 }
 0x44f   : > { %v1673_v55 = vpop.permute.xlu0 %1672 }
 0x450   : > { %3292 = vpow2.f32 %v1767_v39  ;;  %v1746_v12 = vsub.f32 %v4232_v44, %v1673_v55  ;;  %v1773_v15 = vmul.f32 1.442695, %v1751_v63 }
 0x451   : > { %v1688_v1 = vpop.permute.xlu1 %1687 }
 0x452   : > { %v1763_v5 = vmul.f32 1.442695, %v1746_v12  ;;  %v1749_v21 = vsub.f32 %v4244_v8, %v1688_v1 }
 0x453   : > { %v1703_v50 = vpop.permute.xlu0 %1702 }
 0x454   : > { %3294 = vpow2.f32 %v1763_v5  ;;  %v1752_v20 = vsub.f32 %v4241_v4, %v1703_v50  ;;  %v1769_v53 = vmul.f32 1.442695, %v1749_v21 }
 0x455   : > { %v3289_v16 = vpop.eup %3288  ;;  %v1718_v33 = vpop.permute.xlu1 %1717  ;;  %3296 = vpow2.f32 %v1773_v15 }
 0x456   : > { %v1775_v24 = vmul.f32 1.442695, %v1752_v20  ;;  %1830 = vadd.xlane.f32.xlu0 %v3289_v16  ;;  %v1755_v38 = vsub.f32 %v4249_v61, %v1718_v33 }
 0x457   : > { %v1693_v9 = vpop.permute.xlu0 %1692 }
 0x458   : > { %3298 = vpow2.f32 %v1775_v24  ;;  %v1750_v44 = vsub.f32 %v4247_v58, %v1693_v9  ;;  %v1781_v8 = vmul.f32 1.442695, %v1755_v38 }
 0x459   : > { %v3291_v13 = vpop.eup %3290  ;;  %v1708_v40 = vpop.permute.xlu1 %1707  ;;  %3300 = vpow2.f32 %v1769_v53 }
 0x45a   : > { %v1771_v23 = vmul.f32 1.442695, %v1750_v44  ;;  %1826 = vadd.xlane.f32.xlu1 %v3291_v13  ;;  %v1753_v4 = vsub.f32 %v4256_v48, %v1708_v40  ;;  %v1074_v40 = vld [vmem:[#allocation4 + $0x60] sm:$0xff] }
 0x45b   : > { %v1723_v39 = vpop.permute.xlu0 %1722 }
 0x45c   : > { %3302 = vpow2.f32 %v1771_v23  ;;  %v1756_v63 = vsub.f32 %v4253_v17, %v1723_v39  ;;  %v1777_v61 = vmul.f32 1.442695, %v1753_v4 }
 0x45d   : > { %v3293_v55 = vpop.eup %3292  ;;  %v2014_v12 = vpop.permute.xlu1 %2013  ;;  %3304 = vpow2.f32 %v1781_v8 }
 0x45e   : > { %v1783_v1 = vmul.f32 1.442695, %v1756_v63  ;;  %1832 = vadd.xlane.f32.xlu1 %v3293_v55  ;;  %3080 = vmatprep.subr.bf16.mxu0 %v2014_v12 }
 0x45f   : > { %v1713_v58 = vpop.permute.xlu0 %1712  ;;  %3081 = vmatpush3.bf16.msra.mxu0 %v2014_v12 }
 0x460   : > { %3306 = vpow2.f32 %v1783_v1  ;;  %v1754_v5 = vsub.f32 %v4259_v6, %v1713_v58  ;;  %v2004_v6 = vpack.c.bf16 %v3293_v55, %v3289_v16  ;;  %v1076_v1 = vld [vmem:[#allocation4 + $0x70] sm:$0xff] }
 0x461   : > { %v3295_v15 = vpop.eup %3294  ;;  %v1728_v21 = vpop.permute.xlu1 %1727  ;;  %3308 = vpow2.f32 %v1777_v61 }
 0x462   : > { %v1779_v50 = vmul.f32 1.442695, %v1754_v5  ;;  %1828 = vadd.xlane.f32.xlu0 %v3295_v15  ;;  %v2003_v48 = vpack.c.bf16 %v3295_v15, %v3291_v13  ;;  %v1757_v17 = vsub.f32 %v4266_v60, %v1728_v21  ;;  %v3297_v33 = vpop.eup %3296  ;;  %v1075_v5 = vld [vmem:[#allocation4 + $0x68] sm:$0xff] }
 0x463   : > { %v2012_v20 = vpop.permute.xlu0 %2011 }
 0x464   : > { %3310 = vpow2.f32 %v1779_v50  ;;  %3082 = vmatprep.subr.bf16.mxu0 %v2012_v20  ;;  %3084 = vmatprep.mubr.bf16.mxu0 %v2003_v48  ;;  %v1785_v9 = vmul.f32 1.442695, %v1757_v17 }
 0x465   : > { %v3299_v24 = vpop.eup %3298  ;;  %v1738_v53 = vpop.permute.xlu1 %1737  ;;  %3083 = vmatpush3.bf16.msra.mxu0 %v2012_v20 }
 0x466   : > { %v1759_v38 = vsub.f32 %v4262_v62, %v1738_v53  ;;  %1838 = vadd.xlane.f32.xlu0 %v3297_v33  ;;  %1840 = vadd.xlane.f32.xlu1 %v3299_v24  ;;  %v3301_v13 = vpop.eup %3300  ;;  %v2006_v50 = vpack.c.bf16 %v3299_v24, %v3297_v33 }
 0x467   : > { %v1733_v44 = vpop.permute.xlu0 %1732 }
 0x468   : > { %v1789_v23 = vmul.f32 1.442695, %v1759_v38  ;;  %v1758_v60 = vsub.f32 %v4271_v27, %v1733_v44  ;;  %3085 = vmatmul.mubr.bf16.vlgmr.msra.gmra.mxu0 %v2004_v6  ;;  %v1077_v38 = vld [vmem:[#allocation4 + $0x78] sm:$0xff] }
 0x469   : > { %v3303_v8 = vpop.eup %3302  ;;  %v1141_v4 = vpop.permute.xlu1 %1140 }
 0x46a   : > { %3312 = vpow2.f32 %v1789_v23  ;;  %v1787_v39 = vmul.f32 1.442695, %v1758_v60  ;;  %v1170_v63 = vmul.f32 %v1141_v4, %v1074_v40  ;;  %1834 = vadd.xlane.f32.xlu0 %v3301_v13  ;;  %1836 = vadd.xlane.f32.xlu1 %v3303_v8  ;;  %v2005_v12 = vpack.c.bf16 %v3303_v8, %v3301_v13  ;;  %v3305_v16 = vpop.eup %3304 }
 0x46b   : > { %3314 = vpow2.f32 %v1785_v9  ;;  %v1743_v62 = vpop.permute.xlu0 %1742  ;;  %v1647_v23 = vmul.f32 1.442695, %v1624_v3  ;;  %v4723_v8 = vsub.f32 %v4351_v46, %v4366_v42  ;;  %v1663_v3 = vmul.f32 1.442695, %v4724_v35  ;;  %v2200_v46 = vld [vmem:[#allocation3 + $0x8] sm:$0xff]  ;;  %v1801_v35 = vld [vmem:[#allocation3 + $0xb8] sm:$0xff] }
 0x46c   : > { %3316 = vpow2.f32 %v1787_v39  ;;  %v1339_v55 = vadd.f32 %v4220_v26, %v1170_v63  ;;  %v1760_v61 = vsub.f32 %v4268_v25, %v1743_v62  ;;  %3088 = vmatprep.mubr.bf16.mxu0 %v2005_v12  ;;  %v1649_v25 = vmul.f32 1.442695, %v1625_v18 }
 0x46d   : > { %v3307_v27 = vpop.eup %3306  ;;  %v1151_v58 = vpop.permute.xlu1 %1150  ;;  %v1655_v4 = vmul.f32 1.442695, %v4723_v8  ;;  %v4725_v63 = vsub.f32 %v4343_v11, %v4356_v0  ;;  %v2201_v0 = vld [vmem:[#allocation3 + $0x10] sm:$0xff] }
 0x46e   : > { %1355 = vst.msk [vmem:[#allocation4 + $0x60] sm:$0xff] %vm411_vm0, %v1339_v55  ;;  %v1791_v15 = vmul.f32 1.442695, %v1760_v61  ;;  %v1172_v21 = vmul.f32 %v1151_v58, %v1076_v1  ;;  %1846 = vadd.xlane.f32.xlu0 %v3305_v16  ;;  %1848 = vadd.xlane.f32.xlu1 %v3307_v27  ;;  %v3309_v17 = vpop.eup %3308  ;;  %v2008_v44 = vpack.c.bf16 %v3307_v27, %v3305_v16  ;;  %v2199_v58 = vld [vmem:[#allocation3] sm:$0xff] }
 0x46f   : > { %v1146_v48 = vpop.permute.xlu0 %1145  ;;  %v1653_v12 = vmul.f32 1.442695, %v4725_v63  ;;  %v4726_v1 = vsub.f32 %v4401_v34, %v4417_v30  ;;  %v4727_v61 = vsub.f32 %v4379_v52, %v4398_v57  ;;  %v2203_v30 = vld [vmem:[#allocation3 + $0x20] sm:$0xff]  ;;  %v2205_v52 = vld [vmem:[#allocation3 + $0x30] sm:$0xff] }
 0x470   : > { %3318 = vpow2.f32 %v1791_v15  ;;  %v1341_v20 = vadd.f32 %v4218_v37, %v1172_v21  ;;  %v1171_v53 = vmul.f32 %v1146_v48, %v1075_v5  ;;  %3089 = vmatmul.mubr.bf16.gmra.mxu0 %v2006_v50  ;;  %v2207_v15 = vld [vmem:[#allocation3 + $0x40] sm:$0xff] }
 0x471   : > { %v3311_v26 = vpop.eup %3310  ;;  %3320 = vpow2.f32 %v1649_v25  ;;  %v1657_v16 = vmul.f32 1.442695, %v4726_v1  ;;  %v1661_v27 = vmul.f32 1.442695, %v4727_v61  ;;  %v4554_v50 = vpop.permute.xlu1 %1914 }
 0x472   : > { %1357 = vst.msk [vmem:[#allocation4 + $0x70] sm:$0xff] %vm411_vm0, %v1341_v20  ;;  %v1340_v6 = vadd.f32 %v4224_v32, %v1171_v53  ;;  %1842 = vadd.xlane.f32.xlu0 %v3309_v17  ;;  %1844 = vadd.xlane.f32.xlu1 %v3311_v26  ;;  %v2007_v33 = vpack.c.bf16 %v3311_v26, %v3309_v17  ;;  %3322 = vpow2.f32 %v1647_v23 }
 0x473   : > { %v1156_v24 = vpop.permute.xlu0 %1155 }
 0x474   : > { %1356 = vst.msk [vmem:[#allocation4 + $0x68] sm:$0xff] %vm411_vm0, %v1340_v6  ;;  %v1173_v9 = vmul.f32 %v1156_v24, %v1077_v38  ;;  %3092 = vmatprep.mubr.bf16.mxu0 %v2007_v33  ;;  %v1796_v33 = vld [vmem:[#allocation3 + $0x90] sm:$0xff] }
 0x475   : > { %v4558_v53 = vpop.permute.xlu1 %1919  ;;  %v1812_v24 = vmul.f32 %v4458_v54, %v1796_v33 }
 0x476   : > { %v1342_v37 = vadd.f32 %v4222_v31, %v1173_v9  ;;  %v1651_v31 = vmul.f32 1.442695, %v1626_v36  ;;  %v2204_v36 = vld [vmem:[#allocation3 + $0x28] sm:$0xff] }
 0x477   : > { %v3313_v40 = vpop.eup %3312  ;;  %v4556_v17 = vpop.permute.xlu0 %1909 }
 0x478   : > { %v3315_v19 = vpop.eup %3314  ;;  %1358 = vst.msk [vmem:[#allocation4 + $0x78] sm:$0xff] %vm411_vm0, %v1342_v37  ;;  %1854 = vadd.xlane.f32.xlu0 %v3313_v40  ;;  %3093 = vmatmul.mubr.bf16.gmra.mxu0 %v2008_v44  ;;  %3324 = vpow2.f32 %v1651_v31  ;;  %v1794_v44 = vld [vmem:[#allocation3 + $0x80] sm:$0xff]  ;;  %v1795_v31 = vld [vmem:[#allocation3 + $0x88] sm:$0xff] }
 0x479   : > { %v3317_v7 = vpop.eup %3316  ;;  %3326 = vpow2.f32 %v1655_v4  ;;  %v4562_v38 = vpop.permute.xlu1 %1929  ;;  %v1811_v4 = vmul.f32 %v4454_v49, %v1795_v31  ;;  %v1806_v31 = vld [vmem:[#allocation3 + $0xe0] sm:$0xff] }
 0x47a   : > { %v2009_v32 = vpack.c.bf16 %v3317_v7, %v3315_v19  ;;  %3328 = vpow2.f32 %v1659_v14 }
 0x47b   : > { %3330 = vpow2.f32 %v1663_v3  ;;  %v4560_v26 = vpop.permute.xlu0 %1924  ;;  %v1800_v3 = vld [vmem:[#allocation3 + $0xb0] sm:$0xff] }
 0x47c   : > { %1850 = vadd.xlane.f32.xlu0 %v3315_v19  ;;  %3096 = vmatprep.mubr.bf16.mxu0 %v2009_v32  ;;  %3332 = vrcp.f32 %v2200_v46  ;;  %v1810_v19 = vmul.f32 %v4461_v10, %v1794_v44  ;;  %v1797_v32 = vld [vmem:[#allocation3 + $0x98] sm:$0xff] }
 0x47d   : > { %v3319_v18 = vpop.eup %3318  ;;  %3334 = vrcp.f32 %v2202_v28  ;;  %v4567_v9 = vpop.permute.xlu1 %1939 }
 0x47e   : > { %v2010_v13 = vpack.c.bf16 %v3319_v18, %v3313_v40  ;;  %v4506_v60 = vpop.eup %3320  ;;  %3336 = vrcp.f32 %v2204_v36 }
 0x47f   : > { %v4521_v39 = vpop.eup %3322  ;;  %3338 = vrcp.f32 %v2206_v47  ;;  %v4564_v6 = vpop.permute.xlu0 %1934 }
 0x480   : > { %3097 = vmatmul.mubr.bf16.gmra.mxu0 %v2010_v13  ;;  %3340 = vpow2.f32 %v1653_v12  ;;  %v1813_v13 = vmul.f32 %v4467_v41, %v1797_v32  ;;  %v1817_v28 = vmul.f32 %v4521_v39, %v1801_v35  ;;  %v1816_v41 = vmul.f32 %v4470_v56, %v1800_v3  ;;  %v1804_v56 = vld [vmem:[#allocation3 + $0xd0] sm:$0xff] }
 0x481   : > { %3342 = vpow2.f32 %v1657_v16  ;;  %v1808_v32 = vld [vmem:[#allocation3 + $0xf0] sm:$0xff] }
 0x482   : > { %3344 = vpow2.f32 %v1661_v27 }
 0x483   : > { %1949 = vperm.xlu1 %3145, %v4506_v60   ;;  %3346 = vrcp.f32 %v2199_v58 }
 0x484   : > { %3348 = vrcp.f32 %v2201_v0 }
 0x485   : > { %v4524_v59 = vpop.eup %3324  ;;  %3350 = vrcp.f32 %v2203_v30 }
 0x486   : > { %v4527_v42 = vpop.eup %3326  ;;  %3352 = vrcp.f32 %v2205_v52 }
 0x487   : > { %v4530_v45 = vpop.eup %3328  ;;  %3354 = vrcp.f32 %v2207_v15  ;;  %v1802_v15 = vld [vmem:[#allocation3 + $0xc0] sm:$0xff] }
 0x488   : > { %v4533_v51 = vpop.eup %3330 }
 0x489   : > { %v3333_v2 = vpop.eup %3332 }
 0x48a   : > { %v3335_v29 = vpop.eup %3334 }
 0x48b   : > { %v3337_v62 = vpop.eup %3336 }
 0x48c   : > { %v3339_v55 = vpop.eup %3338 }
 0x48d   : > { %v4545_v11 = vpop.eup %3340 }
 0x48e   : > { %v4548_v5 = vpop.eup %3342  ;;  %v1820_v30 = vmul.f32 %v4545_v11, %v1804_v56 }
 0x48f   : > { %v4551_v34 = vpop.eup %3344 }
 0x490   : > { %v3347_v57 = vpop.eup %3346 }
 0x491   : > { %v3349_v21 = vpop.eup %3348 }
 0x492   : > { %1944 = vperm.xlu0 %3144, %v4521_v39   ;;  %v3351_v48 = vpop.eup %3350 }
 0x493   : > { %v3353_v20 = vpop.eup %3352 }
 0x494   : > { %v3355_v25 = vpop.eup %3354 }
 0x496   : > { %1954 = vperm.xlu0 %3144, %v4524_v59  }
 0x49a   : > { %1964 = vperm.xlu0 %3144, %v4527_v42  }
 0x49e   : > { %1974 = vperm.xlu0 %3144, %v4530_v45  }
 0x4a2   : > { %1984 = vperm.xlu0 %3144, %v4533_v51  }
 0x4a6   : > { %2238 = vperm.xlu0 %3144, %v3333_v2   ;;  %v1799_v2 = vld [vmem:[#allocation3 + $0xa8] sm:$0xff] }
 0x4a7   : > { %1856 = vadd.xlane.f32.xlu1 %v3319_v18  ;;  %v1815_v49 = vmul.f32 %v4473_v43, %v1799_v2 }
 0x4aa   : > { %2248 = vperm.xlu0 %3144, %v3335_v29   ;;  %v1798_v29 = vld [vmem:[#allocation3 + $0xa0] sm:$0xff] }
 0x4ab   : > { %1852 = vadd.xlane.f32.xlu1 %v3317_v7  ;;  %v1814_v1 = vmul.f32 %v4464_v22, %v1798_v29  ;;  %v1803_v22 = vld [vmem:[#allocation3 + $0xc8] sm:$0xff] }
 0x4ac   : > { %v1819_v33 = vmul.f32 %v4524_v59, %v1803_v22  ;;  %v1892_v22 = vld [vmem:[#allocation4 + $0x88] sm:$0xff] }
 0x4ae   : > { %2258 = vperm.xlu0 %3144, %v3337_v62  }
 0x4b2   : > { %2268 = vperm.xlu0 %3144, %v3339_v55   ;;  %v1805_v55 = vld [vmem:[#allocation3 + $0xd8] sm:$0xff] }
 0x4b3   : > { %v1821_v0 = vmul.f32 %v4527_v42, %v1805_v55  ;;  %v1818_v42 = vmul.f32 %v4506_v60, %v1802_v15  ;;  %v1824_v60 = vmul.f32 %v4551_v34, %v1808_v32  ;;  %v1893_v55 = vld [vmem:[#allocation4 + $0x90] sm:$0xff] }
 0x4bc   : > { %1959 = vperm.xlu1 %3145, %v4545_v11  }
 0x4c0   : > { %1969 = vperm.xlu1 %3145, %v4548_v5  }
 0x4c4   : > { %1979 = vperm.xlu1 %3145, %v4551_v34  }
 0x4c8   : > { %2233 = vperm.xlu1 %3145, %v3347_v57  }
 0x4cc   : > { %2243 = vperm.xlu1 %3145, %v3349_v21  }
 0x4d0   : > { %2253 = vperm.xlu1 %3145, %v3351_v48  }
 0x4d4   : > { %2263 = vperm.xlu1 %3145, %v3353_v20  }
 0x4d8   : > { %2273 = vperm.xlu1 %3145, %v3355_v25  }
 0x4df   : > { %v1831_v37 = vpop.xlane.xlu0 %1830 }
 0x4e0   : > { %v1860_v40 = vadd.f32 %v1831_v37, %v1812_v24 }
 0x4e2   : > { %1876 = vst.msk [vmem:[#allocation3 + $0x90] sm:$0xff] %vm346_vm1, %v1860_v40 }
 0x4e3   : > { %v1827_v7 = vpop.xlane.xlu1 %1826 }
 0x4e4   : > { %v1858_v18 = vadd.f32 %v1827_v7, %v1810_v19 }
 0x4e6   : > { %1874 = vst.msk [vmem:[#allocation3 + $0x80] sm:$0xff] %vm346_vm1, %v1858_v18 }
 0x4e7   : > { %v1833_v23 = vpop.xlane.xlu1 %1832 }
 0x4e8   : > { %v1861_v8 = vadd.f32 %v1833_v23, %v1813_v13 }
 0x4e9   : > { %v2345_v54 = vld [vmem:[#allocation3 + $0x90] sm:$0xff] }
 0x4ea   : > { %3356 = vrcp.f32 %v2345_v54  ;;  %1877 = vst.msk [vmem:[#allocation3 + $0x98] sm:$0xff] %vm346_vm1, %v1861_v8 }
 0x4eb   : > { %v1829_v14 = vpop.xlane.xlu0 %1828 }
 0x4ec   : > { %v1859_v10 = vadd.f32 %v1829_v14, %v1811_v4  ;;  %v1822_v4 = vmul.f32 %v4548_v5, %v1806_v31  ;;  %v1896_v31 = vld [vmem:[#allocation4 + $0xa8] sm:$0xff] }
 0x4ed   : > { %v2343_v46 = vld [vmem:[#allocation3 + $0x80] sm:$0xff] }
 0x4ee   : > { %3358 = vrcp.f32 %v2343_v46  ;;  %1875 = vst.msk [vmem:[#allocation3 + $0x88] sm:$0xff] %vm346_vm1, %v1859_v10 }
 0x4ef   : > { %v1841_v36 = vpop.xlane.xlu1 %1840  ;;  %v1839_v47 = vpop.xlane.xlu0 %1838 }
 0x4f0   : > { %v1865_v63 = vadd.f32 %v1841_v36, %v1817_v28  ;;  %v1864_v12 = vadd.f32 %v1839_v47, %v1816_v41 }
 0x4f1   : > { %v2346_v62 = vld [vmem:[#allocation3 + $0x98] sm:$0xff] }
 0x4f2   : > { %3360 = vrcp.f32 %v2346_v62  ;;  %1881 = vst.msk [vmem:[#allocation3 + $0xb8] sm:$0xff] %vm346_vm1, %v1865_v63  ;;  %1880 = vst.msk [vmem:[#allocation3 + $0xb0] sm:$0xff] %vm346_vm1, %v1864_v12  ;;  %v2208_v12 = vld [vmem:[#allocation3 + $0x48] sm:$0xff]  ;;  %v2210_v62 = vld [vmem:[#allocation3 + $0x58] sm:$0xff] }
 0x4f3   : > { %v1837_v16 = vpop.xlane.xlu1 %1836  ;;  %v1835_v39 = vpop.xlane.xlu0 %1834 }
 0x4f4   : > { %v1863_v61 = vadd.f32 %v1837_v16, %v1815_v49  ;;  %v1862_v27 = vadd.f32 %v1835_v39, %v1814_v1  ;;  %v2212_v1 = vld [vmem:[#allocation3 + $0x68] sm:$0xff]  ;;  %v2214_v39 = vld [vmem:[#allocation3 + $0x78] sm:$0xff] }
 0x4f5   : > { %v2344_v58 = vld [vmem:[#allocation3 + $0x88] sm:$0xff] }
 0x4f6   : > { %3362 = vrcp.f32 %v2344_v58  ;;  %1879 = vst.msk [vmem:[#allocation3 + $0xa8] sm:$0xff] %vm346_vm1, %v1863_v61  ;;  %1878 = vst.msk [vmem:[#allocation3 + $0xa0] sm:$0xff] %vm346_vm1, %v1862_v27  ;;  %v1891_v61 = vld [vmem:[#allocation4 + $0x80] sm:$0xff]  ;;  %v1989_v27 = vmul.f32 %v4558_v53, %v1893_v55 }
 0x4f7   : > { %v3357_v52 = vpop.eup %3356  ;;  %v1849_v43 = vpop.xlane.xlu1 %1848 }
 0x4f8   : > { %v1847_v57 = vpop.xlane.xlu0 %1846  ;;  %v1869_v21 = vadd.f32 %v1849_v43, %v1821_v0  ;;  %2387 = vperm.xlu0 %3144, %v3357_v52   ;;  %v1894_v0 = vld [vmem:[#allocation4 + $0x98] sm:$0xff]  ;;  %v1987_v43 = vmul.f32 %v4556_v17, %v1891_v61  ;;  %v1903_v61 = vld [vmem:[#allocation4 + $0xe0] sm:$0xff] }
 0x4f9   : > { %v1868_v48 = vadd.f32 %v1847_v57, %v1820_v30  ;;  %v2350_v20 = vld [vmem:[#allocation3 + $0xb8] sm:$0xff]  ;;  %v2349_v25 = vld [vmem:[#allocation3 + $0xb0] sm:$0xff] }
 0x4fa   : > { %3364 = vrcp.f32 %v2350_v20  ;;  %1885 = vst.msk [vmem:[#allocation3 + $0xd8] sm:$0xff] %vm346_vm1, %v1869_v21  ;;  %v1990_v21 = vmul.f32 %v4560_v26, %v1894_v0  ;;  %v1897_v20 = vld [vmem:[#allocation4 + $0xb0] sm:$0xff] }
 0x4fb   : > { %1884 = vst.msk [vmem:[#allocation3 + $0xd0] sm:$0xff] %vm346_vm1, %v1868_v48  ;;  %v3359_v11 = vpop.eup %3358  ;;  %3366 = vrcp.f32 %v2349_v25  ;;  %v1845_v24 = vpop.xlane.xlu1 %1844 }
 0x4fc   : > { %v1843_v37 = vpop.xlane.xlu0 %1842  ;;  %v1867_v44 = vadd.f32 %v1845_v24, %v1819_v33  ;;  %2377 = vperm.xlu0 %3144, %v3359_v11   ;;  %v1988_v11 = vmul.f32 %v4554_v50, %v1892_v22 }
 0x4fd   : > { %v1866_v40 = vadd.f32 %v1843_v37, %v1818_v42  ;;  %v2348_v19 = vld [vmem:[#allocation3 + $0xa8] sm:$0xff]  ;;  %v2347_v7 = vld [vmem:[#allocation3 + $0xa0] sm:$0xff]  ;;  %v1809_v42 = vld [vmem:[#allocation3 + $0xf8] sm:$0xff] }
 0x4fe   : > { %3368 = vrcp.f32 %v2348_v19  ;;  %1883 = vst.msk [vmem:[#allocation3 + $0xc8] sm:$0xff] %vm346_vm1, %v1867_v44  ;;  %v1895_v37 = vld [vmem:[#allocation4 + $0xa0] sm:$0xff]  ;;  %v1825_v19 = vmul.f32 %v4533_v51, %v1809_v42 }
 0x4ff   : > { %1882 = vst.msk [vmem:[#allocation3 + $0xc0] sm:$0xff] %vm346_vm1, %v1866_v40  ;;  %v3361_v18 = vpop.eup %3360  ;;  %3370 = vrcp.f32 %v2347_v7  ;;  %v1950_v25 = vpop.permute.xlu1 %1949  ;;  %v1993_v40 = vmul.f32 %v4567_v9, %v1897_v20  ;;  %v1898_v7 = vld [vmem:[#allocation4 + $0xb8] sm:$0xff]  ;;  %v1991_v50 = vmul.f32 %v4562_v38, %v1895_v37  ;;  %v1992_v38 = vmul.f32 %v4564_v6, %v1896_v31 }
 0x500   : > { %2392 = vperm.xlu1 %3145, %v3361_v18  }
 0x501   : > { %v2354_v59 = vld [vmem:[#allocation3 + $0xd8] sm:$0xff]  ;;  %v1855_v23 = vpop.xlane.xlu0 %1854 }
 0x502   : > { %v2353_v13 = vld [vmem:[#allocation3 + $0xd0] sm:$0xff]  ;;  %3372 = vrcp.f32 %v2354_v59  ;;  %v1872_v8 = vadd.f32 %v1855_v23, %v1824_v60  ;;  %v1807_v60 = vld [vmem:[#allocation3 + $0xe8] sm:$0xff] }
 0x503   : > { %v3363_v54 = vpop.eup %3362  ;;  %3374 = vrcp.f32 %v2353_v13 }
 0x504   : > { %1888 = vst.msk [vmem:[#allocation3 + $0xf0] sm:$0xff] %vm346_vm1, %v1872_v8  ;;  %2382 = vperm.xlu1 %3145, %v3363_v54  }
 0x505   : > { %v2352_v14 = vld [vmem:[#allocation3 + $0xc8] sm:$0xff]  ;;  %v1851_v3 = vpop.xlane.xlu0 %1850 }
 0x506   : > { %v2351_v35 = vld [vmem:[#allocation3 + $0xc0] sm:$0xff]  ;;  %3376 = vrcp.f32 %v2352_v14  ;;  %v1870_v10 = vadd.f32 %v1851_v3, %v1822_v4  ;;  %v1823_v4 = vmul.f32 %v4530_v45, %v1807_v60 }
 0x507   : > { %v3365_v46 = vpop.eup %3364  ;;  %3378 = vrcp.f32 %v2351_v35 }
 0x508   : > { %v3367_v34 = vpop.eup %3366  ;;  %1886 = vst.msk [vmem:[#allocation3 + $0xe0] sm:$0xff] %vm346_vm1, %v1870_v10  ;;  %2412 = vperm.xlu1 %3145, %v3365_v46   ;;  %v1899_v46 = vld [vmem:[#allocation4 + $0xc0] sm:$0xff] }
 0x509   : > { %2407 = vperm.xlu0 %3144, %v3367_v34   ;;  %v1995_v45 = vmul.f32 %v1950_v25, %v1899_v46 }
 0x50b   : > { %v3369_v28 = vpop.eup %3368  ;;  %v2357_v5 = vld [vmem:[#allocation3 + $0xf0] sm:$0xff] }
 0x50c   : > { %v3371_v41 = vpop.eup %3370  ;;  %2402 = vperm.xlu1 %3145, %v3369_v28   ;;  %v1901_v28 = vld [vmem:[#allocation4 + $0xd0] sm:$0xff] }
 0x50d   : > { %2397 = vperm.xlu0 %3144, %v3371_v41   ;;  %v1945_v58 = vpop.permute.xlu0 %1944 }
 0x50e   : > { %v1994_v9 = vmul.f32 %v1945_v58, %v1898_v7  ;;  %v1905_v58 = vld [vmem:[#allocation4 + $0xf0] sm:$0xff] }
 0x50f   : > { %v3373_v36 = vpop.eup %3372  ;;  %v2355_v47 = vld [vmem:[#allocation3 + $0xe0] sm:$0xff] }
 0x510   : > { %v3375_v2 = vpop.eup %3374  ;;  %3380 = vrcp.f32 %v2355_v47  ;;  %2432 = vperm.xlu1 %3145, %v3373_v36   ;;  %v1902_v36 = vld [vmem:[#allocation4 + $0xd8] sm:$0xff] }
 0x511   : > { %2427 = vperm.xlu0 %3144, %v3375_v2   ;;  %3382 = vrcp.f32 %v2357_v5  ;;  %v1955_v24 = vpop.permute.xlu0 %1954 }
 0x512   : > { %3384 = vrcp.f32 %v2208_v12 }
 0x513   : > { %v3377_v29 = vpop.eup %3376  ;;  %3386 = vrcp.f32 %v2210_v62 }
 0x514   : > { %v3379_v63 = vpop.eup %3378  ;;  %2422 = vperm.xlu1 %3145, %v3377_v29   ;;  %3388 = vrcp.f32 %v2212_v1  ;;  %v1900_v29 = vld [vmem:[#allocation4 + $0xc8] sm:$0xff] }
 0x515   : > { %2417 = vperm.xlu0 %3144, %v3379_v63   ;;  %3390 = vrcp.f32 %v2214_v39  ;;  %v1965_v54 = vpop.permute.xlu0 %1964  ;;  %v1996_v39 = vmul.f32 %v1955_v24, %v1900_v29 }
 0x516   : > { %v1998_v12 = vmul.f32 %v1965_v54, %v1902_v36 }
 0x519   : > { %v1975_v5 = vpop.permute.xlu0 %1974 }
 0x51d   : > { %v3381_v49 = vpop.eup %3380  ;;  %v1985_v0 = vpop.permute.xlu0 %1984 }
 0x51e   : > { %2437 = vperm.xlu0 %3144, %v3381_v49   ;;  %v3383_v16 = vpop.eup %3382 }
 0x51f   : > { %v3385_v56 = vpop.eup %3384 }
 0x520   : > { %v3387_v52 = vpop.eup %3386 }
 0x521   : > { %v3389_v53 = vpop.eup %3388 }
 0x522   : > { %2447 = vperm.xlu0 %3144, %v3383_v16   ;;  %v3391_v59 = vpop.eup %3390 }
 0x526   : > { %2278 = vperm.xlu0 %3144, %v3385_v56  }
 0x528   : > { %v3086_v30 = vpop.f32.mrf.mxu0 }
 0x529   : > { %v2134_v57 = vadd.f32 %v3086_v30, %v1989_v27 }
 0x52a   : > { %v2069_v15 = vpop.f32.mrf.mxu0  ;;  %2288 = vperm.xlu0 %3144, %v3387_v52   ;;  %v1906_v52 = vld [vmem:[#allocation4 + $0xf8] sm:$0xff] }
 0x52b   : > { %2150 = vst.msk [vmem:[#allocation4 + $0x90] sm:$0xff] %vm411_vm0, %v2134_v57  ;;  %v2132_v48 = vadd.f32 %v2069_v15, %v1987_v43  ;;  %v2002_v25 = vmul.f32 %v1985_v0, %v1906_v52 }
 0x52c   : > { %v3087_v33 = vpop.f32.mrf.mxu0 }
 0x52d   : > { %2148 = vst.msk [vmem:[#allocation4 + $0x80] sm:$0xff] %vm411_vm0, %v2132_v48  ;;  %v2135_v17 = vadd.f32 %v3087_v33, %v1990_v21  ;;  %v1904_v48 = vld [vmem:[#allocation4 + $0xe8] sm:$0xff] }
 0x52e   : > { %v2072_v44 = vpop.f32.mrf.mxu0  ;;  %2298 = vperm.xlu0 %3144, %v3389_v53   ;;  %v2209_v53 = vld [vmem:[#allocation3 + $0x50] sm:$0xff]  ;;  %v2000_v24 = vmul.f32 %v1975_v5, %v1904_v48 }
 0x52f   : > { %2151 = vst.msk [vmem:[#allocation4 + $0x98] sm:$0xff] %vm411_vm0, %v2135_v17  ;;  %v2133_v26 = vadd.f32 %v2072_v44, %v1988_v11 }
 0x530   : > { %v3090_v32 = vpop.f32.mrf.mxu0  ;;  %v1857_v18 = vpop.xlane.xlu1 %1856 }
 0x531   : > { %2149 = vst.msk [vmem:[#allocation4 + $0x88] sm:$0xff] %vm411_vm0, %v2133_v26  ;;  %v2138_v13 = vadd.f32 %v3090_v32, %v1993_v40  ;;  %v1873_v23 = vadd.f32 %v1857_v18, %v1825_v19  ;;  %v2211_v40 = vld [vmem:[#allocation3 + $0x60] sm:$0xff]  ;;  %v2213_v19 = vld [vmem:[#allocation3 + $0x70] sm:$0xff] }
 0x532   : > { %v2085_v8 = vpop.f32.mrf.mxu0  ;;  %2308 = vperm.xlu0 %3144, %v3391_v59  }
 0x533   : > { %2154 = vst.msk [vmem:[#allocation4 + $0xb0] sm:$0xff] %vm411_vm0, %v2138_v13  ;;  %v2136_v51 = vadd.f32 %v2085_v8, %v1991_v50  ;;  %v4625_v50 = vpop.permute.xlu0 %2238 }
 0x534   : > { %1889 = vst.msk [vmem:[#allocation3 + $0xf8] sm:$0xff] %vm346_vm1, %v1873_v23  ;;  %v3091_v14 = vpop.f32.mrf.mxu0  ;;  %v1853_v35 = vpop.xlane.xlu1 %1852 }
 0x535   : > { %2152 = vst.msk [vmem:[#allocation4 + $0xa0] sm:$0xff] %vm411_vm0, %v2136_v51  ;;  %v2139_v3 = vadd.f32 %v3091_v14, %v1994_v9  ;;  %v1871_v10 = vadd.f32 %v1853_v35, %v1823_v4  ;;  %v2329_v14 = vld [vmem:[#allocation4 + $0x90] sm:$0xff] }
 0x536   : > { %v2088_v34 = vpop.f32.mrf.mxu0 }
 0x537   : > { %2155 = vst.msk [vmem:[#allocation4 + $0xb8] sm:$0xff] %vm411_vm0, %v2139_v3  ;;  %v2137_v41 = vadd.f32 %v2088_v34, %v1992_v38  ;;  %v4629_v23 = vpop.permute.xlu0 %2248  ;;  %v2330_v38 = vld [vmem:[#allocation4 + $0x98] sm:$0xff] }
 0x538   : > { %1887 = vst.msk [vmem:[#allocation3 + $0xe8] sm:$0xff] %vm346_vm1, %v1871_v10  ;;  %v3094_v47 = vpop.f32.mrf.mxu0  ;;  %v1960_v2 = vpop.permute.xlu1 %1959 }
 0x539   : > { %2153 = vst.msk [vmem:[#allocation4 + $0xa8] sm:$0xff] %vm411_vm0, %v2137_v41  ;;  %v1997_v6 = vmul.f32 %v1960_v2, %v1901_v28  ;;  %v2327_v28 = vld [vmem:[#allocation4 + $0x80] sm:$0xff]  ;;  %v2328_v41 = vld [vmem:[#allocation4 + $0x88] sm:$0xff] }
 0x53a   : > { %v2101_v63 = vpop.f32.mrf.mxu0 }
 0x53b   : > { %v2142_v62 = vadd.f32 %v3094_v47, %v1997_v6  ;;  %v2140_v49 = vadd.f32 %v2101_v63, %v1995_v45  ;;  %v2358_v43 = vld [vmem:[#allocation3 + $0xf8] sm:$0xff]  ;;  %v4633_v8 = vpop.permute.xlu0 %2258  ;;  %v2333_v63 = vld [vmem:[#allocation4 + $0xb0] sm:$0xff] }
 0x53c   : > { %v3095_v1 = vpop.f32.mrf.mxu0  ;;  %v1970_v16 = vpop.permute.xlu1 %1969 }
 0x53d   : > { %2158 = vst.msk [vmem:[#allocation4 + $0xd0] sm:$0xff] %vm411_vm0, %v2142_v62  ;;  %2156 = vst.msk [vmem:[#allocation4 + $0xc0] sm:$0xff] %vm411_vm0, %v2140_v49  ;;  %v2143_v55 = vadd.f32 %v3095_v1, %v1998_v12  ;;  %v1999_v15 = vmul.f32 %v1970_v16, %v1903_v61 }
 0x53e   : > { %v2104_v27 = vpop.f32.mrf.mxu0  ;;  %v2334_v6 = vld [vmem:[#allocation4 + $0xb8] sm:$0xff] }
 0x53f   : > { %v2356_v56 = vld [vmem:[#allocation3 + $0xe8] sm:$0xff]  ;;  %2159 = vst.msk [vmem:[#allocation4 + $0xd8] sm:$0xff] %vm411_vm0, %v2143_v55  ;;  %v2141_v30 = vadd.f32 %v2104_v27, %v1996_v39  ;;  %v4637_v54 = vpop.permute.xlu0 %2268  ;;  %v2331_v55 = vld [vmem:[#allocation4 + $0xa0] sm:$0xff] }
 0x540   : > { %3392 = vrcp.f32 %v2356_v56  ;;  %v1980_v57 = vpop.permute.xlu1 %1979  ;;  %v3098_v22 = vpop.f32.mrf.mxu0  ;;  %v2332_v1 = vld [vmem:[#allocation4 + $0xa8] sm:$0xff] }
 0x541   : > { %2157 = vst.msk [vmem:[#allocation4 + $0xc8] sm:$0xff] %vm411_vm0, %v2141_v30  ;;  %v2001_v21 = vmul.f32 %v1980_v57, %v1905_v58  ;;  %3394 = vrcp.f32 %v2358_v43 }
 0x542   : > { %v2117_v20 = vpop.f32.mrf.mxu0  ;;  %3396 = vrcp.f32 %v2209_v53 }
 0x543   : > { %v2146_v33 = vadd.f32 %v3098_v22, %v2001_v21  ;;  %v2144_v42 = vadd.f32 %v2117_v20, %v1999_v15  ;;  %3398 = vrcp.f32 %v2211_v40 }
 0x544   : > { %v3099_v11 = vpop.f32.mrf.mxu0  ;;  %3400 = vrcp.f32 %v2213_v19  ;;  %v4623_v59 = vpop.permute.xlu1 %2233  ;;  %v2337_v52 = vld [vmem:[#allocation4 + $0xd0] sm:$0xff]  ;;  %v2335_v20 = vld [vmem:[#allocation4 + $0xc0] sm:$0xff] }
 0x545   : > { %2162 = vst.msk [vmem:[#allocation4 + $0xf0] sm:$0xff] %vm411_vm0, %v2146_v33  ;;  %2160 = vst.msk [vmem:[#allocation4 + $0xe0] sm:$0xff] %vm411_vm0, %v2144_v42  ;;  %v2147_v17 = vadd.f32 %v3099_v11, %v2002_v25 }
 0x546   : > { %v2120_v37 = vpop.f32.mrf.mxu0  ;;  %v2338_v0 = vld [vmem:[#allocation4 + $0xd8] sm:$0xff] }
 0x547   : > { %2163 = vst.msk [vmem:[#allocation4 + $0xf8] sm:$0xff] %vm411_vm0, %v2147_v17  ;;  %v2145_v44 = vadd.f32 %v2120_v37, %v2000_v24 }
 0x548   : > { %v4627_v13 = vpop.permute.xlu1 %2243  ;;  %v2336_v21 = vld [vmem:[#allocation4 + $0xc8] sm:$0xff] }
 0x549   : > { %2161 = vst.msk [vmem:[#allocation4 + $0xe8] sm:$0xff] %vm411_vm0, %v2145_v44 }
 0x54c   : > { %v4631_v31 = vpop.permute.xlu1 %2253  ;;  %v2339_v11 = vld [vmem:[#allocation4 + $0xe0] sm:$0xff]  ;;  %v2341_v19 = vld [vmem:[#allocation4 + $0xf0] sm:$0xff] }
 0x54d   : > { %v3393_v26 = vpop.eup %3392 }
 0x54e   : > { %2442 = vperm.xlu1 %3145, %v3393_v26   ;;  %v3395_v7 = vpop.eup %3394 }
 0x54f   : > { %v3397_v32 = vpop.eup %3396 }
 0x550   : > { %v3399_v18 = vpop.eup %3398  ;;  %v4635_v9 = vpop.permute.xlu1 %2263  ;;  %v2340_v17 = vld [vmem:[#allocation4 + $0xe8] sm:$0xff] }
 0x551   : > { %v3401_v60 = vpop.eup %3400 }
 0x552   : > { %2452 = vperm.xlu1 %3145, %v3395_v7  }
 0x554   : > { %v4639_v51 = vpop.permute.xlu1 %2273 }
 0x556   : > { %2283 = vperm.xlu1 %3145, %v3397_v32   ;;  %v2342_v32 = vld [vmem:[#allocation4 + $0xf8] sm:$0xff] }
 0x55a   : > { %2293 = vperm.xlu1 %3145, %v3399_v18  }
 0x55e   : > { %2303 = vperm.xlu1 %3145, %v3401_v60  }
 0x573   : > { %v2388_v4 = vpop.permute.xlu0 %2387 }
 0x574   : > { %v2457_v3 = vmul.f32 %v2388_v4, %v2329_v14 }
 0x577   : > { %v2378_v46 = vpop.permute.xlu0 %2377 }
 0x578   : > { %v2455_v47 = vmul.f32 %v2378_v46, %v2327_v28  ;;  %v2185_v28 = vld [vmem:[#allocation4 + $0x10] sm:$0xff] }
 0x57b   : > { %v2393_v35 = vpop.permute.xlu1 %2392 }
 0x57c   : > { %v2458_v10 = vmul.f32 %v2393_v35, %v2330_v38 }
 0x57e   : > { %v3146_v34 = vpack.i.bf16 %v2458_v10, %v2457_v3 }
 0x57f   : > { %v2383_v36 = vpop.permute.xlu1 %2382 }
 0x580   : > { %v2456_v2 = vmul.f32 %v2383_v36, %v2328_v41  ;;  %3147 = vrot.lane.b32.xlu0 %v3146_v34, %s3438_s6  ;;  %v2186_v34 = vld [vmem:[#allocation4 + $0x18] sm:$0xff] }
 0x582   : > { %v3151_v45 = vpack.i.bf16 %v2456_v2, %v2455_v47  ;;  %v2314_v47 = vmul.f32 %v4629_v23, %v2186_v34  ;;  %v2313_v2 = vmul.f32 %v4627_v13, %v2185_v28 }
 0x583   : > { %v2413_v5 = vpop.permute.xlu1 %2412 }
 0x584   : > { %v2462_v29 = vmul.f32 %v2413_v5, %v2334_v6  ;;  %v2408_v12 = vpop.permute.xlu0 %2407  ;;  %3152 = vrot.lane.b32.xlu1 %v3151_v45, %s3438_s6 }
 0x585   : > { %v2461_v62 = vmul.f32 %v2408_v12, %v2333_v63  ;;  %v2184_v63 = vld [vmem:[#allocation4 + $0x8] sm:$0xff]  ;;  %v2183_v12 = vld [vmem:[#allocation4] sm:$0xff] }
 0x586   : > { %v2312_v23 = vmul.f32 %v4625_v50, %v2184_v63  ;;  %v2311_v13 = vmul.f32 %v4623_v59, %v2183_v12  ;;  %v2198_v63 = vld [vmem:[#allocation4 + $0x78] sm:$0xff]  ;;  %v2197_v12 = vld [vmem:[#allocation4 + $0x70] sm:$0xff] }
 0x587   : > { %v3156_v49 = vpack.i.bf16 %v2462_v29, %v2461_v62  ;;  %v2403_v16 = vpop.permute.xlu1 %2402 }
 0x588   : > { %v2460_v39 = vmul.f32 %v2403_v16, %v2332_v1  ;;  %v2398_v56 = vpop.permute.xlu0 %2397 }
 0x589   : > { %v2459_v61 = vmul.f32 %v2398_v56, %v2331_v55  ;;  %3157 = vrot.lane.b32.xlu0 %v3156_v49, %s3438_s6 }
 0x58b   : > { %v3161_v27 = vpack.i.bf16 %v2460_v39, %v2459_v61  ;;  %v2433_v58 = vpop.permute.xlu1 %2432  ;;  %v2190_v61 = vld [vmem:[#allocation4 + $0x38] sm:$0xff] }
 0x58c   : > { %v2466_v30 = vmul.f32 %v2433_v58, %v2338_v0  ;;  %v2428_v43 = vpop.permute.xlu0 %2427  ;;  %v2318_v0 = vmul.f32 %v4637_v54, %v2190_v61 }
 0x58d   : > { %v2465_v57 = vmul.f32 %v2428_v43, %v2337_v52  ;;  %3162 = vrot.lane.b32.xlu1 %v3161_v27, %s3438_s6  ;;  %v2189_v27 = vld [vmem:[#allocation4 + $0x30] sm:$0xff] }
 0x58f   : > { %v3166_v22 = vpack.i.bf16 %v2466_v30, %v2465_v57  ;;  %v2423_v15 = vpop.permute.xlu1 %2422  ;;  %v2317_v30 = vmul.f32 %v4635_v9, %v2189_v27  ;;  %v2188_v57 = vld [vmem:[#allocation4 + $0x28] sm:$0xff] }
 0x590   : > { %v2464_v48 = vmul.f32 %v2423_v15, %v2336_v21  ;;  %v2418_v25 = vpop.permute.xlu0 %2417 }
 0x591   : > { %v2463_v33 = vmul.f32 %v2418_v25, %v2335_v20  ;;  %3167 = vrot.lane.b32.xlu0 %v3166_v22, %s3438_s6  ;;  %v2187_v22 = vld [vmem:[#allocation4 + $0x20] sm:$0xff] }
 0x592   : > { %v2315_v20 = vmul.f32 %v4631_v31, %v2187_v22 }
 0x593   : > { %v3171_v42 = vpack.i.bf16 %v2464_v48, %v2463_v33  ;;  %v2316_v48 = vmul.f32 %v4633_v8, %v2188_v57 }
 0x595   : > { %3172 = vrot.lane.b32.xlu1 %v3171_v42, %s3438_s6  ;;  %v2194_v42 = vld [vmem:[#allocation4 + $0x58] sm:$0xff] }
 0x599   : > { %v2438_v53 = vpop.permute.xlu0 %2437 }
 0x59a   : > { %v2467_v37 = vmul.f32 %v2438_v53, %v2339_v11  ;;  %v2193_v53 = vld [vmem:[#allocation4 + $0x50] sm:$0xff] }
 0x59d   : > { %v2448_v40 = vpop.permute.xlu0 %2447 }
 0x59e   : > { %v2469_v18 = vmul.f32 %v2448_v40, %v2341_v19  ;;  %v2192_v19 = vld [vmem:[#allocation4 + $0x48] sm:$0xff] }
 0x5a1   : > { %v4649_v14 = vpop.permute.xlu0 %2278 }
 0x5a5   : > { %v2289_v35 = vpop.permute.xlu0 %2288 }
 0x5a9   : > { %v4651_v3 = vpop.permute.xlu0 %2298 }
 0x5ad   : > { %v4655_v46 = vpop.permute.xlu0 %2308 }
 0x5c9   : > { %v2443_v24 = vpop.permute.xlu1 %2442 }
 0x5ca   : > { %v2468_v44 = vmul.f32 %v2443_v24, %v2340_v17  ;;  %v2322_v17 = vmul.f32 %v2289_v35, %v2194_v42 }
 0x5cc   : > { %v3176_v26 = vpack.i.bf16 %v2468_v44, %v2467_v37 }
 0x5cd   : > { %v2453_v7 = vpop.permute.xlu1 %2452 }
 0x5ce   : > { %v2470_v60 = vmul.f32 %v2453_v7, %v2342_v32  ;;  %3177 = vrot.lane.b32.xlu1 %v3176_v26, %s3438_s6  ;;  %v2191_v26 = vld [vmem:[#allocation4 + $0x40] sm:$0xff] }
 0x5d0   : > { %v3181_v4 = vpack.i.bf16 %v2470_v60, %v2469_v18  ;;  %v2319_v18 = vmul.f32 %v4639_v51, %v2191_v26  ;;  %v2320_v60 = vmul.f32 %v4649_v14, %v2192_v19 }
 0x5d1   : > { %v2284_v38 = vpop.permute.xlu1 %2283 }
 0x5d2   : > { %3182 = vrot.lane.b32.xlu0 %v3181_v4, %s3438_s6  ;;  %v2321_v37 = vmul.f32 %v2284_v38, %v2193_v53 }
 0x5d5   : > { %v4653_v10 = vpop.permute.xlu1 %2293 }
 0x5d9   : > { %v4657_v41 = vpop.permute.xlu1 %2303 }
 0x5f2   : > { %v3148_v36 = vpop.permute.xlu0 %3147 }
 0x5f3   : > { %v3150_v45 = vunpack.i.h.bf16 %v3148_v36  ;;  %v3149_v5 = vunpack.i.l.bf16 %v3148_v36  ;;  %v2196_v36 = vld [vmem:[#allocation4 + $0x68] sm:$0xff] }
 0x5f5   : > { %v2538_v6 = vsel %vm411_vm0, %v2314_v47, %v3150_v45  ;;  %v2537_v29 = vsel %vm411_vm0, %v2313_v2, %v3149_v5  ;;  %v2195_v47 = vld [vmem:[#allocation4 + $0x60] sm:$0xff]  ;;  %v2324_v45 = vmul.f32 %v4651_v3, %v2196_v36 }
 0x5f6   : > { %v2869_v62 = vpack.c.bf16 %v2538_v6, %v2537_v29  ;;  %v3153_v49 = vpop.permute.xlu1 %3152  ;;  %v2323_v5 = vmul.f32 %v4653_v10, %v2195_v47 }
 0x5f7   : > { %v3155_v1 = vunpack.i.h.bf16 %v3153_v49  ;;  %v3154_v16 = vunpack.i.l.bf16 %v3153_v49 }
 0x5f8   : > { %2901 = vst [vmem:[%s4665_s9 + $0x8] sm:$0xff] %v2869_v62  }
 0x5f9   : > { %v2536_v39 = vsel %vm411_vm0, %v2312_v23, %v3155_v1  ;;  %v2535_v55 = vsel %vm411_vm0, %v2311_v13, %v3154_v16  ;;  %v2326_v23 = vmul.f32 %v4655_v46, %v2198_v63  ;;  %v2325_v13 = vmul.f32 %v4657_v41, %v2197_v12 }
 0x5fa   : > { %v2864_v56 = vpack.c.bf16 %v2536_v39, %v2535_v55 }
 0x5fb   : > { %v3158_v58 = vpop.permute.xlu0 %3157 }
 0x5fc   : > { %2865 = vst [vmem:[%s4665_s9] sm:$0xff] %v2864_v56   ;;  %v3160_v50 = vunpack.i.h.bf16 %v3158_v58  ;;  %v3159_v52 = vunpack.i.l.bf16 %v3158_v58 }
 0x5fe   : > { %v2542_v59 = vsel %vm411_vm0, %v2318_v0, %v3160_v50  ;;  %v2541_v43 = vsel %vm411_vm0, %v2317_v30, %v3159_v52 }
 0x5ff   : > { %v2879_v15 = vpack.c.bf16 %v2542_v59, %v2541_v43  ;;  %v3163_v21 = vpop.permute.xlu1 %3162 }
 0x600   : > { %v3165_v25 = vunpack.i.h.bf16 %v3163_v21  ;;  %v3164_v54 = vunpack.i.l.bf16 %v3163_v21 }
 0x601   : > { %2903 = vst [vmem:[%s4665_s9 + $0x18] sm:$0xff] %v2879_v15  }
 0x602   : > { %v2540_v9 = vsel %vm411_vm0, %v2316_v48, %v3165_v25  ;;  %v2539_v33 = vsel %vm411_vm0, %v2315_v20, %v3164_v54 }
 0x603   : > { %v2874_v11 = vpack.c.bf16 %v2540_v9, %v2539_v33  ;;  %v3168_v24 = vpop.permute.xlu0 %3167 }
 0x604   : > { %v3170_v44 = vunpack.i.h.bf16 %v3168_v24  ;;  %v3169_v40 = vunpack.i.l.bf16 %v3168_v24 }
 0x605   : > { %2902 = vst [vmem:[%s4665_s9 + $0x10] sm:$0xff] %v2874_v11  }
 0x606   : > { %v2546_v31 = vsel %vm411_vm0, %v2322_v17, %v3170_v44  ;;  %v2545_v8 = vsel %vm411_vm0, %v2321_v37, %v3169_v40 }
 0x607   : > { %v2889_v7 = vpack.c.bf16 %v2546_v31, %v2545_v8  ;;  %v3173_v32 = vpop.permute.xlu1 %3172 }
 0x608   : > { %v3175_v4 = vunpack.i.h.bf16 %v3173_v32  ;;  %v3174_v34 = vunpack.i.l.bf16 %v3173_v32 }
 0x609   : > { %2905 = vst [vmem:[%s4665_s9 + $0x28] sm:$0xff] %v2889_v7  }
 0x60a   : > { %v2543_v35 = vsel %vm411_vm0, %v2319_v18, %v3174_v34  ;;  %v2544_v38 = vsel %vm411_vm0, %v2320_v60, %v3175_v4 }
 0x60b   : > { %v2884_v28 = vpack.c.bf16 %v2544_v38, %v2543_v35 }
 0x60d   : > { %2904 = vst [vmem:[%s4665_s9 + $0x20] sm:$0xff] %v2884_v28  }
 0x640   : > { %v3178_v2 = vpop.permute.xlu1 %3177 }
 0x641   : > { %v3180_v51 = vunpack.i.h.bf16 %v3178_v2  ;;  %v3179_v14 = vunpack.i.l.bf16 %v3178_v2 }
 0x643   : > { %v2547_v6 = vsel %vm411_vm0, %v2323_v5, %v3179_v14  ;;  %v2548_v29 = vsel %vm411_vm0, %v2324_v45, %v3180_v51 }
 0x644   : > { %v2894_v62 = vpack.c.bf16 %v2548_v29, %v2547_v6  ;;  %v3183_v49 = vpop.permute.xlu0 %3182 }
 0x645   : > { %v3185_v1 = vunpack.i.h.bf16 %v3183_v49  ;;  %v3184_v16 = vunpack.i.l.bf16 %v3183_v49 }
 0x646   : > { %2906 = vst [vmem:[%s4665_s9 + $0x30] sm:$0xff] %v2894_v62  }
 0x647   : > { %v2550_v3 = vsel %vm411_vm0, %v2326_v23, %v3185_v1  ;;  %v2549_v10 = vsel %vm411_vm0, %v2325_v13, %v3184_v16 }
 0x648   : > { %v2899_v39 = vpack.c.bf16 %v2550_v3, %v2549_v10 }
 0x64a   : > { %2907 = vst [vmem:[%s4665_s9 + $0x38] sm:$0xff] %v2899_v39  }
 0x64b PF: > { %s14_s17 = sadd.s32 1, %s3433_s17   ;;  %s4728_s15 = smov %s3429_s16 }
 0x64c   : > { %p11_p5 = scmp.ge.s32.totalorder %s14_s17, 4   ;;  %s4729_s16 = smov %s4731_s18 }
 0x64e   :  { %13 = sbr.rel (!%p11_p5) target bundleno = 2 (0x2), region = 86 }

// kernel: fwd.15
= control target key start
LH: loop header
LB: loop body
LE: loop exit
PB: predicated region body
PF: predicated region fallthrough
CT: control target
= control target key end

     0   :  { %v2900_v1 = vmov 0   ;;  %v113_v49 = vlaneseq  ;;  %s4307_s1 = inlined_call_operand.vmem [shape: bf16[128,256], index: 1, kind: input, shape index: {}]   ;;  %s4308_s0 = inlined_call_operand.vmem [shape: bf16[256,128], index: 0, kind: input, shape index: {}]   ;;  %s4309_s3 = inlined_call_operand.vmem [shape: bf16[256,128], index: 3, kind: input, shape index: {}]   ;;  %s4310_s2 = inlined_call_operand.vmem [shape: f32[1,256], index: 2, kind: input, shape index: {}]   ;;  %s4311_s4 = inlined_call_operand.vmem [shape: f32[1,128], index: 4, kind: input, shape index: {}]   ;;  %s4312_s5 = inlined_call_operand.vmem [shape: f32[1,128], index: 5, kind: input, shape index: {}]   ;;  %s4313_s6 = inlined_call_operand.vmem [shape: f32[1,128], index: 6, kind: input, shape index: {}]   ;;  %s4314_s7 = inlined_call_operand.vmem [shape: bf16[256,128], index: 7, kind: output, shape index: {}]  }
   0x1   :  { %v2652_v0 = vld [vmem:[%s4307_s1 + $0x74] ss:$8 sps:$4 sm:$0xff]   ;;  %331 = vmatprep.mubr.bf16.mxu0 %v2900_v1  ;;  %v2654_v2 = vld [vmem:[%s4307_s1 + $0x70] ss:$8 sps:$4 sm:$0xff]   ;;  %v2655_v3 = vld [vmem:[%s4307_s1 + $0x64] ss:$8 sps:$4 sm:$0xff]  }
   0x2   :  { %299 = vmatprep.subr.bf16.mxu0 %v2652_v0  ;;  %v2657_v4 = vld [vmem:[%s4307_s1 + $0x60] ss:$8 sps:$4 sm:$0xff]   ;;  %v2658_v5 = vld [vmem:[%s4307_s1 + $0x54] ss:$8 sps:$4 sm:$0xff]   ;;  %v2660_v6 = vld [vmem:[%s4307_s1 + $0x50] ss:$8 sps:$4 sm:$0xff]  }
   0x3   :  { %300 = vmatpush1.bf16.msra.mxu0 %v2654_v2  ;;  %v2661_v7 = vld [vmem:[%s4307_s1 + $0x44] ss:$8 sps:$4 sm:$0xff]   ;;  %v2663_v8 = vld [vmem:[%s4307_s1 + $0x40] ss:$8 sps:$4 sm:$0xff]   ;;  %v2664_v9 = vld [vmem:[%s4307_s1 + $0x34] ss:$8 sps:$4 sm:$0xff]  }
   0x4   :  { %301 = vmatprep.subr.bf16.mxu0 %v2655_v3  ;;  %v2666_v10 = vld [vmem:[%s4307_s1 + $0x30] ss:$8 sps:$4 sm:$0xff]   ;;  %v2667_v11 = vld [vmem:[%s4307_s1 + $0x24] ss:$8 sps:$4 sm:$0xff]   ;;  %v2669_v12 = vld [vmem:[%s4307_s1 + $0x20] ss:$8 sps:$4 sm:$0xff]  }
   0x5   :  { %v2670_v13 = vld [vmem:[%s4307_s1 + $0x14] ss:$8 sps:$4 sm:$0xff]   ;;  %v2672_v14 = vld [vmem:[%s4307_s1 + $0x10] ss:$8 sps:$4 sm:$0xff]   ;;  %v2673_v15 = vld [vmem:[%s4307_s1 + $0x4] ss:$8 sps:$4 sm:$0xff]  }
   0x6   :  { %v2675_v16 = vld [vmem:[%s4307_s1] ss:$8 sps:$4 sm:$0xff]   ;;  %v2678_v19 = vld [vmem:[%s4308_s0 + $0x10] sm:$0xff]   ;;  %v2679_v20 = vld [vmem:[%s4308_s0 + $0x18] sm:$0xff]   ;;  %v114_v50 = vshrl.u32 %v113_v49, 7 }
   0x7   :  { %302 = vmatpush1.bf16.msra.mxu0 %v2657_v4  ;;  %v2676_v17 = vld [vmem:[%s4308_s0] sm:$0xff]   ;;  %v2677_v18 = vld [vmem:[%s4308_s0 + $0x8] sm:$0xff]   ;;  %v2682_v23 = vld [vmem:[%s4308_s0 + $0x30] sm:$0xff]  }
   0x8   :  { %303 = vmatprep.subr.bf16.mxu0 %v2658_v5  ;;  %v2680_v21 = vld [vmem:[%s4308_s0 + $0x20] sm:$0xff]   ;;  %v2681_v22 = vld [vmem:[%s4308_s0 + $0x28] sm:$0xff]   ;;  %v2683_v24 = vld [vmem:[%s4308_s0 + $0x38] sm:$0xff]   ;;  %v115_v51 = vsub.s32 0, %v114_v50  ;;  %v119_v53 = vsub.s32 1, %v114_v50 }
   0x9   :  { %v2684_v25 = vld [vmem:[%s4308_s0 + $0x40] sm:$0xff]   ;;  %v2685_v26 = vld [vmem:[%s4308_s0 + $0x48] sm:$0xff]   ;;  %v2692_v27 = vld [vmem:[%s4309_s3 + $0x78] sm:$0xff]  }
   0xa   :  { %v2686_v28 = vld [vmem:[%s4308_s0 + $0x50] sm:$0xff]   ;;  %v2693_v29 = vld [vmem:[%s4309_s3 + $0x38] sm:$0xff]   ;;  %2539 = vmatprep.subr.bf16.mxu1 %v2692_v27  ;;  %v2696_v32 = vld [vmem:[%s4309_s3 + $0x68] sm:$0xff]  }
   0xb   :  { %304 = vmatpush1.bf16.msra.mxu0 %v2660_v6  ;;  %2540 = vmatpush3.bf16.msra.mxu1 %v2693_v29  ;;  %v2694_v30 = vld [vmem:[%s4309_s3 + $0x70] sm:$0xff]   ;;  %v2687_v33 = vld [vmem:[%s4308_s0 + $0x58] sm:$0xff]   ;;  %v2697_v34 = vld [vmem:[%s4309_s3 + $0x28] sm:$0xff]  }
   0xc   :  { %305 = vmatprep.subr.bf16.mxu0 %v2661_v7  ;;  %v2695_v31 = vld [vmem:[%s4309_s3 + $0x30] sm:$0xff]   ;;  %2541 = vmatprep.subr.bf16.mxu1 %v2694_v30  ;;  %v2698_v35 = vld [vmem:[%s4309_s3 + $0x60] sm:$0xff]   ;;  %v2700_v37 = vld [vmem:[%s4309_s3 + $0x58] sm:$0xff]  }
   0xd   :  { %v2699_v36 = vld [vmem:[%s4309_s3 + $0x20] sm:$0xff]   ;;  %v2701_v38 = vld [vmem:[%s4309_s3 + $0x18] sm:$0xff]   ;;  %v2702_v40 = vld [vmem:[%s4309_s3 + $0x50] sm:$0xff]  }
   0xe   :  { %v2688_v39 = vld [vmem:[%s4308_s0 + $0x60] sm:$0xff]   ;;  %v2703_v41 = vld [vmem:[%s4309_s3 + $0x10] sm:$0xff]   ;;  %v2704_v42 = vld [vmem:[%s4309_s3 + $0x48] sm:$0xff]  }
   0xf   :  { %306 = vmatpush1.bf16.msra.mxu0 %v2663_v8  ;;  %2542 = vmatpush3.bf16.msra.mxu1 %v2695_v31  ;;  %v2705_v43 = vld [vmem:[%s4309_s3 + $0x8] sm:$0xff]   ;;  %v2706_v45 = vld [vmem:[%s4309_s3 + $0x40] sm:$0xff]   ;;  %v2690_v47 = vld [vmem:[%s4308_s0 + $0x70] sm:$0xff]  }
  0x10   :  { %307 = vmatprep.subr.bf16.mxu0 %v2664_v9  ;;  %2543 = vmatprep.subr.bf16.mxu1 %v2696_v32  ;;  %v2689_v44 = vld [vmem:[%s4308_s0 + $0x68] sm:$0xff]   ;;  %v2707_v46 = vld [vmem:[%s4309_s3] sm:$0xff]   ;;  %v2691_v48 = vld [vmem:[%s4308_s0 + $0x78] sm:$0xff]  }
  0x11   :  { %v111_v52 = vld [vmem:[%s4310_s2] sm:$0x3] }
  0x12   :  { %v3104_v54 = vrot.slane %v111_v52, %v115_v51  ;;  %v3106_v55 = vrot.slane %v111_v52, %v119_v53 }
  0x13   :  { %308 = vmatpush1.bf16.msra.mxu0 %v2666_v10  ;;  %2544 = vmatpush3.bf16.msra.mxu1 %v2697_v34 }
  0x14   :  { %309 = vmatprep.subr.bf16.mxu0 %v2667_v11  ;;  %2545 = vmatprep.subr.bf16.mxu1 %v2698_v35 }
  0x17   :  { %310 = vmatpush1.bf16.msra.mxu0 %v2669_v12  ;;  %2546 = vmatpush3.bf16.msra.mxu1 %v2699_v36 }
  0x18   :  { %311 = vmatprep.subr.bf16.mxu0 %v2670_v13  ;;  %2547 = vmatprep.subr.bf16.mxu1 %v2700_v37 }
  0x1b   :  { %312 = vmatpush1.bf16.msra.mxu0 %v2672_v14  ;;  %2548 = vmatpush3.bf16.msra.mxu1 %v2701_v38 }
  0x1c   :  { %313 = vmatprep.subr.bf16.mxu0 %v2673_v15  ;;  %2549 = vmatprep.subr.bf16.mxu1 %v2702_v40 }
  0x1f   :  { %314 = vmatpush1.bf16.msra.mxu0 %v2675_v16  ;;  %2550 = vmatpush3.bf16.msra.mxu1 %v2703_v41 }
  0x20   :  { %2551 = vmatprep.subr.bf16.mxu1 %v2704_v42 }
  0x22   :  { %332 = vmatmul.mubr.bf16.vlgmr.msra.gmra.mxu0 %v2676_v17 }
  0x23   :  { %341 = vmatprep.mubr.bf16.mxu0 %v2900_v1  ;;  %2552 = vmatpush3.bf16.msra.mxu1 %v2705_v43 }
  0x24   :  { %2553 = vmatprep.subr.bf16.mxu1 %v2706_v45 }
  0x27   :  { %2554 = vmatpush3.bf16.msra.mxu1 %v2707_v46 }
  0x2a   :  { %342 = vmatmul.mubr.bf16.gmra.mxu0 %v2677_v18 }
  0x2b   :  { %351 = vmatprep.mubr.bf16.mxu0 %v2900_v1 }
  0x32   :  { %352 = vmatmul.mubr.bf16.gmra.mxu0 %v2678_v19 }
  0x33   :  { %361 = vmatprep.mubr.bf16.mxu0 %v2900_v1 }
  0x3a   :  { %362 = vmatmul.mubr.bf16.gmra.mxu0 %v2679_v20 }
  0x3b   :  { %371 = vmatprep.mubr.bf16.mxu0 %v2900_v1 }
  0x42   :  { %372 = vmatmul.mubr.bf16.gmra.mxu0 %v2680_v21 }
  0x43   :  { %381 = vmatprep.mubr.bf16.mxu0 %v2900_v1 }
  0x4a   :  { %382 = vmatmul.mubr.bf16.gmra.mxu0 %v2681_v22 }
  0x4b   :  { %391 = vmatprep.mubr.bf16.mxu0 %v2900_v1 }
  0x52   :  { %392 = vmatmul.mubr.bf16.gmra.mxu0 %v2682_v23 }
  0x53   :  { %401 = vmatprep.mubr.bf16.mxu0 %v2900_v1 }
  0x5a   :  { %402 = vmatmul.mubr.bf16.gmra.mxu0 %v2683_v24 }
  0x5b   :  { %411 = vmatprep.mubr.bf16.mxu0 %v2900_v1 }
  0x62   :  { %412 = vmatmul.mubr.bf16.gmra.mxu0 %v2684_v25 }
  0x63   :  { %421 = vmatprep.mubr.bf16.mxu0 %v2900_v1 }
  0x6a   :  { %422 = vmatmul.mubr.bf16.gmra.mxu0 %v2685_v26 }
  0x6b   :  { %431 = vmatprep.mubr.bf16.mxu0 %v2900_v1 }
  0x72   :  { %432 = vmatmul.mubr.bf16.gmra.mxu0 %v2686_v28 }
  0x73   :  { %441 = vmatprep.mubr.bf16.mxu0 %v2900_v1 }
  0x7a   :  { %442 = vmatmul.mubr.bf16.gmra.mxu0 %v2687_v33 }
  0x7b   :  { %451 = vmatprep.mubr.bf16.mxu0 %v2900_v1 }
  0x82   :  { %452 = vmatmul.mubr.bf16.gmra.mxu0 %v2688_v39 }
  0x83   :  { %461 = vmatprep.mubr.bf16.mxu0 %v2900_v1 }
  0x8a   :  { %462 = vmatmul.mubr.bf16.gmra.mxu0 %v2689_v44 }
  0x8b   :  { %471 = vmatprep.mubr.bf16.mxu0 %v2900_v1 }
  0x92   :  { %472 = vmatmul.mubr.bf16.gmra.mxu0 %v2690_v47 }
  0x93   :  { %481 = vmatprep.mubr.bf16.mxu0 %v2900_v1 }
  0x9a   :  { %482 = vmatmul.mubr.bf16.gmra.mxu0 %v2691_v48 }
  0xe2   :  { %v333_v56 = vpop.f32.mrf.mxu0 }
  0xe3   :  { %v3109_v57 = vadd.f32 %v333_v56, %v3104_v54 }
  0xe4   :  { %v335_v58 = vpop.f32.mrf.mxu0 }
  0xe5   :  { %v492_v59 = vmul.f32 %v3109_v57, %v3109_v57  ;;  %v3114_v60 = vadd.f32 %v335_v58, %v3106_v55 }
  0xe6   :  { %v337_v61 = vpop.f32.mrf.mxu0 }
  0xe7   :  { %v556_v62 = vmul.f32 %v492_v59, %v3109_v57  ;;  %v493_v63 = vmul.f32 %v3114_v60, %v3114_v60  ;;  %v3120_v0 = vadd.f32 %v337_v61, %v3104_v54 }
  0xe8   :  { %v339_v1 = vpop.f32.mrf.mxu0 }
  0xe9   :  { %v620_v2 = vmul.f32 0.044715, %v556_v62  ;;  %v557_v3 = vmul.f32 %v493_v63, %v3114_v60  ;;  %v494_v4 = vmul.f32 %v3120_v0, %v3120_v0  ;;  %v3126_v5 = vadd.f32 %v339_v1, %v3106_v55 }
  0xea   :  { %v343_v6 = vpop.f32.mrf.mxu0 }
  0xeb   :  { %v684_v7 = vadd.f32 %v620_v2, %v3109_v57  ;;  %v621_v8 = vmul.f32 0.044715, %v557_v3  ;;  %v558_v9 = vmul.f32 %v494_v4, %v3120_v0  ;;  %v495_v10 = vmul.f32 %v3126_v5, %v3126_v5 }
  0xec   :  { %v3133_v11 = vadd.f32 %v343_v6, %v3104_v54  ;;  %v345_v12 = vpop.f32.mrf.mxu0 }
  0xed   :  { %v748_v13 = vmul.f32 0.7978846, %v684_v7  ;;  %v685_v14 = vadd.f32 %v621_v8, %v3114_v60  ;;  %v622_v15 = vmul.f32 0.044715, %v558_v9  ;;  %v559_v16 = vmul.f32 %v495_v10, %v3126_v5 }
  0xee   :  { %v496_v17 = vmul.f32 %v3133_v11, %v3133_v11  ;;  %v3140_v18 = vadd.f32 %v345_v12, %v3106_v55  ;;  %v347_v19 = vpop.f32.mrf.mxu0 }
  0xef   :  { %2708 = vtanh.f32 %v748_v13  ;;  %v623_v20 = vmul.f32 0.044715, %v559_v16  ;;  %v3143_v21 = vadd.f32 %v347_v19, %v3104_v54  ;;  %v686_v22 = vadd.f32 %v622_v15, %v3120_v0 }
  0xf0   :  { %v560_v23 = vmul.f32 %v496_v17, %v3133_v11  ;;  %v497_v24 = vmul.f32 %v3140_v18, %v3140_v18  ;;  %v349_v25 = vpop.f32.mrf.mxu0  ;;  %v749_v26 = vmul.f32 0.7978846, %v685_v14 }
  0xf1   :  { %v687_v27 = vadd.f32 %v623_v20, %v3126_v5  ;;  %v498_v28 = vmul.f32 %v3143_v21, %v3143_v21  ;;  %v3153_v29 = vadd.f32 %v349_v25, %v3106_v55  ;;  %v750_v36 = vmul.f32 0.7978846, %v686_v22 }
  0xf2   :  { %v624_v30 = vmul.f32 0.044715, %v560_v23  ;;  %v561_v31 = vmul.f32 %v497_v24, %v3140_v18  ;;  %v353_v32 = vpop.f32.mrf.mxu0  ;;  %2710 = vtanh.f32 %v749_v26 }
  0xf3   :  { %v562_v33 = vmul.f32 %v498_v28, %v3143_v21  ;;  %v499_v34 = vmul.f32 %v3153_v29, %v3153_v29  ;;  %v3160_v35 = vadd.f32 %v353_v32, %v3104_v54  ;;  %v751_v40 = vmul.f32 0.7978846, %v687_v27 }
  0xf4   :  { %v688_v37 = vadd.f32 %v624_v30, %v3133_v11  ;;  %v625_v38 = vmul.f32 0.044715, %v561_v31  ;;  %v355_v39 = vpop.f32.mrf.mxu0 }
  0xf5   :  { %v626_v41 = vmul.f32 0.044715, %v562_v33  ;;  %v563_v42 = vmul.f32 %v499_v34, %v3153_v29  ;;  %v500_v43 = vmul.f32 %v3160_v35, %v3160_v35  ;;  %v3167_v44 = vadd.f32 %v355_v39, %v3106_v55 }
  0xf6   :  { %v752_v45 = vmul.f32 0.7978846, %v688_v37  ;;  %v689_v46 = vadd.f32 %v625_v38, %v3140_v18  ;;  %v357_v47 = vpop.f32.mrf.mxu0  ;;  %2712 = vtanh.f32 %v751_v40 }
  0xf7   :  { %v690_v48 = vadd.f32 %v626_v41, %v3143_v21  ;;  %v627_v49 = vmul.f32 0.044715, %v563_v42  ;;  %v564_v50 = vmul.f32 %v500_v43, %v3160_v35  ;;  %v501_v51 = vmul.f32 %v3167_v44, %v3167_v44 }
  0xf8   :  { %2714 = vtanh.f32 %v750_v36  ;;  %v753_v52 = vmul.f32 0.7978846, %v689_v46  ;;  %v3175_v53 = vadd.f32 %v357_v47, %v3104_v54  ;;  %v359_v56 = vpop.f32.mrf.mxu0 }
  0xf9   :  { %v754_v58 = vmul.f32 0.7978846, %v690_v48  ;;  %v691_v59 = vadd.f32 %v627_v49, %v3153_v29  ;;  %v628_v61 = vmul.f32 0.044715, %v564_v50  ;;  %v565_v62 = vmul.f32 %v501_v51, %v3167_v44 }
  0xfa   :  { %2716 = vtanh.f32 %v752_v45  ;;  %v502_v63 = vmul.f32 %v3175_v53, %v3175_v53  ;;  %v3182_v1 = vadd.f32 %v359_v56, %v3106_v55  ;;  %v363_v2 = vpop.f32.mrf.mxu0 }
  0xfb   :  { %2718 = vtanh.f32 %v753_v52  ;;  %v755_v3 = vmul.f32 0.7978846, %v691_v59  ;;  %v692_v4 = vadd.f32 %v628_v61, %v3160_v35  ;;  %v629_v6 = vmul.f32 0.044715, %v565_v62 }
  0xfc   :  { %v2709_v7 = vpop.eup %2708  ;;  %2720 = vtanh.f32 %v754_v58  ;;  %v566_v8 = vmul.f32 %v502_v63, %v3175_v53  ;;  %v503_v9 = vmul.f32 %v3182_v1, %v3182_v1  ;;  %v3189_v10 = vadd.f32 %v363_v2, %v3104_v54  ;;  %v365_v12 = vpop.f32.mrf.mxu0 }
  0xfd   :  { %2722 = vtanh.f32 %v755_v3  ;;  %v756_v13 = vmul.f32 0.7978846, %v692_v4  ;;  %v693_v14 = vadd.f32 %v629_v6, %v3167_v44  ;;  %v3193_v15 = vadd.f32 %v365_v12, %v3106_v55 }
  0xfe   :  { %v630_v16 = vmul.f32 0.044715, %v566_v8  ;;  %v567_v17 = vmul.f32 %v503_v9, %v3182_v1  ;;  %v504_v19 = vmul.f32 %v3189_v10, %v3189_v10  ;;  %v367_v20 = vpop.f32.mrf.mxu0  ;;  %v3198_v22 = vadd.f32 1.0, %v2709_v7 }
  0xff   :  { %v2711_v23 = vpop.eup %2710  ;;  %2724 = vtanh.f32 %v756_v13  ;;  %v757_v24 = vmul.f32 0.7978846, %v693_v14  ;;  %v505_v25 = vmul.f32 %v3193_v15, %v3193_v15  ;;  %v3203_v26 = vadd.f32 %v367_v20, %v3104_v54 }
 0x100   :  { %v694_v27 = vadd.f32 %v630_v16, %v3175_v53  ;;  %v631_v28 = vmul.f32 0.044715, %v567_v17  ;;  %v568_v30 = vmul.f32 %v504_v19, %v3189_v10  ;;  %v369_v31 = vpop.f32.mrf.mxu0  ;;  %v877_v32 = vadd.f32 1.0, %v2711_v23 }
 0x101   :  { %2726 = vtanh.f32 %v757_v24  ;;  %v569_v33 = vmul.f32 %v505_v25, %v3193_v15  ;;  %v506_v34 = vmul.f32 %v3203_v26, %v3203_v26  ;;  %v3211_v36 = vadd.f32 %v369_v31, %v3106_v55 }
 0x102   :  { %v758_v37 = vmul.f32 0.7978846, %v694_v27  ;;  %v695_v38 = vadd.f32 %v631_v28, %v3182_v1  ;;  %v632_v39 = vmul.f32 0.044715, %v568_v30  ;;  %v373_v40 = vpop.f32.mrf.mxu0  ;;  %v941_v41 = vmul.f32 0.5, %v877_v32 }
 0x103   :  { %v2713_v42 = vpop.eup %2712  ;;  %v633_v43 = vmul.f32 0.044715, %v569_v33  ;;  %v570_v45 = vmul.f32 %v506_v34, %v3203_v26  ;;  %v507_v46 = vmul.f32 %v3211_v36, %v3211_v36  ;;  %v3218_v47 = vadd.f32 %v373_v40, %v3104_v54 }
 0x104   :  { %2728 = vtanh.f32 %v758_v37  ;;  %v759_v48 = vmul.f32 0.7978846, %v695_v38  ;;  %v696_v49 = vadd.f32 %v632_v39, %v3189_v10  ;;  %v375_v50 = vpop.f32.mrf.mxu0  ;;  %v879_v51 = vadd.f32 1.0, %v2713_v42 }
 0x105   :  { %v2715_v52 = vpop.eup %2714  ;;  %v697_v56 = vadd.f32 %v633_v43, %v3193_v15  ;;  %v634_v58 = vmul.f32 0.044715, %v570_v45  ;;  %v571_v59 = vmul.f32 %v507_v46, %v3211_v36  ;;  %v508_v61 = vmul.f32 %v3218_v47, %v3218_v47 }
 0x106   :  { %2730 = vtanh.f32 %v759_v48  ;;  %v760_v62 = vmul.f32 0.7978846, %v696_v49  ;;  %v3226_v63 = vadd.f32 %v375_v50, %v3106_v55  ;;  %v377_v2 = vpop.f32.mrf.mxu0  ;;  %v943_v3 = vmul.f32 0.5, %v879_v51 }
 0x107   :  { %v3228_v4 = vpop.eup %2716  ;;  %v761_v6 = vmul.f32 0.7978846, %v697_v56  ;;  %v698_v7 = vadd.f32 %v634_v58, %v3203_v26  ;;  %v635_v8 = vmul.f32 0.044715, %v571_v59  ;;  %v572_v9 = vmul.f32 %v508_v61, %v3218_v47 }
 0x108   :  { %v3232_v12 = vpop.eup %2718  ;;  %2732 = vtanh.f32 %v760_v62  ;;  %v509_v13 = vmul.f32 %v3226_v63, %v3226_v63  ;;  %v3237_v14 = vadd.f32 %v377_v2, %v3104_v54  ;;  %v379_v16 = vpop.f32.mrf.mxu0  ;;  %v1005_v17 = vmul.f32 %v941_v41, %v3114_v60 }
 0x109   :  { %v3240_v19 = vpop.eup %2720  ;;  %2734 = vtanh.f32 %v761_v6  ;;  %v762_v20 = vmul.f32 0.7978846, %v698_v7  ;;  %v699_v23 = vadd.f32 %v635_v8, %v3211_v36  ;;  %v636_v24 = vmul.f32 0.044715, %v572_v9 }
 0x10a   :  { %v3243_v25 = vpop.eup %2722  ;;  %v573_v27 = vmul.f32 %v509_v13, %v3226_v63  ;;  %v510_v28 = vmul.f32 %v3237_v14, %v3237_v14  ;;  %v3249_v30 = vadd.f32 %v379_v16, %v3106_v55  ;;  %v383_v31 = vpop.f32.mrf.mxu0  ;;  %v1007_v60 = vmul.f32 %v943_v3, %v3126_v5 }
 0x10b   :  { %2736 = vtanh.f32 %v762_v20  ;;  %v763_v32 = vmul.f32 0.7978846, %v699_v23  ;;  %v700_v33 = vadd.f32 %v636_v24, %v3218_v47  ;;  %v3254_v34 = vadd.f32 %v383_v31, %v3104_v54 }
 0x10c   :  { %v3256_v37 = vpop.eup %2724  ;;  %v637_v38 = vmul.f32 0.044715, %v573_v27  ;;  %v574_v39 = vmul.f32 %v510_v28, %v3237_v14  ;;  %v511_v40 = vmul.f32 %v3249_v30, %v3249_v30  ;;  %v1101_v41 = vpack.c.bf16 %v1007_v60, %v1005_v17  ;;  %v385_v42 = vpop.f32.mrf.mxu0 }
 0x10d   :  { %2738 = vtanh.f32 %v763_v32  ;;  %v764_v43 = vmul.f32 0.7978846, %v700_v33  ;;  %v512_v5 = vmul.f32 %v3254_v34, %v3254_v34  ;;  %v3264_v45 = vadd.f32 %v385_v42, %v3106_v55 }
 0x10e   :  { %v3266_v46 = vpop.eup %2726  ;;  %v701_v48 = vadd.f32 %v637_v38, %v3226_v63  ;;  %v638_v49 = vmul.f32 0.044715, %v574_v39  ;;  %v575_v50 = vmul.f32 %v511_v40, %v3249_v30  ;;  %1292 = vmatprep.mubr.bf16.mxu1 %v1101_v41  ;;  %v878_v51 = vadd.f32 1.0, %v2715_v52  ;;  %v387_v56 = vpop.f32.mrf.mxu0 }
 0x10f   :  { %2740 = vtanh.f32 %v764_v43  ;;  %v576_v58 = vmul.f32 %v512_v5, %v3254_v34  ;;  %v513_v59 = vmul.f32 %v3264_v45, %v3264_v45  ;;  %v940_v61 = vmul.f32 0.5, %v3198_v22 }
 0x110   :  { %v765_v62 = vmul.f32 0.7978846, %v701_v48  ;;  %v702_v2 = vadd.f32 %v638_v49, %v3237_v14  ;;  %v639_v3 = vmul.f32 0.044715, %v575_v50  ;;  %v942_v6 = vmul.f32 0.5, %v878_v51  ;;  %v389_v7 = vpop.f32.mrf.mxu0 }
 0x111   :  { %v3275_v8 = vpop.eup %2728  ;;  %v640_v9 = vmul.f32 0.044715, %v576_v58  ;;  %v577_v52 = vmul.f32 %v513_v59, %v3264_v45  ;;  %v1004_v13 = vmul.f32 %v940_v61, %v3109_v57  ;;  %v3280_v16 = vadd.f32 %v387_v56, %v3104_v54 }
 0x112   :  { %2742 = vtanh.f32 %v765_v62  ;;  %v766_v17 = vmul.f32 0.7978846, %v702_v2  ;;  %v703_v22 = vadd.f32 %v639_v3, %v3249_v30  ;;  %v1006_v20 = vmul.f32 %v942_v6, %v3120_v0  ;;  %v393_v23 = vpop.f32.mrf.mxu0 }
 0x113   :  { %v3284_v24 = vpop.eup %2730  ;;  %v704_v27 = vadd.f32 %v640_v9, %v3254_v34  ;;  %v641_v28 = vmul.f32 0.044715, %v577_v52  ;;  %v514_v31 = vmul.f32 %v3280_v16, %v3280_v16  ;;  %v3290_v57 = vadd.f32 %v389_v7, %v3106_v55 }
 0x114   :  { %2744 = vtanh.f32 %v766_v17  ;;  %v767_v60 = vmul.f32 0.7978846, %v703_v22  ;;  %v1100_v32 = vpack.c.bf16 %v1006_v20, %v1004_v13  ;;  %v3293_v33 = vadd.f32 %v393_v23, %v3104_v54  ;;  %v395_v38 = vpop.f32.mrf.mxu0 }
 0x115   :  { %v3295_v0 = vpop.eup %2732  ;;  %v768_v39 = vmul.f32 0.7978846, %v704_v27  ;;  %v705_v40 = vadd.f32 %v641_v28, %v3264_v45  ;;  %v578_v41 = vmul.f32 %v514_v31, %v3280_v16  ;;  %v515_v42 = vmul.f32 %v3290_v57, %v3290_v57 }
 0x116   :  { %v3301_v43 = vpop.eup %2734  ;;  %2746 = vtanh.f32 %v767_v60  ;;  %1293 = vmatmul.mubr.bf16.vlgmr.msra.gmra.mxu1 %v1100_v32  ;;  %v516_v5 = vmul.f32 %v3293_v33, %v3293_v33  ;;  %v881_v48 = vadd.f32 1.0, %v3232_v12  ;;  %v883_v49 = vadd.f32 1.0, %v3243_v25  ;;  %v397_v50 = vpop.f32.mrf.mxu0 }
 0x117   :  { %2748 = vtanh.f32 %v768_v39  ;;  %v769_v51 = vmul.f32 0.7978846, %v705_v40  ;;  %v642_v56 = vmul.f32 0.044715, %v578_v41  ;;  %v579_v58 = vmul.f32 %v515_v42, %v3290_v57 }
 0x118   :  { %v3308_v59 = vpop.eup %2736  ;;  %v580_v61 = vmul.f32 %v516_v5, %v3293_v33  ;;  %v945_v62 = vmul.f32 0.5, %v881_v48  ;;  %v947_v2 = vmul.f32 0.5, %v883_v49  ;;  %v3312_v3 = vadd.f32 %v395_v38, %v3106_v55  ;;  %v399_v6 = vpop.f32.mrf.mxu0 }
 0x119   :  { %2750 = vtanh.f32 %v769_v51  ;;  %v706_v12 = vadd.f32 %v642_v56, %v3280_v16  ;;  %v643_v25 = vmul.f32 0.044715, %v579_v58  ;;  %v880_v7 = vadd.f32 1.0, %v3228_v4 }
 0x11a   :  { %v3316_v9 = vpop.eup %2738  ;;  %v644_v52 = vmul.f32 0.044715, %v580_v61  ;;  %v1009_v13 = vmul.f32 %v945_v62, %v3140_v18  ;;  %v1011_v17 = vmul.f32 %v947_v2, %v3153_v29  ;;  %v517_v22 = vmul.f32 %v3312_v3, %v3312_v3  ;;  %v403_v20 = vpop.f32.mrf.mxu0 }
 0x11b   :  { %v770_v23 = vmul.f32 0.7978846, %v706_v12  ;;  %v707_v27 = vadd.f32 %v643_v25, %v3290_v57  ;;  %v882_v28 = vadd.f32 1.0, %v3240_v19  ;;  %v944_v31 = vmul.f32 0.5, %v880_v7 }
 0x11c   :  { %v3324_v60 = vpop.eup %2740  ;;  %v708_v4 = vadd.f32 %v644_v52, %v3293_v33  ;;  %v1103_v32 = vpack.c.bf16 %v1011_v17, %v1009_v13  ;;  %v581_v38 = vmul.f32 %v517_v22, %v3312_v3  ;;  %v3329_v18 = vadd.f32 %v397_v50, %v3104_v54  ;;  %v405_v29 = vpop.f32.mrf.mxu0 }
 0x11d   :  { %2752 = vtanh.f32 %v770_v23  ;;  %v771_v39 = vmul.f32 0.7978846, %v707_v27  ;;  %v946_v40 = vmul.f32 0.5, %v882_v28  ;;  %v1008_v41 = vmul.f32 %v944_v31, %v3133_v11 }
 0x11e   :  { %v772_v42 = vmul.f32 0.7978846, %v708_v4  ;;  %1300 = vmatprep.mubr.bf16.mxu1 %v1103_v32  ;;  %v645_v19 = vmul.f32 0.044715, %v581_v38  ;;  %v518_v5 = vmul.f32 %v3329_v18, %v3329_v18  ;;  %v3335_v48 = vadd.f32 %v399_v6, %v3106_v55  ;;  %v407_v49 = vpop.f32.mrf.mxu0 }
 0x11f   :  { %v3337_v51 = vpop.eup %2742  ;;  %2754 = vtanh.f32 %v771_v39  ;;  %v1010_v50 = vmul.f32 %v946_v40, %v3143_v21  ;;  %v3341_v56 = vadd.f32 %v403_v20, %v3104_v54  ;;  %v885_v11 = vadd.f32 1.0, %v3266_v46 }
 0x120   :  { %2756 = vtanh.f32 %v772_v42  ;;  %v709_v58 = vadd.f32 %v645_v19, %v3312_v3  ;;  %v582_v61 = vmul.f32 %v518_v5, %v3329_v18  ;;  %v519_v62 = vmul.f32 %v3335_v48, %v3335_v48  ;;  %v409_v2 = vpop.f32.mrf.mxu0 }
 0x121   :  { %v3348_v6 = vpop.eup %2744  ;;  %v1102_v12 = vpack.c.bf16 %v1010_v50, %v1008_v41  ;;  %v520_v21 = vmul.f32 %v3341_v56, %v3341_v56  ;;  %v887_v25 = vadd.f32 1.0, %v3284_v24  ;;  %v949_v7 = vmul.f32 0.5, %v885_v11 }
 0x122   :  { %v773_v52 = vmul.f32 0.7978846, %v709_v58  ;;  %v646_v46 = vmul.f32 0.044715, %v582_v61  ;;  %v583_v13 = vmul.f32 %v519_v62, %v3335_v48  ;;  %v3355_v17 = vadd.f32 %v405_v29, %v3106_v55  ;;  %v413_v22 = vpop.f32.mrf.mxu0 }
 0x123   :  { %v3357_v20 = vpop.eup %2746  ;;  %1301 = vmatmul.mubr.bf16.gmra.mxu1 %v1102_v12  ;;  %v584_v23 = vmul.f32 %v520_v21, %v3341_v56  ;;  %v951_v27 = vmul.f32 0.5, %v887_v25  ;;  %v1013_v28 = vmul.f32 %v949_v7, %v3167_v44  ;;  %v884_v31 = vadd.f32 1.0, %v3256_v37 }
 0x124   :  { %v3362_v24 = vpop.eup %2748  ;;  %2758 = vtanh.f32 %v773_v52  ;;  %v710_v4 = vadd.f32 %v646_v46, %v3329_v18  ;;  %v647_v32 = vmul.f32 0.044715, %v583_v13  ;;  %v521_v38 = vmul.f32 %v3355_v17, %v3355_v17  ;;  %v415_v29 = vpop.f32.mrf.mxu0 }
 0x125   :  { %v648_v39 = vmul.f32 0.044715, %v584_v23  ;;  %v1015_v40 = vmul.f32 %v951_v27, %v3182_v1  ;;  %v886_v41 = vadd.f32 1.0, %v3275_v8  ;;  %v948_v42 = vmul.f32 0.5, %v884_v31 }
 0x126   :  { %v3369_v19 = vpop.eup %2750  ;;  %v774_v44 = vmul.f32 0.7978846, %v710_v4  ;;  %v711_v37 = vadd.f32 %v647_v32, %v3335_v48  ;;  %v585_v5 = vmul.f32 %v521_v38, %v3355_v17  ;;  %v3374_v50 = vadd.f32 %v407_v49, %v3104_v54  ;;  %v417_v11 = vpop.f32.mrf.mxu0 }
 0x127   :  { %v712_v58 = vadd.f32 %v648_v39, %v3341_v56  ;;  %v1105_v61 = vpack.c.bf16 %v1015_v40, %v1013_v28  ;;  %v950_v62 = vmul.f32 0.5, %v886_v41  ;;  %v1012_v1 = vmul.f32 %v948_v42, %v3160_v35 }
 0x128   :  { %2760 = vtanh.f32 %v774_v44  ;;  %v775_v8 = vmul.f32 0.7978846, %v711_v37  ;;  %v649_v12 = vmul.f32 0.044715, %v585_v5  ;;  %v522_v21 = vmul.f32 %v3374_v50, %v3374_v50  ;;  %v419_v25 = vpop.f32.mrf.mxu0 }
 0x129   :  { %v776_v7 = vmul.f32 0.7978846, %v712_v58  ;;  %1308 = vmatprep.mubr.bf16.mxu1 %v1105_v61  ;;  %v1014_v52 = vmul.f32 %v950_v62, %v3175_v53  ;;  %v3382_v49 = vadd.f32 %v409_v2, %v3106_v55  ;;  %v3385_v46 = vadd.f32 %v413_v22, %v3104_v54 }
 0x12a   :  { %v3387_v13 = vpop.eup %2752  ;;  %2762 = vtanh.f32 %v775_v8  ;;  %v713_v35 = vadd.f32 %v649_v12, %v3355_v17  ;;  %v586_v23 = vmul.f32 %v522_v21, %v3374_v50  ;;  %v889_v27 = vadd.f32 1.0, %v3301_v43  ;;  %v423_v28 = vpop.f32.mrf.mxu0 }
 0x12b   :  { %2764 = vtanh.f32 %v776_v7  ;;  %v1104_v31 = vpack.c.bf16 %v1014_v52, %v1012_v1  ;;  %v523_v53 = vmul.f32 %v3382_v49, %v3382_v49  ;;  %v524_v2 = vmul.f32 %v3385_v46, %v3385_v46 }
 0x12c   :  { %v3396_v22 = vpop.eup %2754  ;;  %v777_v4 = vmul.f32 0.7978846, %v713_v35  ;;  %v650_v32 = vmul.f32 0.044715, %v586_v23  ;;  %v891_v38 = vadd.f32 1.0, %v3316_v9  ;;  %v953_v39 = vmul.f32 0.5, %v889_v27  ;;  %v425_v40 = vpop.f32.mrf.mxu0 }
 0x12d   :  { %v3399_v41 = vpop.eup %2756  ;;  %1309 = vmatmul.mubr.bf16.gmra.mxu1 %v1104_v31  ;;  %v587_v43 = vmul.f32 %v523_v53, %v3382_v49  ;;  %v588_v42 = vmul.f32 %v524_v2, %v3385_v46  ;;  %v3404_v44 = vadd.f32 %v415_v29, %v3106_v55  ;;  %v888_v37 = vadd.f32 1.0, %v3295_v0 }
 0x12e   :  { %2766 = vtanh.f32 %v777_v4  ;;  %v714_v5 = vadd.f32 %v650_v32, %v3374_v50  ;;  %v955_v58 = vmul.f32 0.5, %v891_v38  ;;  %v1017_v9 = vmul.f32 %v953_v39, %v3193_v15  ;;  %v427_v61 = vpop.f32.mrf.mxu0 }
 0x12f   :  { %v651_v62 = vmul.f32 0.044715, %v587_v43  ;;  %v652_v1 = vmul.f32 0.044715, %v588_v42  ;;  %v525_v8 = vmul.f32 %v3404_v44, %v3404_v44  ;;  %v890_v12 = vadd.f32 1.0, %v3308_v59 }
 0x130   :  { %v778_v21 = vmul.f32 0.7978846, %v714_v5  ;;  %v1019_v29 = vmul.f32 %v955_v58, %v3211_v36  ;;  %v952_v7 = vmul.f32 0.5, %v888_v37  ;;  %v3414_v0 = vadd.f32 %v417_v11, %v3104_v54  ;;  %v3416_v52 = vpop.f32.mrf.mxu0 }
 0x131   :  { %v3418_v35 = vpop.eup %2758  ;;  %v715_v15 = vadd.f32 %v651_v62, %v3382_v49  ;;  %v716_v23 = vadd.f32 %v652_v1, %v3385_v46  ;;  %v589_v27 = vmul.f32 %v525_v8, %v3404_v44  ;;  %v954_v31 = vmul.f32 0.5, %v890_v12 }
 0x132   :  { %2768 = vtanh.f32 %v778_v21  ;;  %v1107_v59 = vpack.c.bf16 %v1019_v29, %v1017_v9  ;;  %v526_v36 = vmul.f32 %v3414_v0, %v3414_v0  ;;  %v433_v53 = vpop.f32.mrf.mxu0  ;;  %v1016_v4 = vmul.f32 %v952_v7, %v3189_v10 }
 0x133   :  { %v779_v2 = vmul.f32 0.7978846, %v715_v15  ;;  %v653_v11 = vmul.f32 0.044715, %v589_v27  ;;  %v1018_v32 = vmul.f32 %v954_v31, %v3203_v26  ;;  %v3429_v39 = vadd.f32 %v419_v25, %v3106_v55 }
 0x134   :  { %1316 = vmatprep.mubr.bf16.mxu1 %v1107_v59  ;;  %v590_v38 = vmul.f32 %v526_v36, %v3414_v0  ;;  %v3432_v43 = vadd.f32 %v423_v28, %v3104_v54  ;;  %v893_v42 = vadd.f32 1.0, %v3337_v51  ;;  %v3435_v37 = vpop.f32.mrf.mxu0  ;;  %v780_v58 = vmul.f32 0.7978846, %v716_v23 }
 0x135   :  { %v3437_v5 = vpop.eup %2760  ;;  %v717_v10 = vadd.f32 %v653_v11, %v3404_v44  ;;  %v1106_v9 = vpack.c.bf16 %v1018_v32, %v1016_v4  ;;  %v895_v26 = vadd.f32 1.0, %v3357_v20  ;;  %2770 = vtanh.f32 %v779_v2 }
 0x136   :  { %v654_v62 = vmul.f32 0.044715, %v590_v38  ;;  %v527_v25 = vmul.f32 %v3429_v39, %v3429_v39  ;;  %v528_v28 = vmul.f32 %v3432_v43, %v3432_v43  ;;  %v3445_v1 = vpop.f32.mrf.mxu0  ;;  %v957_v12 = vmul.f32 0.5, %v893_v42 }
 0x137   :  { %v3447_v51 = vpop.eup %2762  ;;  %v781_v8 = vmul.f32 0.7978846, %v717_v10  ;;  %1317 = vmatmul.mubr.bf16.gmra.mxu1 %v1106_v9  ;;  %v959_v21 = vmul.f32 0.5, %v895_v26  ;;  %v3450_v29 = vadd.f32 %v425_v40, %v3106_v55  ;;  %v892_v27 = vadd.f32 1.0, %v3324_v60 }
 0x138   :  { %v3452_v20 = vpop.eup %2764  ;;  %v718_v7 = vadd.f32 %v654_v62, %v3414_v0  ;;  %v591_v15 = vmul.f32 %v527_v25, %v3429_v39  ;;  %v592_v23 = vmul.f32 %v528_v28, %v3432_v43  ;;  %v3458_v31 = vpop.f32.mrf.mxu0  ;;  %2772 = vtanh.f32 %v780_v58 }
 0x139   :  { %v1021_v59 = vmul.f32 %v957_v12, %v3226_v63  ;;  %v1023_v36 = vmul.f32 %v959_v21, %v3249_v30  ;;  %v529_v40 = vmul.f32 %v3450_v29, %v3450_v29  ;;  %2774 = vtanh.f32 %v781_v8 }
 0x13a   :  { %v655_v2 = vmul.f32 0.044715, %v591_v15  ;;  %v656_v11 = vmul.f32 0.044715, %v592_v23  ;;  %v3465_v4 = vadd.f32 %v427_v61, %v3104_v54  ;;  %v3467_v32 = vpop.f32.mrf.mxu0  ;;  %v894_v63 = vadd.f32 1.0, %v3348_v6 }
 0x13b   :  { %v3469_v38 = vpop.eup %2766  ;;  %v1109_v60 = vpack.c.bf16 %v1023_v36, %v1021_v59  ;;  %v593_v42 = vmul.f32 %v529_v40, %v3450_v29  ;;  %v956_v58 = vmul.f32 0.5, %v892_v27  ;;  %v782_v30 = vmul.f32 0.7978846, %v718_v7 }
 0x13c   :  { %v719_v10 = vadd.f32 %v655_v2, %v3429_v39  ;;  %v720_v9 = vadd.f32 %v656_v11, %v3432_v43  ;;  %v530_v26 = vmul.f32 %v3465_v4, %v3465_v4  ;;  %v3477_v61 = vpop.f32.mrf.mxu0  ;;  %v958_v25 = vmul.f32 0.5, %v894_v63 }
 0x13d   :  { %1324 = vmatprep.mubr.bf16.mxu1 %v1109_v60  ;;  %v657_v62 = vmul.f32 0.044715, %v593_v42  ;;  %v1020_v28 = vmul.f32 %v956_v58, %v3218_v47  ;;  %v3482_v8 = vadd.f32 %v3416_v52, %v3106_v55  ;;  %v3486_v7 = vadd.f32 %v433_v53, %v3104_v54 }
 0x13e   :  { %v783_v6 = vmul.f32 0.7978846, %v719_v10  ;;  %v784_v12 = vmul.f32 0.7978846, %v720_v9  ;;  %v594_v21 = vmul.f32 %v530_v26, %v3465_v4  ;;  %v3488_v15 = vpop.f32.mrf.mxu0  ;;  %v1022_v59 = vmul.f32 %v958_v25, %v3237_v14 }
 0x13f   :  { %v3490_v23 = vpop.eup %2768  ;;  %v721_v27 = vadd.f32 %v657_v62, %v3450_v29  ;;  %v531_v47 = vmul.f32 %v3482_v8, %v3482_v8  ;;  %v897_v52 = vadd.f32 1.0, %v3369_v19  ;;  %2776 = vtanh.f32 %v782_v30 }
 0x140   :  { %v658_v36 = vmul.f32 0.044715, %v594_v21  ;;  %v532_v40 = vmul.f32 %v3486_v7, %v3486_v7  ;;  %v899_v53 = vadd.f32 1.0, %v3396_v22  ;;  %v3500_v2 = vpop.f32.mrf.mxu0  ;;  %2778 = vtanh.f32 %v783_v6 }
 0x141   :  { %v785_v11 = vmul.f32 0.7978846, %v721_v27  ;;  %v1108_v60 = vpack.c.bf16 %v1022_v59, %v1020_v28  ;;  %v595_v42 = vmul.f32 %v531_v47, %v3482_v8  ;;  %v961_v58 = vmul.f32 0.5, %v897_v52 }
 0x142   :  { %v722_v14 = vadd.f32 %v658_v36, %v3465_v4  ;;  %v596_v63 = vmul.f32 %v532_v40, %v3486_v7  ;;  %v963_v19 = vmul.f32 0.5, %v899_v53  ;;  %v3505_v30 = vpop.f32.mrf.mxu0  ;;  %v3507_v10 = vpop.eup %2770  ;;  %2780 = vtanh.f32 %v784_v12 }
 0x143   :  { %1325 = vmatmul.mubr.bf16.gmra.mxu1 %v1108_v60  ;;  %v659_v22 = vmul.f32 0.044715, %v595_v42  ;;  %v3511_v9 = vadd.f32 %v3435_v37, %v3106_v55  ;;  %v896_v26 = vadd.f32 1.0, %v3362_v24  ;;  %v1025_v28 = vmul.f32 %v961_v58, %v3264_v45 }
 0x144   :  { %v786_v62 = vmul.f32 0.7978846, %v722_v14  ;;  %v660_v25 = vmul.f32 0.044715, %v596_v63  ;;  %v1027_v6 = vmul.f32 %v963_v19, %v3290_v57  ;;  %v3516_v21 = vpop.f32.mrf.mxu0  ;;  %v898_v59 = vadd.f32 1.0, %v3387_v13 }
 0x145   :  { %v723_v27 = vadd.f32 %v659_v22, %v3482_v8  ;;  %v533_v12 = vmul.f32 %v3511_v9, %v3511_v9  ;;  %v960_v47 = vmul.f32 0.5, %v896_v26  ;;  %v3522_v37 = vpop.eup %2772  ;;  %2782 = vtanh.f32 %v785_v11 }
 0x146   :  { %v724_v24 = vadd.f32 %v660_v25, %v3486_v7  ;;  %v1111_v52 = vpack.c.bf16 %v1027_v6, %v1025_v28  ;;  %v3527_v45 = vadd.f32 %v3445_v1, %v3104_v54  ;;  %v3529_v57 = vpop.f32.mrf.mxu0  ;;  %v3531_v36 = vpop.eup %2774  ;;  %2784 = vtanh.f32 %v786_v62 }
 0x147   :  { %v597_v40 = vmul.f32 %v533_v12, %v3511_v9  ;;  %v962_v53 = vmul.f32 0.5, %v898_v59  ;;  %v787_v13 = vmul.f32 0.7978846, %v723_v27  ;;  %v3538_v60 = vadd.f32 %v3458_v31, %v3106_v55 }
 0x148   :  { %1332 = vmatprep.mubr.bf16.mxu1 %v1111_v52  ;;  %v534_v11 = vmul.f32 %v3527_v45, %v3527_v45  ;;  %v3542_v1 = vadd.f32 %v3467_v32, %v3104_v54  ;;  %v1024_v14 = vmul.f32 %v960_v47, %v3254_v34  ;;  %v901_v58 = vadd.f32 1.0, %v3418_v35  ;;  %v3552_v62 = vpop.f32.mrf.mxu0 }
 0x149   :  { %v661_v42 = vmul.f32 0.044715, %v597_v40  ;;  %v1026_v63 = vmul.f32 %v962_v53, %v3280_v16  ;;  %v788_v19 = vmul.f32 0.7978846, %v724_v24  ;;  %v535_v26 = vmul.f32 %v3538_v60, %v3538_v60 }
 0x14a   :  { %v598_v22 = vmul.f32 %v534_v11, %v3527_v45  ;;  %v536_v31 = vmul.f32 %v3542_v1, %v3542_v1  ;;  %v903_v34 = vadd.f32 1.0, %v3447_v51  ;;  %v965_v28 = vmul.f32 0.5, %v901_v58 }
 0x14b   :  { %v725_v32 = vadd.f32 %v661_v42, %v3511_v9  ;;  %v1110_v25 = vpack.c.bf16 %v1026_v63, %v1024_v14  ;;  %v599_v35 = vmul.f32 %v535_v26, %v3538_v60  ;;  %v3560_v27 = vadd.f32 %v3477_v61, %v3106_v55  ;;  %v3570_v42 = vpop.f32.mrf.mxu0 }
 0x14c   :  { %v662_v16 = vmul.f32 0.044715, %v598_v22  ;;  %v600_v6 = vmul.f32 %v536_v31, %v3542_v1  ;;  %v3562_v12 = vpop.eup %2776  ;;  %2786 = vtanh.f32 %v787_v13  ;;  %v967_v47 = vmul.f32 0.5, %v903_v34 }
 0x14d   :  { %v789_v59 = vmul.f32 0.7978846, %v725_v32  ;;  %1333 = vmatmul.mubr.bf16.gmra.mxu1 %v1110_v25  ;;  %v900_v24 = vadd.f32 1.0, %v3399_v41  ;;  %v3565_v52 = vpop.eup %2778  ;;  %v663_v40 = vmul.f32 0.044715, %v599_v35  ;;  %v537_v11 = vmul.f32 %v3560_v27, %v3560_v27  ;;  %v3585_v34 = vpop.f32.mrf.mxu0 }
 0x14e   :  { %v726_v51 = vadd.f32 %v662_v16, %v3527_v45  ;;  %v664_v53 = vmul.f32 0.044715, %v600_v6  ;;  %v1029_v61 = vmul.f32 %v965_v28, %v3312_v3  ;;  %v1031_v13 = vmul.f32 %v967_v47, %v3335_v48 }
 0x14f   :  { %v902_v14 = vadd.f32 1.0, %v3437_v5  ;;  %v964_v63 = vmul.f32 0.5, %v900_v24  ;;  %v3575_v58 = vpop.eup %2780  ;;  %2788 = vtanh.f32 %v788_v19  ;;  %v601_v22 = vmul.f32 %v537_v11, %v3560_v27 }
 0x150   :  { %v790_v41 = vmul.f32 0.7978846, %v726_v51  ;;  %v727_v26 = vadd.f32 %v663_v40, %v3538_v60  ;;  %v1113_v31 = vpack.c.bf16 %v1031_v13, %v1029_v61  ;;  %v3581_v25 = vadd.f32 %v3488_v15, %v3104_v54  ;;  %v3610_v61 = vpop.f32.mrf.mxu0 }
 0x151   :  { %v966_v32 = vmul.f32 0.5, %v902_v14  ;;  %2790 = vtanh.f32 %v789_v59  ;;  %v728_v3 = vadd.f32 %v664_v53, %v3542_v1  ;;  %v665_v48 = vmul.f32 0.044715, %v601_v22 }
 0x152   :  { %v1028_v5 = vmul.f32 %v964_v63, %v3293_v33  ;;  %v3587_v19 = vpop.eup %2782  ;;  %1340 = vmatprep.mubr.bf16.mxu1 %v1113_v31  ;;  %v538_v16 = vmul.f32 %v3581_v25, %v3581_v25  ;;  %v3594_v15 = vadd.f32 %v3500_v2, %v3106_v55  ;;  %v3598_v35 = vadd.f32 %v3505_v30, %v3104_v54 }
 0x153   :  { %v1030_v28 = vmul.f32 %v966_v32, %v3329_v18  ;;  %v3600_v6 = vpop.eup %2784  ;;  %2792 = vtanh.f32 %v790_v41  ;;  %v729_v33 = vadd.f32 %v665_v48, %v3560_v27  ;;  %v905_v59 = vadd.f32 1.0, %v3469_v38 }
 0x154   :  { %v907_v18 = vadd.f32 1.0, %v3507_v10  ;;  %v791_v47 = vmul.f32 0.7978846, %v727_v26  ;;  %v602_v51 = vmul.f32 %v538_v16, %v3581_v25  ;;  %v539_v2 = vmul.f32 %v3594_v15, %v3594_v15 }
 0x155   :  { %v1112_v24 = vpack.c.bf16 %v1030_v28, %v1028_v5  ;;  %v792_v40 = vmul.f32 0.7978846, %v728_v3  ;;  %v540_v30 = vmul.f32 %v3598_v35, %v3598_v35  ;;  %v969_v53 = vmul.f32 0.5, %v905_v59 }
 0x156   :  { %v971_v11 = vmul.f32 0.5, %v907_v18  ;;  %v666_v13 = vmul.f32 0.044715, %v602_v51  ;;  %v603_v38 = vmul.f32 %v539_v2, %v3594_v15  ;;  %v3615_v10 = vadd.f32 %v3516_v21, %v3106_v55 }
 0x157   :  { %1341 = vmatmul.mubr.bf16.gmra.mxu1 %v1112_v24  ;;  %v904_v14 = vadd.f32 1.0, %v3452_v20  ;;  %v793_v63 = vmul.f32 0.7978846, %v729_v33  ;;  %v604_v41 = vmul.f32 %v540_v30, %v3598_v35  ;;  %v1033_v22 = vmul.f32 %v969_v53, %v3355_v17  ;;  %v3631_v17 = vpop.f32.mrf.mxu0 }
 0x158   :  { %v1035_v26 = vmul.f32 %v971_v11, %v3382_v49  ;;  %v730_v31 = vadd.f32 %v666_v13, %v3581_v25  ;;  %v667_v32 = vmul.f32 0.044715, %v603_v38  ;;  %v541_v3 = vmul.f32 %v3615_v10, %v3615_v10 }
 0x159   :  { %v906_v48 = vadd.f32 1.0, %v3490_v23  ;;  %v3625_v5 = vpop.eup %2786  ;;  %v668_v21 = vmul.f32 0.044715, %v604_v41  ;;  %v968_v20 = vmul.f32 0.5, %v904_v14  ;;  %v3629_v16 = vadd.f32 %v3529_v57, %v3104_v54 }
 0x15a   :  { %v1115_v28 = vpack.c.bf16 %v1035_v26, %v1033_v22  ;;  %2794 = vtanh.f32 %v791_v47  ;;  %v731_v49 = vadd.f32 %v667_v32, %v3594_v15  ;;  %v605_v33 = vmul.f32 %v541_v3, %v3615_v10 }
 0x15b   :  { %v970_v59 = vmul.f32 0.5, %v906_v48  ;;  %2796 = vtanh.f32 %v792_v40  ;;  %v794_v18 = vmul.f32 0.7978846, %v730_v31  ;;  %v542_v23 = vmul.f32 %v3629_v16, %v3629_v16 }
 0x15c   :  { %1348 = vmatprep.mubr.bf16.mxu1 %v1115_v28  ;;  %v3639_v24 = vadd.f32 %v3552_v62, %v3106_v55  ;;  %v3641_v57 = vpop.eup %2788  ;;  %v732_v51 = vadd.f32 %v668_v21, %v3598_v35  ;;  %v669_v47 = vmul.f32 0.044715, %v605_v33  ;;  %v1032_v2 = vmul.f32 %v968_v20, %v3341_v56  ;;  %v473_v62 = vpop.f32.mrf.mxu0 }
 0x15d   :  { %v1034_v30 = vmul.f32 %v970_v59, %v3374_v50  ;;  %2798 = vtanh.f32 %v793_v63  ;;  %v606_v40 = vmul.f32 %v542_v23, %v3629_v16  ;;  %v3651_v11 = vadd.f32 %v3570_v42, %v3104_v54 }
 0x15e   :  { %v543_v53 = vmul.f32 %v3639_v24, %v3639_v24  ;;  %v3653_v13 = vpop.eup %2790  ;;  %v795_v38 = vmul.f32 0.7978846, %v731_v49  ;;  %v733_v14 = vadd.f32 %v669_v47, %v3615_v10  ;;  %v909_v56 = vadd.f32 1.0, %v3531_v36  ;;  %v475_v20 = vpop.f32.mrf.mxu0 }
 0x15f   :  { %v1114_v41 = vpack.c.bf16 %v1034_v30, %v1032_v2  ;;  %2800 = vtanh.f32 %v794_v18  ;;  %v670_v50 = vmul.f32 0.044715, %v606_v40  ;;  %v544_v22 = vmul.f32 %v3651_v11, %v3651_v11 }
 0x160   :  { %v607_v63 = vmul.f32 %v543_v53, %v3639_v24  ;;  %v3660_v26 = vpop.eup %2792  ;;  %v796_v42 = vmul.f32 0.7978846, %v732_v51  ;;  %v911_v31 = vadd.f32 1.0, %v3565_v52  ;;  %v973_v32 = vmul.f32 0.5, %v909_v56  ;;  %v477_v53 = vpop.f32.mrf.mxu0 }
 0x161   :  { %1349 = vmatmul.mubr.bf16.gmra.mxu1 %v1114_v41  ;;  %v3665_v3 = vadd.f32 %v3585_v34, %v3106_v55  ;;  %v734_v36 = vadd.f32 %v670_v50, %v3629_v16  ;;  %v608_v21 = vmul.f32 %v544_v22, %v3651_v11  ;;  %v908_v28 = vadd.f32 1.0, %v3522_v37 }
 0x162   :  { %v671_v48 = vmul.f32 0.044715, %v607_v63  ;;  %2802 = vtanh.f32 %v795_v38  ;;  %v797_v49 = vmul.f32 0.7978846, %v733_v14  ;;  %v975_v33 = vmul.f32 0.5, %v911_v31 }
 0x163   :  { %v545_v59 = vmul.f32 %v3665_v3, %v3665_v3  ;;  %v672_v18 = vmul.f32 0.044715, %v608_v21  ;;  %v1037_v34 = vmul.f32 %v973_v32, %v3404_v44  ;;  %v910_v23 = vadd.f32 1.0, %v3562_v12 }
 0x164   :  { %v735_v52 = vadd.f32 %v671_v48, %v3639_v24  ;;  %v1039_v51 = vmul.f32 %v975_v33, %v3429_v39  ;;  %v972_v2 = vmul.f32 0.5, %v908_v28  ;;  %v3679_v37 = vadd.f32 %v3610_v61, %v3104_v54 }
 0x165   :  { %v609_v47 = vmul.f32 %v545_v59, %v3665_v3  ;;  %2804 = vtanh.f32 %v796_v42  ;;  %v798_v30 = vmul.f32 0.7978846, %v734_v36  ;;  %v974_v40 = vmul.f32 0.5, %v910_v23 }
 0x166   :  { %2806 = vtanh.f32 %v797_v49  ;;  %v799_v38 = vmul.f32 0.7978846, %v735_v52  ;;  %v1117_v14 = vpack.c.bf16 %v1039_v51, %v1037_v34  ;;  %v546_v44 = vmul.f32 %v3679_v37, %v3679_v37 }
 0x167   :  { %v3683_v12 = vpop.eup %2794  ;;  %v736_v39 = vadd.f32 %v672_v18, %v3651_v11  ;;  %v1036_v41 = vmul.f32 %v972_v2, %v3385_v46  ;;  %v1038_v56 = vmul.f32 %v974_v40, %v3414_v0  ;;  %v3690_v61 = vadd.f32 %v3631_v17, %v3106_v55  ;;  %v479_v17 = vpop.f32.mrf.mxu0 }
 0x168   :  { %v3692_v50 = vpop.eup %2796  ;;  %1356 = vmatprep.mubr.bf16.mxu1 %v1117_v14  ;;  %v673_v63 = vmul.f32 0.044715, %v609_v47  ;;  %v610_v22 = vmul.f32 %v546_v44, %v3679_v37  ;;  %v3696_v42 = vadd.f32 %v473_v62, %v3104_v54  ;;  %v913_v31 = vadd.f32 1.0, %v3587_v19 }
 0x169   :  { %2808 = vtanh.f32 %v798_v30  ;;  %v1116_v32 = vpack.c.bf16 %v1038_v56, %v1036_v41  ;;  %v547_v46 = vmul.f32 %v3690_v61, %v3690_v61  ;;  %v915_v0 = vadd.f32 1.0, %v3625_v5  ;;  %v483_v2 = vpop.f32.mrf.mxu0 }
 0x16a   :  { %v3702_v36 = vpop.eup %2798  ;;  %2810 = vtanh.f32 %v799_v38  ;;  %v674_v48 = vmul.f32 0.044715, %v610_v22  ;;  %v548_v21 = vmul.f32 %v3696_v42, %v3696_v42  ;;  %v977_v28 = vmul.f32 0.5, %v913_v31 }
 0x16b   :  { %1357 = vmatmul.mubr.bf16.gmra.mxu1 %v1116_v32  ;;  %v611_v62 = vmul.f32 %v547_v46, %v3690_v61  ;;  %v979_v19 = vmul.f32 0.5, %v915_v0  ;;  %v3708_v49 = vadd.f32 %v475_v20, %v3106_v55  ;;  %v912_v33 = vadd.f32 1.0, %v3575_v58  ;;  %v485_v46 = vpop.f32.mrf.mxu0 }
 0x16c   :  { %v3711_v59 = vpop.eup %2800  ;;  %v800_v5 = vmul.f32 0.7978846, %v736_v39  ;;  %v737_v52 = vadd.f32 %v673_v63, %v3665_v3  ;;  %v612_v18 = vmul.f32 %v548_v21, %v3696_v42  ;;  %v1041_v34 = vmul.f32 %v977_v28, %v3450_v29 }
 0x16d   :  { %v675_v23 = vmul.f32 0.044715, %v611_v62  ;;  %v1043_v51 = vmul.f32 %v979_v19, %v3482_v8  ;;  %v549_v47 = vmul.f32 %v3708_v49, %v3708_v49  ;;  %v914_v20 = vadd.f32 1.0, %v3600_v6 }
 0x16e   :  { %v738_v58 = vadd.f32 %v674_v48, %v3679_v37  ;;  %v676_v30 = vmul.f32 0.044715, %v612_v18  ;;  %v976_v40 = vmul.f32 0.5, %v912_v33  ;;  %v3722_v38 = vadd.f32 %v477_v53, %v3104_v54 }
 0x16f   :  { %v3724_v14 = vpop.eup %2802  ;;  %v739_v29 = vadd.f32 %v675_v23, %v3690_v61  ;;  %v1119_v44 = vpack.c.bf16 %v1043_v51, %v1041_v34  ;;  %v613_v8 = vmul.f32 %v549_v47, %v3708_v49  ;;  %v978_v39 = vmul.f32 0.5, %v914_v20  ;;  %v487_v23 = vpop.f32.mrf.mxu0 }
 0x170   :  { %v801_v41 = vmul.f32 0.7978846, %v737_v52  ;;  %v740_v56 = vadd.f32 %v676_v30, %v3696_v42  ;;  %v1040_v6 = vmul.f32 %v976_v40, %v3432_v43  ;;  %v550_v63 = vmul.f32 %v3722_v38, %v3722_v38 }
 0x171   :  { %v803_v22 = vmul.f32 0.7978846, %v739_v29  ;;  %1364 = vmatprep.mubr.bf16.mxu1 %v1119_v44  ;;  %v677_v53 = vmul.f32 0.044715, %v613_v8  ;;  %v1042_v31 = vmul.f32 %v978_v39, %v3465_v4  ;;  %v3734_v32 = vadd.f32 %v479_v17, %v3106_v55 }
 0x172   :  { %v3736_v0 = vpop.eup %2804  ;;  %2812 = vtanh.f32 %v800_v5  ;;  %v614_v48 = vmul.f32 %v550_v63, %v3722_v38  ;;  %v3740_v21 = vadd.f32 %v483_v2, %v3104_v54  ;;  %v917_v43 = vadd.f32 1.0, %v3653_v13  ;;  %v489_v63 = vpop.f32.mrf.mxu0 }
 0x173   :  { %v3743_v28 = vpop.eup %2806  ;;  %v802_v62 = vmul.f32 0.7978846, %v738_v58  ;;  %v741_v19 = vadd.f32 %v677_v53, %v3708_v49  ;;  %v1118_v4 = vpack.c.bf16 %v1042_v31, %v1040_v6  ;;  %v551_v17 = vmul.f32 %v3734_v32, %v3734_v32 }
 0x174   :  { %2814 = vtanh.f32 %v801_v41  ;;  %v804_v33 = vmul.f32 0.7978846, %v740_v56  ;;  %v678_v52 = vmul.f32 0.044715, %v614_v48  ;;  %v919_v5 = vadd.f32 1.0, %v3683_v12 }
 0x175   :  { %2816 = vtanh.f32 %v803_v22  ;;  %1365 = vmatmul.mubr.bf16.gmra.mxu1 %v1118_v4  ;;  %v615_v18 = vmul.f32 %v551_v17, %v3734_v32  ;;  %v981_v34 = vmul.f32 0.5, %v917_v43  ;;  %v3751_v13 = vadd.f32 %v485_v46, %v3106_v55 }
 0x176   :  { %v3753_v51 = vpop.eup %2808  ;;  %v805_v47 = vmul.f32 0.7978846, %v741_v19  ;;  %v552_v20 = vmul.f32 %v3740_v21, %v3740_v21  ;;  %v983_v2 = vmul.f32 0.5, %v919_v5  ;;  %v916_v58 = vadd.f32 1.0, %v3641_v57 }
 0x177   :  { %v2811_v30 = vpop.eup %2810  ;;  %2818 = vtanh.f32 %v802_v62  ;;  %v742_v12 = vadd.f32 %v678_v52, %v3722_v38  ;;  %v679_v40 = vmul.f32 0.044715, %v615_v18  ;;  %v553_v29 = vmul.f32 %v3751_v13, %v3751_v13 }
 0x178   :  { %2820 = vtanh.f32 %v804_v33  ;;  %v1045_v44 = vmul.f32 %v981_v34, %v3511_v9  ;;  %v1047_v8 = vmul.f32 %v983_v2, %v3538_v60  ;;  %v918_v39 = vadd.f32 1.0, %v3660_v26 }
 0x179   :  { %v743_v41 = vadd.f32 %v679_v40, %v3734_v32  ;;  %v617_v56 = vmul.f32 %v553_v29, %v3751_v13  ;;  %v980_v57 = vmul.f32 0.5, %v916_v58  ;;  %v3767_v6 = vadd.f32 %v487_v23, %v3104_v54 }
 0x17a   :  { %2822 = vtanh.f32 %v805_v47  ;;  %v616_v22 = vmul.f32 %v552_v20, %v3740_v21  ;;  %v1121_v53 = vpack.c.bf16 %v1047_v8, %v1045_v44  ;;  %v982_v31 = vmul.f32 0.5, %v918_v39 }
 0x17b   :  { %v806_v46 = vmul.f32 0.7978846, %v742_v12  ;;  %v807_v9 = vmul.f32 0.7978846, %v743_v41  ;;  %v681_v48 = vmul.f32 0.044715, %v617_v56  ;;  %v554_v60 = vmul.f32 %v3767_v6, %v3767_v6 }
 0x17c   :  { %1372 = vmatprep.mubr.bf16.mxu1 %v1121_v53  ;;  %v1044_v26 = vmul.f32 %v980_v57, %v3486_v7  ;;  %v1046_v43 = vmul.f32 %v982_v31, %v3527_v45  ;;  %v3775_v54 = vadd.f32 %v489_v63, %v3106_v55  ;;  %v921_v62 = vadd.f32 1.0, %v3702_v36 }
 0x17d   :  { %2824 = vtanh.f32 %v807_v9  ;;  %v745_v19 = vadd.f32 %v681_v48, %v3751_v13  ;;  %v618_v4 = vmul.f32 %v554_v60, %v3767_v6  ;;  %v923_v17 = vadd.f32 1.0, %v3724_v14 }
 0x17e   :  { %v680_v33 = vmul.f32 0.044715, %v616_v22  ;;  %v1120_v52 = vpack.c.bf16 %v1046_v43, %v1044_v26  ;;  %v555_v5 = vmul.f32 %v3775_v54, %v3775_v54  ;;  %v985_v7 = vmul.f32 0.5, %v921_v62 }
 0x17f   :  { %v2813_v18 = vpop.eup %2812  ;;  %v809_v45 = vmul.f32 0.7978846, %v745_v19  ;;  %v682_v34 = vmul.f32 0.044715, %v618_v4  ;;  %v987_v55 = vmul.f32 0.5, %v923_v17  ;;  %v920_v23 = vadd.f32 1.0, %v3692_v50 }
 0x180   :  { %2826 = vtanh.f32 %v806_v46  ;;  %1373 = vmatmul.mubr.bf16.gmra.mxu1 %v1120_v52  ;;  %v619_v36 = vmul.f32 %v555_v5, %v3775_v54  ;;  %v922_v47 = vadd.f32 1.0, %v3711_v59  ;;  %v925_v14 = vadd.f32 1.0, %v3743_v28 }
 0x181   :  { %v2815_v20 = vpop.eup %2814  ;;  %v746_v2 = vadd.f32 %v682_v34, %v3767_v6  ;;  %v1049_v58 = vmul.f32 %v985_v7, %v3560_v27  ;;  %v1051_v12 = vmul.f32 %v987_v55, %v3594_v15  ;;  %v984_v40 = vmul.f32 0.5, %v920_v23 }
 0x182   :  { %v2817_v29 = vpop.eup %2816  ;;  %v683_v44 = vmul.f32 0.044715, %v619_v36  ;;  %v986_v8 = vmul.f32 0.5, %v922_v47  ;;  %v927_v50 = vadd.f32 1.0, %v2811_v30  ;;  %v989_v39 = vmul.f32 0.5, %v925_v14 }
 0x183   :  { %v744_v41 = vadd.f32 %v680_v33, %v3740_v21  ;;  %2828 = vtanh.f32 %v809_v45  ;;  %v1123_v56 = vpack.c.bf16 %v1051_v12, %v1049_v58  ;;  %v1048_v59 = vmul.f32 %v984_v40, %v3542_v1 }
 0x184   :  { %v2819_v28 = vpop.eup %2818  ;;  %v747_v57 = vadd.f32 %v683_v44, %v3775_v54  ;;  %v1050_v63 = vmul.f32 %v986_v8, %v3581_v25  ;;  %v991_v27 = vmul.f32 0.5, %v927_v50  ;;  %v924_v15 = vadd.f32 1.0, %v3736_v0 }
 0x185   :  { %v2821_v22 = vpop.eup %2820  ;;  %v810_v53 = vmul.f32 0.7978846, %v746_v2  ;;  %1380 = vmatprep.mubr.bf16.mxu1 %v1123_v56  ;;  %v1053_v30 = vmul.f32 %v989_v39, %v3615_v10  ;;  %v926_v31 = vadd.f32 1.0, %v3753_v51  ;;  %v929_v46 = vadd.f32 1.0, %v2815_v20 }
 0x186   :  { %v811_v9 = vmul.f32 0.7978846, %v747_v57  ;;  %v1122_v48 = vpack.c.bf16 %v1050_v63, %v1048_v59  ;;  %v1055_v1 = vmul.f32 %v991_v27, %v3639_v24  ;;  %v931_v60 = vadd.f32 1.0, %v2817_v29 }
 0x187   :  { %v2823_v26 = vpop.eup %2822  ;;  %v808_v43 = vmul.f32 0.7978846, %v744_v41  ;;  %v990_v62 = vmul.f32 0.5, %v926_v31  ;;  %v993_v25 = vmul.f32 0.5, %v929_v46  ;;  %v988_v19 = vmul.f32 0.5, %v924_v15 }
 0x188   :  { %2830 = vtanh.f32 %v811_v9  ;;  %1381 = vmatmul.mubr.bf16.gmra.mxu1 %v1122_v48  ;;  %v1125_v0 = vpack.c.bf16 %v1055_v1, %v1053_v30  ;;  %v995_v4 = vmul.f32 0.5, %v931_v60  ;;  %v930_v33 = vadd.f32 1.0, %v2819_v28 }
 0x189   :  { %2832 = vtanh.f32 %v810_v53  ;;  %v1054_v10 = vmul.f32 %v990_v62, %v3629_v16  ;;  %v1057_v24 = vmul.f32 %v993_v25, %v3665_v3  ;;  %v933_v52 = vadd.f32 1.0, %v2823_v26 }
 0x18a   :  { %v2825_v17 = vpop.eup %2824  ;;  %1388 = vmatprep.mubr.bf16.mxu1 %v1125_v0  ;;  %v1059_v51 = vmul.f32 %v995_v4, %v3690_v61  ;;  %2834 = vtanh.f32 %v808_v43  ;;  %v1052_v7 = vmul.f32 %v988_v19, %v3598_v35  ;;  %v928_v45 = vadd.f32 1.0, %v2813_v18  ;;  %v2509_v19 = vld [vmem:[%s4308_s0 + $0x8] sm:$0xff]  }
 0x18b   :  { %v935_v5 = vadd.f32 1.0, %v2825_v17  ;;  %v994_v47 = vmul.f32 0.5, %v930_v33  ;;  %v997_v14 = vmul.f32 0.5, %v933_v52  ;;  %v932_v18 = vadd.f32 1.0, %v2821_v22 }
 0x18c   :  { %v1127_v55 = vpack.c.bf16 %v1059_v51, %v1057_v24  ;;  %v1124_v36 = vpack.c.bf16 %v1054_v10, %v1052_v7  ;;  %v992_v16 = vmul.f32 0.5, %v928_v45  ;;  %v2371_v10 = vunpack.c.l.bf16 %v2509_v19 }
 0x18d   :  { %v2827_v34 = vpop.eup %2826  ;;  %v999_v23 = vmul.f32 0.5, %v935_v5  ;;  %v1058_v3 = vmul.f32 %v994_v47, %v3679_v37  ;;  %v1061_v58 = vmul.f32 %v997_v14, %v3708_v49  ;;  %v996_v56 = vmul.f32 0.5, %v932_v18  ;;  %v2511_v18 = vld [vmem:[%s4308_s0 + $0x18] sm:$0xff]  }
 0x18e   :  { %v934_v2 = vadd.f32 1.0, %v2827_v34  ;;  %v1056_v35 = vmul.f32 %v992_v16, %v3651_v11  ;;  %v2372_v7 = vunpack.c.h.bf16 %v2509_v19 }
 0x18f   :  { %v1063_v61 = vmul.f32 %v999_v23, %v3734_v32  ;;  %v1060_v57 = vmul.f32 %v996_v56, %v3696_v42  ;;  %v3818_v42 = vld [vmem:[%s4311_s4] ss:$0 sm:$0xff] }
 0x190   :  { %v2829_v20 = vpop.eup %2828  ;;  %1389 = vmatmul.mubr.bf16.gmra.mxu1 %v1124_v36  ;;  %v1126_v44 = vpack.c.bf16 %v1058_v3, %v1056_v35  ;;  %v998_v8 = vmul.f32 0.5, %v934_v2 }
 0x191   :  { %1396 = vmatprep.mubr.bf16.mxu1 %v1127_v55  ;;  %v937_v12 = vadd.f32 1.0, %v2829_v20  ;;  %v1129_v29 = vpack.c.bf16 %v1063_v61, %v1061_v58  ;;  %v2510_v55 = vld [vmem:[%s4308_s0 + $0x10] sm:$0xff]  }
 0x192   :  { %v1062_v37 = vmul.f32 %v998_v8, %v3722_v38  ;;  %v2375_v14 = vunpack.c.l.bf16 %v2510_v55  ;;  %v2376_v58 = vunpack.c.h.bf16 %v2510_v55  ;;  %v2379_v8 = vunpack.c.l.bf16 %v2511_v18 }
 0x193   :  { %v1001_v41 = vmul.f32 0.5, %v937_v12 }
 0x194   :  { %v1128_v15 = vpack.c.bf16 %v1062_v37, %v1060_v57 }
 0x195   :  { %v2831_v40 = vpop.eup %2830  ;;  %v1065_v11 = vmul.f32 %v1001_v41, %v3751_v13  ;;  %v2366_v13 = vld [vmem:[%s4308_s0] sm:$0xff]  }
 0x196   :  { %v939_v50 = vadd.f32 1.0, %v2831_v40  ;;  %v2833_v39 = vpop.eup %2832  ;;  %v2367_v48 = vunpack.c.l.bf16 %v2366_v13  ;;  %v2368_v43 = vunpack.c.h.bf16 %v2366_v13 }
 0x197   :  { %v2835_v32 = vpop.eup %2834  ;;  %v938_v28 = vadd.f32 1.0, %v2833_v39 }
 0x198   :  { %1397 = vmatmul.mubr.bf16.gmra.mxu1 %v1126_v44  ;;  %v1003_v59 = vmul.f32 0.5, %v939_v50  ;;  %v936_v63 = vadd.f32 1.0, %v2835_v32  ;;  %v2380_v32 = vunpack.c.h.bf16 %v2511_v18 }
 0x199   :  { %1404 = vmatprep.mubr.bf16.mxu1 %v1129_v29  ;;  %v1002_v22 = vmul.f32 0.5, %v938_v28 }
 0x19a   :  { %v1067_v49 = vmul.f32 %v1003_v59, %v3775_v54  ;;  %v1000_v53 = vmul.f32 0.5, %v936_v63 }
 0x19b   :  { %v1066_v30 = vmul.f32 %v1002_v22, %v3767_v6 }
 0x19c   :  { %v1131_v27 = vpack.c.bf16 %v1067_v49, %v1065_v11  ;;  %v1064_v31 = vmul.f32 %v1000_v53, %v3740_v21  ;;  %v2512_v11 = vld [vmem:[%s4308_s0 + $0x20] sm:$0xff]  }
 0x19e   :  { %v1130_v46 = vpack.c.bf16 %v1066_v30, %v1064_v31 }
 0x1a0   :  { %1405 = vmatmul.mubr.bf16.gmra.mxu1 %v1128_v15 }
 0x1a1   :  { %1412 = vmatprep.mubr.bf16.mxu1 %v1131_v27  ;;  %v2383_v27 = vunpack.c.l.bf16 %v2512_v11 }
 0x1a8   :  { %1413 = vmatmul.mubr.bf16.gmra.mxu1 %v1130_v46  ;;  %v2384_v46 = vunpack.c.h.bf16 %v2512_v11 }
 0x1d6   :  { %v2555_v38 = vpop.f32.mrf.mxu1 }
 0x1d8   :  { %v2556_v54 = vpop.f32.mrf.mxu1 }
 0x1d9   :  { %v2557_v9 = vadd.f32 %v2556_v54, %v2555_v38  ;;  %v2513_v54 = vld [vmem:[%s4308_s0 + $0x28] sm:$0xff]  }
 0x1da   :  { %v2558_v1 = vpop.f32.mrf.mxu1  ;;  %v2388_v19 = vunpack.c.h.bf16 %v2513_v54 }
 0x1db   :  { %v1527_v6 = vadd.f32 %v2557_v9, %v3818_v42 }
 0x1dc   :  { %v2559_v60 = vpop.f32.mrf.mxu1 }
 0x1dd   :  { %v2560_v21 = vadd.f32 %v2559_v60, %v2558_v1  ;;  %v3821_v26 = vadd.f32 %v2367_v48, %v1527_v6  ;;  %v2387_v6 = vunpack.c.l.bf16 %v2513_v54 }
 0x1df   :  { %v1528_v62 = vadd.f32 %v2560_v21, %v3818_v42  ;;  %1655 = vadd.xlane.f32.xlu0 %v3821_v26 }
 0x1e1   :  { %v3825_v25 = vadd.f32 %v2368_v43, %v1528_v62 }
 0x1e3   :  { %v2561_v0 = vpop.f32.mrf.mxu1  ;;  %1657 = vadd.xlane.f32.xlu0 %v3825_v25 }
 0x1e5   :  { %v2562_v4 = vpop.f32.mrf.mxu1 }
 0x1e6   :  { %v2563_v17 = vadd.f32 %v2562_v4, %v2561_v0 }
 0x1e7   :  { %v2564_v51 = vpop.f32.mrf.mxu1 }
 0x1e8   :  { %v1529_v33 = vadd.f32 %v2563_v17, %v3818_v42 }
 0x1e9   :  { %v2565_v24 = vpop.f32.mrf.mxu1 }
 0x1ea   :  { %v2566_v52 = vadd.f32 %v2565_v24, %v2564_v51  ;;  %v3832_v5 = vadd.f32 %v2371_v10, %v1529_v33  ;;  %v2514_v10 = vld [vmem:[%s4308_s0 + $0x30] sm:$0xff]  }
 0x1ec   :  { %v1530_v45 = vadd.f32 %v2566_v52, %v3818_v42  ;;  %1659 = vadd.xlane.f32.xlu1 %v3832_v5  ;;  %v2391_v52 = vunpack.c.l.bf16 %v2514_v10 }
 0x1ed   :  { %v2567_v34 = vpop.f32.mrf.mxu1 }
 0x1ee   :  { %v3839_v23 = vadd.f32 %v2372_v7, %v1530_v45 }
 0x1ef   :  { %v2568_v36 = vpop.f32.mrf.mxu1 }
 0x1f0   :  { %v2569_v47 = vadd.f32 %v2568_v36, %v2567_v34  ;;  %1661 = vadd.xlane.f32.xlu1 %v3839_v23 }
 0x1f1   :  { %v2570_v20 = vpop.f32.mrf.mxu1 }
 0x1f2   :  { %v1531_v16 = vadd.f32 %v2569_v47, %v3818_v42  ;;  %v2392_v47 = vunpack.c.h.bf16 %v2514_v10 }
 0x1f3   :  { %v2571_v61 = vpop.f32.mrf.mxu1 }
 0x1f4   :  { %v2572_v3 = vadd.f32 %v2571_v61, %v2570_v20  ;;  %v3843_v2 = vadd.f32 %v2375_v14, %v1531_v16  ;;  %v2515_v16 = vld [vmem:[%s4308_s0 + $0x38] sm:$0xff]  }
 0x1f6   :  { %v1532_v12 = vadd.f32 %v2572_v3, %v3818_v42  ;;  %1663 = vadd.xlane.f32.xlu0 %v3843_v2 }
 0x1f7   :  { %v2573_v35 = vpop.f32.mrf.mxu1 }
 0x1f8   :  { %v3850_v40 = vadd.f32 %v2376_v58, %v1532_v12  ;;  %v2395_v12 = vunpack.c.l.bf16 %v2515_v16 }
 0x1f9   :  { %v2574_v29 = vpop.f32.mrf.mxu1 }
 0x1fa   :  { %v2575_v44 = vadd.f32 %v2574_v29, %v2573_v35  ;;  %1665 = vadd.xlane.f32.xlu1 %v3850_v40 }
 0x1fb   :  { %v2576_v50 = vpop.f32.mrf.mxu1 }
 0x1fc   :  { %v1533_v39 = vadd.f32 %v2575_v44, %v3818_v42 }
 0x1fd   :  { %v2577_v41 = vpop.f32.mrf.mxu1 }
 0x1fe   :  { %v2578_v56 = vadd.f32 %v2577_v41, %v2576_v50  ;;  %v3854_v59 = vadd.f32 %v2379_v8, %v1533_v39  ;;  %v2396_v50 = vunpack.c.h.bf16 %v2515_v16 }
 0x200   :  { %v1534_v37 = vadd.f32 %v2578_v56, %v3818_v42  ;;  %1667 = vadd.xlane.f32.xlu0 %v3854_v59 }
 0x202   :  { %v3858_v49 = vadd.f32 %v2380_v32, %v1534_v37  ;;  %v2516_v32 = vld [vmem:[%s4308_s0 + $0x40] sm:$0xff]  }
 0x203   :  { %v2579_v28 = vpop.f32.mrf.mxu1  ;;  %v2399_v11 = vunpack.c.l.bf16 %v2516_v32 }
 0x204   :  { %1669 = vadd.xlane.f32.xlu1 %v3858_v49 }
 0x205   :  { %v2580_v57 = vpop.f32.mrf.mxu1 }
 0x206   :  { %v2581_v63 = vadd.f32 %v2580_v57, %v2579_v28 }
 0x207   :  { %v2582_v15 = vpop.f32.mrf.mxu1 }
 0x208   :  { %v1535_v22 = vadd.f32 %v2581_v63, %v3818_v42 }
 0x209   :  { %v2583_v53 = vpop.f32.mrf.mxu1 }
 0x20a   :  { %v2584_v30 = vadd.f32 %v2583_v53, %v2582_v15  ;;  %v3865_v31 = vadd.f32 %v2383_v27, %v1535_v22  ;;  %v2400_v53 = vunpack.c.h.bf16 %v2516_v32 }
 0x20c   :  { %v1536_v38 = vadd.f32 %v2584_v30, %v3818_v42  ;;  %1671 = vadd.xlane.f32.xlu0 %v3865_v31 }
 0x20d   :  { %v2585_v13 = vpop.f32.mrf.mxu1 }
 0x20e   :  { %v3872_v9 = vadd.f32 %v2384_v46, %v1536_v38  ;;  %v2517_v38 = vld [vmem:[%s4308_s0 + $0x48] sm:$0xff]  }
 0x20f   :  { %v2586_v48 = vpop.f32.mrf.mxu1 }
 0x210   :  { %v2587_v1 = vadd.f32 %v2586_v48, %v2585_v13  ;;  %1673 = vadd.xlane.f32.xlu1 %v3872_v9 }
 0x211   :  { %v2588_v60 = vpop.f32.mrf.mxu1 }
 0x212   :  { %v1537_v21 = vadd.f32 %v2587_v1, %v3818_v42  ;;  %v2403_v1 = vunpack.c.l.bf16 %v2517_v38 }
 0x213   :  { %v2589_v43 = vpop.f32.mrf.mxu1 }
 0x214   :  { %v2590_v62 = vadd.f32 %v2589_v43, %v2588_v60  ;;  %v3876_v0 = vadd.f32 %v2387_v6, %v1537_v21 }
 0x216   :  { %v1538_v4 = vadd.f32 %v2590_v62, %v3818_v42  ;;  %1675 = vadd.xlane.f32.xlu0 %v3876_v0 }
 0x217   :  { %v2591_v17 = vpop.f32.mrf.mxu1 }
 0x218   :  { %v3883_v51 = vadd.f32 %v2388_v19, %v1538_v4  ;;  %v2404_v19 = vunpack.c.h.bf16 %v2517_v38 }
 0x219   :  { %v2592_v33 = vpop.f32.mrf.mxu1 }
 0x21a   :  { %v2593_v24 = vadd.f32 %v2592_v33, %v2591_v17  ;;  %1677 = vadd.xlane.f32.xlu1 %v3883_v51  ;;  %v2518_v33 = vld [vmem:[%s4308_s0 + $0x50] sm:$0xff]  }
 0x21b   :  { %v2594_v7 = vpop.f32.mrf.mxu1 }
 0x21c   :  { %v1539_v45 = vadd.f32 %v2593_v24, %v3818_v42 }
 0x21d   :  { %v2595_v34 = vpop.f32.mrf.mxu1 }
 0x21e   :  { %v2596_v55 = vadd.f32 %v2595_v34, %v2594_v7  ;;  %v3887_v36 = vadd.f32 %v2391_v52, %v1539_v45  ;;  %v2407_v7 = vunpack.c.l.bf16 %v2518_v33 }
 0x220   :  { %v1540_v14 = vadd.f32 %v2596_v55, %v3818_v42  ;;  %1679 = vadd.xlane.f32.xlu0 %v3887_v36 }
 0x221   :  { %v2597_v20 = vpop.f32.mrf.mxu1 }
 0x222   :  { %v3894_v61 = vadd.f32 %v2392_v47, %v1540_v14 }
 0x223   :  { %v2598_v3 = vpop.f32.mrf.mxu1 }
 0x224   :  { %v2599_v58 = vadd.f32 %v2598_v3, %v2597_v20  ;;  %1681 = vadd.xlane.f32.xlu1 %v3894_v61  ;;  %v2408_v20 = vunpack.c.h.bf16 %v2518_v33  ;;  %v2519_v3 = vld [vmem:[%s4308_s0 + $0x58] sm:$0xff]  }
 0x225   :  { %v2600_v35 = vpop.f32.mrf.mxu1 }
 0x226   :  { %v1541_v18 = vadd.f32 %v2599_v58, %v3818_v42 }
 0x227   :  { %v2601_v29 = vpop.f32.mrf.mxu1 }
 0x228   :  { %v2602_v44 = vadd.f32 %v2601_v29, %v2600_v35  ;;  %v3898_v8 = vadd.f32 %v2395_v12, %v1541_v18  ;;  %v2411_v29 = vunpack.c.l.bf16 %v2519_v3 }
 0x22a   :  { %v1542_v39 = vadd.f32 %v2602_v44, %v3818_v42  ;;  %1683 = vadd.xlane.f32.xlu0 %v3898_v8 }
 0x22b   :  { %v2603_v41 = vpop.f32.mrf.mxu1 }
 0x22c   :  { %v3902_v56 = vadd.f32 %v2396_v50, %v1542_v39 }
 0x22d   :  { %v2604_v37 = vpop.f32.mrf.mxu1 }
 0x22e   :  { %1685 = vadd.xlane.f32.xlu1 %v3902_v56  ;;  %v2605_v28 = vadd.f32 %v2604_v37, %v2603_v41  ;;  %v2412_v37 = vunpack.c.h.bf16 %v2519_v3 }
 0x22f   :  { %v2606_v57 = vpop.f32.mrf.mxu1 }
 0x230   :  { %v1543_v63 = vadd.f32 %v2605_v28, %v3818_v42 }
 0x231   :  { %v2607_v27 = vpop.f32.mrf.mxu1 }
 0x232   :  { %v2608_v15 = vadd.f32 %v2607_v27, %v2606_v57  ;;  %v3909_v22 = vadd.f32 %v2399_v11, %v1543_v63  ;;  %v2520_v11 = vld [vmem:[%s4308_s0 + $0x60] sm:$0xff]  }
 0x234   :  { %v1544_v30 = vadd.f32 %v2608_v15, %v3818_v42  ;;  %1687 = vadd.xlane.f32.xlu0 %v3909_v22 }
 0x235   :  { %v2609_v46 = vpop.f32.mrf.mxu1 }
 0x236   :  { %v3916_v13 = vadd.f32 %v2400_v53, %v1544_v30  ;;  %v2415_v53 = vunpack.c.l.bf16 %v2520_v11 }
 0x237   :  { %v2610_v54 = vpop.f32.mrf.mxu1 }
 0x238   :  { %v2611_v48 = vadd.f32 %v2610_v54, %v2609_v46  ;;  %1689 = vadd.xlane.f32.xlu1 %v3916_v13 }
 0x239   :  { %v2612_v6 = vpop.f32.mrf.mxu1 }
 0x23a   :  { %v1545_v60 = vadd.f32 %v2611_v48, %v3818_v42 }
 0x23b   :  { %v2613_v21 = vpop.f32.mrf.mxu1 }
 0x23c   :  { %v2614_v43 = vadd.f32 %v2613_v21, %v2612_v6  ;;  %v3920_v62 = vadd.f32 %v2403_v1, %v1545_v60  ;;  %v2416_v1 = vunpack.c.h.bf16 %v2520_v11  ;;  %v2521_v60 = vld [vmem:[%s4308_s0 + $0x68] sm:$0xff]   ;;  %v2523_v11 = vld [vmem:[%s4308_s0 + $0x78] sm:$0xff]  }
 0x23e   :  { %v1546_v4 = vadd.f32 %v2614_v43, %v3818_v42  ;;  %1691 = vadd.xlane.f32.xlu0 %v3920_v62 }
 0x240   :  { %v2615_v17 = vpop.f32.mrf.mxu1  ;;  %v3924_v10 = vadd.f32 %v2404_v19, %v1546_v4 }
 0x242   :  { %v2616_v24 = vpop.f32.mrf.mxu1  ;;  %1693 = vadd.xlane.f32.xlu1 %v3924_v10 }
 0x243   :  { %v2617_v52 = vadd.f32 %v2616_v24, %v2615_v17  ;;  %v2419_v17 = vunpack.c.l.bf16 %v2521_v60 }
 0x244   :  { %v2618_v45 = vpop.f32.mrf.mxu1 }
 0x245   :  { %v1547_v34 = vadd.f32 %v2617_v52, %v3818_v42 }
 0x246   :  { %v2619_v55 = vpop.f32.mrf.mxu1 }
 0x247   :  { %v2620_v47 = vadd.f32 %v2619_v55, %v2618_v45  ;;  %v3931_v14 = vadd.f32 %v2407_v7, %v1547_v34  ;;  %v2420_v34 = vunpack.c.h.bf16 %v2521_v60 }
 0x248   :  { %v2621_v16 = vpop.f32.mrf.mxu1 }
 0x249   :  { %v1548_v58 = vadd.f32 %v2620_v47, %v3818_v42  ;;  %1695 = vadd.xlane.f32.xlu0 %v3931_v14  ;;  %v2522_v47 = vld [vmem:[%s4308_s0 + $0x70] sm:$0xff]  }
 0x24a   :  { %v2622_v12 = vpop.f32.mrf.mxu1 }
 0x24b   :  { %v2623_v35 = vadd.f32 %v2622_v12, %v2621_v16  ;;  %v3938_v18 = vadd.f32 %v2408_v20, %v1548_v58  ;;  %v2423_v12 = vunpack.c.l.bf16 %v2522_v47 }
 0x24c   :  { %v2624_v44 = vpop.f32.mrf.mxu1 }
 0x24d   :  { %v1549_v50 = vadd.f32 %v2623_v35, %v3818_v42  ;;  %1697 = vadd.xlane.f32.xlu1 %v3938_v18 }
 0x24e   :  { %v2625_v39 = vpop.f32.mrf.mxu1 }
 0x24f   :  { %v2626_v41 = vadd.f32 %v2625_v39, %v2624_v44  ;;  %v3942_v32 = vadd.f32 %v2411_v29, %v1549_v50 }
 0x250   :  { %v2627_v28 = vpop.f32.mrf.mxu1 }
 0x251   :  { %v1550_v57 = vadd.f32 %v2626_v41, %v3818_v42  ;;  %1699 = vadd.xlane.f32.xlu0 %v3942_v32  ;;  %v2424_v41 = vunpack.c.h.bf16 %v2522_v47 }
 0x252   :  { %v2628_v63 = vpop.f32.mrf.mxu1 }
 0x253   :  { %v2629_v27 = vadd.f32 %v2628_v63, %v2627_v28  ;;  %v3949_v15 = vadd.f32 %v2412_v37, %v1550_v57 }
 0x254   :  { %v2630_v30 = vpop.f32.mrf.mxu1 }
 0x255   :  { %v1551_v46 = vadd.f32 %v2629_v27, %v3818_v42  ;;  %1701 = vadd.xlane.f32.xlu1 %v3949_v15 }
 0x256   :  { %v2631_v38 = vpop.f32.mrf.mxu1 }
 0x257   :  { %v2632_v54 = vadd.f32 %v2631_v38, %v2630_v30  ;;  %v3953_v48 = vadd.f32 %v2415_v53, %v1551_v46  ;;  %v2427_v46 = vunpack.c.l.bf16 %v2523_v11 }
 0x258   :  { %v2633_v6 = vpop.f32.mrf.mxu1 }
 0x259   :  { %v1552_v21 = vadd.f32 %v2632_v54, %v3818_v42  ;;  %1703 = vadd.xlane.f32.xlu0 %v3953_v48 }
 0x25a   :  { %v2634_v43 = vpop.f32.mrf.mxu1 }
 0x25b   :  { %v2635_v19 = vadd.f32 %v2634_v43, %v2633_v6  ;;  %v3960_v4 = vadd.f32 %v2416_v1, %v1552_v21 }
 0x25c   :  { %v2636_v33 = vpop.f32.mrf.mxu1 }
 0x25d   :  { %v1553_v24 = vadd.f32 %v2635_v19, %v3818_v42  ;;  %1705 = vadd.xlane.f32.xlu1 %v3960_v4 }
 0x25e   :  { %v2637_v52 = vpop.f32.mrf.mxu1 }
 0x25f   :  { %v2638_v7 = vadd.f32 %v2637_v52, %v2636_v33  ;;  %v3964_v45 = vadd.f32 %v2419_v17, %v1553_v24  ;;  %v2428_v17 = vunpack.c.h.bf16 %v2523_v11 }
 0x260   :  { %v2639_v55 = vpop.f32.mrf.mxu1 }
 0x261   :  { %v1554_v20 = vadd.f32 %v2638_v7, %v3818_v42  ;;  %1707 = vadd.xlane.f32.xlu0 %v3964_v45 }
 0x262   :  { %v2640_v16 = vpop.f32.mrf.mxu1 }
 0x263   :  { %v2641_v3 = vadd.f32 %v2640_v16, %v2639_v55  ;;  %v3971_v58 = vadd.f32 %v2420_v34, %v1554_v20 }
 0x264   :  { %v2642_v35 = vpop.f32.mrf.mxu1 }
 0x265   :  { %v1555_v29 = vadd.f32 %v2641_v3, %v3818_v42  ;;  %1709 = vadd.xlane.f32.xlu1 %v3971_v58 }
 0x266   :  { %v2643_v44 = vpop.f32.mrf.mxu1 }
 0x267   :  { %v2644_v50 = vadd.f32 %v2643_v44, %v2642_v35  ;;  %v3975_v39 = vadd.f32 %v2423_v12, %v1555_v29 }
 0x268   :  { %v1656_v37 = vpop.xlane.xlu0 %1655  ;;  %v2645_v28 = vpop.f32.mrf.mxu1 }
 0x269   :  { %v1556_v57 = vadd.f32 %v2644_v50, %v3818_v42  ;;  %1711 = vadd.xlane.f32.xlu0 %v3975_v39  ;;  %v1720_v63 = vmul.f32 0.0078125, %v1656_v37 }
 0x26a   :  { %v2646_v27 = vpop.f32.mrf.mxu1 }
 0x26b   :  { %v2647_v53 = vadd.f32 %v2646_v27, %v2645_v28  ;;  %v3982_v30 = vadd.f32 %v2424_v41, %v1556_v57  ;;  %v3987_v6 = vsub.f32 %v3821_v26, %v1720_v63 }
 0x26c   :  { %v1658_v38 = vpop.xlane.xlu0 %1657  ;;  %v2648_v54 = vpop.f32.mrf.mxu1 }
 0x26d   :  { %v1557_v1 = vadd.f32 %v2647_v53, %v3818_v42  ;;  %1713 = vadd.xlane.f32.xlu1 %v3982_v30  ;;  %v1721_v60 = vmul.f32 0.0078125, %v1658_v38  ;;  %v1784_v52 = vmul.f32 %v3987_v6, %v3987_v6 }
 0x26e   :  { %v2649_v21 = vpop.f32.mrf.mxu1 }
 0x26f   :  { %v2650_v43 = vadd.f32 %v2649_v21, %v2648_v54  ;;  %v3989_v19 = vadd.f32 %v2427_v46, %v1557_v1  ;;  %v3994_v24 = vsub.f32 %v3825_v25, %v1721_v60 }
 0x271   :  { %v1558_v33 = vadd.f32 %v2650_v43, %v3818_v42  ;;  %1715 = vadd.xlane.f32.xlu0 %v3989_v19  ;;  %v1785_v55 = vmul.f32 %v3994_v24, %v3994_v24 }
 0x273   :  { %v3998_v7 = vadd.f32 %v2428_v17, %v1558_v33 }
 0x275   :  { %v1660_v26 = vpop.xlane.xlu1 %1659  ;;  %1717 = vadd.xlane.f32.xlu1 %v3998_v7  ;;  %1816 = vadd.xlane.f32.xlu0 %v1784_v52 }
 0x276   :  { %v1722_v34 = vmul.f32 0.0078125, %v1660_v26 }
 0x278   :  { %v4004_v42 = vsub.f32 %v3832_v5, %v1722_v34 }
 0x279   :  { %v1662_v47 = vpop.xlane.xlu1 %1661  ;;  %1818 = vadd.xlane.f32.xlu1 %v1785_v55 }
 0x27a   :  { %v1723_v25 = vmul.f32 0.0078125, %v1662_v47  ;;  %v1786_v20 = vmul.f32 %v4004_v42, %v4004_v42 }
 0x27c   :  { %v4009_v16 = vsub.f32 %v3839_v23, %v1723_v25  ;;  %1820 = vadd.xlane.f32.xlu0 %v1786_v20 }
 0x27e   :  { %v1787_v3 = vmul.f32 %v4009_v16, %v4009_v16 }
 0x27f   :  { %v1664_v12 = vpop.xlane.xlu0 %1663 }
 0x280   :  { %v1724_v35 = vmul.f32 0.0078125, %v1664_v12  ;;  %1822 = vadd.xlane.f32.xlu1 %v1787_v3 }
 0x282   :  { %v4014_v29 = vsub.f32 %v3843_v2, %v1724_v35 }
 0x283   :  { %v1666_v5 = vpop.xlane.xlu1 %1665 }
 0x284   :  { %v1725_v44 = vmul.f32 0.0078125, %v1666_v5  ;;  %v1788_v50 = vmul.f32 %v4014_v29, %v4014_v29 }
 0x286   :  { %v4019_v41 = vsub.f32 %v3850_v40, %v1725_v44  ;;  %1824 = vadd.xlane.f32.xlu0 %v1788_v50 }
 0x288   :  { %v1789_v23 = vmul.f32 %v4019_v41, %v4019_v41 }
 0x289   :  { %v1668_v37 = vpop.xlane.xlu0 %1667 }
 0x28a   :  { %v1726_v28 = vmul.f32 0.0078125, %v1668_v37  ;;  %1826 = vadd.xlane.f32.xlu1 %v1789_v23 }
 0x28c   :  { %v4024_v11 = vsub.f32 %v3854_v59, %v1726_v28 }
 0x28d   :  { %v1670_v2 = vpop.xlane.xlu1 %1669 }
 0x28e   :  { %v1727_v57 = vmul.f32 0.0078125, %v1670_v2  ;;  %v1790_v63 = vmul.f32 %v4024_v11, %v4024_v11 }
 0x290   :  { %v4029_v27 = vsub.f32 %v3858_v49, %v1727_v57  ;;  %1828 = vadd.xlane.f32.xlu0 %v1790_v63 }
 0x292   :  { %v1791_v40 = vmul.f32 %v4029_v27, %v4029_v27 }
 0x294   :  { %1830 = vadd.xlane.f32.xlu1 %v1791_v40 }
 0x295   :  { %v1672_v53 = vpop.xlane.xlu0 %1671 }
 0x296   :  { %v1728_v46 = vmul.f32 0.0078125, %v1672_v53 }
 0x298   :  { %v4034_v38 = vsub.f32 %v3865_v31, %v1728_v46 }
 0x299   :  { %v1674_v59 = vpop.xlane.xlu1 %1673 }
 0x29a   :  { %v1729_v54 = vmul.f32 0.0078125, %v1674_v59  ;;  %v1792_v1 = vmul.f32 %v4034_v38, %v4034_v38 }
 0x29c   :  { %v4039_v60 = vsub.f32 %v3872_v9, %v1729_v54  ;;  %1832 = vadd.xlane.f32.xlu0 %v1792_v1 }
 0x29e   :  { %v1793_v49 = vmul.f32 %v4039_v60, %v4039_v60 }
 0x29f   :  { %v1676_v21 = vpop.xlane.xlu0 %1675 }
 0x2a0   :  { %v1730_v43 = vmul.f32 0.0078125, %v1676_v21  ;;  %1834 = vadd.xlane.f32.xlu1 %v1793_v49 }
 0x2a2   :  { %v4044_v17 = vsub.f32 %v3876_v0, %v1730_v43 }
 0x2a3   :  { %v1678_v31 = vpop.xlane.xlu1 %1677 }
 0x2a4   :  { %v1731_v33 = vmul.f32 0.0078125, %v1678_v31  ;;  %v1794_v52 = vmul.f32 %v4044_v17, %v4044_v17 }
 0x2a6   :  { %v4049_v26 = vsub.f32 %v3883_v51, %v1731_v33  ;;  %1836 = vadd.xlane.f32.xlu0 %v1794_v52 }
 0x2a8   :  { %v1795_v9 = vmul.f32 %v4049_v26, %v4049_v26 }
 0x2a9   :  { %v1680_v34 = vpop.xlane.xlu0 %1679 }
 0x2aa   :  { %v1732_v55 = vmul.f32 0.0078125, %v1680_v34  ;;  %1838 = vadd.xlane.f32.xlu1 %v1795_v9 }
 0x2ac   :  { %v4054_v47 = vsub.f32 %v3887_v36, %v1732_v55 }
 0x2ad   :  { %v1682_v0 = vpop.xlane.xlu1 %1681 }
 0x2ae   :  { %v1733_v25 = vmul.f32 0.0078125, %v1682_v0  ;;  %v1796_v20 = vmul.f32 %v4054_v47, %v4054_v47 }
 0x2b0   :  { %v4059_v3 = vsub.f32 %v3894_v61, %v1733_v25  ;;  %1840 = vadd.xlane.f32.xlu0 %v1796_v20 }
 0x2b2   :  { %v1797_v51 = vmul.f32 %v4059_v3, %v4059_v3 }
 0x2b3   :  { %v1684_v12 = vpop.xlane.xlu0 %1683 }
 0x2b4   :  { %v1734_v35 = vmul.f32 0.0078125, %v1684_v12  ;;  %1842 = vadd.xlane.f32.xlu1 %v1797_v51 }
 0x2b6   :  { %v4064_v5 = vsub.f32 %v3898_v8, %v1734_v35 }
 0x2b7   :  { %v1686_v36 = vpop.xlane.xlu1 %1685 }
 0x2b8   :  { %v1735_v44 = vmul.f32 0.0078125, %v1686_v36  ;;  %v1798_v50 = vmul.f32 %v4064_v5, %v4064_v5 }
 0x2ba   :  { %v4069_v23 = vsub.f32 %v3902_v56, %v1735_v44  ;;  %1844 = vadd.xlane.f32.xlu0 %v1798_v50 }
 0x2bc   :  { %v1799_v61 = vmul.f32 %v4069_v23, %v4069_v23 }
 0x2bd   :  { %v1688_v37 = vpop.xlane.xlu0 %1687 }
 0x2be   :  { %1846 = vadd.xlane.f32.xlu1 %v1799_v61  ;;  %v1736_v28 = vmul.f32 0.0078125, %v1688_v37 }
 0x2c0   :  { %v4074_v2 = vsub.f32 %v3909_v22, %v1736_v28 }
 0x2c1   :  { %v1690_v8 = vpop.xlane.xlu1 %1689 }
 0x2c2   :  { %v1737_v57 = vmul.f32 0.0078125, %v1690_v8  ;;  %v1800_v63 = vmul.f32 %v4074_v2, %v4074_v2 }
 0x2c4   :  { %v4079_v40 = vsub.f32 %v3916_v13, %v1737_v57  ;;  %1848 = vadd.xlane.f32.xlu0 %v1800_v63 }
 0x2c6   :  { %v1801_v56 = vmul.f32 %v4079_v40, %v4079_v40 }
 0x2c7   :  { %v1692_v53 = vpop.xlane.xlu0 %1691 }
 0x2c8   :  { %v1738_v46 = vmul.f32 0.0078125, %v1692_v53  ;;  %1850 = vadd.xlane.f32.xlu1 %v1801_v56 }
 0x2ca   :  { %v4084_v59 = vsub.f32 %v3920_v62, %v1738_v46 }
 0x2cb   :  { %v1694_v22 = vpop.xlane.xlu1 %1693 }
 0x2cc   :  { %v1739_v54 = vmul.f32 0.0078125, %v1694_v22  ;;  %v1802_v1 = vmul.f32 %v4084_v59, %v4084_v59 }
 0x2ce   :  { %v4089_v49 = vsub.f32 %v3924_v10, %v1739_v54  ;;  %1852 = vadd.xlane.f32.xlu0 %v1802_v1 }
 0x2d0   :  { %v1803_v13 = vmul.f32 %v4089_v49, %v4089_v49 }
 0x2d2   :  { %v1696_v21 = vpop.xlane.xlu0 %1695  ;;  %1854 = vadd.xlane.f32.xlu1 %v1803_v13 }
 0x2d3   :  { %v1740_v43 = vmul.f32 0.0078125, %v1696_v21 }
 0x2d5   :  { %v4094_v31 = vsub.f32 %v3931_v14, %v1740_v43 }
 0x2d6   :  { %v1698_v62 = vpop.xlane.xlu1 %1697 }
 0x2d7   :  { %v1741_v33 = vmul.f32 0.0078125, %v1698_v62  ;;  %v1804_v52 = vmul.f32 %v4094_v31, %v4094_v31 }
 0x2d9   :  { %v4099_v9 = vsub.f32 %v3938_v18, %v1741_v33  ;;  %1856 = vadd.xlane.f32.xlu0 %v1804_v52 }
 0x2da   :  { %v1700_v10 = vpop.xlane.xlu0 %1699 }
 0x2db   :  { %v1742_v34 = vmul.f32 0.0078125, %v1700_v10  ;;  %v1805_v55 = vmul.f32 %v4099_v9, %v4099_v9 }
 0x2dd   :  { %v4104_v0 = vsub.f32 %v3942_v32, %v1742_v34  ;;  %1858 = vadd.xlane.f32.xlu1 %v1805_v55 }
 0x2de   :  { %v1702_v14 = vpop.xlane.xlu1 %1701 }
 0x2df   :  { %v1743_v25 = vmul.f32 0.0078125, %v1702_v14  ;;  %v1806_v20 = vmul.f32 %v4104_v0, %v4104_v0 }
 0x2e1   :  { %v4109_v51 = vsub.f32 %v3949_v15, %v1743_v25  ;;  %1860 = vadd.xlane.f32.xlu0 %v1806_v20 }
 0x2e2   :  { %v1704_v18 = vpop.xlane.xlu0 %1703 }
 0x2e3   :  { %v1744_v12 = vmul.f32 0.0078125, %v1704_v18  ;;  %v1807_v35 = vmul.f32 %v4109_v51, %v4109_v51 }
 0x2e5   :  { %v4114_v36 = vsub.f32 %v3953_v48, %v1744_v12  ;;  %1862 = vadd.xlane.f32.xlu1 %v1807_v35 }
 0x2e6   :  { %v1706_v32 = vpop.xlane.xlu1 %1705 }
 0x2e7   :  { %v1745_v44 = vmul.f32 0.0078125, %v1706_v32  ;;  %v1808_v50 = vmul.f32 %v4114_v36, %v4114_v36 }
 0x2e9   :  { %v4119_v61 = vsub.f32 %v3960_v4, %v1745_v44  ;;  %1864 = vadd.xlane.f32.xlu0 %v1808_v50 }
 0x2ea   :  { %v1708_v15 = vpop.xlane.xlu0 %1707 }
 0x2eb   :  { %v1746_v37 = vmul.f32 0.0078125, %v1708_v15  ;;  %v1809_v28 = vmul.f32 %v4119_v61, %v4119_v61 }
 0x2ed   :  { %v4124_v8 = vsub.f32 %v3964_v45, %v1746_v37  ;;  %1866 = vadd.xlane.f32.xlu1 %v1809_v28 }
 0x2ee   :  { %v1710_v48 = vpop.xlane.xlu1 %1709 }
 0x2ef   :  { %v1747_v57 = vmul.f32 0.0078125, %v1710_v48  ;;  %v1810_v63 = vmul.f32 %v4124_v8, %v4124_v8 }
 0x2f1   :  { %v4129_v56 = vsub.f32 %v3971_v58, %v1747_v57  ;;  %1868 = vadd.xlane.f32.xlu0 %v1810_v63  ;;  %v4157_v57 = vld [vmem:[%s4312_s5] ss:$0 sm:$0xff] }
 0x2f2   :  { %v1712_v4 = vpop.xlane.xlu0 %1711 }
 0x2f3   :  { %v1748_v53 = vmul.f32 0.0078125, %v1712_v4  ;;  %v1811_v46 = vmul.f32 %v4129_v56, %v4129_v56 }
 0x2f5   :  { %v4134_v22 = vsub.f32 %v3975_v39, %v1748_v53  ;;  %1870 = vadd.xlane.f32.xlu1 %v1811_v46 }
 0x2f6   :  { %v1714_v45 = vpop.xlane.xlu1 %1713 }
 0x2f7   :  { %v1749_v54 = vmul.f32 0.0078125, %v1714_v45  ;;  %v1812_v1 = vmul.f32 %v4134_v22, %v4134_v22 }
 0x2f9   :  { %v4139_v13 = vsub.f32 %v3982_v30, %v1749_v54  ;;  %1872 = vadd.xlane.f32.xlu0 %v1812_v1 }
 0x2fa   :  { %v1716_v58 = vpop.xlane.xlu0 %1715 }
 0x2fb   :  { %v1750_v21 = vmul.f32 0.0078125, %v1716_v58  ;;  %v1813_v43 = vmul.f32 %v4139_v13, %v4139_v13 }
 0x2fd   :  { %v4144_v62 = vsub.f32 %v3989_v19, %v1750_v21  ;;  %1874 = vadd.xlane.f32.xlu1 %v1813_v43 }
 0x2fe   :  { %v1718_v39 = vpop.xlane.xlu1 %1717  ;;  %v1817_v33 = vpop.xlane.xlu0 %1816 }
 0x2ff   :  { %v1751_v52 = vmul.f32 0.0078125, %v1718_v39  ;;  %v1814_v10 = vmul.f32 %v4144_v62, %v4144_v62  ;;  %v1880_v34 = vmul.f32 0.0078125, %v1817_v33 }
 0x301   :  { %v4149_v30 = vsub.f32 %v3998_v7, %v1751_v52  ;;  %1876 = vadd.xlane.f32.xlu0 %v1814_v10  ;;  %v1912_v55 = vadd.f32 1e-12, %v1880_v34 }
 0x302   :  { %v1819_v14 = vpop.xlane.xlu1 %1818 }
 0x303   :  { %v1815_v25 = vmul.f32 %v4149_v30, %v4149_v30  ;;  %2836 = vrsqrt.f32 %v1912_v55  ;;  %v1881_v19 = vmul.f32 0.0078125, %v1819_v14 }
 0x305   :  { %v1821_v20 = vpop.xlane.xlu0 %1820  ;;  %1878 = vadd.xlane.f32.xlu1 %v1815_v25  ;;  %v1913_v18 = vadd.f32 1e-12, %v1881_v19 }
 0x306   :  { %v1882_v12 = vmul.f32 0.0078125, %v1821_v20 }
 0x307   :  { %2838 = vrsqrt.f32 %v1913_v18 }
 0x308   :  { %v1914_v35 = vadd.f32 1e-12, %v1882_v12 }
 0x309   :  { %v1823_v32 = vpop.xlane.xlu1 %1822 }
 0x30a   :  { %2840 = vrsqrt.f32 %v1914_v35  ;;  %v1883_v44 = vmul.f32 0.0078125, %v1823_v32 }
 0x30c   :  { %v1915_v50 = vadd.f32 1e-12, %v1883_v44 }
 0x30e   :  { %2842 = vrsqrt.f32 %v1915_v50 }
 0x30f   :  { %v1825_v7 = vpop.xlane.xlu0 %1824 }
 0x310   :  { %v1884_v15 = vmul.f32 0.0078125, %v1825_v7  ;;  %v2837_v37 = vpop.eup %2836 }
 0x311   :  { %v1976_v28 = vmul.f32 %v2837_v37, %v3987_v6  ;;  %v4164_v6 = vld [vmem:[%s4313_s6] ss:$0 sm:$0xff] }
 0x312   :  { %v1916_v48 = vadd.f32 1e-12, %v1884_v15 }
 0x313   :  { %v1827_v63 = vpop.xlane.xlu1 %1826  ;;  %v2015_v46 = vmul.f32 %v4157_v57, %v1976_v28 }
 0x314   :  { %2844 = vrsqrt.f32 %v1916_v48  ;;  %v1885_v4 = vmul.f32 0.0078125, %v1827_v63  ;;  %v2839_v53 = vpop.eup %2838 }
 0x315   :  { %v1977_v45 = vmul.f32 %v2839_v53, %v3994_v24  ;;  %v2054_v39 = vadd.f32 %v4164_v6, %v2015_v46 }
 0x316   :  { %v1917_v54 = vadd.f32 1e-12, %v1885_v4 }
 0x317   :  { %v2841_v1 = vpop.eup %2840  ;;  %v2016_v58 = vmul.f32 %v4157_v57, %v1977_v45 }
 0x318   :  { %v1978_v21 = vmul.f32 %v2841_v1, %v4004_v42  ;;  %2846 = vrsqrt.f32 %v1917_v54 }
 0x319   :  { %v1829_v43 = vpop.xlane.xlu0 %1828  ;;  %v2055_v33 = vadd.f32 %v4164_v6, %v2016_v58 }
 0x31a   :  { %v1886_v52 = vmul.f32 0.0078125, %v1829_v43  ;;  %v2017_v34 = vmul.f32 %v4157_v57, %v1978_v21 }
 0x31b   :  { %v2843_v10 = vpop.eup %2842  ;;  %v2432_v24 = vpack.c.bf16 %v2055_v33, %v2054_v39 }
 0x31c   :  { %v1979_v55 = vmul.f32 %v2843_v10, %v4009_v16  ;;  %v1918_v14 = vadd.f32 1e-12, %v1886_v52  ;;  %v2056_v20 = vadd.f32 %v4164_v6, %v2017_v34 }
 0x31d   :  { %v1831_v25 = vpop.xlane.xlu1 %1830  ;;  %2433 = vst [vmem:[%s4314_s7] sm:$0xff] %v2432_v24  }
 0x31e   :  { %v2018_v42 = vmul.f32 %v4157_v57, %v1979_v55  ;;  %2848 = vrsqrt.f32 %v1918_v14  ;;  %v1887_v19 = vmul.f32 0.0078125, %v1831_v25 }
 0x320   :  { %v2057_v18 = vadd.f32 %v4164_v6, %v2018_v42  ;;  %v1919_v12 = vadd.f32 1e-12, %v1887_v19 }
 0x321   :  { %v2845_v35 = vpop.eup %2844 }
 0x322   :  { %v2437_v32 = vpack.c.bf16 %v2057_v18, %v2056_v20  ;;  %v1980_v44 = vmul.f32 %v2845_v35, %v4014_v29  ;;  %2850 = vrsqrt.f32 %v1919_v12 }
 0x324   :  { %2524 = vst [vmem:[%s4314_s7 + $0x8] sm:$0xff] %v2437_v32   ;;  %v2019_v7 = vmul.f32 %v4157_v57, %v1980_v44 }
 0x325   :  { %v2847_v16 = vpop.eup %2846  ;;  %v1833_v50 = vpop.xlane.xlu0 %1832 }
 0x326   :  { %v1981_v15 = vmul.f32 %v2847_v16, %v4019_v41  ;;  %v1888_v37 = vmul.f32 0.0078125, %v1833_v50  ;;  %v2058_v4 = vadd.f32 %v4164_v6, %v2019_v7 }
 0x328   :  { %v2020_v28 = vmul.f32 %v4157_v57, %v1981_v15  ;;  %v1920_v48 = vadd.f32 1e-12, %v1888_v37 }
 0x329   :  { %v1835_v63 = vpop.xlane.xlu1 %1834 }
 0x32a   :  { %v2059_v29 = vadd.f32 %v4164_v6, %v2020_v28  ;;  %2852 = vrsqrt.f32 %v1920_v48  ;;  %v1889_v53 = vmul.f32 0.0078125, %v1835_v63 }
 0x32b   :  { %v2849_v46 = vpop.eup %2848 }
 0x32c   :  { %v2442_v45 = vpack.c.bf16 %v2059_v29, %v2058_v4  ;;  %v1982_v54 = vmul.f32 %v2849_v46, %v4024_v11  ;;  %v1921_v1 = vadd.f32 1e-12, %v1889_v53 }
 0x32e   :  { %2525 = vst [vmem:[%s4314_s7 + $0x10] sm:$0xff] %v2442_v45   ;;  %2854 = vrsqrt.f32 %v1921_v1  ;;  %v2021_v21 = vmul.f32 %v4157_v57, %v1982_v54 }
 0x32f   :  { %v2851_v41 = vpop.eup %2850  ;;  %v1837_v58 = vpop.xlane.xlu0 %1836 }
 0x330   :  { %v1983_v43 = vmul.f32 %v2851_v41, %v4029_v27  ;;  %v1890_v39 = vmul.f32 0.0078125, %v1837_v58  ;;  %v2060_v24 = vadd.f32 %v4164_v6, %v2021_v21 }
 0x332   :  { %v2022_v33 = vmul.f32 %v4157_v57, %v1983_v43  ;;  %v1922_v52 = vadd.f32 1e-12, %v1890_v39 }
 0x333   :  { %v1839_v10 = vpop.xlane.xlu1 %1838 }
 0x334   :  { %v2061_v11 = vadd.f32 %v4164_v6, %v2022_v33  ;;  %2856 = vrsqrt.f32 %v1922_v52  ;;  %v1891_v34 = vmul.f32 0.0078125, %v1839_v10 }
 0x336   :  { %v2447_v55 = vpack.c.bf16 %v2061_v11, %v2060_v24  ;;  %v1923_v14 = vadd.f32 1e-12, %v1891_v34 }
 0x337   :  { %v2853_v25 = vpop.eup %2852 }
 0x338   :  { %2526 = vst [vmem:[%s4314_s7 + $0x18] sm:$0xff] %v2447_v55   ;;  %v1984_v27 = vmul.f32 %v2853_v25, %v4034_v38  ;;  %2858 = vrsqrt.f32 %v1923_v14 }
 0x339   :  { %v1841_v42 = vpop.xlane.xlu0 %1840 }
 0x33a   :  { %v1892_v19 = vmul.f32 0.0078125, %v1841_v42  ;;  %v2023_v18 = vmul.f32 %v4157_v57, %v1984_v27 }
 0x33b   :  { %v2855_v20 = vpop.eup %2854 }
 0x33c   :  { %v1985_v12 = vmul.f32 %v2855_v20, %v4039_v60  ;;  %v1924_v35 = vadd.f32 1e-12, %v1892_v19  ;;  %v2062_v50 = vadd.f32 %v4164_v6, %v2023_v18 }
 0x33d   :  { %v1843_v32 = vpop.xlane.xlu1 %1842 }
 0x33e   :  { %v2024_v44 = vmul.f32 %v4157_v57, %v1985_v12  ;;  %2860 = vrsqrt.f32 %v1924_v35  ;;  %v1893_v16 = vmul.f32 0.0078125, %v1843_v32 }
 0x340   :  { %v2063_v7 = vadd.f32 %v4164_v6, %v2024_v44  ;;  %v1925_v15 = vadd.f32 1e-12, %v1893_v16 }
 0x341   :  { %v2857_v38 = vpop.eup %2856 }
 0x342   :  { %v2452_v37 = vpack.c.bf16 %v2063_v7, %v2062_v50  ;;  %v1986_v28 = vmul.f32 %v2857_v38, %v4044_v17  ;;  %2862 = vrsqrt.f32 %v1925_v15 }
 0x343   :  { %v1845_v48 = vpop.xlane.xlu0 %1844 }
 0x344   :  { %2527 = vst [vmem:[%s4314_s7 + $0x20] sm:$0xff] %v2452_v37   ;;  %v1894_v60 = vmul.f32 0.0078125, %v1845_v48  ;;  %v2025_v4 = vmul.f32 %v4157_v57, %v1986_v28 }
 0x345   :  { %v2859_v63 = vpop.eup %2858 }
 0x346   :  { %v1987_v29 = vmul.f32 %v2859_v63, %v4049_v26  ;;  %v1926_v53 = vadd.f32 1e-12, %v1894_v60  ;;  %v2064_v17 = vadd.f32 %v4164_v6, %v2025_v4 }
 0x347   :  { %v1847_v46 = vpop.xlane.xlu1 %1846 }
 0x348   :  { %v2026_v45 = vmul.f32 %v4157_v57, %v1987_v29  ;;  %2864 = vrsqrt.f32 %v1926_v53  ;;  %v1895_v54 = vmul.f32 0.0078125, %v1847_v46 }
 0x34a   :  { %v2065_v1 = vadd.f32 %v4164_v6, %v2026_v45  ;;  %v1927_v41 = vadd.f32 1e-12, %v1895_v54 }
 0x34b   :  { %v2861_v58 = vpop.eup %2860 }
 0x34c   :  { %v2457_v21 = vpack.c.bf16 %v2065_v1, %v2064_v17  ;;  %v1988_v43 = vmul.f32 %v2861_v58, %v4054_v47  ;;  %2866 = vrsqrt.f32 %v1927_v41 }
 0x34d   :  { %v1849_v26 = vpop.xlane.xlu0 %1848 }
 0x34e   :  { %2528 = vst [vmem:[%s4314_s7 + $0x28] sm:$0xff] %v2457_v21   ;;  %v1896_v33 = vmul.f32 0.0078125, %v1849_v26  ;;  %v2027_v52 = vmul.f32 %v4157_v57, %v1988_v43 }
 0x34f   :  { %v2863_v39 = vpop.eup %2862 }
 0x350   :  { %v1989_v10 = vmul.f32 %v2863_v39, %v4059_v3  ;;  %v1928_v24 = vadd.f32 1e-12, %v1896_v33  ;;  %v2066_v47 = vadd.f32 %v4164_v6, %v2027_v52 }
 0x351   :  { %v1851_v34 = vpop.xlane.xlu1 %1850 }
 0x352   :  { %v2028_v11 = vmul.f32 %v4157_v57, %v1989_v10  ;;  %2868 = vrsqrt.f32 %v1928_v24  ;;  %v1897_v55 = vmul.f32 0.0078125, %v1851_v34 }
 0x354   :  { %v2067_v14 = vadd.f32 %v4164_v6, %v2028_v11  ;;  %v1929_v27 = vadd.f32 1e-12, %v1897_v55 }
 0x355   :  { %v2865_v25 = vpop.eup %2864 }
 0x356   :  { %v2462_v42 = vpack.c.bf16 %v2067_v14, %v2066_v47  ;;  %v1990_v19 = vmul.f32 %v2865_v25, %v4064_v5  ;;  %2870 = vrsqrt.f32 %v1929_v27 }
 0x357   :  { %v1853_v3 = vpop.xlane.xlu0 %1852 }
 0x358   :  { %2529 = vst [vmem:[%s4314_s7 + $0x30] sm:$0xff] %v2462_v42   ;;  %v1898_v18 = vmul.f32 0.0078125, %v1853_v3  ;;  %v2029_v12 = vmul.f32 %v4157_v57, %v1990_v19 }
 0x359   :  { %v2867_v20 = vpop.eup %2866 }
 0x35a   :  { %v1991_v35 = vmul.f32 %v2867_v20, %v4069_v23  ;;  %v1930_v32 = vadd.f32 1e-12, %v1898_v18  ;;  %v2068_v5 = vadd.f32 %v4164_v6, %v2029_v12 }
 0x35b   :  { %v1855_v16 = vpop.xlane.xlu1 %1854 }
 0x35c   :  { %v2030_v44 = vmul.f32 %v4157_v57, %v1991_v35  ;;  %2872 = vrsqrt.f32 %v1930_v32  ;;  %v1899_v50 = vmul.f32 0.0078125, %v1855_v16 }
 0x35e   :  { %v2069_v7 = vadd.f32 %v4164_v6, %v2030_v44  ;;  %v1931_v15 = vadd.f32 1e-12, %v1899_v50 }
 0x35f   :  { %v2869_v38 = vpop.eup %2868 }
 0x360   :  { %v2467_v37 = vpack.c.bf16 %v2069_v7, %v2068_v5  ;;  %v1992_v28 = vmul.f32 %v2869_v38, %v4074_v2  ;;  %2874 = vrsqrt.f32 %v1931_v15 }
 0x362   :  { %2530 = vst [vmem:[%s4314_s7 + $0x38] sm:$0xff] %v2467_v37   ;;  %v1857_v23 = vpop.xlane.xlu0 %1856  ;;  %v2031_v63 = vmul.f32 %v4157_v57, %v1992_v28 }
 0x363   :  { %v2871_v48 = vpop.eup %2870  ;;  %v1900_v60 = vmul.f32 0.0078125, %v1857_v23 }
 0x364   :  { %v1993_v4 = vmul.f32 %v2871_v48, %v4079_v40  ;;  %v2070_v2 = vadd.f32 %v4164_v6, %v2031_v63 }
 0x365   :  { %v1932_v29 = vadd.f32 1e-12, %v1900_v60 }
 0x366   :  { %v2032_v53 = vmul.f32 %v4157_v57, %v1993_v4  ;;  %v1859_v46 = vpop.xlane.xlu1 %1858 }
 0x367   :  { %2876 = vrsqrt.f32 %v1932_v29  ;;  %v1901_v45 = vmul.f32 0.0078125, %v1859_v46 }
 0x368   :  { %v2071_v54 = vadd.f32 %v4164_v6, %v2032_v53 }
 0x369   :  { %v2873_v17 = vpop.eup %2872  ;;  %v1933_v1 = vadd.f32 1e-12, %v1901_v45 }
 0x36a   :  { %v2472_v41 = vpack.c.bf16 %v2071_v54, %v2070_v2  ;;  %v1994_v58 = vmul.f32 %v2873_v17, %v4084_v59  ;;  %v1861_v21 = vpop.xlane.xlu0 %1860 }
 0x36b   :  { %2878 = vrsqrt.f32 %v1933_v1  ;;  %v1902_v43 = vmul.f32 0.0078125, %v1861_v21 }
 0x36c   :  { %2531 = vst [vmem:[%s4314_s7 + $0x40] sm:$0xff] %v2472_v41   ;;  %v2033_v39 = vmul.f32 %v4157_v57, %v1994_v58 }
 0x36d   :  { %v2875_v40 = vpop.eup %2874  ;;  %v1934_v26 = vadd.f32 1e-12, %v1902_v43 }
 0x36e   :  { %v1995_v33 = vmul.f32 %v2875_v40, %v4089_v49  ;;  %v1863_v52 = vpop.xlane.xlu1 %1862  ;;  %v2072_v59 = vadd.f32 %v4164_v6, %v2033_v39 }
 0x36f   :  { %2880 = vrsqrt.f32 %v1934_v26  ;;  %v1903_v10 = vmul.f32 0.0078125, %v1863_v52 }
 0x370   :  { %v2034_v24 = vmul.f32 %v4157_v57, %v1995_v33 }
 0x371   :  { %v1935_v11 = vadd.f32 1e-12, %v1903_v10 }
 0x372   :  { %v2073_v34 = vadd.f32 %v4164_v6, %v2034_v24  ;;  %v1865_v55 = vpop.xlane.xlu0 %1864 }
 0x373   :  { %2882 = vrsqrt.f32 %v1935_v11  ;;  %v1904_v47 = vmul.f32 0.0078125, %v1865_v55 }
 0x374   :  { %v2877_v14 = vpop.eup %2876  ;;  %v2477_v25 = vpack.c.bf16 %v2073_v34, %v2072_v59 }
 0x375   :  { %v1996_v27 = vmul.f32 %v2877_v14, %v4094_v31  ;;  %v1936_v42 = vadd.f32 1e-12, %v1904_v47 }
 0x376   :  { %2532 = vst [vmem:[%s4314_s7 + $0x48] sm:$0xff] %v2477_v25   ;;  %v1867_v49 = vpop.xlane.xlu1 %1866 }
 0x377   :  { %2884 = vrsqrt.f32 %v1936_v42  ;;  %v1905_v19 = vmul.f32 0.0078125, %v1867_v49  ;;  %v2035_v20 = vmul.f32 %v4157_v57, %v1996_v27 }
 0x378   :  { %v2879_v3 = vpop.eup %2878 }
 0x379   :  { %v1997_v18 = vmul.f32 %v2879_v3, %v4099_v9  ;;  %v1937_v12 = vadd.f32 1e-12, %v1905_v19  ;;  %v2074_v16 = vadd.f32 %v4164_v6, %v2035_v20 }
 0x37a   :  { %v1869_v35 = vpop.xlane.xlu0 %1868 }
 0x37b   :  { %v2036_v32 = vmul.f32 %v4157_v57, %v1997_v18  ;;  %2886 = vrsqrt.f32 %v1937_v12  ;;  %v1906_v44 = vmul.f32 0.0078125, %v1869_v35 }
 0x37c   :  { %v2881_v31 = vpop.eup %2880 }
 0x37d   :  { %v2075_v50 = vadd.f32 %v4164_v6, %v2036_v32  ;;  %v1998_v5 = vmul.f32 %v2881_v31, %v4104_v0  ;;  %v1938_v7 = vadd.f32 1e-12, %v1906_v44 }
 0x37e   :  { %v1871_v15 = vpop.xlane.xlu1 %1870 }
 0x37f   :  { %v2482_v38 = vpack.c.bf16 %v2075_v50, %v2074_v16  ;;  %2888 = vrsqrt.f32 %v1938_v7  ;;  %v1907_v37 = vmul.f32 0.0078125, %v1871_v15  ;;  %v2037_v9 = vmul.f32 %v4157_v57, %v1998_v5 }
 0x380   :  { %v2883_v28 = vpop.eup %2882 }
 0x381   :  { %2533 = vst [vmem:[%s4314_s7 + $0x50] sm:$0xff] %v2482_v38   ;;  %v1999_v23 = vmul.f32 %v2883_v28, %v4109_v51  ;;  %v1939_v48 = vadd.f32 1e-12, %v1907_v37  ;;  %v2076_v29 = vadd.f32 %v4164_v6, %v2037_v9 }
 0x382   :  { %v1873_v60 = vpop.xlane.xlu0 %1872 }
 0x383   :  { %v2038_v63 = vmul.f32 %v4157_v57, %v1999_v23  ;;  %2890 = vrsqrt.f32 %v1939_v48  ;;  %v1908_v0 = vmul.f32 0.0078125, %v1873_v60 }
 0x384   :  { %v2885_v4 = vpop.eup %2884 }
 0x385   :  { %v2077_v53 = vadd.f32 %v4164_v6, %v2038_v63  ;;  %v2000_v46 = vmul.f32 %v2885_v4, %v4114_v36  ;;  %v1940_v45 = vadd.f32 1e-12, %v1908_v0 }
 0x386   :  { %v1875_v2 = vpop.xlane.xlu1 %1874 }
 0x387   :  { %v2487_v54 = vpack.c.bf16 %v2077_v53, %v2076_v29  ;;  %2892 = vrsqrt.f32 %v1940_v45  ;;  %v1909_v17 = vmul.f32 0.0078125, %v1875_v2  ;;  %v2039_v51 = vmul.f32 %v4157_v57, %v2000_v46 }
 0x388   :  { %v2887_v1 = vpop.eup %2886 }
 0x389   :  { %2534 = vst [vmem:[%s4314_s7 + $0x58] sm:$0xff] %v2487_v54   ;;  %v2001_v41 = vmul.f32 %v2887_v1, %v4119_v61  ;;  %v1941_v58 = vadd.f32 1e-12, %v1909_v17  ;;  %v2078_v26 = vadd.f32 %v4164_v6, %v2039_v51 }
 0x38a   :  { %v1877_v21 = vpop.xlane.xlu0 %1876 }
 0x38b   :  { %v2040_v43 = vmul.f32 %v4157_v57, %v2001_v41  ;;  %2894 = vrsqrt.f32 %v1941_v58  ;;  %v1910_v36 = vmul.f32 0.0078125, %v1877_v21 }
 0x38c   :  { %v2889_v40 = vpop.eup %2888 }
 0x38d   :  { %v2079_v39 = vadd.f32 %v4164_v6, %v2040_v43  ;;  %v2002_v33 = vmul.f32 %v2889_v40, %v4124_v8  ;;  %v1942_v52 = vadd.f32 1e-12, %v1910_v36 }
 0x38e   :  { %v1879_v10 = vpop.xlane.xlu1 %1878 }
 0x38f   :  { %v2492_v24 = vpack.c.bf16 %v2079_v39, %v2078_v26  ;;  %2896 = vrsqrt.f32 %v1942_v52  ;;  %v1911_v11 = vmul.f32 0.0078125, %v1879_v10  ;;  %v2041_v61 = vmul.f32 %v4157_v57, %v2002_v33 }
 0x390   :  { %v2891_v59 = vpop.eup %2890 }
 0x391   :  { %2535 = vst [vmem:[%s4314_s7 + $0x60] sm:$0xff] %v2492_v24   ;;  %v2003_v34 = vmul.f32 %v2891_v59, %v4129_v56  ;;  %v1943_v55 = vadd.f32 1e-12, %v1911_v11  ;;  %v2080_v8 = vadd.f32 %v4164_v6, %v2041_v61 }
 0x393   :  { %v2042_v47 = vmul.f32 %v4157_v57, %v2003_v34  ;;  %2898 = vrsqrt.f32 %v1943_v55 }
 0x394   :  { %v2893_v14 = vpop.eup %2892 }
 0x395   :  { %v2081_v25 = vadd.f32 %v4164_v6, %v2042_v47  ;;  %v2004_v27 = vmul.f32 %v2893_v14, %v4134_v22 }
 0x397   :  { %v2497_v42 = vpack.c.bf16 %v2081_v25, %v2080_v8  ;;  %v2043_v19 = vmul.f32 %v4157_v57, %v2004_v27 }
 0x398   :  { %v2895_v49 = vpop.eup %2894 }
 0x399   :  { %2536 = vst [vmem:[%s4314_s7 + $0x68] sm:$0xff] %v2497_v42   ;;  %v2005_v56 = vmul.f32 %v2895_v49, %v4139_v13  ;;  %v2082_v18 = vadd.f32 %v4164_v6, %v2043_v19 }
 0x39b   :  { %v2044_v3 = vmul.f32 %v4157_v57, %v2005_v56 }
 0x39c   :  { %v2897_v20 = vpop.eup %2896 }
 0x39d   :  { %v2083_v12 = vadd.f32 %v4164_v6, %v2044_v3  ;;  %v2006_v35 = vmul.f32 %v2897_v20, %v4144_v62 }
 0x39f   :  { %v2502_v22 = vpack.c.bf16 %v2083_v12, %v2082_v18  ;;  %v2045_v44 = vmul.f32 %v4157_v57, %v2006_v35 }
 0x3a0   :  { %v2899_v32 = vpop.eup %2898 }
 0x3a1   :  { %2537 = vst [vmem:[%s4314_s7 + $0x70] sm:$0xff] %v2502_v22   ;;  %v2007_v31 = vmul.f32 %v2899_v32, %v4149_v30  ;;  %v2084_v16 = vadd.f32 %v4164_v6, %v2045_v44 }
 0x3a3   :  { %v2046_v13 = vmul.f32 %v4157_v57, %v2007_v31 }
 0x3a5   :  { %v2085_v50 = vadd.f32 %v4164_v6, %v2046_v13 }
 0x3a7   :  { %v2507_v5 = vpack.c.bf16 %v2085_v50, %v2084_v16 }
 0x3a9   :  { %2538 = vst [vmem:[%s4314_s7 + $0x78] sm:$0xff] %v2507_v5  }

</bundles_post_ra>
